<compile_context>
chip_gen: v5e
topology: v5e:2x2
jax: 0.10.0
libtpu: 0.0.40
codegen_flags: <defaults>
</compile_context>

<pallas_src>
import functools
import math

import jax
import jax.numpy as jnp
from jax.experimental import pallas as pl
from jax.experimental.pallas import tpu as pltpu


# ----------------------------------------------------------------------------
# Fused kernel: entire PancModel forward for one image
# ----------------------------------------------------------------------------
def _fused_forward_kernel(*refs, ksizes, w_full, h0):
    """refs = (x_ref, w_1, b_1, ..., w_L, b_L, out_ref, fbuf)

      x_ref : (h0*w_full + k1-1, 1) f32   row-flattened, zero-padded image
      w_1   : (k1*k1, 1, F)         f32   tap-major layer-1 weights
      w_i   : (k*k, 2F, Cout)       bf16  tap-major fold-layer weights (i >= 2)
      b_i   : (1, Cout)             f32
      out   : (n_cols, classnum)    f32   max-pooled logits
      fbuf  : VMEM (rows, 2F)       bf16  CReLU of previous activation + pad rows
    """
    n_layers = len(ksizes)
    x_ref = refs[0]
    w_refs = [refs[1 + 2 * i] for i in range(n_layers)]
    b_refs = [refs[2 + 2 * i] for i in range(n_layers)]
    out_ref = refs[1 + 2 * n_layers]
    fbuf = refs[2 + 2 * n_layers]

    # ---- layer 1: 5x5 conv, Cin=1 -> F, rank-1 taps on the VPU (K=1 would waste
    # the MXU).  TODO(synk): a width-on-lanes layout would avoid the 1/128-lane use
    # of the input slices; negligible at these sizes.
    k1 = ksizes[0]
    h = h0 - (k1 - 1)
    w_valid = w_full - (k1 - 1)
    rows_out = h * w_full
    acc = jnp.zeros((rows_out, w_refs[0].shape[-1]), jnp.float32)
    tap = 0
    for kh in range(k1):
        for kw in range(k1):
            off = kh * w_full + kw
            win = x_ref[off:off + rows_out, :]           # (rows_out, 1) f32
            acc = acc + win * w_refs[0][tap]             # bcast (1, F) -> VPU FMA
            tap += 1
    acc = acc + b_refs[0][...]

    # ---- layers 2..L: Fold (CReLU) of the previous activation into fbuf once,
    # then the valid k x k conv as k*k shifted-slice K=2F MXU matmuls.
    for li in range(1, n_layers):
        k = ksizes[li]
        rows_in = h * w_full
        pos = jnp.maximum(acc, 0).astype(fbuf.dtype)
        neg = jnp.maximum(-acc, 0).astype(fbuf.dtype)
        fbuf[0:rows_in, :] = jnp.concatenate([pos, neg], axis=1)   # (rows_in, 2F)
        # Zero the k-1 overreach rows read by the right-edge (invalid-column) taps.
        fbuf[rows_in:rows_in + (k - 1), :] = jnp.zeros(
            (k - 1, fbuf.shape[1]), fbuf.dtype)

        h = h - (k - 1)
        w_valid = w_valid - (k - 1)
        rows_out = h * w_full
        cout = w_refs[li].shape[-1]
        acc = jnp.zeros((rows_out, cout), jnp.float32)
        tap = 0
        for kh in range(k):
            for kw in range(k):
                off = kh * w_full + kw
                acc = acc + jnp.dot(fbuf[off:off + rows_out, :], w_refs[li][tap],
                                    preferred_element_type=jnp.float32)
                tap += 1
        acc = acc + b_refs[li][...]

    # ---- F.max_pool2d(x, kernel_size=h, stride=1) over the valid h x w_valid map.
    # Only valid columns (w < w_valid) are read; the garbage right-edge columns
    # carried by the full-width layout never reach the pooled output.
    # TODO(synk): assumes w_valid >= h (true for square inputs; PyTorch itself
    # errors otherwise).
    n_cols = w_valid - h + 1
    cols = []
    for j in range(n_cols):
        m = None
        for hi in range(h):
            blk = acc[hi * w_full + j: hi * w_full + j + h, :]     # (h, classnum)
            m = blk if m is None else jnp.maximum(m, blk)
        cols.append(jnp.max(m, axis=0, keepdims=True))             # (1, classnum)
    out_ref[...] = cols[0] if n_cols == 1 else jnp.concatenate(cols, axis=0)


# ----------------------------------------------------------------------------
# Wrapper: weight packing + one pallas_call over the batch
# ----------------------------------------------------------------------------
def panc_model_forward(x_nchw, params):
    """x: (N, 1, H, W) f32 -> (N, classnum, 1, W'-H'+1)  (== (N,classnum,1,1) square)."""
    n, cin0, h0, w0 = x_nchw.shape
    assert cin0 == 1
    n_layers = len(params)
    ksizes = tuple([5] + [3] * (n_layers - 1))

    h_fin = h0 - sum(k - 1 for k in ksizes)
    w_fin = w0 - sum(k - 1 for k in ksizes)
    assert h_fin >= 1 and w_fin >= h_fin, (h_fin, w_fin)
    n_cols = w_fin - h_fin + 1
    classnum = params[-1][0].shape[0]
    num_filter = params[0][0].shape[0]

    # Pack weights tap-major with Cout on lanes: (Cout, K, k, k) -> (k*k, K, Cout).
    # Fold-layer K order is [relu(x) channels | relu(-x) channels], matching the
    # CReLU concat in the kernel.
    packed = []
    for i, (w, b) in enumerate(params):
        k = ksizes[i]
        cout, k_in = w.shape[0], w.shape[1]
        assert w.shape == (cout, k_in, k, k)
        wt = jnp.transpose(w, (2, 3, 1, 0)).reshape(k * k, k_in, cout)
        wt = wt.astype(jnp.float32 if i == 0 else jnp.bfloat16)    # layer 1 = VPU
        packed.append((wt, b.reshape(1, cout).astype(jnp.float32)))

    # Row-flatten the image and zero-pad k1-1 rows for the right-edge 5x5 taps.
    pad0 = ksizes[0] - 1
    x_flat = x_nchw.reshape(n, h0 * w0, 1).astype(jnp.float32)
    x_flat = jnp.pad(x_flat, ((0, 0), (0, pad0), (0, 0)))
    rows_x = h0 * w0 + pad0

    # Fold-buffer rows: max over fold layers of (rows_in + k - 1), rounded up to 8.
    fbuf_rows, hh = 8, h0 - (ksizes[0] - 1)
    for i in range(1, n_layers):
        fbuf_rows = max(fbuf_rows, hh * w0 + ksizes[i] - 1)
        hh -= ksizes[i] - 1
    fbuf_rows = -(-fbuf_rows // 8) * 8

    # Whole-image working set must fit comfortably in VMEM (true for this config).
    # TODO(synk): add a row-tiled multi-block path for large images.
    wbytes = sum(wt.size * wt.dtype.itemsize + bt.size * 4 for wt, bt in packed)
    vmem_est = 2 * (wbytes + rows_x * 4) + fbuf_rows * 2 * num_filter * 2
    assert vmem_est < 8 * 1024 * 1024, vmem_est

    in_specs = [pl.BlockSpec((None, rows_x, 1), lambda i: (i, 0, 0))]
    inputs = [x_flat]
    for wt, bt in packed:
        in_specs.append(pl.BlockSpec(wt.shape, lambda i: (0, 0, 0)))
        in_specs.append(pl.BlockSpec(bt.shape, lambda i: (0, 0)))
        inputs += [wt, bt]

    kernel = functools.partial(_fused_forward_kernel, ksizes=ksizes,
                               w_full=w0, h0=h0)
    out = pl.pallas_call(
        kernel,
        out_shape=jax.ShapeDtypeStruct((n, n_cols, classnum), jnp.float32),
        grid=(n,),
        in_specs=in_specs,
        out_specs=pl.BlockSpec((None, n_cols, classnum), lambda i: (i, 0, 0)),
        scratch_shapes=[pltpu.VMEM((fbuf_rows, 2 * num_filter), jnp.bfloat16)],
        compiler_params=pltpu.CompilerParams(
            dimension_semantics=("parallel",)),    # batch -> both TCs on v7x
    )(*inputs)

    # (N, n_cols, C) -> (N, C, 1, n_cols), matching the PyTorch output layout.
    return jnp.transpose(out, (0, 2, 1))[:, :, None, :]


# ----------------------------------------------------------------------------
# Parameters (synthetic, deterministic, torch-like uniform init)
# ----------------------------------------------------------------------------
def conv_params(key, cout, cin, k):
    fan_in = cin * k * k
    bound = 1.0 / math.sqrt(fan_in)
    kw_, kb_ = jax.random.split(key)
    w = jax.random.uniform(kw_, (cout, cin, k, k), jnp.float32, -bound, bound)
    b = jax.random.uniform(kb_, (cout,), jnp.float32, -bound, bound)
    return w, b


def init_params(key, layers, classnum, num_filter):
    params = []
    key, k1 = jax.random.split(key)
    params.append(conv_params(k1, num_filter, 1, 5))                  # conv_1
    for _ in range(layers - 2):                                       # conv_2..L-1
        key, ki = jax.random.split(key)
        params.append(conv_params(ki, num_filter, 2 * num_filter, 3))
    key, kl = jax.random.split(key)
    params.append(conv_params(kl, classnum, 2 * num_filter, 3))       # conv_L
    return params


# ----------------------------------------------------------------------------
if __name__ == "__main__":
    # Small config consistent with the module defaults:
    # 4 conv layers (5x5 then 3x3 x3), classnum=2, num_filter=64, 16x16 input.
    layers, classnum, num_filter, filter_scale = 4, 2, 64, 1
    num_filter = math.ceil(num_filter * filter_scale)

    key = jax.random.PRNGKey(0)
    kp, kx = jax.random.split(key)
    params = init_params(kp, layers, classnum, num_filter)

    # Spatial: 16 -> 12 -> 10 -> 8 -> 6 -> max_pool(6) -> 1x1.
    x = jax.random.normal(kx, (2, 1, 16, 16), jnp.float32)            # NCHW

    fwd = jax.jit(panc_model_forward)
    y = jax.block_until_ready(fwd(x, params))

    assert y.shape == (2, classnum, 1, 1), y.shape
    assert bool(jnp.all(jnp.isfinite(y)))
    print("KERNEL_OK")
</pallas_src>

<mosaic_0001>
module attributes {stable_mosaic.version = 11 : i64} {
  func.func @_fused_forward_kernel(%arg0: i32, %arg1: memref<1x260x1xf32, #tpu.memory_space<vmem>>, %arg2: memref<25x1x64xf32, #tpu.memory_space<vmem>>, %arg3: memref<1x64xf32, #tpu.memory_space<vmem>>, %arg4: memref<9x128x64xbf16, #tpu.memory_space<vmem>>, %arg5: memref<1x64xf32, #tpu.memory_space<vmem>>, %arg6: memref<9x128x64xbf16, #tpu.memory_space<vmem>>, %arg7: memref<1x64xf32, #tpu.memory_space<vmem>>, %arg8: memref<9x128x2xbf16, #tpu.memory_space<vmem>>, %arg9: memref<1x2xf32, #tpu.memory_space<vmem>>, %arg10: memref<1x1x2xf32, #tpu.memory_space<vmem>>, %arg11: memref<200x128xbf16, #tpu.memory_space<vmem>>) attributes {dimension_semantics = [#tpu.dimension_semantics<parallel>], iteration_bounds = array<i64: 2>, scalar_prefetch = 0 : i64, scratch_operands = 1 : i64, tpu.core_type = #tpu.core_type<tc>, window_params = [{transform_indices = @transform_0, window_bounds = array<i64: 1, 260, 1>}, {pipeline_mode = #tpu.pipeline_mode<synchronous>, transform_indices = @transform_1, window_bounds = array<i64: 25, 1, 64>}, {pipeline_mode = #tpu.pipeline_mode<synchronous>, transform_indices = @transform_2, window_bounds = array<i64: 1, 64>}, {pipeline_mode = #tpu.pipeline_mode<synchronous>, transform_indices = @transform_3, window_bounds = array<i64: 9, 128, 64>}, {pipeline_mode = #tpu.pipeline_mode<synchronous>, transform_indices = @transform_4, window_bounds = array<i64: 1, 64>}, {pipeline_mode = #tpu.pipeline_mode<synchronous>, transform_indices = @transform_5, window_bounds = array<i64: 9, 128, 64>}, {pipeline_mode = #tpu.pipeline_mode<synchronous>, transform_indices = @transform_6, window_bounds = array<i64: 1, 64>}, {pipeline_mode = #tpu.pipeline_mode<synchronous>, transform_indices = @transform_7, window_bounds = array<i64: 9, 128, 2>}, {pipeline_mode = #tpu.pipeline_mode<synchronous>, transform_indices = @transform_8, window_bounds = array<i64: 1, 2>}, {transform_indices = @transform_9, window_bounds = array<i64: 1, 1, 2>}]} {
    %cst = arith.constant 0.000000e+00 : f32
    %0 = vector.broadcast %cst : f32 to vector<192x64xf32>
    %c0 = arith.constant 0 : index
    %c0_0 = arith.constant 0 : index
    %c0_1 = arith.constant 0 : index
    %1 = vector.load %arg1[%c0, %c0_0, %c0_1] : memref<1x260x1xf32, #tpu.memory_space<vmem>>, vector<1x192x1xf32>
    %2 = vector.shape_cast %1 : vector<1x192x1xf32> to vector<192x1xf32>
    %c0_2 = arith.constant 0 : index
    %c0_3 = arith.constant 0 : index
    %c0_4 = arith.constant 0 : index
    %3 = vector.load %arg2[%c0_2, %c0_3, %c0_4] : memref<25x1x64xf32, #tpu.memory_space<vmem>>, vector<1x1x64xf32>
    %4 = vector.shape_cast %3 : vector<1x1x64xf32> to vector<1x64xf32>
    %5 = vector.broadcast %2 : vector<192x1xf32> to vector<192x64xf32>
    %6 = vector.broadcast %4 : vector<1x64xf32> to vector<192x64xf32>
    %7 = arith.mulf %5, %6 : vector<192x64xf32>
    %8 = arith.addf %0, %7 : vector<192x64xf32>
    %c0_5 = arith.constant 0 : index
    %c1 = arith.constant 1 : index
    %c0_6 = arith.constant 0 : index
    %9 = vector.load %arg1[%c0_5, %c1, %c0_6] : memref<1x260x1xf32, #tpu.memory_space<vmem>>, vector<1x192x1xf32>
    %10 = vector.shape_cast %9 : vector<1x192x1xf32> to vector<192x1xf32>
    %c1_7 = arith.constant 1 : index
    %c0_8 = arith.constant 0 : index
    %c0_9 = arith.constant 0 : index
    %11 = vector.load %arg2[%c1_7, %c0_8, %c0_9] : memref<25x1x64xf32, #tpu.memory_space<vmem>>, vector<1x1x64xf32>
    %12 = vector.shape_cast %11 : vector<1x1x64xf32> to vector<1x64xf32>
    %13 = vector.broadcast %10 : vector<192x1xf32> to vector<192x64xf32>
    %14 = vector.broadcast %12 : vector<1x64xf32> to vector<192x64xf32>
    %15 = arith.mulf %13, %14 : vector<192x64xf32>
    %16 = arith.addf %8, %15 : vector<192x64xf32>
    %c0_10 = arith.constant 0 : index
    %c2 = arith.constant 2 : index
    %c0_11 = arith.constant 0 : index
    %17 = vector.load %arg1[%c0_10, %c2, %c0_11] : memref<1x260x1xf32, #tpu.memory_space<vmem>>, vector<1x192x1xf32>
    %18 = vector.shape_cast %17 : vector<1x192x1xf32> to vector<192x1xf32>
    %c2_12 = arith.constant 2 : index
    %c0_13 = arith.constant 0 : index
    %c0_14 = arith.constant 0 : index
    %19 = vector.load %arg2[%c2_12, %c0_13, %c0_14] : memref<25x1x64xf32, #tpu.memory_space<vmem>>, vector<1x1x64xf32>
    %20 = vector.shape_cast %19 : vector<1x1x64xf32> to vector<1x64xf32>
    %21 = vector.broadcast %18 : vector<192x1xf32> to vector<192x64xf32>
    %22 = vector.broadcast %20 : vector<1x64xf32> to vector<192x64xf32>
    %23 = arith.mulf %21, %22 : vector<192x64xf32>
    %24 = arith.addf %16, %23 : vector<192x64xf32>
    %c0_15 = arith.constant 0 : index
    %c3 = arith.constant 3 : index
    %c0_16 = arith.constant 0 : index
    %25 = vector.load %arg1[%c0_15, %c3, %c0_16] : memref<1x260x1xf32, #tpu.memory_space<vmem>>, vector<1x192x1xf32>
    %26 = vector.shape_cast %25 : vector<1x192x1xf32> to vector<192x1xf32>
    %c3_17 = arith.constant 3 : index
    %c0_18 = arith.constant 0 : index
    %c0_19 = arith.constant 0 : index
    %27 = vector.load %arg2[%c3_17, %c0_18, %c0_19] : memref<25x1x64xf32, #tpu.memory_space<vmem>>, vector<1x1x64xf32>
    %28 = vector.shape_cast %27 : vector<1x1x64xf32> to vector<1x64xf32>
    %29 = vector.broadcast %26 : vector<192x1xf32> to vector<192x64xf32>
    %30 = vector.broadcast %28 : vector<1x64xf32> to vector<192x64xf32>
    %31 = arith.mulf %29, %30 : vector<192x64xf32>
    %32 = arith.addf %24, %31 : vector<192x64xf32>
    %c0_20 = arith.constant 0 : index
    %c4 = arith.constant 4 : index
    %c0_21 = arith.constant 0 : index
    %33 = vector.load %arg1[%c0_20, %c4, %c0_21] : memref<1x260x1xf32, #tpu.memory_space<vmem>>, vector<1x192x1xf32>
    %34 = vector.shape_cast %33 : vector<1x192x1xf32> to vector<192x1xf32>
    %c4_22 = arith.constant 4 : index
    %c0_23 = arith.constant 0 : index
    %c0_24 = arith.constant 0 : index
    %35 = vector.load %arg2[%c4_22, %c0_23, %c0_24] : memref<25x1x64xf32, #tpu.memory_space<vmem>>, vector<1x1x64xf32>
    %36 = vector.shape_cast %35 : vector<1x1x64xf32> to vector<1x64xf32>
    %37 = vector.broadcast %34 : vector<192x1xf32> to vector<192x64xf32>
    %38 = vector.broadcast %36 : vector<1x64xf32> to vector<192x64xf32>
    %39 = arith.mulf %37, %38 : vector<192x64xf32>
    %40 = arith.addf %32, %39 : vector<192x64xf32>
    %c0_25 = arith.constant 0 : index
    %c16 = arith.constant 16 : index
    %c0_26 = arith.constant 0 : index
    %41 = vector.load %arg1[%c0_25, %c16, %c0_26] : memref<1x260x1xf32, #tpu.memory_space<vmem>>, vector<1x192x1xf32>
    %42 = vector.shape_cast %41 : vector<1x192x1xf32> to vector<192x1xf32>
    %c5 = arith.constant 5 : index
    %c0_27 = arith.constant 0 : index
    %c0_28 = arith.constant 0 : index
    %43 = vector.load %arg2[%c5, %c0_27, %c0_28] : memref<25x1x64xf32, #tpu.memory_space<vmem>>, vector<1x1x64xf32>
    %44 = vector.shape_cast %43 : vector<1x1x64xf32> to vector<1x64xf32>
    %45 = vector.broadcast %42 : vector<192x1xf32> to vector<192x64xf32>
    %46 = vector.broadcast %44 : vector<1x64xf32> to vector<192x64xf32>
    %47 = arith.mulf %45, %46 : vector<192x64xf32>
    %48 = arith.addf %40, %47 : vector<192x64xf32>
    %c0_29 = arith.constant 0 : index
    %c17 = arith.constant 17 : index
    %c0_30 = arith.constant 0 : index
    %49 = vector.load %arg1[%c0_29, %c17, %c0_30] : memref<1x260x1xf32, #tpu.memory_space<vmem>>, vector<1x192x1xf32>
    %50 = vector.shape_cast %49 : vector<1x192x1xf32> to vector<192x1xf32>
    %c6 = arith.constant 6 : index
    %c0_31 = arith.constant 0 : index
    %c0_32 = arith.constant 0 : index
    %51 = vector.load %arg2[%c6, %c0_31, %c0_32] : memref<25x1x64xf32, #tpu.memory_space<vmem>>, vector<1x1x64xf32>
    %52 = vector.shape_cast %51 : vector<1x1x64xf32> to vector<1x64xf32>
    %53 = vector.broadcast %50 : vector<192x1xf32> to vector<192x64xf32>
    %54 = vector.broadcast %52 : vector<1x64xf32> to vector<192x64xf32>
    %55 = arith.mulf %53, %54 : vector<192x64xf32>
    %56 = arith.addf %48, %55 : vector<192x64xf32>
    %c0_33 = arith.constant 0 : index
    %c18 = arith.constant 18 : index
    %c0_34 = arith.constant 0 : index
    %57 = vector.load %arg1[%c0_33, %c18, %c0_34] : memref<1x260x1xf32, #tpu.memory_space<vmem>>, vector<1x192x1xf32>
    %58 = vector.shape_cast %57 : vector<1x192x1xf32> to vector<192x1xf32>
    %c7 = arith.constant 7 : index
    %c0_35 = arith.constant 0 : index
    %c0_36 = arith.constant 0 : index
    %59 = vector.load %arg2[%c7, %c0_35, %c0_36] : memref<25x1x64xf32, #tpu.memory_space<vmem>>, vector<1x1x64xf32>
    %60 = vector.shape_cast %59 : vector<1x1x64xf32> to vector<1x64xf32>
    %61 = vector.broadcast %58 : vector<192x1xf32> to vector<192x64xf32>
    %62 = vector.broadcast %60 : vector<1x64xf32> to vector<192x64xf32>
    %63 = arith.mulf %61, %62 : vector<192x64xf32>
    %64 = arith.addf %56, %63 : vector<192x64xf32>
    %c0_37 = arith.constant 0 : index
    %c19 = arith.constant 19 : index
    %c0_38 = arith.constant 0 : index
    %65 = vector.load %arg1[%c0_37, %c19, %c0_38] : memref<1x260x1xf32, #tpu.memory_space<vmem>>, vector<1x192x1xf32>
    %66 = vector.shape_cast %65 : vector<1x192x1xf32> to vector<192x1xf32>
    %c8 = arith.constant 8 : index
    %c0_39 = arith.constant 0 : index
    %c0_40 = arith.constant 0 : index
    %67 = vector.load %arg2[%c8, %c0_39, %c0_40] : memref<25x1x64xf32, #tpu.memory_space<vmem>>, vector<1x1x64xf32>
    %68 = vector.shape_cast %67 : vector<1x1x64xf32> to vector<1x64xf32>
    %69 = vector.broadcast %66 : vector<192x1xf32> to vector<192x64xf32>
    %70 = vector.broadcast %68 : vector<1x64xf32> to vector<192x64xf32>
    %71 = arith.mulf %69, %70 : vector<192x64xf32>
    %72 = arith.addf %64, %71 : vector<192x64xf32>
    %c0_41 = arith.constant 0 : index
    %c20 = arith.constant 20 : index
    %c0_42 = arith.constant 0 : index
    %73 = vector.load %arg1[%c0_41, %c20, %c0_42] : memref<1x260x1xf32, #tpu.memory_space<vmem>>, vector<1x192x1xf32>
    %74 = vector.shape_cast %73 : vector<1x192x1xf32> to vector<192x1xf32>
    %c9 = arith.constant 9 : index
    %c0_43 = arith.constant 0 : index
    %c0_44 = arith.constant 0 : index
    %75 = vector.load %arg2[%c9, %c0_43, %c0_44] : memref<25x1x64xf32, #tpu.memory_space<vmem>>, vector<1x1x64xf32>
    %76 = vector.shape_cast %75 : vector<1x1x64xf32> to vector<1x64xf32>
    %77 = vector.broadcast %74 : vector<192x1xf32> to vector<192x64xf32>
    %78 = vector.broadcast %76 : vector<1x64xf32> to vector<192x64xf32>
    %79 = arith.mulf %77, %78 : vector<192x64xf32>
    %80 = arith.addf %72, %79 : vector<192x64xf32>
    %c0_45 = arith.constant 0 : index
    %c32 = arith.constant 32 : index
    %c0_46 = arith.constant 0 : index
    %81 = vector.load %arg1[%c0_45, %c32, %c0_46] : memref<1x260x1xf32, #tpu.memory_space<vmem>>, vector<1x192x1xf32>
    %82 = vector.shape_cast %81 : vector<1x192x1xf32> to vector<192x1xf32>
    %c10 = arith.constant 10 : index
    %c0_47 = arith.constant 0 : index
    %c0_48 = arith.constant 0 : index
    %83 = vector.load %arg2[%c10, %c0_47, %c0_48] : memref<25x1x64xf32, #tpu.memory_space<vmem>>, vector<1x1x64xf32>
    %84 = vector.shape_cast %83 : vector<1x1x64xf32> to vector<1x64xf32>
    %85 = vector.broadcast %82 : vector<192x1xf32> to vector<192x64xf32>
    %86 = vector.broadcast %84 : vector<1x64xf32> to vector<192x64xf32>
    %87 = arith.mulf %85, %86 : vector<192x64xf32>
    %88 = arith.addf %80, %87 : vector<192x64xf32>
    %c0_49 = arith.constant 0 : index
    %c33 = arith.constant 33 : index
    %c0_50 = arith.constant 0 : index
    %89 = vector.load %arg1[%c0_49, %c33, %c0_50] : memref<1x260x1xf32, #tpu.memory_space<vmem>>, vector<1x192x1xf32>
    %90 = vector.shape_cast %89 : vector<1x192x1xf32> to vector<192x1xf32>
    %c11 = arith.constant 11 : index
    %c0_51 = arith.constant 0 : index
    %c0_52 = arith.constant 0 : index
    %91 = vector.load %arg2[%c11, %c0_51, %c0_52] : memref<25x1x64xf32, #tpu.memory_space<vmem>>, vector<1x1x64xf32>
    %92 = vector.shape_cast %91 : vector<1x1x64xf32> to vector<1x64xf32>
    %93 = vector.broadcast %90 : vector<192x1xf32> to vector<192x64xf32>
    %94 = vector.broadcast %92 : vector<1x64xf32> to vector<192x64xf32>
    %95 = arith.mulf %93, %94 : vector<192x64xf32>
    %96 = arith.addf %88, %95 : vector<192x64xf32>
    %c0_53 = arith.constant 0 : index
    %c34 = arith.constant 34 : index
    %c0_54 = arith.constant 0 : index
    %97 = vector.load %arg1[%c0_53, %c34, %c0_54] : memref<1x260x1xf32, #tpu.memory_space<vmem>>, vector<1x192x1xf32>
    %98 = vector.shape_cast %97 : vector<1x192x1xf32> to vector<192x1xf32>
    %c12 = arith.constant 12 : index
    %c0_55 = arith.constant 0 : index
    %c0_56 = arith.constant 0 : index
    %99 = vector.load %arg2[%c12, %c0_55, %c0_56] : memref<25x1x64xf32, #tpu.memory_space<vmem>>, vector<1x1x64xf32>
    %100 = vector.shape_cast %99 : vector<1x1x64xf32> to vector<1x64xf32>
    %101 = vector.broadcast %98 : vector<192x1xf32> to vector<192x64xf32>
    %102 = vector.broadcast %100 : vector<1x64xf32> to vector<192x64xf32>
    %103 = arith.mulf %101, %102 : vector<192x64xf32>
    %104 = arith.addf %96, %103 : vector<192x64xf32>
    %c0_57 = arith.constant 0 : index
    %c35 = arith.constant 35 : index
    %c0_58 = arith.constant 0 : index
    %105 = vector.load %arg1[%c0_57, %c35, %c0_58] : memref<1x260x1xf32, #tpu.memory_space<vmem>>, vector<1x192x1xf32>
    %106 = vector.shape_cast %105 : vector<1x192x1xf32> to vector<192x1xf32>
    %c13 = arith.constant 13 : index
    %c0_59 = arith.constant 0 : index
    %c0_60 = arith.constant 0 : index
    %107 = vector.load %arg2[%c13, %c0_59, %c0_60] : memref<25x1x64xf32, #tpu.memory_space<vmem>>, vector<1x1x64xf32>
    %108 = vector.shape_cast %107 : vector<1x1x64xf32> to vector<1x64xf32>
    %109 = vector.broadcast %106 : vector<192x1xf32> to vector<192x64xf32>
    %110 = vector.broadcast %108 : vector<1x64xf32> to vector<192x64xf32>
    %111 = arith.mulf %109, %110 : vector<192x64xf32>
    %112 = arith.addf %104, %111 : vector<192x64xf32>
    %c0_61 = arith.constant 0 : index
    %c36 = arith.constant 36 : index
    %c0_62 = arith.constant 0 : index
    %113 = vector.load %arg1[%c0_61, %c36, %c0_62] : memref<1x260x1xf32, #tpu.memory_space<vmem>>, vector<1x192x1xf32>
    %114 = vector.shape_cast %113 : vector<1x192x1xf32> to vector<192x1xf32>
    %c14 = arith.constant 14 : index
    %c0_63 = arith.constant 0 : index
    %c0_64 = arith.constant 0 : index
    %115 = vector.load %arg2[%c14, %c0_63, %c0_64] : memref<25x1x64xf32, #tpu.memory_space<vmem>>, vector<1x1x64xf32>
    %116 = vector.shape_cast %115 : vector<1x1x64xf32> to vector<1x64xf32>
    %117 = vector.broadcast %114 : vector<192x1xf32> to vector<192x64xf32>
    %118 = vector.broadcast %116 : vector<1x64xf32> to vector<192x64xf32>
    %119 = arith.mulf %117, %118 : vector<192x64xf32>
    %120 = arith.addf %112, %119 : vector<192x64xf32>
    %c0_65 = arith.constant 0 : index
    %c48 = arith.constant 48 : index
    %c0_66 = arith.constant 0 : index
    %121 = vector.load %arg1[%c0_65, %c48, %c0_66] : memref<1x260x1xf32, #tpu.memory_space<vmem>>, vector<1x192x1xf32>
    %122 = vector.shape_cast %121 : vector<1x192x1xf32> to vector<192x1xf32>
    %c15 = arith.constant 15 : index
    %c0_67 = arith.constant 0 : index
    %c0_68 = arith.constant 0 : index
    %123 = vector.load %arg2[%c15, %c0_67, %c0_68] : memref<25x1x64xf32, #tpu.memory_space<vmem>>, vector<1x1x64xf32>
    %124 = vector.shape_cast %123 : vector<1x1x64xf32> to vector<1x64xf32>
    %125 = vector.broadcast %122 : vector<192x1xf32> to vector<192x64xf32>
    %126 = vector.broadcast %124 : vector<1x64xf32> to vector<192x64xf32>
    %127 = arith.mulf %125, %126 : vector<192x64xf32>
    %128 = arith.addf %120, %127 : vector<192x64xf32>
    %c0_69 = arith.constant 0 : index
    %c49 = arith.constant 49 : index
    %c0_70 = arith.constant 0 : index
    %129 = vector.load %arg1[%c0_69, %c49, %c0_70] : memref<1x260x1xf32, #tpu.memory_space<vmem>>, vector<1x192x1xf32>
    %130 = vector.shape_cast %129 : vector<1x192x1xf32> to vector<192x1xf32>
    %c16_71 = arith.constant 16 : index
    %c0_72 = arith.constant 0 : index
    %c0_73 = arith.constant 0 : index
    %131 = vector.load %arg2[%c16_71, %c0_72, %c0_73] : memref<25x1x64xf32, #tpu.memory_space<vmem>>, vector<1x1x64xf32>
    %132 = vector.shape_cast %131 : vector<1x1x64xf32> to vector<1x64xf32>
    %133 = vector.broadcast %130 : vector<192x1xf32> to vector<192x64xf32>
    %134 = vector.broadcast %132 : vector<1x64xf32> to vector<192x64xf32>
    %135 = arith.mulf %133, %134 : vector<192x64xf32>
    %136 = arith.addf %128, %135 : vector<192x64xf32>
    %c0_74 = arith.constant 0 : index
    %c50 = arith.constant 50 : index
    %c0_75 = arith.constant 0 : index
    %137 = vector.load %arg1[%c0_74, %c50, %c0_75] : memref<1x260x1xf32, #tpu.memory_space<vmem>>, vector<1x192x1xf32>
    %138 = vector.shape_cast %137 : vector<1x192x1xf32> to vector<192x1xf32>
    %c17_76 = arith.constant 17 : index
    %c0_77 = arith.constant 0 : index
    %c0_78 = arith.constant 0 : index
    %139 = vector.load %arg2[%c17_76, %c0_77, %c0_78] : memref<25x1x64xf32, #tpu.memory_space<vmem>>, vector<1x1x64xf32>
    %140 = vector.shape_cast %139 : vector<1x1x64xf32> to vector<1x64xf32>
    %141 = vector.broadcast %138 : vector<192x1xf32> to vector<192x64xf32>
    %142 = vector.broadcast %140 : vector<1x64xf32> to vector<192x64xf32>
    %143 = arith.mulf %141, %142 : vector<192x64xf32>
    %144 = arith.addf %136, %143 : vector<192x64xf32>
    %c0_79 = arith.constant 0 : index
    %c51 = arith.constant 51 : index
    %c0_80 = arith.constant 0 : index
    %145 = vector.load %arg1[%c0_79, %c51, %c0_80] : memref<1x260x1xf32, #tpu.memory_space<vmem>>, vector<1x192x1xf32>
    %146 = vector.shape_cast %145 : vector<1x192x1xf32> to vector<192x1xf32>
    %c18_81 = arith.constant 18 : index
    %c0_82 = arith.constant 0 : index
    %c0_83 = arith.constant 0 : index
    %147 = vector.load %arg2[%c18_81, %c0_82, %c0_83] : memref<25x1x64xf32, #tpu.memory_space<vmem>>, vector<1x1x64xf32>
    %148 = vector.shape_cast %147 : vector<1x1x64xf32> to vector<1x64xf32>
    %149 = vector.broadcast %146 : vector<192x1xf32> to vector<192x64xf32>
    %150 = vector.broadcast %148 : vector<1x64xf32> to vector<192x64xf32>
    %151 = arith.mulf %149, %150 : vector<192x64xf32>
    %152 = arith.addf %144, %151 : vector<192x64xf32>
    %c0_84 = arith.constant 0 : index
    %c52 = arith.constant 52 : index
    %c0_85 = arith.constant 0 : index
    %153 = vector.load %arg1[%c0_84, %c52, %c0_85] : memref<1x260x1xf32, #tpu.memory_space<vmem>>, vector<1x192x1xf32>
    %154 = vector.shape_cast %153 : vector<1x192x1xf32> to vector<192x1xf32>
    %c19_86 = arith.constant 19 : index
    %c0_87 = arith.constant 0 : index
    %c0_88 = arith.constant 0 : index
    %155 = vector.load %arg2[%c19_86, %c0_87, %c0_88] : memref<25x1x64xf32, #tpu.memory_space<vmem>>, vector<1x1x64xf32>
    %156 = vector.shape_cast %155 : vector<1x1x64xf32> to vector<1x64xf32>
    %157 = vector.broadcast %154 : vector<192x1xf32> to vector<192x64xf32>
    %158 = vector.broadcast %156 : vector<1x64xf32> to vector<192x64xf32>
    %159 = arith.mulf %157, %158 : vector<192x64xf32>
    %160 = arith.addf %152, %159 : vector<192x64xf32>
    %c0_89 = arith.constant 0 : index
    %c64 = arith.constant 64 : index
    %c0_90 = arith.constant 0 : index
    %161 = vector.load %arg1[%c0_89, %c64, %c0_90] : memref<1x260x1xf32, #tpu.memory_space<vmem>>, vector<1x192x1xf32>
    %162 = vector.shape_cast %161 : vector<1x192x1xf32> to vector<192x1xf32>
    %c20_91 = arith.constant 20 : index
    %c0_92 = arith.constant 0 : index
    %c0_93 = arith.constant 0 : index
    %163 = vector.load %arg2[%c20_91, %c0_92, %c0_93] : memref<25x1x64xf32, #tpu.memory_space<vmem>>, vector<1x1x64xf32>
    %164 = vector.shape_cast %163 : vector<1x1x64xf32> to vector<1x64xf32>
    %165 = vector.broadcast %162 : vector<192x1xf32> to vector<192x64xf32>
    %166 = vector.broadcast %164 : vector<1x64xf32> to vector<192x64xf32>
    %167 = arith.mulf %165, %166 : vector<192x64xf32>
    %168 = arith.addf %160, %167 : vector<192x64xf32>
    %c0_94 = arith.constant 0 : index
    %c65 = arith.constant 65 : index
    %c0_95 = arith.constant 0 : index
    %169 = vector.load %arg1[%c0_94, %c65, %c0_95] : memref<1x260x1xf32, #tpu.memory_space<vmem>>, vector<1x192x1xf32>
    %170 = vector.shape_cast %169 : vector<1x192x1xf32> to vector<192x1xf32>
    %c21 = arith.constant 21 : index
    %c0_96 = arith.constant 0 : index
    %c0_97 = arith.constant 0 : index
    %171 = vector.load %arg2[%c21, %c0_96, %c0_97] : memref<25x1x64xf32, #tpu.memory_space<vmem>>, vector<1x1x64xf32>
    %172 = vector.shape_cast %171 : vector<1x1x64xf32> to vector<1x64xf32>
    %173 = vector.broadcast %170 : vector<192x1xf32> to vector<192x64xf32>
    %174 = vector.broadcast %172 : vector<1x64xf32> to vector<192x64xf32>
    %175 = arith.mulf %173, %174 : vector<192x64xf32>
    %176 = arith.addf %168, %175 : vector<192x64xf32>
    %c0_98 = arith.constant 0 : index
    %c66 = arith.constant 66 : index
    %c0_99 = arith.constant 0 : index
    %177 = vector.load %arg1[%c0_98, %c66, %c0_99] : memref<1x260x1xf32, #tpu.memory_space<vmem>>, vector<1x192x1xf32>
    %178 = vector.shape_cast %177 : vector<1x192x1xf32> to vector<192x1xf32>
    %c22 = arith.constant 22 : index
    %c0_100 = arith.constant 0 : index
    %c0_101 = arith.constant 0 : index
    %179 = vector.load %arg2[%c22, %c0_100, %c0_101] : memref<25x1x64xf32, #tpu.memory_space<vmem>>, vector<1x1x64xf32>
    %180 = vector.shape_cast %179 : vector<1x1x64xf32> to vector<1x64xf32>
    %181 = vector.broadcast %178 : vector<192x1xf32> to vector<192x64xf32>
    %182 = vector.broadcast %180 : vector<1x64xf32> to vector<192x64xf32>
    %183 = arith.mulf %181, %182 : vector<192x64xf32>
    %184 = arith.addf %176, %183 : vector<192x64xf32>
    %c0_102 = arith.constant 0 : index
    %c67 = arith.constant 67 : index
    %c0_103 = arith.constant 0 : index
    %185 = vector.load %arg1[%c0_102, %c67, %c0_103] : memref<1x260x1xf32, #tpu.memory_space<vmem>>, vector<1x192x1xf32>
    %186 = vector.shape_cast %185 : vector<1x192x1xf32> to vector<192x1xf32>
    %c23 = arith.constant 23 : index
    %c0_104 = arith.constant 0 : index
    %c0_105 = arith.constant 0 : index
    %187 = vector.load %arg2[%c23, %c0_104, %c0_105] : memref<25x1x64xf32, #tpu.memory_space<vmem>>, vector<1x1x64xf32>
    %188 = vector.shape_cast %187 : vector<1x1x64xf32> to vector<1x64xf32>
    %189 = vector.broadcast %186 : vector<192x1xf32> to vector<192x64xf32>
    %190 = vector.broadcast %188 : vector<1x64xf32> to vector<192x64xf32>
    %191 = arith.mulf %189, %190 : vector<192x64xf32>
    %192 = arith.addf %184, %191 : vector<192x64xf32>
    %c0_106 = arith.constant 0 : index
    %c68 = arith.constant 68 : index
    %c0_107 = arith.constant 0 : index
    %193 = vector.load %arg1[%c0_106, %c68, %c0_107] : memref<1x260x1xf32, #tpu.memory_space<vmem>>, vector<1x192x1xf32>
    %194 = vector.shape_cast %193 : vector<1x192x1xf32> to vector<192x1xf32>
    %c24 = arith.constant 24 : index
    %c0_108 = arith.constant 0 : index
    %c0_109 = arith.constant 0 : index
    %195 = vector.load %arg2[%c24, %c0_108, %c0_109] : memref<25x1x64xf32, #tpu.memory_space<vmem>>, vector<1x1x64xf32>
    %196 = vector.shape_cast %195 : vector<1x1x64xf32> to vector<1x64xf32>
    %197 = vector.broadcast %194 : vector<192x1xf32> to vector<192x64xf32>
    %198 = vector.broadcast %196 : vector<1x64xf32> to vector<192x64xf32>
    %199 = arith.mulf %197, %198 : vector<192x64xf32>
    %200 = arith.addf %192, %199 : vector<192x64xf32>
    %c0_110 = arith.constant 0 : index
    %c0_111 = arith.constant 0 : index
    %201 = vector.load %arg3[%c0_110, %c0_111] : memref<1x64xf32, #tpu.memory_space<vmem>>, vector<1x64xf32>
    %202 = vector.broadcast %201 : vector<1x64xf32> to vector<192x64xf32>
    %203 = arith.addf %200, %202 : vector<192x64xf32>
    %cst_112 = arith.constant 0.000000e+00 : f32
    %204 = vector.broadcast %cst_112 : f32 to vector<192x64xf32>
    %205 = arith.maximumf %203, %204 : vector<192x64xf32>
    %206 = arith.truncf %205 : vector<192x64xf32> to vector<192x64xbf16>
    %cst_113 = arith.constant 0.000000e+00 : f32
    %207 = vector.broadcast %cst_113 : f32 to vector<192x64xf32>
    %208 = arith.subf %207, %203 : vector<192x64xf32>
    %cst_114 = arith.constant 0.000000e+00 : f32
    %209 = vector.broadcast %cst_114 : f32 to vector<192x64xf32>
    %210 = arith.maximumf %208, %209 : vector<192x64xf32>
    %211 = arith.truncf %210 : vector<192x64xf32> to vector<192x64xbf16>
    %212 = tpu.concatenate %206, %211 in 1 : vector<192x64xbf16>, vector<192x64xbf16> -> vector<192x128xbf16>
    %c0_115 = arith.constant 0 : index
    %c0_116 = arith.constant 0 : index
    %213 = vector.load %arg11[%c0_115, %c0_116] : memref<200x128xbf16, #tpu.memory_space<vmem>>, vector<192x128xbf16>
    tpu.vector_store %arg11[%c0_115, %c0_116], %212 {strides = array<i32>} : memref<200x128xbf16, #tpu.memory_space<vmem>>, vector<192x128xbf16>,
    %cst_117 = arith.constant 0.000000e+00 : bf16
    %214 = vector.broadcast %cst_117 : bf16 to vector<2x128xbf16>
    %c192 = arith.constant 192 : index
    %c0_118 = arith.constant 0 : index
    %215 = vector.load %arg11[%c192, %c0_118] : memref<200x128xbf16, #tpu.memory_space<vmem>>, vector<2x128xbf16>
    tpu.vector_store %arg11[%c192, %c0_118], %214 {strides = array<i32>} : memref<200x128xbf16, #tpu.memory_space<vmem>>, vector<2x128xbf16>,
    %cst_119 = arith.constant 0.000000e+00 : f32
    %216 = vector.broadcast %cst_119 : f32 to vector<160x64xf32>
    %c0_120 = arith.constant 0 : index
    %c0_121 = arith.constant 0 : index
    %217 = vector.load %arg11[%c0_120, %c0_121] : memref<200x128xbf16, #tpu.memory_space<vmem>>, vector<160x128xbf16>
    %c0_122 = arith.constant 0 : index
    %c0_123 = arith.constant 0 : index
    %c0_124 = arith.constant 0 : index
    %218 = vector.load %arg4[%c0_122, %c0_123, %c0_124] : memref<9x128x64xbf16, #tpu.memory_space<vmem>>, vector<1x128x64xbf16>
    %219 = vector.shape_cast %218 : vector<1x128x64xbf16> to vector<128x64xbf16>
    %cst_125 = arith.constant dense<0.000000e+00> : vector<160x64xf32>
    %220 = tpu.matmul %217, %219, %cst_125 {dimension_numbers = #tpu.dot_dimension_numbers<[1], [0], [0], [1], [0, 0, 1, 1], [], []>} : vector<160x128xbf16>, vector<128x64xbf16>, vector<160x64xf32> -> vector<160x64xf32>
    %221 = arith.addf %216, %220 : vector<160x64xf32>
    %c1_126 = arith.constant 1 : index
    %c0_127 = arith.constant 0 : index
    %222 = vector.load %arg11[%c1_126, %c0_127] : memref<200x128xbf16, #tpu.memory_space<vmem>>, vector<160x128xbf16>
    %c1_128 = arith.constant 1 : index
    %c0_129 = arith.constant 0 : index
    %c0_130 = arith.constant 0 : index
    %223 = vector.load %arg4[%c1_128, %c0_129, %c0_130] : memref<9x128x64xbf16, #tpu.memory_space<vmem>>, vector<1x128x64xbf16>
    %224 = vector.shape_cast %223 : vector<1x128x64xbf16> to vector<128x64xbf16>
    %cst_131 = arith.constant dense<0.000000e+00> : vector<160x64xf32>
    %225 = tpu.matmul %222, %224, %cst_131 {dimension_numbers = #tpu.dot_dimension_numbers<[1], [0], [0], [1], [0, 0, 1, 1], [], []>} : vector<160x128xbf16>, vector<128x64xbf16>, vector<160x64xf32> -> vector<160x64xf32>
    %226 = arith.addf %221, %225 : vector<160x64xf32>
    %c2_132 = arith.constant 2 : index
    %c0_133 = arith.constant 0 : index
    %227 = vector.load %arg11[%c2_132, %c0_133] : memref<200x128xbf16, #tpu.memory_space<vmem>>, vector<160x128xbf16>
    %c2_134 = arith.constant 2 : index
    %c0_135 = arith.constant 0 : index
    %c0_136 = arith.constant 0 : index
    %228 = vector.load %arg4[%c2_134, %c0_135, %c0_136] : memref<9x128x64xbf16, #tpu.memory_space<vmem>>, vector<1x128x64xbf16>
    %229 = vector.shape_cast %228 : vector<1x128x64xbf16> to vector<128x64xbf16>
    %cst_137 = arith.constant dense<0.000000e+00> : vector<160x64xf32>
    %230 = tpu.matmul %227, %229, %cst_137 {dimension_numbers = #tpu.dot_dimension_numbers<[1], [0], [0], [1], [0, 0, 1, 1], [], []>} : vector<160x128xbf16>, vector<128x64xbf16>, vector<160x64xf32> -> vector<160x64xf32>
    %231 = arith.addf %226, %230 : vector<160x64xf32>
    %c16_138 = arith.constant 16 : index
    %c0_139 = arith.constant 0 : index
    %232 = vector.load %arg11[%c16_138, %c0_139] : memref<200x128xbf16, #tpu.memory_space<vmem>>, vector<160x128xbf16>
    %c3_140 = arith.constant 3 : index
    %c0_141 = arith.constant 0 : index
    %c0_142 = arith.constant 0 : index
    %233 = vector.load %arg4[%c3_140, %c0_141, %c0_142] : memref<9x128x64xbf16, #tpu.memory_space<vmem>>, vector<1x128x64xbf16>
    %234 = vector.shape_cast %233 : vector<1x128x64xbf16> to vector<128x64xbf16>
    %cst_143 = arith.constant dense<0.000000e+00> : vector<160x64xf32>
    %235 = tpu.matmul %232, %234, %cst_143 {dimension_numbers = #tpu.dot_dimension_numbers<[1], [0], [0], [1], [0, 0, 1, 1], [], []>} : vector<160x128xbf16>, vector<128x64xbf16>, vector<160x64xf32> -> vector<160x64xf32>
    %236 = arith.addf %231, %235 : vector<160x64xf32>
    %c17_144 = arith.constant 17 : index
    %c0_145 = arith.constant 0 : index
    %237 = vector.load %arg11[%c17_144, %c0_145] : memref<200x128xbf16, #tpu.memory_space<vmem>>, vector<160x128xbf16>
    %c4_146 = arith.constant 4 : index
    %c0_147 = arith.constant 0 : index
    %c0_148 = arith.constant 0 : index
    %238 = vector.load %arg4[%c4_146, %c0_147, %c0_148] : memref<9x128x64xbf16, #tpu.memory_space<vmem>>, vector<1x128x64xbf16>
    %239 = vector.shape_cast %238 : vector<1x128x64xbf16> to vector<128x64xbf16>
    %cst_149 = arith.constant dense<0.000000e+00> : vector<160x64xf32>
    %240 = tpu.matmul %237, %239, %cst_149 {dimension_numbers = #tpu.dot_dimension_numbers<[1], [0], [0], [1], [0, 0, 1, 1], [], []>} : vector<160x128xbf16>, vector<128x64xbf16>, vector<160x64xf32> -> vector<160x64xf32>
    %241 = arith.addf %236, %240 : vector<160x64xf32>
    %c18_150 = arith.constant 18 : index
    %c0_151 = arith.constant 0 : index
    %242 = vector.load %arg11[%c18_150, %c0_151] : memref<200x128xbf16, #tpu.memory_space<vmem>>, vector<160x128xbf16>
    %c5_152 = arith.constant 5 : index
    %c0_153 = arith.constant 0 : index
    %c0_154 = arith.constant 0 : index
    %243 = vector.load %arg4[%c5_152, %c0_153, %c0_154] : memref<9x128x64xbf16, #tpu.memory_space<vmem>>, vector<1x128x64xbf16>
    %244 = vector.shape_cast %243 : vector<1x128x64xbf16> to vector<128x64xbf16>
    %cst_155 = arith.constant dense<0.000000e+00> : vector<160x64xf32>
    %245 = tpu.matmul %242, %244, %cst_155 {dimension_numbers = #tpu.dot_dimension_numbers<[1], [0], [0], [1], [0, 0, 1, 1], [], []>} : vector<160x128xbf16>, vector<128x64xbf16>, vector<160x64xf32> -> vector<160x64xf32>
    %246 = arith.addf %241, %245 : vector<160x64xf32>
    %c32_156 = arith.constant 32 : index
    %c0_157 = arith.constant 0 : index
    %247 = vector.load %arg11[%c32_156, %c0_157] : memref<200x128xbf16, #tpu.memory_space<vmem>>, vector<160x128xbf16>
    %c6_158 = arith.constant 6 : index
    %c0_159 = arith.constant 0 : index
    %c0_160 = arith.constant 0 : index
    %248 = vector.load %arg4[%c6_158, %c0_159, %c0_160] : memref<9x128x64xbf16, #tpu.memory_space<vmem>>, vector<1x128x64xbf16>
    %249 = vector.shape_cast %248 : vector<1x128x64xbf16> to vector<128x64xbf16>
    %cst_161 = arith.constant dense<0.000000e+00> : vector<160x64xf32>
    %250 = tpu.matmul %247, %249, %cst_161 {dimension_numbers = #tpu.dot_dimension_numbers<[1], [0], [0], [1], [0, 0, 1, 1], [], []>} : vector<160x128xbf16>, vector<128x64xbf16>, vector<160x64xf32> -> vector<160x64xf32>
    %251 = arith.addf %246, %250 : vector<160x64xf32>
    %c33_162 = arith.constant 33 : index
    %c0_163 = arith.constant 0 : index
    %252 = vector.load %arg11[%c33_162, %c0_163] : memref<200x128xbf16, #tpu.memory_space<vmem>>, vector<160x128xbf16>
    %c7_164 = arith.constant 7 : index
    %c0_165 = arith.constant 0 : index
    %c0_166 = arith.constant 0 : index
    %253 = vector.load %arg4[%c7_164, %c0_165, %c0_166] : memref<9x128x64xbf16, #tpu.memory_space<vmem>>, vector<1x128x64xbf16>
    %254 = vector.shape_cast %253 : vector<1x128x64xbf16> to vector<128x64xbf16>
    %cst_167 = arith.constant dense<0.000000e+00> : vector<160x64xf32>
    %255 = tpu.matmul %252, %254, %cst_167 {dimension_numbers = #tpu.dot_dimension_numbers<[1], [0], [0], [1], [0, 0, 1, 1], [], []>} : vector<160x128xbf16>, vector<128x64xbf16>, vector<160x64xf32> -> vector<160x64xf32>
    %256 = arith.addf %251, %255 : vector<160x64xf32>
    %c34_168 = arith.constant 34 : index
    %c0_169 = arith.constant 0 : index
    %257 = vector.load %arg11[%c34_168, %c0_169] : memref<200x128xbf16, #tpu.memory_space<vmem>>, vector<160x128xbf16>
    %c8_170 = arith.constant 8 : index
    %c0_171 = arith.constant 0 : index
    %c0_172 = arith.constant 0 : index
    %258 = vector.load %arg4[%c8_170, %c0_171, %c0_172] : memref<9x128x64xbf16, #tpu.memory_space<vmem>>, vector<1x128x64xbf16>
    %259 = vector.shape_cast %258 : vector<1x128x64xbf16> to vector<128x64xbf16>
    %cst_173 = arith.constant dense<0.000000e+00> : vector<160x64xf32>
    %260 = tpu.matmul %257, %259, %cst_173 {dimension_numbers = #tpu.dot_dimension_numbers<[1], [0], [0], [1], [0, 0, 1, 1], [], []>} : vector<160x128xbf16>, vector<128x64xbf16>, vector<160x64xf32> -> vector<160x64xf32>
    %261 = arith.addf %256, %260 : vector<160x64xf32>
    %c0_174 = arith.constant 0 : index
    %c0_175 = arith.constant 0 : index
    %262 = vector.load %arg5[%c0_174, %c0_175] : memref<1x64xf32, #tpu.memory_space<vmem>>, vector<1x64xf32>
    %263 = vector.broadcast %262 : vector<1x64xf32> to vector<160x64xf32>
    %264 = arith.addf %261, %263 : vector<160x64xf32>
    %cst_176 = arith.constant 0.000000e+00 : f32
    %265 = vector.broadcast %cst_176 : f32 to vector<160x64xf32>
    %266 = arith.maximumf %264, %265 : vector<160x64xf32>
    %267 = arith.truncf %266 : vector<160x64xf32> to vector<160x64xbf16>
    %cst_177 = arith.constant 0.000000e+00 : f32
    %268 = vector.broadcast %cst_177 : f32 to vector<160x64xf32>
    %269 = arith.subf %268, %264 : vector<160x64xf32>
    %cst_178 = arith.constant 0.000000e+00 : f32
    %270 = vector.broadcast %cst_178 : f32 to vector<160x64xf32>
    %271 = arith.maximumf %269, %270 : vector<160x64xf32>
    %272 = arith.truncf %271 : vector<160x64xf32> to vector<160x64xbf16>
    %273 = tpu.concatenate %267, %272 in 1 : vector<160x64xbf16>, vector<160x64xbf16> -> vector<160x128xbf16>
    %c0_179 = arith.constant 0 : index
    %c0_180 = arith.constant 0 : index
    %274 = vector.load %arg11[%c0_179, %c0_180] : memref<200x128xbf16, #tpu.memory_space<vmem>>, vector<160x128xbf16>
    tpu.vector_store %arg11[%c0_179, %c0_180], %273 {strides = array<i32>} : memref<200x128xbf16, #tpu.memory_space<vmem>>, vector<160x128xbf16>,
    %cst_181 = arith.constant 0.000000e+00 : bf16
    %275 = vector.broadcast %cst_181 : bf16 to vector<2x128xbf16>
    %c160 = arith.constant 160 : index
    %c0_182 = arith.constant 0 : index
    %276 = vector.load %arg11[%c160, %c0_182] : memref<200x128xbf16, #tpu.memory_space<vmem>>, vector<2x128xbf16>
    tpu.vector_store %arg11[%c160, %c0_182], %275 {strides = array<i32>} : memref<200x128xbf16, #tpu.memory_space<vmem>>, vector<2x128xbf16>,
    %cst_183 = arith.constant 0.000000e+00 : f32
    %277 = vector.broadcast %cst_183 : f32 to vector<128x64xf32>
    %c0_184 = arith.constant 0 : index
    %c0_185 = arith.constant 0 : index
    %278 = vector.load %arg11[%c0_184, %c0_185] : memref<200x128xbf16, #tpu.memory_space<vmem>>, vector<128x128xbf16>
    %c0_186 = arith.constant 0 : index
    %c0_187 = arith.constant 0 : index
    %c0_188 = arith.constant 0 : index
    %279 = vector.load %arg6[%c0_186, %c0_187, %c0_188] : memref<9x128x64xbf16, #tpu.memory_space<vmem>>, vector<1x128x64xbf16>
    %280 = vector.shape_cast %279 : vector<1x128x64xbf16> to vector<128x64xbf16>
    %cst_189 = arith.constant dense<0.000000e+00> : vector<128x64xf32>
    %281 = tpu.matmul %278, %280, %cst_189 {dimension_numbers = #tpu.dot_dimension_numbers<[1], [0], [0], [1], [0, 0, 1, 1], [], []>} : vector<128x128xbf16>, vector<128x64xbf16>, vector<128x64xf32> -> vector<128x64xf32>
    %282 = arith.addf %277, %281 : vector<128x64xf32>
    %c1_190 = arith.constant 1 : index
    %c0_191 = arith.constant 0 : index
    %283 = vector.load %arg11[%c1_190, %c0_191] : memref<200x128xbf16, #tpu.memory_space<vmem>>, vector<128x128xbf16>
    %c1_192 = arith.constant 1 : index
    %c0_193 = arith.constant 0 : index
    %c0_194 = arith.constant 0 : index
    %284 = vector.load %arg6[%c1_192, %c0_193, %c0_194] : memref<9x128x64xbf16, #tpu.memory_space<vmem>>, vector<1x128x64xbf16>
    %285 = vector.shape_cast %284 : vector<1x128x64xbf16> to vector<128x64xbf16>
    %cst_195 = arith.constant dense<0.000000e+00> : vector<128x64xf32>
    %286 = tpu.matmul %283, %285, %cst_195 {dimension_numbers = #tpu.dot_dimension_numbers<[1], [0], [0], [1], [0, 0, 1, 1], [], []>} : vector<128x128xbf16>, vector<128x64xbf16>, vector<128x64xf32> -> vector<128x64xf32>
    %287 = arith.addf %282, %286 : vector<128x64xf32>
    %c2_196 = arith.constant 2 : index
    %c0_197 = arith.constant 0 : index
    %288 = vector.load %arg11[%c2_196, %c0_197] : memref<200x128xbf16, #tpu.memory_space<vmem>>, vector<128x128xbf16>
    %c2_198 = arith.constant 2 : index
    %c0_199 = arith.constant 0 : index
    %c0_200 = arith.constant 0 : index
    %289 = vector.load %arg6[%c2_198, %c0_199, %c0_200] : memref<9x128x64xbf16, #tpu.memory_space<vmem>>, vector<1x128x64xbf16>
    %290 = vector.shape_cast %289 : vector<1x128x64xbf16> to vector<128x64xbf16>
    %cst_201 = arith.constant dense<0.000000e+00> : vector<128x64xf32>
    %291 = tpu.matmul %288, %290, %cst_201 {dimension_numbers = #tpu.dot_dimension_numbers<[1], [0], [0], [1], [0, 0, 1, 1], [], []>} : vector<128x128xbf16>, vector<128x64xbf16>, vector<128x64xf32> -> vector<128x64xf32>
    %292 = arith.addf %287, %291 : vector<128x64xf32>
    %c16_202 = arith.constant 16 : index
    %c0_203 = arith.constant 0 : index
    %293 = vector.load %arg11[%c16_202, %c0_203] : memref<200x128xbf16, #tpu.memory_space<vmem>>, vector<128x128xbf16>
    %c3_204 = arith.constant 3 : index
    %c0_205 = arith.constant 0 : index
    %c0_206 = arith.constant 0 : index
    %294 = vector.load %arg6[%c3_204, %c0_205, %c0_206] : memref<9x128x64xbf16, #tpu.memory_space<vmem>>, vector<1x128x64xbf16>
    %295 = vector.shape_cast %294 : vector<1x128x64xbf16> to vector<128x64xbf16>
    %cst_207 = arith.constant dense<0.000000e+00> : vector<128x64xf32>
    %296 = tpu.matmul %293, %295, %cst_207 {dimension_numbers = #tpu.dot_dimension_numbers<[1], [0], [0], [1], [0, 0, 1, 1], [], []>} : vector<128x128xbf16>, vector<128x64xbf16>, vector<128x64xf32> -> vector<128x64xf32>
    %297 = arith.addf %292, %296 : vector<128x64xf32>
    %c17_208 = arith.constant 17 : index
    %c0_209 = arith.constant 0 : index
    %298 = vector.load %arg11[%c17_208, %c0_209] : memref<200x128xbf16, #tpu.memory_space<vmem>>, vector<128x128xbf16>
    %c4_210 = arith.constant 4 : index
    %c0_211 = arith.constant 0 : index
    %c0_212 = arith.constant 0 : index
    %299 = vector.load %arg6[%c4_210, %c0_211, %c0_212] : memref<9x128x64xbf16, #tpu.memory_space<vmem>>, vector<1x128x64xbf16>
    %300 = vector.shape_cast %299 : vector<1x128x64xbf16> to vector<128x64xbf16>
    %cst_213 = arith.constant dense<0.000000e+00> : vector<128x64xf32>
    %301 = tpu.matmul %298, %300, %cst_213 {dimension_numbers = #tpu.dot_dimension_numbers<[1], [0], [0], [1], [0, 0, 1, 1], [], []>} : vector<128x128xbf16>, vector<128x64xbf16>, vector<128x64xf32> -> vector<128x64xf32>
    %302 = arith.addf %297, %301 : vector<128x64xf32>
    %c18_214 = arith.constant 18 : index
    %c0_215 = arith.constant 0 : index
    %303 = vector.load %arg11[%c18_214, %c0_215] : memref<200x128xbf16, #tpu.memory_space<vmem>>, vector<128x128xbf16>
    %c5_216 = arith.constant 5 : index
    %c0_217 = arith.constant 0 : index
    %c0_218 = arith.constant 0 : index
    %304 = vector.load %arg6[%c5_216, %c0_217, %c0_218] : memref<9x128x64xbf16, #tpu.memory_space<vmem>>, vector<1x128x64xbf16>
    %305 = vector.shape_cast %304 : vector<1x128x64xbf16> to vector<128x64xbf16>
    %cst_219 = arith.constant dense<0.000000e+00> : vector<128x64xf32>
    %306 = tpu.matmul %303, %305, %cst_219 {dimension_numbers = #tpu.dot_dimension_numbers<[1], [0], [0], [1], [0, 0, 1, 1], [], []>} : vector<128x128xbf16>, vector<128x64xbf16>, vector<128x64xf32> -> vector<128x64xf32>
    %307 = arith.addf %302, %306 : vector<128x64xf32>
    %c32_220 = arith.constant 32 : index
    %c0_221 = arith.constant 0 : index
    %308 = vector.load %arg11[%c32_220, %c0_221] : memref<200x128xbf16, #tpu.memory_space<vmem>>, vector<128x128xbf16>
    %c6_222 = arith.constant 6 : index
    %c0_223 = arith.constant 0 : index
    %c0_224 = arith.constant 0 : index
    %309 = vector.load %arg6[%c6_222, %c0_223, %c0_224] : memref<9x128x64xbf16, #tpu.memory_space<vmem>>, vector<1x128x64xbf16>
    %310 = vector.shape_cast %309 : vector<1x128x64xbf16> to vector<128x64xbf16>
    %cst_225 = arith.constant dense<0.000000e+00> : vector<128x64xf32>
    %311 = tpu.matmul %308, %310, %cst_225 {dimension_numbers = #tpu.dot_dimension_numbers<[1], [0], [0], [1], [0, 0, 1, 1], [], []>} : vector<128x128xbf16>, vector<128x64xbf16>, vector<128x64xf32> -> vector<128x64xf32>
    %312 = arith.addf %307, %311 : vector<128x64xf32>
    %c33_226 = arith.constant 33 : index
    %c0_227 = arith.constant 0 : index
    %313 = vector.load %arg11[%c33_226, %c0_227] : memref<200x128xbf16, #tpu.memory_space<vmem>>, vector<128x128xbf16>
    %c7_228 = arith.constant 7 : index
    %c0_229 = arith.constant 0 : index
    %c0_230 = arith.constant 0 : index
    %314 = vector.load %arg6[%c7_228, %c0_229, %c0_230] : memref<9x128x64xbf16, #tpu.memory_space<vmem>>, vector<1x128x64xbf16>
    %315 = vector.shape_cast %314 : vector<1x128x64xbf16> to vector<128x64xbf16>
    %cst_231 = arith.constant dense<0.000000e+00> : vector<128x64xf32>
    %316 = tpu.matmul %313, %315, %cst_231 {dimension_numbers = #tpu.dot_dimension_numbers<[1], [0], [0], [1], [0, 0, 1, 1], [], []>} : vector<128x128xbf16>, vector<128x64xbf16>, vector<128x64xf32> -> vector<128x64xf32>
    %317 = arith.addf %312, %316 : vector<128x64xf32>
    %c34_232 = arith.constant 34 : index
    %c0_233 = arith.constant 0 : index
    %318 = vector.load %arg11[%c34_232, %c0_233] : memref<200x128xbf16, #tpu.memory_space<vmem>>, vector<128x128xbf16>
    %c8_234 = arith.constant 8 : index
    %c0_235 = arith.constant 0 : index
    %c0_236 = arith.constant 0 : index
    %319 = vector.load %arg6[%c8_234, %c0_235, %c0_236] : memref<9x128x64xbf16, #tpu.memory_space<vmem>>, vector<1x128x64xbf16>
    %320 = vector.shape_cast %319 : vector<1x128x64xbf16> to vector<128x64xbf16>
    %cst_237 = arith.constant dense<0.000000e+00> : vector<128x64xf32>
    %321 = tpu.matmul %318, %320, %cst_237 {dimension_numbers = #tpu.dot_dimension_numbers<[1], [0], [0], [1], [0, 0, 1, 1], [], []>} : vector<128x128xbf16>, vector<128x64xbf16>, vector<128x64xf32> -> vector<128x64xf32>
    %322 = arith.addf %317, %321 : vector<128x64xf32>
    %c0_238 = arith.constant 0 : index
    %c0_239 = arith.constant 0 : index
    %323 = vector.load %arg7[%c0_238, %c0_239] : memref<1x64xf32, #tpu.memory_space<vmem>>, vector<1x64xf32>
    %324 = vector.broadcast %323 : vector<1x64xf32> to vector<128x64xf32>
    %325 = arith.addf %322, %324 : vector<128x64xf32>
    %cst_240 = arith.constant 0.000000e+00 : f32
    %326 = vector.broadcast %cst_240 : f32 to vector<128x64xf32>
    %327 = arith.maximumf %325, %326 : vector<128x64xf32>
    %328 = arith.truncf %327 : vector<128x64xf32> to vector<128x64xbf16>
    %cst_241 = arith.constant 0.000000e+00 : f32
    %329 = vector.broadcast %cst_241 : f32 to vector<128x64xf32>
    %330 = arith.subf %329, %325 : vector<128x64xf32>
    %cst_242 = arith.constant 0.000000e+00 : f32
    %331 = vector.broadcast %cst_242 : f32 to vector<128x64xf32>
    %332 = arith.maximumf %330, %331 : vector<128x64xf32>
    %333 = arith.truncf %332 : vector<128x64xf32> to vector<128x64xbf16>
    %334 = tpu.concatenate %328, %333 in 1 : vector<128x64xbf16>, vector<128x64xbf16> -> vector<128x128xbf16>
    %c0_243 = arith.constant 0 : index
    %c0_244 = arith.constant 0 : index
    %335 = vector.load %arg11[%c0_243, %c0_244] : memref<200x128xbf16, #tpu.memory_space<vmem>>, vector<128x128xbf16>
    tpu.vector_store %arg11[%c0_243, %c0_244], %334 {strides = array<i32>} : memref<200x128xbf16, #tpu.memory_space<vmem>>, vector<128x128xbf16>,
    %cst_245 = arith.constant 0.000000e+00 : bf16
    %336 = vector.broadcast %cst_245 : bf16 to vector<2x128xbf16>
    %c128 = arith.constant 128 : index
    %c0_246 = arith.constant 0 : index
    %337 = vector.load %arg11[%c128, %c0_246] : memref<200x128xbf16, #tpu.memory_space<vmem>>, vector<2x128xbf16>
    tpu.vector_store %arg11[%c128, %c0_246], %336 {strides = array<i32>} : memref<200x128xbf16, #tpu.memory_space<vmem>>, vector<2x128xbf16>,
    %cst_247 = arith.constant 0.000000e+00 : f32
    %338 = vector.broadcast %cst_247 : f32 to vector<96x2xf32>
    %c0_248 = arith.constant 0 : index
    %c0_249 = arith.constant 0 : index
    %339 = vector.load %arg11[%c0_248, %c0_249] : memref<200x128xbf16, #tpu.memory_space<vmem>>, vector<96x128xbf16>
    %c0_250 = arith.constant 0 : index
    %c0_251 = arith.constant 0 : index
    %c0_252 = arith.constant 0 : index
    %340 = vector.load %arg8[%c0_250, %c0_251, %c0_252] : memref<9x128x2xbf16, #tpu.memory_space<vmem>>, vector<1x128x2xbf16>
    %341 = vector.shape_cast %340 : vector<1x128x2xbf16> to vector<128x2xbf16>
    %cst_253 = arith.constant dense<0.000000e+00> : vector<96x2xf32>
    %342 = tpu.matmul %339, %341, %cst_253 {dimension_numbers = #tpu.dot_dimension_numbers<[1], [0], [0], [1], [0, 0, 1, 1], [], []>} : vector<96x128xbf16>, vector<128x2xbf16>, vector<96x2xf32> -> vector<96x2xf32>
    %343 = arith.addf %338, %342 : vector<96x2xf32>
    %c1_254 = arith.constant 1 : index
    %c0_255 = arith.constant 0 : index
    %344 = vector.load %arg11[%c1_254, %c0_255] : memref<200x128xbf16, #tpu.memory_space<vmem>>, vector<96x128xbf16>
    %c1_256 = arith.constant 1 : index
    %c0_257 = arith.constant 0 : index
    %c0_258 = arith.constant 0 : index
    %345 = vector.load %arg8[%c1_256, %c0_257, %c0_258] : memref<9x128x2xbf16, #tpu.memory_space<vmem>>, vector<1x128x2xbf16>
    %346 = vector.shape_cast %345 : vector<1x128x2xbf16> to vector<128x2xbf16>
    %cst_259 = arith.constant dense<0.000000e+00> : vector<96x2xf32>
    %347 = tpu.matmul %344, %346, %cst_259 {dimension_numbers = #tpu.dot_dimension_numbers<[1], [0], [0], [1], [0, 0, 1, 1], [], []>} : vector<96x128xbf16>, vector<128x2xbf16>, vector<96x2xf32> -> vector<96x2xf32>
    %348 = arith.addf %343, %347 : vector<96x2xf32>
    %c2_260 = arith.constant 2 : index
    %c0_261 = arith.constant 0 : index
    %349 = vector.load %arg11[%c2_260, %c0_261] : memref<200x128xbf16, #tpu.memory_space<vmem>>, vector<96x128xbf16>
    %c2_262 = arith.constant 2 : index
    %c0_263 = arith.constant 0 : index
    %c0_264 = arith.constant 0 : index
    %350 = vector.load %arg8[%c2_262, %c0_263, %c0_264] : memref<9x128x2xbf16, #tpu.memory_space<vmem>>, vector<1x128x2xbf16>
    %351 = vector.shape_cast %350 : vector<1x128x2xbf16> to vector<128x2xbf16>
    %cst_265 = arith.constant dense<0.000000e+00> : vector<96x2xf32>
    %352 = tpu.matmul %349, %351, %cst_265 {dimension_numbers = #tpu.dot_dimension_numbers<[1], [0], [0], [1], [0, 0, 1, 1], [], []>} : vector<96x128xbf16>, vector<128x2xbf16>, vector<96x2xf32> -> vector<96x2xf32>
    %353 = arith.addf %348, %352 : vector<96x2xf32>
    %c16_266 = arith.constant 16 : index
    %c0_267 = arith.constant 0 : index
    %354 = vector.load %arg11[%c16_266, %c0_267] : memref<200x128xbf16, #tpu.memory_space<vmem>>, vector<96x128xbf16>
    %c3_268 = arith.constant 3 : index
    %c0_269 = arith.constant 0 : index
    %c0_270 = arith.constant 0 : index
    %355 = vector.load %arg8[%c3_268, %c0_269, %c0_270] : memref<9x128x2xbf16, #tpu.memory_space<vmem>>, vector<1x128x2xbf16>
    %356 = vector.shape_cast %355 : vector<1x128x2xbf16> to vector<128x2xbf16>
    %cst_271 = arith.constant dense<0.000000e+00> : vector<96x2xf32>
    %357 = tpu.matmul %354, %356, %cst_271 {dimension_numbers = #tpu.dot_dimension_numbers<[1], [0], [0], [1], [0, 0, 1, 1], [], []>} : vector<96x128xbf16>, vector<128x2xbf16>, vector<96x2xf32> -> vector<96x2xf32>
    %358 = arith.addf %353, %357 : vector<96x2xf32>
    %c17_272 = arith.constant 17 : index
    %c0_273 = arith.constant 0 : index
    %359 = vector.load %arg11[%c17_272, %c0_273] : memref<200x128xbf16, #tpu.memory_space<vmem>>, vector<96x128xbf16>
    %c4_274 = arith.constant 4 : index
    %c0_275 = arith.constant 0 : index
    %c0_276 = arith.constant 0 : index
    %360 = vector.load %arg8[%c4_274, %c0_275, %c0_276] : memref<9x128x2xbf16, #tpu.memory_space<vmem>>, vector<1x128x2xbf16>
    %361 = vector.shape_cast %360 : vector<1x128x2xbf16> to vector<128x2xbf16>
    %cst_277 = arith.constant dense<0.000000e+00> : vector<96x2xf32>
    %362 = tpu.matmul %359, %361, %cst_277 {dimension_numbers = #tpu.dot_dimension_numbers<[1], [0], [0], [1], [0, 0, 1, 1], [], []>} : vector<96x128xbf16>, vector<128x2xbf16>, vector<96x2xf32> -> vector<96x2xf32>
    %363 = arith.addf %358, %362 : vector<96x2xf32>
    %c18_278 = arith.constant 18 : index
    %c0_279 = arith.constant 0 : index
    %364 = vector.load %arg11[%c18_278, %c0_279] : memref<200x128xbf16, #tpu.memory_space<vmem>>, vector<96x128xbf16>
    %c5_280 = arith.constant 5 : index
    %c0_281 = arith.constant 0 : index
    %c0_282 = arith.constant 0 : index
    %365 = vector.load %arg8[%c5_280, %c0_281, %c0_282] : memref<9x128x2xbf16, #tpu.memory_space<vmem>>, vector<1x128x2xbf16>
    %366 = vector.shape_cast %365 : vector<1x128x2xbf16> to vector<128x2xbf16>
    %cst_283 = arith.constant dense<0.000000e+00> : vector<96x2xf32>
    %367 = tpu.matmul %364, %366, %cst_283 {dimension_numbers = #tpu.dot_dimension_numbers<[1], [0], [0], [1], [0, 0, 1, 1], [], []>} : vector<96x128xbf16>, vector<128x2xbf16>, vector<96x2xf32> -> vector<96x2xf32>
    %368 = arith.addf %363, %367 : vector<96x2xf32>
    %c32_284 = arith.constant 32 : index
    %c0_285 = arith.constant 0 : index
    %369 = vector.load %arg11[%c32_284, %c0_285] : memref<200x128xbf16, #tpu.memory_space<vmem>>, vector<96x128xbf16>
    %c6_286 = arith.constant 6 : index
    %c0_287 = arith.constant 0 : index
    %c0_288 = arith.constant 0 : index
    %370 = vector.load %arg8[%c6_286, %c0_287, %c0_288] : memref<9x128x2xbf16, #tpu.memory_space<vmem>>, vector<1x128x2xbf16>
    %371 = vector.shape_cast %370 : vector<1x128x2xbf16> to vector<128x2xbf16>
    %cst_289 = arith.constant dense<0.000000e+00> : vector<96x2xf32>
    %372 = tpu.matmul %369, %371, %cst_289 {dimension_numbers = #tpu.dot_dimension_numbers<[1], [0], [0], [1], [0, 0, 1, 1], [], []>} : vector<96x128xbf16>, vector<128x2xbf16>, vector<96x2xf32> -> vector<96x2xf32>
    %373 = arith.addf %368, %372 : vector<96x2xf32>
    %c33_290 = arith.constant 33 : index
    %c0_291 = arith.constant 0 : index
    %374 = vector.load %arg11[%c33_290, %c0_291] : memref<200x128xbf16, #tpu.memory_space<vmem>>, vector<96x128xbf16>
    %c7_292 = arith.constant 7 : index
    %c0_293 = arith.constant 0 : index
    %c0_294 = arith.constant 0 : index
    %375 = vector.load %arg8[%c7_292, %c0_293, %c0_294] : memref<9x128x2xbf16, #tpu.memory_space<vmem>>, vector<1x128x2xbf16>
    %376 = vector.shape_cast %375 : vector<1x128x2xbf16> to vector<128x2xbf16>
    %cst_295 = arith.constant dense<0.000000e+00> : vector<96x2xf32>
    %377 = tpu.matmul %374, %376, %cst_295 {dimension_numbers = #tpu.dot_dimension_numbers<[1], [0], [0], [1], [0, 0, 1, 1], [], []>} : vector<96x128xbf16>, vector<128x2xbf16>, vector<96x2xf32> -> vector<96x2xf32>
    %378 = arith.addf %373, %377 : vector<96x2xf32>
    %c34_296 = arith.constant 34 : index
    %c0_297 = arith.constant 0 : index
    %379 = vector.load %arg11[%c34_296, %c0_297] : memref<200x128xbf16, #tpu.memory_space<vmem>>, vector<96x128xbf16>
    %c8_298 = arith.constant 8 : index
    %c0_299 = arith.constant 0 : index
    %c0_300 = arith.constant 0 : index
    %380 = vector.load %arg8[%c8_298, %c0_299, %c0_300] : memref<9x128x2xbf16, #tpu.memory_space<vmem>>, vector<1x128x2xbf16>
    %381 = vector.shape_cast %380 : vector<1x128x2xbf16> to vector<128x2xbf16>
    %cst_301 = arith.constant dense<0.000000e+00> : vector<96x2xf32>
    %382 = tpu.matmul %379, %381, %cst_301 {dimension_numbers = #tpu.dot_dimension_numbers<[1], [0], [0], [1], [0, 0, 1, 1], [], []>} : vector<96x128xbf16>, vector<128x2xbf16>, vector<96x2xf32> -> vector<96x2xf32>
    %383 = arith.addf %378, %382 : vector<96x2xf32>
    %c0_302 = arith.constant 0 : index
    %c0_303 = arith.constant 0 : index
    %384 = vector.load %arg9[%c0_302, %c0_303] : memref<1x2xf32, #tpu.memory_space<vmem>>, vector<1x2xf32>
    %385 = vector.broadcast %384 : vector<1x2xf32> to vector<96x2xf32>
    %386 = arith.addf %383, %385 : vector<96x2xf32>
    %387 = vector.extract_strided_slice %386 {offsets = [0, 0], sizes = [6, 2], strides = [1, 1]} : vector<96x2xf32> to vector<6x2xf32>
    %388 = vector.extract_strided_slice %386 {offsets = [16, 0], sizes = [6, 2], strides = [1, 1]} : vector<96x2xf32> to vector<6x2xf32>
    %389 = arith.maximumf %387, %388 : vector<6x2xf32>
    %390 = vector.extract_strided_slice %386 {offsets = [32, 0], sizes = [6, 2], strides = [1, 1]} : vector<96x2xf32> to vector<6x2xf32>
    %391 = arith.maximumf %389, %390 : vector<6x2xf32>
    %392 = vector.extract_strided_slice %386 {offsets = [48, 0], sizes = [6, 2], strides = [1, 1]} : vector<96x2xf32> to vector<6x2xf32>
    %393 = arith.maximumf %391, %392 : vector<6x2xf32>
    %394 = vector.extract_strided_slice %386 {offsets = [64, 0], sizes = [6, 2], strides = [1, 1]} : vector<96x2xf32> to vector<6x2xf32>
    %395 = arith.maximumf %393, %394 : vector<6x2xf32>
    %396 = vector.extract_strided_slice %386 {offsets = [80, 0], sizes = [6, 2], strides = [1, 1]} : vector<96x2xf32> to vector<6x2xf32>
    %397 = arith.maximumf %395, %396 : vector<6x2xf32>
    %cst_304 = arith.constant dense<0xFF800000> : vector<2xf32>
    %398 = vector.multi_reduction <maximumf>, %397, %cst_304 [0] : vector<6x2xf32> to vector<2xf32>
    %399 = vector.shape_cast %398 : vector<2xf32> to vector<1x2xf32>
    %c0_305 = arith.constant 0 : index
    %c0_306 = arith.constant 0 : index
    %c0_307 = arith.constant 0 : index
    %400 = vector.load %arg10[%c0_305, %c0_306, %c0_307] : memref<1x1x2xf32, #tpu.memory_space<vmem>>, vector<1x1x2xf32>
    %401 = vector.shape_cast %400 : vector<1x1x2xf32> to vector<1x2xf32>
    %402 = vector.shape_cast %399 : vector<1x2xf32> to vector<1x1x2xf32>
    tpu.vector_store %arg10[%c0_305, %c0_306, %c0_307], %402 {strides = array<i32>} : memref<1x1x2xf32, #tpu.memory_space<vmem>>, vector<1x1x2xf32>,
    return
  }
  func.func @transform_0(%arg0: i32) -> (i32, i32, i32) {
    %c0_i32 = arith.constant 0 : i32
    %c0_i32_0 = arith.constant 0 : i32
    %c0_i32_1 = arith.constant 0 : i32
    return %arg0, %c0_i32, %c0_i32_0 : i32, i32, i32
  }
  func.func @transform_1(%arg0: i32) -> (i32, i32, i32) {
    %c0_i32 = arith.constant 0 : i32
    %c0_i32_0 = arith.constant 0 : i32
    %c0_i32_1 = arith.constant 0 : i32
    %c0_i32_2 = arith.constant 0 : i32
    return %c0_i32, %c0_i32_0, %c0_i32_1 : i32, i32, i32
  }
  func.func @transform_2(%arg0: i32) -> (i32, i32) {
    %c0_i32 = arith.constant 0 : i32
    %c0_i32_0 = arith.constant 0 : i32
    %c0_i32_1 = arith.constant 0 : i32
    return %c0_i32, %c0_i32_0 : i32, i32
  }
  func.func @transform_3(%arg0: i32) -> (i32, i32, i32) {
    %c0_i32 = arith.constant 0 : i32
    %c0_i32_0 = arith.constant 0 : i32
    %c0_i32_1 = arith.constant 0 : i32
    %c0_i32_2 = arith.constant 0 : i32
    return %c0_i32, %c0_i32_0, %c0_i32_1 : i32, i32, i32
  }
  func.func @transform_4(%arg0: i32) -> (i32, i32) {
    %c0_i32 = arith.constant 0 : i32
    %c0_i32_0 = arith.constant 0 : i32
    %c0_i32_1 = arith.constant 0 : i32
    return %c0_i32, %c0_i32_0 : i32, i32
  }
  func.func @transform_5(%arg0: i32) -> (i32, i32, i32) {
    %c0_i32 = arith.constant 0 : i32
    %c0_i32_0 = arith.constant 0 : i32
    %c0_i32_1 = arith.constant 0 : i32
    %c0_i32_2 = arith.constant 0 : i32
    return %c0_i32, %c0_i32_0, %c0_i32_1 : i32, i32, i32
  }
  func.func @transform_6(%arg0: i32) -> (i32, i32) {
    %c0_i32 = arith.constant 0 : i32
    %c0_i32_0 = arith.constant 0 : i32
    %c0_i32_1 = arith.constant 0 : i32
    return %c0_i32, %c0_i32_0 : i32, i32
  }
  func.func @transform_7(%arg0: i32) -> (i32, i32, i32) {
    %c0_i32 = arith.constant 0 : i32
    %c0_i32_0 = arith.constant 0 : i32
    %c0_i32_1 = arith.constant 0 : i32
    %c0_i32_2 = arith.constant 0 : i32
    return %c0_i32, %c0_i32_0, %c0_i32_1 : i32, i32, i32
  }
  func.func @transform_8(%arg0: i32) -> (i32, i32) {
    %c0_i32 = arith.constant 0 : i32
    %c0_i32_0 = arith.constant 0 : i32
    %c0_i32_1 = arith.constant 0 : i32
    return %c0_i32, %c0_i32_0 : i32, i32
  }
  func.func @transform_9(%arg0: i32) -> (i32, i32, i32) {
    %c0_i32 = arith.constant 0 : i32
    %c0_i32_0 = arith.constant 0 : i32
    %c0_i32_1 = arith.constant 0 : i32
    return %arg0, %c0_i32, %c0_i32_0 : i32, i32, i32
  }
}

</mosaic_0001>

<bundles_post_ra>
// kernel: panc_model_forward.1
= control target key start
LH: loop header
LB: loop body
LE: loop exit
PB: predicated region body
PF: predicated region fallthrough
CT: control target
= control target key end

     0   :  { %14 = vsyncpa [#allocation4], 0  ;;  %s19384_s0 = inlined_call_operand.vmem [shape: f32[2,260,1], index: 0, kind: input, shape index: {}]   ;;  %s19385_s1 = inlined_call_operand.vmem [shape: f32[25,1,64], index: 1, kind: input, shape index: {}]   ;;  %s19386_s2 = inlined_call_operand.vmem [shape: f32[1,64], index: 2, kind: input, shape index: {}]   ;;  %s19387_s3 = inlined_call_operand.vmem [shape: bf16[9,128,64], index: 3, kind: input, shape index: {}]   ;;  %s19388_s4 = inlined_call_operand.vmem [shape: f32[1,64], index: 4, kind: input, shape index: {}]   ;;  %s19389_s5 = inlined_call_operand.vmem [shape: bf16[9,128,64], index: 5, kind: input, shape index: {}]   ;;  %s19390_s6 = inlined_call_operand.vmem [shape: f32[1,64], index: 6, kind: input, shape index: {}]   ;;  %s19391_s7 = inlined_call_operand.vmem [shape: bf16[9,128,2], index: 7, kind: input, shape index: {}]   ;;  %s19392_s8 = inlined_call_operand.vmem [shape: f32[1,2], index: 8, kind: input, shape index: {}]   ;;  %s19393_s9 = inlined_call_operand.hbm [shape: f32[2,1,2], index: 9, kind: output, shape index: {}]  }
   0x1   :  { %16 = vsyncpa [#allocation4 + $0x1], 0  ;;  %s14058_s30 = smov 0   ;;  %s14060_s10 = smov 0  }
   0x2   :  { %s14062_s11 = smov 0   ;;  %s14064_s12 = smov 0  }
   0x3 LB: > { %s14079_s13 = sadd.s32 4294967295, %s14004_s12   ;;  %s11654_s14 = sadd.s32 4294967294, %s14004_s12   ;;  %s14004_s12 = sphi %s14064_s12, %s20217_s12   ;;  %s14000_s11 = sphi %s14062_s11, %s20216_s11   ;;  %s13996_s10 = sphi %s14060_s10, %s20215_s10   ;;  %s13992_s30 = sphi %s14058_s30, %s20214_s30  }
   0x4   : > { %s14083_s15 = sadd.s32 1, %s14004_s12   ;;  %s223_s16 = sadd.s32 1, %s14000_s11 }
   0x5   : > { %s220_s17 = ssub.s32 %s14004_s12, %s14083_s15  ;;  %p233_p0 = scmp.ne.s32.totalorder %s14000_s11, %s13996_s10 }
   0x6   : > { %p221_p1 = scmp.eq.s32.totalorder %s220_s17, 0  ;;  %p234_p2 = scmp.eq.s32.totalorder %s14079_s13, 1 }
   0x7   : > { %p239_p3 = scmp.ne.s32.totalorder %s13996_s10, %s13992_s30  ;;  %p240_p4 = scmp.eq.s32.totalorder %s11654_s14, 1 }
   0x8   : > { %s14094_s18 = scalar_select %p221_p1, %s14000_s11, %s223_s16  }
   0x9   : > { %p14096_p5 = por %p234_p2, %p233_p0  ;;  %p14100_p6 = por %p240_p4, %p239_p3 }
   0xa   : > { %p11657_p7 = scmp.ge.s32.totalorder %s14004_s12, 1  ;;  %p290_p8 = scmp.lt.s32.totalorder %s14004_s12, 3 }
   0xc   : > { %p291_p9 = pnand %p11657_p7, %p290_p8 }
   0xe   : > { %294 = sbr.rel (%p291_p9) target bundleno = 3319 (0xcf7), region = 56 }
  0x13   : > { %p325_p10 = scmp.lt.s32.totalorder %s14079_s13, 1  ;;  %v19394_v0 = vmov 0   ;;  %s14007_s14 = smov 64   ;;  %vm5547_vm0 = vcmask 523264   ;;  %vm5800_vm1 = vsmask.f32 7424 }
  0x14   : > { %13833 = vset.pattern.permute.xlu2 %v19394_v0  ;;  %5692 = vst [vmem:[#allocation2 + $0x60] sm:$0x1] %v19394_v0  ;;  %13832 = vset.pattern.permute.xlu1 %v19394_v0  ;;  %vm6140_vm2 = vcmask 1046528   ;;  %vm11576_vm3 = vcmask 13312   ;;  %s323_s29 = sand.u32 1, %s13996_s10   ;;  %vm11584_vm4 = vcmask 8192  }
  0x15   : > { %13831 = vset.pattern.permute.xlu0 %v19394_v0  ;;  %s326_s21 = scalar_select %p325_p10, %s14079_s13, 1 }
  0x16   : > { %s11587_s26 = scalar_lea.sflag [#allocation4], %s323_s29  ;;  %s13962_s28 = scalar_lea.hbm %s19393_s9, 2 }
  0x17   : > { %s13789_s22 = smul.u32 264, %s326_s21  ;;  %s11595_s21 = scalar_lea.hbm %s19393_s9, %s14079_s13 }
  0x18   : > { %s11599_s24 = sshll.u32 %s11595_s21, 4  ;;  %s11600_s24 = int_to_ptr.hbm [resolvable:$true] %s11599_s24 }
  0x19   : > { %s14115_s25 = scalar_lea.vmem %s19384_s0, %s13789_s22  ;;  %s324_s22 = scalar_lea.vmem [#allocation3], %s323_s29 }
  0x1a   : > { %v14118_v1 = vld [vmem:[%s14115_s25 + $0x20] sm:$0xff]  ;;  %v14121_v2 = vld [vmem:[%s14115_s25 + $0x10] sm:$0xff]  ;;  %v14127_v4 = vld [vmem:[%s14115_s25 + $0x28] sm:$0xff]  ;;  %s11597_s23 = sshll.u32 %s324_s22, 4  ;;  %s11598_s23 = int_to_ptr.vmem [resolvable:$true] %s11597_s23 }
  0x1b   : > { %v331_v3 = vld [vmem:[%s14115_s25] sm:$0xff]  ;;  %378 = vperm.xlu2 %13833, %v14118_v1   ;;  %368 = vperm.xlu1 %13832, %v14121_v2   ;;  %v14130_v5 = vld [vmem:[%s14115_s25 + $0x18] sm:$0xff]  ;;  %v332_v6 = vld [vmem:[%s14115_s25 + $0x8] sm:$0xff] }
  0x1c   : > { %358 = vperm.xlu0 %13831, %v331_v3   ;;  %v14136_v7 = vld [vmem:[%s14115_s25 + $0x40] sm:$0xff]  ;;  %v14139_v8 = vld [vmem:[%s14115_s25 + $0x38] sm:$0xff]  ;;  %v14142_v9 = vld [vmem:[%s14115_s25 + $0x30] sm:$0xff] }
  0x1d   : > { %v14148_v10 = vld [vmem:[%s14115_s25 + $0x58] sm:$0xff]  ;;  %v14151_v11 = vld [vmem:[%s14115_s25 + $0x50] sm:$0xff]  ;;  %v14154_v12 = vld [vmem:[%s14115_s25 + $0x48] sm:$0xff] }
  0x1e   : > { %v14160_v13 = vld [vmem:[%s14115_s25 + $0x70] sm:$0xff]  ;;  %v14163_v14 = vld [vmem:[%s14115_s25 + $0x68] sm:$0xff]  ;;  %v14166_v15 = vld [vmem:[%s14115_s25 + $0x60] sm:$0xff] }
  0x1f   : > { %v348_v16 = vld [vmem:[%s14115_s25 + $0x88] sm:$0xff]  ;;  %v14173_v17 = vld [vmem:[%s14115_s25 + $0x80] sm:$0xff]  ;;  %v14176_v18 = vld [vmem:[%s14115_s25 + $0x78] sm:$0xff] }
  0x20   : > { %v351_v19 = vld [vmem:[%s14115_s25 + $0xa0] sm:$0xff]  ;;  %v14182_v20 = vld [vmem:[%s14115_s25 + $0x98] sm:$0xff]  ;;  %v14185_v21 = vld [vmem:[%s14115_s25 + $0x90] sm:$0xff] }
  0x21   : > { %v354_v22 = vld [vmem:[%s14115_s25 + $0xb8] sm:$0xff]  ;;  %v353_v23 = vld [vmem:[%s14115_s25 + $0xb0] sm:$0xff]  ;;  %v352_v24 = vld [vmem:[%s14115_s25 + $0xa8] sm:$0xff] }
  0x22   : > { %v529_v25 = vld [vmem:[%s14115_s25 + $0x11] sm:$0xff]  ;;  %v528_v26 = vld [vmem:[%s14115_s25 + $0x9] sm:$0xff]  ;;  %v527_v27 = vld [vmem:[%s14115_s25 + $0x1] sm:$0xff] }
  0x23   : > { %383 = vperm.xlu2 %13833, %v14127_v4   ;;  %373 = vperm.xlu1 %13832, %v14130_v5   ;;  %v532_v28 = vld [vmem:[%s14115_s25 + $0x29] sm:$0xff]  ;;  %v531_v29 = vld [vmem:[%s14115_s25 + $0x21] sm:$0xff]  ;;  %v530_v30 = vld [vmem:[%s14115_s25 + $0x19] sm:$0xff] }
  0x24   : > { %363 = vperm.xlu0 %13831, %v332_v6   ;;  %v535_v31 = vld [vmem:[%s14115_s25 + $0x41] sm:$0xff]  ;;  %v534_v32 = vld [vmem:[%s14115_s25 + $0x39] sm:$0xff]  ;;  %v533_v33 = vld [vmem:[%s14115_s25 + $0x31] sm:$0xff] }
  0x25   : > { %v538_v34 = vld [vmem:[%s14115_s25 + $0x59] sm:$0xff]  ;;  %v537_v35 = vld [vmem:[%s14115_s25 + $0x51] sm:$0xff]  ;;  %v536_v36 = vld [vmem:[%s14115_s25 + $0x49] sm:$0xff] }
  0x26   : > { %v541_v38 = vld [vmem:[%s14115_s25 + $0x71] sm:$0xff]  ;;  %v540_v39 = vld [vmem:[%s14115_s25 + $0x69] sm:$0xff]  ;;  %v539_v40 = vld [vmem:[%s14115_s25 + $0x61] sm:$0xff] }
  0x27   : > { %v544_v42 = vld [vmem:[%s14115_s25 + $0x89] sm:$0xff]  ;;  %v543_v43 = vld [vmem:[%s14115_s25 + $0x81] sm:$0xff]  ;;  %v542_v44 = vld [vmem:[%s14115_s25 + $0x79] sm:$0xff] }
  0x28   : > { %v547_v46 = vld [vmem:[%s14115_s25 + $0xa1] sm:$0xff]  ;;  %v546_v47 = vld [vmem:[%s14115_s25 + $0x99] sm:$0xff]  ;;  %v545_v48 = vld [vmem:[%s14115_s25 + $0x91] sm:$0xff] }
  0x29   : > { %v550_v52 = vld [vmem:[%s14115_s25 + $0xb9] sm:$0xff]  ;;  %v549_v53 = vld [vmem:[%s14115_s25 + $0xb1] sm:$0xff]  ;;  %v548_v54 = vld [vmem:[%s14115_s25 + $0xa9] sm:$0xff] }
  0x2a   : > { %v726_v58 = vld [vmem:[%s14115_s25 + $0x12] sm:$0xff]  ;;  %v725_v59 = vld [vmem:[%s14115_s25 + $0xa] sm:$0xff]  ;;  %v724_v60 = vld [vmem:[%s14115_s25 + $0x2] sm:$0xff] }
  0x2b   : > { %398 = vperm.xlu2 %13833, %v14136_v7   ;;  %393 = vperm.xlu1 %13832, %v14139_v8   ;;  %v729_v3 = vld [vmem:[%s14115_s25 + $0x2a] sm:$0xff]  ;;  %v728_v6 = vld [vmem:[%s14115_s25 + $0x22] sm:$0xff]  ;;  %v931_v0 = vld [vmem:[%s14115_s25 + $0x53] sm:$0xff] }
  0x2c   : > { %388 = vperm.xlu0 %13831, %v14142_v9  }
  0x33   : > { %413 = vperm.xlu2 %13833, %v14148_v10   ;;  %408 = vperm.xlu1 %13832, %v14151_v11  }
  0x34   : > { %403 = vperm.xlu0 %13831, %v14154_v12  }
  0x3b   : > { %428 = vperm.xlu2 %13833, %v14160_v13   ;;  %423 = vperm.xlu1 %13832, %v14163_v14  }
  0x3c   : > { %418 = vperm.xlu0 %13831, %v14166_v15  }
  0x43   : > { %443 = vperm.xlu2 %13833, %v348_v16   ;;  %438 = vperm.xlu1 %13832, %v14173_v17   ;;  %v727_v16 = vld [vmem:[%s14115_s25 + $0x1a] sm:$0xff] }
  0x44   : > { %433 = vperm.xlu0 %13831, %v14176_v18  }
  0x4b   : > { %458 = vperm.xlu2 %13833, %v351_v19   ;;  %453 = vperm.xlu1 %13832, %v14182_v20  }
  0x4c   : > { %448 = vperm.xlu0 %13831, %v14185_v21  }
  0x53   : > { %473 = vperm.xlu2 %13833, %v354_v22   ;;  %468 = vperm.xlu1 %13832, %v353_v23  }
  0x54   : > { %463 = vperm.xlu0 %13831, %v352_v24   ;;  %v732_v24 = vld [vmem:[%s14115_s25 + $0x42] sm:$0xff] }
  0x5b   : > { %565 = vperm.xlu2 %13833, %v529_v25   ;;  %560 = vperm.xlu1 %13832, %v528_v26   ;;  %v731_v25 = vld [vmem:[%s14115_s25 + $0x3a] sm:$0xff]  ;;  %v730_v26 = vld [vmem:[%s14115_s25 + $0x32] sm:$0xff] }
  0x5c   : > { %555 = vperm.xlu0 %13831, %v527_v27  }
  0x63   : > { %580 = vperm.xlu2 %13833, %v532_v28   ;;  %575 = vperm.xlu1 %13832, %v531_v29  }
  0x64   : > { %570 = vperm.xlu0 %13831, %v530_v30   ;;  %v735_v30 = vld [vmem:[%s14115_s25 + $0x5a] sm:$0xff] }
  0x6b   : > { %595 = vperm.xlu2 %13833, %v535_v31   ;;  %590 = vperm.xlu1 %13832, %v534_v32   ;;  %v734_v31 = vld [vmem:[%s14115_s25 + $0x52] sm:$0xff]  ;;  %v733_v32 = vld [vmem:[%s14115_s25 + $0x4a] sm:$0xff] }
  0x6c   : > { %585 = vperm.xlu0 %13831, %v533_v33  }
  0x73   : > { %610 = vperm.xlu2 %13833, %v538_v34   ;;  %605 = vperm.xlu1 %13832, %v537_v35  }
  0x74   : > { %600 = vperm.xlu0 %13831, %v536_v36   ;;  %v738_v36 = vld [vmem:[%s14115_s25 + $0x72] sm:$0xff] }
  0x75   : > { %v14204_v37 = vpop.permute.xlu2 %378 }
  0x76   : > { %19430 = vst [vmem:[#allocation6_spill] sm:$0xff] %v14204_v37  ;;  %v2707_v37 = vld [vmem:[%s14115_s25 + $0x8a] sm:$0xff] }
  0x7b   : > { %625 = vperm.xlu2 %13833, %v541_v38   ;;  %620 = vperm.xlu1 %13832, %v540_v39   ;;  %v737_v38 = vld [vmem:[%s14115_s25 + $0x6a] sm:$0xff]  ;;  %v736_v39 = vld [vmem:[%s14115_s25 + $0x62] sm:$0xff] }
  0x7c   : > { %615 = vperm.xlu0 %13831, %v539_v40  }
  0x7d   : > { %v14209_v41 = vpop.permute.xlu2 %383 }
  0x7e   : > { %19431 = vst [vmem:[#allocation7_spill] sm:$0xff] %v14209_v41 }
  0x83   : > { %640 = vperm.xlu2 %13833, %v544_v42   ;;  %635 = vperm.xlu1 %13832, %v543_v43  }
  0x84   : > { %630 = vperm.xlu0 %13831, %v542_v44   ;;  %v741_v44 = vld [vmem:[%s14115_s25 + $0x8a] sm:$0xff] }
  0x85   : > { %v14214_v45 = vpop.permute.xlu2 %398 }
  0x86   : > { %19432 = vst [vmem:[#allocation8_spill] sm:$0xff] %v14214_v45  ;;  %v1913_v45 = vld [vmem:[%s14115_s25 + $0x4b] sm:$0xff] }
  0x8b   : > { %655 = vperm.xlu2 %13833, %v547_v46   ;;  %650 = vperm.xlu1 %13832, %v546_v47   ;;  %v740_v46 = vld [vmem:[%s14115_s25 + $0x82] sm:$0xff]  ;;  %v739_v47 = vld [vmem:[%s14115_s25 + $0x7a] sm:$0xff] }
  0x8c   : > { %645 = vperm.xlu0 %13831, %v545_v48  }
  0x8d   : > { %v14219_v49 = vpop.permute.xlu2 %413  ;;  %v14221_v50 = vpop.permute.xlu1 %368 }
  0x8e   : > { %19433 = vst [vmem:[#allocation9_spill] sm:$0xff] %v14219_v49  ;;  %v14223_v51 = vpop.permute.xlu0 %358  ;;  %v1909_v49 = vld [vmem:[%s14115_s25 + $0x2b] sm:$0xff] }
  0x93   : > { %670 = vperm.xlu2 %13833, %v550_v52   ;;  %665 = vperm.xlu1 %13832, %v549_v53  }
  0x94   : > { %660 = vperm.xlu0 %13831, %v548_v54   ;;  %v744_v54 = vld [vmem:[%s14115_s25 + $0xa2] sm:$0xff] }
  0x95   : > { %v14228_v55 = vpop.permute.xlu2 %428  ;;  %v14230_v56 = vpop.permute.xlu1 %373 }
  0x96   : > { %19434 = vst [vmem:[#allocation10_spill] sm:$0xff] %v14228_v55  ;;  %v14232_v57 = vpop.permute.xlu0 %363  ;;  %v938_v55 = vld [vmem:[%s14115_s25 + $0x8b] sm:$0xff] }
  0x9b   : > { %762 = vperm.xlu2 %13833, %v726_v58   ;;  %757 = vperm.xlu1 %13832, %v725_v59   ;;  %v743_v58 = vld [vmem:[%s14115_s25 + $0x9a] sm:$0xff]  ;;  %v742_v59 = vld [vmem:[%s14115_s25 + $0x92] sm:$0xff] }
  0x9c   : > { %752 = vperm.xlu0 %13831, %v724_v60  }
  0x9d   : > { %v14237_v61 = vpop.permute.xlu2 %443  ;;  %v14239_v62 = vpop.permute.xlu1 %393 }
  0x9e   : > { %19435 = vst [vmem:[#allocation11_spill] sm:$0xff] %v14237_v61  ;;  %v14241_v63 = vpop.permute.xlu0 %388  ;;  %v1910_v61 = vld [vmem:[%s14115_s25 + $0x33] sm:$0xff] }
  0x9f   : > { %19436 = vst [vmem:[#allocation12_spill] sm:$0xff] %v14239_v62  ;;  %v2119_v62 = vld [vmem:[%s14115_s25 + $0x94] sm:$0xff] }
  0xa0   : > { %19437 = vst [vmem:[#allocation13_spill] sm:$0xff] %v14241_v63  ;;  %v2303_v63 = vld [vmem:[%s14115_s25 + $0x38] sm:$0xff] }
  0xa3   : > { %777 = vperm.xlu2 %13833, %v729_v3   ;;  %772 = vperm.xlu1 %13832, %v728_v6  }
  0xa4   : > { %767 = vperm.xlu0 %13831, %v727_v16   ;;  %v747_v16 = vld [vmem:[%s14115_s25 + $0xba] sm:$0xff] }
  0xa5   : > { %v14246_v19 = vpop.permute.xlu2 %458  ;;  %v14248_v22 = vpop.permute.xlu1 %408 }
  0xa6   : > { %19438 = vst [vmem:[#allocation14_spill] sm:$0xff] %v14246_v19  ;;  %v14250_v23 = vpop.permute.xlu0 %403  ;;  %v1906_v19 = vld [vmem:[%s14115_s25 + $0x13] sm:$0xff] }
  0xa7   : > { %19439 = vst [vmem:[#allocation15_spill] sm:$0xff] %v14248_v22  ;;  %v1728_v22 = vld [vmem:[%s14115_s25 + $0xaa] sm:$0xff] }
  0xa8   : > { %19440 = vst [vmem:[#allocation16_spill] sm:$0xff] %v14250_v23  ;;  %v1725_v23 = vld [vmem:[%s14115_s25 + $0x92] sm:$0xff] }
  0xab   : > { %792 = vperm.xlu2 %13833, %v732_v24   ;;  %787 = vperm.xlu1 %13832, %v731_v25   ;;  %v746_v24 = vld [vmem:[%s14115_s25 + $0xb2] sm:$0xff]  ;;  %v745_v25 = vld [vmem:[%s14115_s25 + $0xaa] sm:$0xff] }
  0xac   : > { %782 = vperm.xlu0 %13831, %v730_v26  }
  0xad   : > { %v14255_v27 = vpop.permute.xlu2 %473  ;;  %v14257_v28 = vpop.permute.xlu1 %423 }
  0xae   : > { %19441 = vst [vmem:[#allocation17_spill] sm:$0xff] %v14255_v27  ;;  %v14259_v29 = vpop.permute.xlu0 %418  ;;  %v935_v27 = vld [vmem:[%s14115_s25 + $0x73] sm:$0xff] }
  0xaf   : > { %19442 = vst [vmem:[#allocation18_spill] sm:$0xff] %v14257_v28  ;;  %v940_v28 = vld [vmem:[%s14115_s25 + $0x9b] sm:$0xff] }
  0xb0   : > { %19443 = vst [vmem:[#allocation19_spill] sm:$0xff] %v14259_v29  ;;  %v936_v29 = vld [vmem:[%s14115_s25 + $0x7b] sm:$0xff] }
  0xb3   : > { %807 = vperm.xlu2 %13833, %v735_v30   ;;  %802 = vperm.xlu1 %13832, %v734_v31  }
  0xb4   : > { %797 = vperm.xlu0 %13831, %v733_v32   ;;  %v923_v32 = vld [vmem:[%s14115_s25 + $0x13] sm:$0xff] }
  0xb5   : > { %v14264_v33 = vpop.permute.xlu2 %565  ;;  %v14266_v34 = vpop.permute.xlu1 %438 }
  0xb6   : > { %19444 = vst [vmem:[#allocation20_spill] sm:$0xff] %v14266_v34  ;;  %v14268_v35 = vpop.permute.xlu0 %433  ;;  %v1719_v34 = vld [vmem:[%s14115_s25 + $0x62] sm:$0xff] }
  0xb7   : > { %19445 = vst [vmem:[#allocation21_spill] sm:$0xff] %v14268_v35  ;;  %v933_v35 = vld [vmem:[%s14115_s25 + $0x63] sm:$0xff] }
  0xbb   : > { %822 = vperm.xlu2 %13833, %v738_v36   ;;  %817 = vperm.xlu1 %13832, %v737_v38   ;;  %v922_v36 = vld [vmem:[%s14115_s25 + $0xb] sm:$0xff]  ;;  %v921_v38 = vld [vmem:[%s14115_s25 + $0x3] sm:$0xff] }
  0xbc   : > { %812 = vperm.xlu0 %13831, %v736_v39  }
  0xbd   : > { %v14273_v40 = vpop.permute.xlu2 %580  ;;  %v14275_v42 = vpop.permute.xlu1 %453 }
  0xbe   : > { %19446 = vst [vmem:[#allocation22_spill] sm:$0xff] %v14273_v40  ;;  %v14277_v43 = vpop.permute.xlu0 %448 }
  0xbf   : > { %19447 = vst [vmem:[#allocation23_spill] sm:$0xff] %v14275_v42  ;;  %v1119_v42 = vld [vmem:[%s14115_s25 + $0xc] sm:$0xff] }
  0xc0   : > { %19448 = vst [vmem:[#allocation24_spill] sm:$0xff] %v14277_v43  ;;  %v1120_v43 = vld [vmem:[%s14115_s25 + $0x14] sm:$0xff] }
  0xc3   : > { %837 = vperm.xlu2 %13833, %v741_v44   ;;  %832 = vperm.xlu1 %13832, %v740_v46  }
  0xc4   : > { %827 = vperm.xlu0 %13831, %v739_v47   ;;  %v926_v47 = vld [vmem:[%s14115_s25 + $0x2b] sm:$0xff] }
  0xc5   : > { %v14282_v48 = vpop.permute.xlu2 %595  ;;  %v14284_v52 = vpop.permute.xlu1 %468 }
  0xc6   : > { %19449 = vst [vmem:[#allocation25_spill] sm:$0xff] %v14282_v48  ;;  %v14286_v53 = vpop.permute.xlu0 %463  ;;  %v1715_v48 = vld [vmem:[%s14115_s25 + $0x42] sm:$0xff] }
  0xc7   : > { %19450 = vst [vmem:[#allocation26_spill] sm:$0xff] %v14284_v52  ;;  %v930_v52 = vld [vmem:[%s14115_s25 + $0x4b] sm:$0xff] }
  0xc8   : > { %19451 = vst [vmem:[#allocation27_spill] sm:$0xff] %v14286_v53  ;;  %v943_v53 = vld [vmem:[%s14115_s25 + $0xb3] sm:$0xff] }
  0xcb   : > { %852 = vperm.xlu2 %13833, %v744_v54   ;;  %847 = vperm.xlu1 %13832, %v743_v58   ;;  %v925_v54 = vld [vmem:[%s14115_s25 + $0x23] sm:$0xff]  ;;  %v924_v58 = vld [vmem:[%s14115_s25 + $0x1b] sm:$0xff] }
  0xcc   : > { %842 = vperm.xlu0 %13831, %v742_v59  }
  0xcd   : > { %v14291_v60 = vpop.permute.xlu2 %610  ;;  %v14293_v3 = vpop.permute.xlu1 %560 }
  0xce   : > { %19452 = vst [vmem:[#allocation28_spill] sm:$0xff] %v14291_v60  ;;  %v14295_v6 = vpop.permute.xlu0 %555  ;;  %v1716_v60 = vld [vmem:[%s14115_s25 + $0x4a] sm:$0xff] }
  0xd3   : > { %867 = vperm.xlu2 %13833, %v747_v16   ;;  %862 = vperm.xlu1 %13832, %v746_v24  }
  0xd4   : > { %857 = vperm.xlu0 %13831, %v745_v25   ;;  %v929_v25 = vld [vmem:[%s14115_s25 + $0x43] sm:$0xff] }
  0xd5   : > { %v14300_v26 = vpop.permute.xlu2 %625  ;;  %v14302_v30 = vpop.permute.xlu1 %575 }
  0xd6   : > { %19453 = vst [vmem:[#allocation29_spill] sm:$0xff] %v14300_v26  ;;  %v14304_v31 = vpop.permute.xlu0 %570  ;;  %v937_v26 = vld [vmem:[%s14115_s25 + $0x83] sm:$0xff] }
  0xd7   : > { %19454 = vst [vmem:[#allocation30_spill] sm:$0xff] %v14302_v30  ;;  %v2703_v30 = vld [vmem:[%s14115_s25 + $0x6a] sm:$0xff] }
  0xdb   : > { %959 = vperm.xlu2 %13833, %v923_v32   ;;  %954 = vperm.xlu1 %13832, %v922_v36   ;;  %v928_v32 = vld [vmem:[%s14115_s25 + $0x3b] sm:$0xff]  ;;  %v927_v36 = vld [vmem:[%s14115_s25 + $0x33] sm:$0xff] }
  0xdc   : > { %949 = vperm.xlu0 %13831, %v921_v38  }
  0xdd   : > { %v14309_v39 = vpop.permute.xlu2 %640  ;;  %v14311_v44 = vpop.permute.xlu1 %590 }
  0xde   : > { %19455 = vst [vmem:[#allocation31_spill] sm:$0xff] %v14309_v39  ;;  %v14313_v46 = vpop.permute.xlu0 %585  ;;  %v1139_v39 = vld [vmem:[%s14115_s25 + $0xac] sm:$0xff] }
  0xdf   : > { %19456 = vst [vmem:[#allocation32_spill] sm:$0xff] %v14311_v44  ;;  %v2300_v44 = vld [vmem:[%s14115_s25 + $0x20] sm:$0xff] }
  0xe0   : > { %19457 = vst [vmem:[#allocation33_spill] sm:$0xff] %v14313_v46  ;;  %v2307_v46 = vld [vmem:[%s14115_s25 + $0x58] sm:$0xff] }
  0xe3   : > { %974 = vperm.xlu2 %13833, %v926_v47   ;;  %969 = vperm.xlu1 %13832, %v925_v54  }
  0xe4   : > { %964 = vperm.xlu0 %13831, %v924_v58   ;;  %v932_v58 = vld [vmem:[%s14115_s25 + $0x5b] sm:$0xff] }
  0xe5   : > { %v14318_v59 = vpop.permute.xlu2 %655  ;;  %v14320_v16 = vpop.permute.xlu1 %605 }
  0xe6   : > { %19458 = vst [vmem:[#allocation34_spill] sm:$0xff] %v14318_v59  ;;  %v14322_v24 = vpop.permute.xlu0 %600 }
  0xe7   : > { %19459 = vst [vmem:[#allocation35_spill] sm:$0xff] %v14320_v16  ;;  %v1137_v16 = vld [vmem:[%s14115_s25 + $0x9c] sm:$0xff] }
  0xe8   : > { %19460 = vst [vmem:[#allocation36_spill] sm:$0xff] %v14322_v24  ;;  %v1134_v24 = vld [vmem:[%s14115_s25 + $0x84] sm:$0xff] }
  0xeb   : > { %989 = vperm.xlu2 %13833, %v929_v25   ;;  %984 = vperm.xlu1 %13832, %v928_v32  }
  0xec   : > { %979 = vperm.xlu0 %13831, %v927_v36  }
  0xed   : > { %v14327_v38 = vpop.permute.xlu2 %670  ;;  %v14329_v47 = vpop.permute.xlu1 %620 }
  0xee   : > { %19461 = vst [vmem:[#allocation37_spill] sm:$0xff] %v14327_v38  ;;  %v14331_v54 = vpop.permute.xlu0 %615  ;;  %v934_v38 = vld [vmem:[%s14115_s25 + $0x6b] sm:$0xff] }
  0xef   : > { %19462 = vst [vmem:[#allocation38_spill] sm:$0xff] %v14329_v47  ;;  %v944_v47 = vld [vmem:[%s14115_s25 + $0xbb] sm:$0xff] }
  0xf0   : > { %19463 = vst [vmem:[#allocation39_spill] sm:$0xff] %v14331_v54  ;;  %v939_v54 = vld [vmem:[%s14115_s25 + $0x93] sm:$0xff] }
  0xf3   : > { %1004 = vperm.xlu2 %13833, %v932_v58   ;;  %999 = vperm.xlu1 %13832, %v931_v0  }
  0xf4   : > { %994 = vperm.xlu0 %13831, %v930_v52  }
  0xf5   : > { %v14336_v25 = vpop.permute.xlu2 %762  ;;  %v14338_v32 = vpop.permute.xlu1 %635 }
  0xf6   : > { %19464 = vst [vmem:[#allocation40_spill] sm:$0xff] %v14338_v32  ;;  %v14340_v36 = vpop.permute.xlu0 %630  ;;  %v1128_v32 = vld [vmem:[%s14115_s25 + $0x54] sm:$0xff] }
  0xf7   : > { %19465 = vst [vmem:[#allocation41_spill] sm:$0xff] %v14340_v36  ;;  %v941_v36 = vld [vmem:[%s14115_s25 + $0xa3] sm:$0xff] }
  0xfb   : > { %1019 = vperm.xlu2 %13833, %v935_v27   ;;  %1014 = vperm.xlu1 %13832, %v934_v38  }
  0xfc   : > { %1009 = vperm.xlu0 %13831, %v933_v35  }
  0xfd   : > { %v14345_v58 = vpop.permute.xlu2 %777  ;;  %v14347_v0 = vpop.permute.xlu1 %650 }
  0xfe   : > { %19466 = vst [vmem:[#allocation42_spill] sm:$0xff] %v14345_v58  ;;  %v14349_v52 = vpop.permute.xlu0 %645  ;;  %v2704_v58 = vld [vmem:[%s14115_s25 + $0x72] sm:$0xff] }
  0xff   : > { %19467 = vst [vmem:[#allocation43_spill] sm:$0xff] %v14347_v0  ;;  %v1124_v0 = vld [vmem:[%s14115_s25 + $0x34] sm:$0xff] }
 0x100   : > { %19468 = vst [vmem:[#allocation44_spill] sm:$0xff] %v14349_v52  ;;  %v1125_v52 = vld [vmem:[%s14115_s25 + $0x3c] sm:$0xff] }
 0x103   : > { %1034 = vperm.xlu2 %13833, %v938_v55   ;;  %1029 = vperm.xlu1 %13832, %v937_v26  }
 0x104   : > { %1024 = vperm.xlu0 %13831, %v936_v29  }
 0x105   : > { %v14354_v27 = vpop.permute.xlu2 %792  ;;  %v14356_v38 = vpop.permute.xlu1 %665 }
 0x106   : > { %19469 = vst [vmem:[#allocation45_spill] sm:$0xff] %v14354_v27  ;;  %v14358_v35 = vpop.permute.xlu0 %660  ;;  %v1121_v27 = vld [vmem:[%s14115_s25 + $0x1c] sm:$0xff] }
 0x107   : > { %19470 = vst [vmem:[#allocation46_spill] sm:$0xff] %v14356_v38  ;;  %v942_v38 = vld [vmem:[%s14115_s25 + $0xab] sm:$0xff] }
 0x108   : > { %19471 = vst [vmem:[#allocation47_spill] sm:$0xff] %v14358_v35  ;;  %v1122_v35 = vld [vmem:[%s14115_s25 + $0x24] sm:$0xff] }
 0x10b   : > { %1049 = vperm.xlu2 %13833, %v941_v36   ;;  %1044 = vperm.xlu1 %13832, %v940_v28  }
 0x10c   : > { %1039 = vperm.xlu0 %13831, %v939_v54  }
 0x10d   : > { %v14363_v55 = vpop.permute.xlu2 %807  ;;  %v14365_v26 = vpop.permute.xlu1 %757 }
 0x10e   : > { %19472 = vst [vmem:[#allocation48_spill] sm:$0xff] %v14363_v55  ;;  %v14367_v29 = vpop.permute.xlu0 %752  ;;  %v1118_v55 = vld [vmem:[%s14115_s25 + $0x4] sm:$0xff] }
 0x113   : > { %1064 = vperm.xlu2 %13833, %v944_v47   ;;  %1059 = vperm.xlu1 %13832, %v943_v53  }
 0x114   : > { %1054 = vperm.xlu0 %13831, %v942_v38  }
 0x115   : > { %v14372_v36 = vpop.permute.xlu2 %822  ;;  %v14374_v28 = vpop.permute.xlu1 %772 }
 0x116   : > { %19473 = vst [vmem:[#allocation49_spill] sm:$0xff] %v14372_v36  ;;  %v14376_v54 = vpop.permute.xlu0 %767  ;;  %v1123_v36 = vld [vmem:[%s14115_s25 + $0x2c] sm:$0xff] }
 0x117   : > { %19474 = vst [vmem:[#allocation50_spill] sm:$0xff] %v14374_v28 }
 0x11b   : > { %1156 = vperm.xlu2 %13833, %v1120_v43   ;;  %1151 = vperm.xlu1 %13832, %v1119_v42  }
 0x11c   : > { %1146 = vperm.xlu0 %13831, %v1118_v55  }
 0x11d   : > { %v14381_v47 = vpop.permute.xlu2 %837  ;;  %v14383_v53 = vpop.permute.xlu1 %787 }
 0x11e   : > { %19475 = vst [vmem:[#allocation51_spill] sm:$0xff] %v14381_v47  ;;  %v14385_v38 = vpop.permute.xlu0 %782  ;;  %v1126_v47 = vld [vmem:[%s14115_s25 + $0x44] sm:$0xff] }
 0x11f   : > { %19476 = vst [vmem:[#allocation52_spill] sm:$0xff] %v14383_v53  ;;  %v2110_v53 = vld [vmem:[%s14115_s25 + $0x4c] sm:$0xff] }
 0x120   : > { %19477 = vst [vmem:[#allocation53_spill] sm:$0xff] %v14385_v38  ;;  %v2304_v38 = vld [vmem:[%s14115_s25 + $0x40] sm:$0xff] }
 0x123   : > { %1171 = vperm.xlu2 %13833, %v1123_v36   ;;  %1166 = vperm.xlu1 %13832, %v1122_v35  }
 0x124   : > { %1161 = vperm.xlu0 %13831, %v1121_v27  }
 0x125   : > { %v14390_v43 = vpop.permute.xlu2 %852  ;;  %v14392_v42 = vpop.permute.xlu1 %802 }
 0x126   : > { %19478 = vst [vmem:[#allocation54_spill] sm:$0xff] %v14390_v43  ;;  %v14394_v55 = vpop.permute.xlu0 %797  ;;  %v1129_v43 = vld [vmem:[%s14115_s25 + $0x5c] sm:$0xff] }
 0x127   : > { %19479 = vst [vmem:[#allocation55_spill] sm:$0xff] %v14392_v42  ;;  %v1127_v42 = vld [vmem:[%s14115_s25 + $0x4c] sm:$0xff] }
 0x128   : > { %19480 = vst [vmem:[#allocation56_spill] sm:$0xff] %v14394_v55  ;;  %v1131_v55 = vld [vmem:[%s14115_s25 + $0x6c] sm:$0xff] }
 0x12b   : > { %1186 = vperm.xlu2 %13833, %v1126_v47   ;;  %1181 = vperm.xlu1 %13832, %v1125_v52  }
 0x12c   : > { %1176 = vperm.xlu0 %13831, %v1124_v0  }
 0x12d   : > { %v14399_v36 = vpop.permute.xlu2 %867  ;;  %v14401_v35 = vpop.permute.xlu1 %817 }
 0x12e   : > { %19481 = vst [vmem:[#allocation57_spill] sm:$0xff] %v14399_v36  ;;  %v14403_v27 = vpop.permute.xlu0 %812  ;;  %v1132_v36 = vld [vmem:[%s14115_s25 + $0x74] sm:$0xff] }
 0x12f   : > { %19482 = vst [vmem:[#allocation58_spill] sm:$0xff] %v14401_v35  ;;  %v1130_v35 = vld [vmem:[%s14115_s25 + $0x64] sm:$0xff] }
 0x130   : > { %19483 = vst [vmem:[#allocation59_spill] sm:$0xff] %v14403_v27  ;;  %v1135_v27 = vld [vmem:[%s14115_s25 + $0x8c] sm:$0xff] }
 0x133   : > { %1201 = vperm.xlu2 %13833, %v1129_v43   ;;  %1196 = vperm.xlu1 %13832, %v1128_v32  }
 0x134   : > { %1191 = vperm.xlu0 %13831, %v1127_v42  }
 0x135   : > { %v14408_v47 = vpop.permute.xlu2 %959  ;;  %v14410_v52 = vpop.permute.xlu1 %832 }
 0x136   : > { %19484 = vst [vmem:[#allocation60_spill] sm:$0xff] %v14410_v52  ;;  %v14412_v0 = vpop.permute.xlu0 %827  ;;  %v1133_v52 = vld [vmem:[%s14115_s25 + $0x7c] sm:$0xff] }
 0x137   : > { %19485 = vst [vmem:[#allocation61_spill] sm:$0xff] %v14412_v0  ;;  %v1138_v0 = vld [vmem:[%s14115_s25 + $0xa4] sm:$0xff] }
 0x13b   : > { %1216 = vperm.xlu2 %13833, %v1132_v36   ;;  %1211 = vperm.xlu1 %13832, %v1131_v55  }
 0x13c   : > { %1206 = vperm.xlu0 %13831, %v1130_v35  }
 0x13d   : > { %v14417_v43 = vpop.permute.xlu2 %974  ;;  %v14419_v32 = vpop.permute.xlu1 %847 }
 0x13e   : > { %19486 = vst [vmem:[#allocation62_spill] sm:$0xff] %v14417_v43  ;;  %v14421_v42 = vpop.permute.xlu0 %842  ;;  %v15001_v43 = vld [vmem:[%s14115_s25 + $0x52] sm:$0xff] }
 0x13f   : > { %19487 = vst [vmem:[#allocation63_spill] sm:$0xff] %v14419_v32  ;;  %v1136_v32 = vld [vmem:[%s14115_s25 + $0x94] sm:$0xff] }
 0x140   : > { %19488 = vst [vmem:[#allocation64_spill] sm:$0xff] %v14421_v42 }
 0x143   : > { %1231 = vperm.xlu2 %13833, %v1135_v27   ;;  %1226 = vperm.xlu1 %13832, %v1134_v24   ;;  %v1141_v24 = vld [vmem:[%s14115_s25 + $0xbc] sm:$0xff] }
 0x144   : > { %1221 = vperm.xlu0 %13831, %v1133_v52   ;;  %v1140_v52 = vld [vmem:[%s14115_s25 + $0xb4] sm:$0xff] }
 0x145   : > { %v14426_v36 = vpop.permute.xlu2 %989  ;;  %v14428_v55 = vpop.permute.xlu1 %862 }
 0x146   : > { %19489 = vst [vmem:[#allocation65_spill] sm:$0xff] %v14426_v36  ;;  %v14430_v35 = vpop.permute.xlu0 %857 }
 0x147   : > { %19490 = vst [vmem:[#allocation66_spill] sm:$0xff] %v14428_v55 }
 0x148   : > { %19491 = vst [vmem:[#allocation67_spill] sm:$0xff] %v14430_v35 }
 0x14b   : > { %1246 = vperm.xlu2 %13833, %v1138_v0   ;;  %1241 = vperm.xlu1 %13832, %v1137_v16  }
 0x14c   : > { %1236 = vperm.xlu0 %13831, %v1136_v32  }
 0x14d   : > { %v14435_v42 = vpop.permute.xlu2 %1004  ;;  %v14437_v59 = vpop.permute.xlu1 %954 }
 0x14e   : > { %19492 = vst [vmem:[#allocation68_spill] sm:$0xff] %v14435_v42  ;;  %v14439_v27 = vpop.permute.xlu0 %949  ;;  %v1712_v42 = vld [vmem:[%s14115_s25 + $0x2a] sm:$0xff] }
 0x153   : > { %1261 = vperm.xlu2 %13833, %v1141_v24   ;;  %1256 = vperm.xlu1 %13832, %v1140_v52   ;;  %v1334_v52 = vld [vmem:[%s14115_s25 + $0xa8] sm:$0xff] }
 0x154   : > { %1251 = vperm.xlu0 %13831, %v1139_v39  }
 0x155   : > { %v14444_v55 = vpop.permute.xlu2 %1019  ;;  %v14446_v35 = vpop.permute.xlu1 %969 }
 0x156   : > { %19493 = vst [vmem:[#allocation69_spill] sm:$0xff] %v14444_v55  ;;  %v14448_v36 = vpop.permute.xlu0 %964  ;;  %v1337_v55 = vld [vmem:[%s14115_s25 + $0xc0] sm:$0xff] }
 0x157   : > { %19494 = vst [vmem:[#allocation70_spill] sm:$0xff] %v14446_v35  ;;  %v2694_v35 = vld [vmem:[%s14115_s25 + $0x22] sm:$0xff] }
 0x15b   : > { %1353 = vperm.xlu2 %13833, %v14118_v1   ;;  %1348 = vperm.xlu1 %13832, %v14130_v5  }
 0x15c   : > { %1343 = vperm.xlu0 %13831, %v14121_v2  }
 0x15d   : > { %v14453_v16 = vpop.permute.xlu2 %1034  ;;  %v14455_v0 = vpop.permute.xlu1 %984 }
 0x15e   : > { %19495 = vst [vmem:[#allocation71_spill] sm:$0xff] %v14453_v16  ;;  %v14457_v32 = vpop.permute.xlu0 %979  ;;  %v1713_v16 = vld [vmem:[%s14115_s25 + $0x32] sm:$0xff] }
 0x15f   : > { %19496 = vst [vmem:[#allocation72_spill] sm:$0xff] %v14455_v0  ;;  %v2107_v0 = vld [vmem:[%s14115_s25 + $0x34] sm:$0xff] }
 0x160   : > { %19497 = vst [vmem:[#allocation73_spill] sm:$0xff] %v14457_v32  ;;  %v2122_v32 = vld [vmem:[%s14115_s25 + $0xac] sm:$0xff] }
 0x163   : > { %1368 = vperm.xlu2 %13833, %v14139_v8   ;;  %1363 = vperm.xlu1 %13832, %v14142_v9  }
 0x164   : > { %1358 = vperm.xlu0 %13831, %v14127_v4  }
 0x165   : > { %v14462_v39 = vpop.permute.xlu2 %1049  ;;  %v14464_v24 = vpop.permute.xlu1 %999 }
 0x166   : > { %19498 = vst [vmem:[#allocation74_spill] sm:$0xff] %v14462_v39  ;;  %v14466_v1 = vpop.permute.xlu0 %994  ;;  %v1709_v39 = vld [vmem:[%s14115_s25 + $0x12] sm:$0xff] }
 0x167   : > { %19499 = vst [vmem:[#allocation75_spill] sm:$0xff] %v14464_v24  ;;  %v1531_v24 = vld [vmem:[%s14115_s25 + $0xa9] sm:$0xff] }
 0x168   : > { %19500 = vst [vmem:[#allocation76_spill] sm:$0xff] %v14466_v1  ;;  %v1528_v1 = vld [vmem:[%s14115_s25 + $0x91] sm:$0xff] }
 0x16b   : > { %1383 = vperm.xlu2 %13833, %v14151_v11   ;;  %1378 = vperm.xlu1 %13832, %v14154_v12  }
 0x16c   : > { %1373 = vperm.xlu0 %13831, %v14136_v7  }
 0x16d   : > { %v14471_v2 = vpop.permute.xlu2 %1064  ;;  %v14473_v5 = vpop.permute.xlu1 %1014 }
 0x16e   : > { %19501 = vst [vmem:[#allocation77_spill] sm:$0xff] %v14471_v2  ;;  %v14475_v8 = vpop.permute.xlu0 %1009  ;;  %v1333_v2 = vld [vmem:[%s14115_s25 + $0xa0] sm:$0xff] }
 0x16f   : > { %19502 = vst [vmem:[#allocation78_spill] sm:$0xff] %v14473_v5  ;;  %v1513_v5 = vld [vmem:[%s14115_s25 + $0x19] sm:$0xff] }
 0x170   : > { %19503 = vst [vmem:[#allocation79_spill] sm:$0xff] %v14475_v8  ;;  %v1514_v8 = vld [vmem:[%s14115_s25 + $0x21] sm:$0xff] }
 0x173   : > { %1398 = vperm.xlu2 %13833, %v14163_v14   ;;  %1393 = vperm.xlu1 %13832, %v14166_v15   ;;  %v1330_v14 = vld [vmem:[%s14115_s25 + $0x88] sm:$0xff] }
 0x174   : > { %1388 = vperm.xlu0 %13831, %v14148_v10  }
 0x175   : > { %v14480_v4 = vpop.permute.xlu2 %1156  ;;  %v14482_v9 = vpop.permute.xlu1 %1029 }
 0x176   : > { %19504 = vst [vmem:[#allocation80_spill] sm:$0xff] %v14482_v9  ;;  %v14484_v7 = vpop.permute.xlu0 %1024  ;;  %v1522_v9 = vld [vmem:[%s14115_s25 + $0x61] sm:$0xff] }
 0x177   : > { %19505 = vst [vmem:[#allocation81_spill] sm:$0xff] %v14484_v7  ;;  %v1338_v7 = vld [vmem:[%s14115_s25 + $0xc8] sm:$0xff] }
 0x17b   : > { %1413 = vperm.xlu2 %13833, %v14173_v17   ;;  %1408 = vperm.xlu1 %13832, %v14176_v18   ;;  %v1335_v18 = vld [vmem:[%s14115_s25 + $0xb0] sm:$0xff] }
 0x17c   : > { %1403 = vperm.xlu0 %13831, %v14160_v13  }
 0x17d   : > { %v14489_v11 = vpop.permute.xlu2 %1171  ;;  %v14491_v12 = vpop.permute.xlu1 %1044 }
 0x17e   : > { %19506 = vst [vmem:[#allocation82_spill] sm:$0xff] %v14489_v11  ;;  %v14493_v10 = vpop.permute.xlu0 %1039  ;;  %v14985_v11 = vld [vmem:[%s14115_s25 + $0x3a] sm:$0xff] }
 0x17f   : > { %19507 = vst [vmem:[#allocation83_spill] sm:$0xff] %v14491_v12  ;;  %v1518_v12 = vld [vmem:[%s14115_s25 + $0x41] sm:$0xff] }
 0x180   : > { %19508 = vst [vmem:[#allocation84_spill] sm:$0xff] %v14493_v10  ;;  %v1519_v10 = vld [vmem:[%s14115_s25 + $0x49] sm:$0xff] }
 0x183   : > { %1428 = vperm.xlu2 %13833, %v14182_v20   ;;  %1423 = vperm.xlu1 %13832, %v14185_v21  }
 0x184   : > { %1418 = vperm.xlu0 %13831, %v1330_v14  }
 0x185   : > { %v14498_v15 = vpop.permute.xlu2 %1186  ;;  %v14500_v17 = vpop.permute.xlu1 %1059 }
 0x186   : > { %19509 = vst [vmem:[#allocation85_spill] sm:$0xff] %v14498_v15  ;;  %v14502_v13 = vpop.permute.xlu0 %1054  ;;  %v1515_v15 = vld [vmem:[%s14115_s25 + $0x29] sm:$0xff] }
 0x187   : > { %19510 = vst [vmem:[#allocation86_spill] sm:$0xff] %v14500_v17  ;;  %v1336_v17 = vld [vmem:[%s14115_s25 + $0xb8] sm:$0xff] }
 0x188   : > { %19511 = vst [vmem:[#allocation87_spill] sm:$0xff] %v14502_v13  ;;  %v1516_v13 = vld [vmem:[%s14115_s25 + $0x31] sm:$0xff] }
 0x18b   : > { %1443 = vperm.xlu2 %13833, %v1335_v18   ;;  %1438 = vperm.xlu1 %13832, %v1334_v52  }
 0x18c   : > { %1433 = vperm.xlu0 %13831, %v1333_v2  }
 0x18d   : > { %v14507_v20 = vpop.permute.xlu2 %1201  ;;  %v14509_v21 = vpop.permute.xlu1 %1151 }
 0x18e   : > { %19512 = vst [vmem:[#allocation88_spill] sm:$0xff] %v14507_v20  ;;  %v14511_v14 = vpop.permute.xlu0 %1146  ;;  %v1512_v20 = vld [vmem:[%s14115_s25 + $0x11] sm:$0xff] }
 0x193   : > { %1458 = vperm.xlu2 %13833, %v1338_v7   ;;  %1453 = vperm.xlu1 %13832, %v1337_v55  }
 0x194   : > { %1448 = vperm.xlu0 %13831, %v1336_v17  }
 0x195   : > { %v14516_v18 = vpop.permute.xlu2 %1216  ;;  %v14518_v52 = vpop.permute.xlu1 %1166 }
 0x196   : > { %19513 = vst [vmem:[#allocation89_spill] sm:$0xff] %v14516_v18  ;;  %v14520_v2 = vpop.permute.xlu0 %1161  ;;  %v1517_v18 = vld [vmem:[%s14115_s25 + $0x39] sm:$0xff] }
 0x197   : > { %19514 = vst [vmem:[#allocation90_spill] sm:$0xff] %v14518_v52  ;;  %v2507_v52 = vld [vmem:[%s14115_s25 + $0x71] sm:$0xff] }
 0x19b   : > { %1550 = vperm.xlu2 %13833, %v1514_v8   ;;  %1545 = vperm.xlu1 %13832, %v1513_v5  }
 0x19c   : > { %1540 = vperm.xlu0 %13831, %v1512_v20  }
 0x19d   : > { %v14525_v7 = vpop.permute.xlu2 %1231  ;;  %v14527_v55 = vpop.permute.xlu1 %1181 }
 0x19e   : > { %19515 = vst [vmem:[#allocation91_spill] sm:$0xff] %v14525_v7  ;;  %v14529_v17 = vpop.permute.xlu0 %1176  ;;  %v1520_v7 = vld [vmem:[%s14115_s25 + $0x51] sm:$0xff] }
 0x19f   : > { %19516 = vst [vmem:[#allocation92_spill] sm:$0xff] %v14527_v55  ;;  %v1925_v55 = vld [vmem:[%s14115_s25 + $0xab] sm:$0xff] }
 0x1a0   : > { %19517 = vst [vmem:[#allocation93_spill] sm:$0xff] %v14529_v17  ;;  %v2106_v17 = vld [vmem:[%s14115_s25 + $0x2c] sm:$0xff] }
 0x1a3   : > { %1565 = vperm.xlu2 %13833, %v1517_v18   ;;  %1560 = vperm.xlu1 %13832, %v1516_v13  }
 0x1a4   : > { %1555 = vperm.xlu0 %13831, %v1515_v15  }
 0x1a5   : > { %v14534_v8 = vpop.permute.xlu2 %1246  ;;  %v14536_v5 = vpop.permute.xlu1 %1196 }
 0x1a6   : > { %19518 = vst [vmem:[#allocation94_spill] sm:$0xff] %v14534_v8  ;;  %v14538_v20 = vpop.permute.xlu0 %1191  ;;  %v1523_v8 = vld [vmem:[%s14115_s25 + $0x69] sm:$0xff] }
 0x1a7   : > { %19519 = vst [vmem:[#allocation95_spill] sm:$0xff] %v14536_v5  ;;  %v1521_v5 = vld [vmem:[%s14115_s25 + $0x59] sm:$0xff] }
 0x1a8   : > { %19520 = vst [vmem:[#allocation96_spill] sm:$0xff] %v14538_v20  ;;  %v1525_v20 = vld [vmem:[%s14115_s25 + $0x79] sm:$0xff] }
 0x1ab   : > { %1580 = vperm.xlu2 %13833, %v1520_v7   ;;  %1575 = vperm.xlu1 %13832, %v1519_v10  }
 0x1ac   : > { %1570 = vperm.xlu0 %13831, %v1518_v12  }
 0x1ad   : > { %v14543_v18 = vpop.permute.xlu2 %1261  ;;  %v14545_v13 = vpop.permute.xlu1 %1211 }
 0x1ae   : > { %19521 = vst [vmem:[#allocation97_spill] sm:$0xff] %v14543_v18  ;;  %v14547_v15 = vpop.permute.xlu0 %1206  ;;  %v1526_v18 = vld [vmem:[%s14115_s25 + $0x81] sm:$0xff] }
 0x1af   : > { %19522 = vst [vmem:[#allocation98_spill] sm:$0xff] %v14545_v13  ;;  %v1524_v13 = vld [vmem:[%s14115_s25 + $0x71] sm:$0xff] }
 0x1b0   : > { %19523 = vst [vmem:[#allocation99_spill] sm:$0xff] %v14547_v15  ;;  %v1529_v15 = vld [vmem:[%s14115_s25 + $0x99] sm:$0xff] }
 0x1b3   : > { %1595 = vperm.xlu2 %13833, %v1523_v8   ;;  %1590 = vperm.xlu1 %13832, %v1522_v9  }
 0x1b4   : > { %1585 = vperm.xlu0 %13831, %v1521_v5  }
 0x1b5   : > { %v14552_v7 = vpop.permute.xlu2 %1353  ;;  %v14554_v10 = vpop.permute.xlu1 %1226 }
 0x1b6   : > { %19524 = vst [vmem:[#allocation100_spill] sm:$0xff] %v14554_v10  ;;  %v14556_v12 = vpop.permute.xlu0 %1221  ;;  %v1527_v10 = vld [vmem:[%s14115_s25 + $0x89] sm:$0xff] }
 0x1b7   : > { %19525 = vst [vmem:[#allocation101_spill] sm:$0xff] %v14556_v12  ;;  %v1532_v12 = vld [vmem:[%s14115_s25 + $0xb1] sm:$0xff] }
 0x1bb   : > { %1610 = vperm.xlu2 %13833, %v1526_v18   ;;  %1605 = vperm.xlu1 %13832, %v1525_v20  }
 0x1bc   : > { %1600 = vperm.xlu0 %13831, %v1524_v13  }
 0x1bd   : > { %v14561_v8 = vpop.permute.xlu2 %1368  ;;  %v14563_v9 = vpop.permute.xlu1 %1241 }
 0x1be   : > { %19526 = vst [vmem:[#allocation102_spill] sm:$0xff] %v14561_v8  ;;  %v14565_v5 = vpop.permute.xlu0 %1236  ;;  %v2513_v8 = vld [vmem:[%s14115_s25 + $0xa1] sm:$0xff] }
 0x1bf   : > { %19527 = vst [vmem:[#allocation103_spill] sm:$0xff] %v14563_v9  ;;  %v1530_v9 = vld [vmem:[%s14115_s25 + $0xa1] sm:$0xff] }
 0x1c0   : > { %19528 = vst [vmem:[#allocation104_spill] sm:$0xff] %v14565_v5  ;;  %v1534_v5 = vld [vmem:[%s14115_s25 + $0xc1] sm:$0xff] }
 0x1c3   : > { %1625 = vperm.xlu2 %13833, %v1529_v15   ;;  %1620 = vperm.xlu1 %13832, %v1528_v1  }
 0x1c4   : > { %1615 = vperm.xlu0 %13831, %v1527_v10  }
 0x1c5   : > { %v14570_v18 = vpop.permute.xlu2 %1383  ;;  %v14572_v20 = vpop.permute.xlu1 %1256 }
 0x1c6   : > { %19529 = vst [vmem:[#allocation105_spill] sm:$0xff] %v14570_v18  ;;  %v14574_v13 = vpop.permute.xlu0 %1251  ;;  %v1535_v18 = vld [vmem:[%s14115_s25 + $0xc9] sm:$0xff] }
 0x1c7   : > { %19530 = vst [vmem:[#allocation106_spill] sm:$0xff] %v14572_v20  ;;  %v1533_v20 = vld [vmem:[%s14115_s25 + $0xb9] sm:$0xff] }
 0x1c8   : > { %19531 = vst [vmem:[#allocation107_spill] sm:$0xff] %v14574_v13  ;;  %v1710_v13 = vld [vmem:[%s14115_s25 + $0x1a] sm:$0xff] }
 0x1cb   : > { %1640 = vperm.xlu2 %13833, %v1532_v12   ;;  %1635 = vperm.xlu1 %13832, %v1531_v24  }
 0x1cc   : > { %1630 = vperm.xlu0 %13831, %v1530_v9  }
 0x1cd   : > { %v14579_v15 = vpop.permute.xlu2 %1398  ;;  %v14581_v1 = vpop.permute.xlu1 %1348 }
 0x1ce   : > { %19532 = vst [vmem:[#allocation108_spill] sm:$0xff] %v14579_v15  ;;  %v14583_v10 = vpop.permute.xlu0 %1343  ;;  %v1711_v15 = vld [vmem:[%s14115_s25 + $0x22] sm:$0xff] }
 0x1d3   : > { %1655 = vperm.xlu2 %13833, %v1535_v18   ;;  %1650 = vperm.xlu1 %13832, %v1534_v5  }
 0x1d4   : > { %1645 = vperm.xlu0 %13831, %v1533_v20  }
 0x1d5   : > { %v14588_v12 = vpop.permute.xlu2 %1413  ;;  %v14590_v24 = vpop.permute.xlu1 %1363 }
 0x1d6   : > { %19533 = vst [vmem:[#allocation109_spill] sm:$0xff] %v14588_v12  ;;  %v14592_v9 = vpop.permute.xlu0 %1358  ;;  %v1714_v12 = vld [vmem:[%s14115_s25 + $0x3a] sm:$0xff] }
 0x1d7   : > { %19534 = vst [vmem:[#allocation110_spill] sm:$0xff] %v14590_v24 }
 0x1db   : > { %1747 = vperm.xlu2 %13833, %v1711_v15   ;;  %1742 = vperm.xlu1 %13832, %v1710_v13  }
 0x1dc   : > { %1737 = vperm.xlu0 %13831, %v1709_v39  }
 0x1dd   : > { %v14597_v18 = vpop.permute.xlu2 %1428  ;;  %v14599_v5 = vpop.permute.xlu1 %1378 }
 0x1de   : > { %19535 = vst [vmem:[#allocation111_spill] sm:$0xff] %v14597_v18  ;;  %v14601_v20 = vpop.permute.xlu0 %1373  ;;  %v1717_v18 = vld [vmem:[%s14115_s25 + $0x52] sm:$0xff] }
 0x1df   : > { %19536 = vst [vmem:[#allocation112_spill] sm:$0xff] %v14599_v5  ;;  %v1916_v5 = vld [vmem:[%s14115_s25 + $0x63] sm:$0xff] }
 0x1e0   : > { %19537 = vst [vmem:[#allocation113_spill] sm:$0xff] %v14601_v20  ;;  %v2103_v20 = vld [vmem:[%s14115_s25 + $0x14] sm:$0xff] }
 0x1e3   : > { %1762 = vperm.xlu2 %13833, %v1714_v12   ;;  %1757 = vperm.xlu1 %13832, %v1713_v16  }
 0x1e4   : > { %1752 = vperm.xlu0 %13831, %v1712_v42  }
 0x1e5   : > { %v14606_v15 = vpop.permute.xlu2 %1443  ;;  %v14608_v13 = vpop.permute.xlu1 %1393 }
 0x1e6   : > { %19538 = vst [vmem:[#allocation114_spill] sm:$0xff] %v14606_v15  ;;  %v14610_v39 = vpop.permute.xlu0 %1388  ;;  %v1720_v15 = vld [vmem:[%s14115_s25 + $0x6a] sm:$0xff] }
 0x1e7   : > { %19539 = vst [vmem:[#allocation115_spill] sm:$0xff] %v14608_v13  ;;  %v1718_v13 = vld [vmem:[%s14115_s25 + $0x5a] sm:$0xff] }
 0x1e8   : > { %19540 = vst [vmem:[#allocation116_spill] sm:$0xff] %v14610_v39  ;;  %v1722_v39 = vld [vmem:[%s14115_s25 + $0x7a] sm:$0xff] }
 0x1eb   : > { %1777 = vperm.xlu2 %13833, %v1717_v18   ;;  %1772 = vperm.xlu1 %13832, %v1716_v60  }
 0x1ec   : > { %1767 = vperm.xlu0 %13831, %v1715_v48  }
 0x1ed   : > { %v14615_v12 = vpop.permute.xlu2 %1458  ;;  %v14617_v16 = vpop.permute.xlu1 %1408 }
 0x1ee   : > { %19541 = vst [vmem:[#allocation117_spill] sm:$0xff] %v14615_v12  ;;  %v14619_v42 = vpop.permute.xlu0 %1403  ;;  %v1723_v12 = vld [vmem:[%s14115_s25 + $0x82] sm:$0xff] }
 0x1ef   : > { %19542 = vst [vmem:[#allocation118_spill] sm:$0xff] %v14617_v16  ;;  %v1721_v16 = vld [vmem:[%s14115_s25 + $0x72] sm:$0xff] }
 0x1f0   : > { %19543 = vst [vmem:[#allocation119_spill] sm:$0xff] %v14619_v42  ;;  %v1726_v42 = vld [vmem:[%s14115_s25 + $0x9a] sm:$0xff] }
 0x1f3   : > { %1792 = vperm.xlu2 %13833, %v1720_v15   ;;  %1787 = vperm.xlu1 %13832, %v1719_v34  }
 0x1f4   : > { %1782 = vperm.xlu0 %13831, %v1718_v13  }
 0x1f5   : > { %v14624_v18 = vpop.permute.xlu2 %1550  ;;  %v14626_v60 = vpop.permute.xlu1 %1423 }
 0x1f6   : > { %19544 = vst [vmem:[#allocation120_spill] sm:$0xff] %v14626_v60  ;;  %v14628_v48 = vpop.permute.xlu0 %1418  ;;  %v1724_v60 = vld [vmem:[%s14115_s25 + $0x8a] sm:$0xff] }
 0x1f7   : > { %19545 = vst [vmem:[#allocation121_spill] sm:$0xff] %v14628_v48  ;;  %v1729_v48 = vld [vmem:[%s14115_s25 + $0xb2] sm:$0xff] }
 0x1fb   : > { %1807 = vperm.xlu2 %13833, %v1723_v12   ;;  %1802 = vperm.xlu1 %13832, %v1722_v39  }
 0x1fc   : > { %1797 = vperm.xlu0 %13831, %v1721_v16  }
 0x1fd   : > { %v14633_v15 = vpop.permute.xlu2 %1565  ;;  %v14635_v34 = vpop.permute.xlu1 %1438 }
 0x1fe   : > { %19546 = vst [vmem:[#allocation122_spill] sm:$0xff] %v14633_v15  ;;  %v14637_v13 = vpop.permute.xlu0 %1433 }
 0x1ff   : > { %19547 = vst [vmem:[#allocation123_spill] sm:$0xff] %v14635_v34  ;;  %v1727_v34 = vld [vmem:[%s14115_s25 + $0xa2] sm:$0xff] }
 0x200   : > { %19548 = vst [vmem:[#allocation124_spill] sm:$0xff] %v14637_v13  ;;  %v1731_v13 = vld [vmem:[%s14115_s25 + $0xc2] sm:$0xff] }
 0x203   : > { %1822 = vperm.xlu2 %13833, %v1726_v42   ;;  %1817 = vperm.xlu1 %13832, %v1725_v23  }
 0x204   : > { %1812 = vperm.xlu0 %13831, %v1724_v60  }
 0x205   : > { %v14642_v12 = vpop.permute.xlu2 %1580  ;;  %v14644_v39 = vpop.permute.xlu1 %1453 }
 0x206   : > { %19549 = vst [vmem:[#allocation125_spill] sm:$0xff] %v14642_v12  ;;  %v14646_v16 = vpop.permute.xlu0 %1448  ;;  %v1732_v12 = vld [vmem:[%s14115_s25 + $0xca] sm:$0xff] }
 0x207   : > { %19550 = vst [vmem:[#allocation126_spill] sm:$0xff] %v14644_v39  ;;  %v1730_v39 = vld [vmem:[%s14115_s25 + $0xba] sm:$0xff] }
 0x208   : > { %19551 = vst [vmem:[#allocation127_spill] sm:$0xff] %v14646_v16  ;;  %v1907_v16 = vld [vmem:[%s14115_s25 + $0x1b] sm:$0xff] }
 0x20b   : > { %1837 = vperm.xlu2 %13833, %v1729_v48   ;;  %1832 = vperm.xlu1 %13832, %v1728_v22  }
 0x20c   : > { %1827 = vperm.xlu0 %13831, %v1727_v34  }
 0x20d   : > { %v14651_v42 = vpop.permute.xlu2 %1595  ;;  %v14653_v23 = vpop.permute.xlu1 %1545 }
 0x20e   : > { %19552 = vst [vmem:[#allocation128_spill] sm:$0xff] %v14651_v42  ;;  %v14655_v60 = vpop.permute.xlu0 %1540  ;;  %v1908_v42 = vld [vmem:[%s14115_s25 + $0x23] sm:$0xff] }
 0x20f   : > { %19553 = vst [vmem:[#allocation129_spill] sm:$0xff] %v14653_v23  ;;  %v3286_v23 = vld [vmem:[%s14115_s25 + $0x38] sm:$0xff] }
 0x210   : > { %19554 = vst [vmem:[#allocation130_spill] sm:$0xff] %v14655_v60 }
 0x213   : > { %1852 = vperm.xlu2 %13833, %v1732_v12   ;;  %1847 = vperm.xlu1 %13832, %v1731_v13  }
 0x214   : > { %1842 = vperm.xlu0 %13831, %v1730_v39  }
 0x215   : > { %v14660_v48 = vpop.permute.xlu2 %1610  ;;  %v14662_v22 = vpop.permute.xlu1 %1560 }
 0x216   : > { %19555 = vst [vmem:[#allocation131_spill] sm:$0xff] %v14660_v48  ;;  %v14664_v34 = vpop.permute.xlu0 %1555  ;;  %v1911_v48 = vld [vmem:[%s14115_s25 + $0x3b] sm:$0xff] }
 0x217   : > { %19556 = vst [vmem:[#allocation132_spill] sm:$0xff] %v14662_v22  ;;  %v2503_v22 = vld [vmem:[%s14115_s25 + $0x51] sm:$0xff] }
 0x218   : > { %19557 = vst [vmem:[#allocation133_spill] sm:$0xff] %v14664_v34  ;;  %v3104_v34 = vld [vmem:[%s14115_s25 + $0xa4] sm:$0xff] }
 0x21b   : > { %1944 = vperm.xlu2 %13833, %v1908_v42   ;;  %1939 = vperm.xlu1 %13832, %v1907_v16  }
 0x21c   : > { %1934 = vperm.xlu0 %13831, %v1906_v19  }
 0x21d   : > { %v14669_v12 = vpop.permute.xlu2 %1625  ;;  %v14671_v13 = vpop.permute.xlu1 %1575 }
 0x21e   : > { %19558 = vst [vmem:[#allocation134_spill] sm:$0xff] %v14669_v12  ;;  %v14673_v39 = vpop.permute.xlu0 %1570  ;;  %v1914_v12 = vld [vmem:[%s14115_s25 + $0x53] sm:$0xff] }
 0x21f   : > { %19559 = vst [vmem:[#allocation135_spill] sm:$0xff] %v14671_v13  ;;  %v1912_v13 = vld [vmem:[%s14115_s25 + $0x43] sm:$0xff] }
 0x220   : > { %19560 = vst [vmem:[#allocation136_spill] sm:$0xff] %v14673_v39  ;;  %v1922_v39 = vld [vmem:[%s14115_s25 + $0x93] sm:$0xff] }
 0x223   : > { %1959 = vperm.xlu2 %13833, %v1911_v48   ;;  %1954 = vperm.xlu1 %13832, %v1910_v61  }
 0x224   : > { %1949 = vperm.xlu0 %13831, %v1909_v49  }
 0x225   : > { %v14678_v42 = vpop.permute.xlu2 %1640  ;;  %v14680_v16 = vpop.permute.xlu1 %1590 }
 0x226   : > { %19561 = vst [vmem:[#allocation137_spill] sm:$0xff] %v14678_v42  ;;  %v14682_v19 = vpop.permute.xlu0 %1585  ;;  %v1917_v42 = vld [vmem:[%s14115_s25 + $0x6b] sm:$0xff] }
 0x227   : > { %19562 = vst [vmem:[#allocation138_spill] sm:$0xff] %v14680_v16  ;;  %v1915_v16 = vld [vmem:[%s14115_s25 + $0x5b] sm:$0xff] }
 0x228   : > { %19563 = vst [vmem:[#allocation139_spill] sm:$0xff] %v14682_v19  ;;  %v1919_v19 = vld [vmem:[%s14115_s25 + $0x7b] sm:$0xff] }
 0x22b   : > { %1974 = vperm.xlu2 %13833, %v1914_v12   ;;  %1969 = vperm.xlu1 %13832, %v1913_v45  }
 0x22c   : > { %1964 = vperm.xlu0 %13831, %v1912_v13  }
 0x22d   : > { %v14687_v48 = vpop.permute.xlu2 %1655  ;;  %v14689_v61 = vpop.permute.xlu1 %1605 }
 0x22e   : > { %19564 = vst [vmem:[#allocation140_spill] sm:$0xff] %v14687_v48  ;;  %v14691_v49 = vpop.permute.xlu0 %1600  ;;  %v1920_v48 = vld [vmem:[%s14115_s25 + $0x83] sm:$0xff] }
 0x22f   : > { %19565 = vst [vmem:[#allocation141_spill] sm:$0xff] %v14689_v61  ;;  %v1918_v61 = vld [vmem:[%s14115_s25 + $0x73] sm:$0xff] }
 0x230   : > { %19566 = vst [vmem:[#allocation142_spill] sm:$0xff] %v14691_v49  ;;  %v1923_v49 = vld [vmem:[%s14115_s25 + $0x9b] sm:$0xff] }
 0x233   : > { %1989 = vperm.xlu2 %13833, %v1917_v42   ;;  %1984 = vperm.xlu1 %13832, %v1916_v5  }
 0x234   : > { %1979 = vperm.xlu0 %13831, %v1915_v16  }
 0x235   : > { %v14696_v12 = vpop.permute.xlu2 %1747  ;;  %v14698_v45 = vpop.permute.xlu1 %1620 }
 0x236   : > { %19567 = vst [vmem:[#allocation143_spill] sm:$0xff] %v14698_v45  ;;  %v14700_v13 = vpop.permute.xlu0 %1615  ;;  %v1921_v45 = vld [vmem:[%s14115_s25 + $0x8b] sm:$0xff] }
 0x237   : > { %19568 = vst [vmem:[#allocation144_spill] sm:$0xff] %v14700_v13  ;;  %v1926_v13 = vld [vmem:[%s14115_s25 + $0xb3] sm:$0xff] }
 0x23b   : > { %2004 = vperm.xlu2 %13833, %v1920_v48   ;;  %1999 = vperm.xlu1 %13832, %v1919_v19  }
 0x23c   : > { %1994 = vperm.xlu0 %13831, %v1918_v61  }
 0x23d   : > { %v14705_v42 = vpop.permute.xlu2 %1762  ;;  %v14707_v5 = vpop.permute.xlu1 %1635 }
 0x23e   : > { %19569 = vst [vmem:[#allocation145_spill] sm:$0xff] %v14705_v42  ;;  %v14709_v16 = vpop.permute.xlu0 %1630 }
 0x23f   : > { %19570 = vst [vmem:[#allocation146_spill] sm:$0xff] %v14707_v5  ;;  %v1924_v5 = vld [vmem:[%s14115_s25 + $0xa3] sm:$0xff] }
 0x240   : > { %19571 = vst [vmem:[#allocation147_spill] sm:$0xff] %v14709_v16  ;;  %v1928_v16 = vld [vmem:[%s14115_s25 + $0xc3] sm:$0xff] }
 0x243   : > { %2019 = vperm.xlu2 %13833, %v1923_v49   ;;  %2014 = vperm.xlu1 %13832, %v1922_v39  }
 0x244   : > { %2009 = vperm.xlu0 %13831, %v1921_v45  }
 0x245   : > { %v14714_v48 = vpop.permute.xlu2 %1777  ;;  %v14716_v19 = vpop.permute.xlu1 %1650 }
 0x246   : > { %19572 = vst [vmem:[#allocation148_spill] sm:$0xff] %v14714_v48  ;;  %v14718_v61 = vpop.permute.xlu0 %1645  ;;  %v1929_v48 = vld [vmem:[%s14115_s25 + $0xcb] sm:$0xff] }
 0x247   : > { %19573 = vst [vmem:[#allocation149_spill] sm:$0xff] %v14716_v19  ;;  %v1927_v19 = vld [vmem:[%s14115_s25 + $0xbb] sm:$0xff] }
 0x248   : > { %19574 = vst [vmem:[#allocation150_spill] sm:$0xff] %v14718_v61  ;;  %v2104_v61 = vld [vmem:[%s14115_s25 + $0x1c] sm:$0xff] }
 0x24b   : > { %2034 = vperm.xlu2 %13833, %v1926_v13   ;;  %2029 = vperm.xlu1 %13832, %v1925_v55  }
 0x24c   : > { %2024 = vperm.xlu0 %13831, %v1924_v5  }
 0x24d   : > { %v14723_v49 = vpop.permute.xlu2 %1792  ;;  %v14725_v39 = vpop.permute.xlu1 %1742 }
 0x24e   : > { %19575 = vst [vmem:[#allocation151_spill] sm:$0xff] %v14723_v49  ;;  %v14727_v45 = vpop.permute.xlu0 %1737  ;;  %v2105_v49 = vld [vmem:[%s14115_s25 + $0x24] sm:$0xff] }
 0x24f   : > { %19576 = vst [vmem:[#allocation152_spill] sm:$0xff] %v14725_v39  ;;  %v3100_v39 = vld [vmem:[%s14115_s25 + $0x84] sm:$0xff] }
 0x250   : > { %19577 = vst [vmem:[#allocation153_spill] sm:$0xff] %v14727_v45  ;;  %v3101_v45 = vld [vmem:[%s14115_s25 + $0x8c] sm:$0xff] }
 0x253   : > { %2049 = vperm.xlu2 %13833, %v1929_v48   ;;  %2044 = vperm.xlu1 %13832, %v1928_v16  }
 0x254   : > { %2039 = vperm.xlu0 %13831, %v1927_v19  }
 0x255   : > { %v14732_v13 = vpop.permute.xlu2 %1807  ;;  %v14734_v55 = vpop.permute.xlu1 %1757 }
 0x256   : > { %19578 = vst [vmem:[#allocation154_spill] sm:$0xff] %v14732_v13  ;;  %v14736_v5 = vpop.permute.xlu0 %1752  ;;  %v2108_v13 = vld [vmem:[%s14115_s25 + $0x3c] sm:$0xff] }
 0x257   : > { %19579 = vst [vmem:[#allocation155_spill] sm:$0xff] %v14734_v55  ;;  %v2497_v55 = vld [vmem:[%s14115_s25 + $0x21] sm:$0xff] }
 0x258   : > { %19580 = vst [vmem:[#allocation156_spill] sm:$0xff] %v14736_v5  ;;  %v15201_v5 = vld [vmem:[%s14115_s25 + $0x7c] sm:$0xff] }
 0x259   : > { %19710 = vst [vmem:[#allocation286_spill] sm:$0xff] %v15201_v5 }
 0x25b   : > { %2141 = vperm.xlu2 %13833, %v2105_v49   ;;  %2136 = vperm.xlu1 %13832, %v2104_v61  }
 0x25c   : > { %2131 = vperm.xlu0 %13831, %v2103_v20  }
 0x25d   : > { %v14741_v48 = vpop.permute.xlu2 %1822  ;;  %v14743_v16 = vpop.permute.xlu1 %1772 }
 0x25e   : > { %19581 = vst [vmem:[#allocation157_spill] sm:$0xff] %v14741_v48  ;;  %v14745_v19 = vpop.permute.xlu0 %1767  ;;  %v2111_v48 = vld [vmem:[%s14115_s25 + $0x54] sm:$0xff] }
 0x25f   : > { %19582 = vst [vmem:[#allocation158_spill] sm:$0xff] %v14743_v16  ;;  %v2109_v16 = vld [vmem:[%s14115_s25 + $0x44] sm:$0xff] }
 0x260   : > { %19583 = vst [vmem:[#allocation159_spill] sm:$0xff] %v14745_v19  ;;  %v2113_v19 = vld [vmem:[%s14115_s25 + $0x64] sm:$0xff] }
 0x263   : > { %2156 = vperm.xlu2 %13833, %v2108_v13   ;;  %2151 = vperm.xlu1 %13832, %v2107_v0  }
 0x264   : > { %2146 = vperm.xlu0 %13831, %v2106_v17  }
 0x265   : > { %v14750_v49 = vpop.permute.xlu2 %1837  ;;  %v14752_v61 = vpop.permute.xlu1 %1787 }
 0x266   : > { %19584 = vst [vmem:[#allocation160_spill] sm:$0xff] %v14750_v49  ;;  %v14754_v20 = vpop.permute.xlu0 %1782  ;;  %v2114_v49 = vld [vmem:[%s14115_s25 + $0x6c] sm:$0xff] }
 0x267   : > { %19585 = vst [vmem:[#allocation161_spill] sm:$0xff] %v14752_v61  ;;  %v2112_v61 = vld [vmem:[%s14115_s25 + $0x5c] sm:$0xff] }
 0x268   : > { %19586 = vst [vmem:[#allocation162_spill] sm:$0xff] %v14754_v20  ;;  %v2116_v20 = vld [vmem:[%s14115_s25 + $0x7c] sm:$0xff] }
 0x26b   : > { %2171 = vperm.xlu2 %13833, %v2111_v48   ;;  %2166 = vperm.xlu1 %13832, %v2110_v53  }
 0x26c   : > { %2161 = vperm.xlu0 %13831, %v2109_v16  }
 0x26d   : > { %v14759_v13 = vpop.permute.xlu2 %1852  ;;  %v14761_v0 = vpop.permute.xlu1 %1802 }
 0x26e   : > { %19587 = vst [vmem:[#allocation163_spill] sm:$0xff] %v14759_v13  ;;  %v14763_v17 = vpop.permute.xlu0 %1797  ;;  %v2117_v13 = vld [vmem:[%s14115_s25 + $0x84] sm:$0xff] }
 0x26f   : > { %19588 = vst [vmem:[#allocation164_spill] sm:$0xff] %v14761_v0  ;;  %v2115_v0 = vld [vmem:[%s14115_s25 + $0x74] sm:$0xff] }
 0x270   : > { %19589 = vst [vmem:[#allocation165_spill] sm:$0xff] %v14763_v17  ;;  %v2120_v17 = vld [vmem:[%s14115_s25 + $0x9c] sm:$0xff] }
 0x273   : > { %2186 = vperm.xlu2 %13833, %v2114_v49   ;;  %2181 = vperm.xlu1 %13832, %v2113_v19  }
 0x274   : > { %2176 = vperm.xlu0 %13831, %v2112_v61  }
 0x275   : > { %v14768_v48 = vpop.permute.xlu2 %1944  ;;  %v14770_v53 = vpop.permute.xlu1 %1817 }
 0x276   : > { %19590 = vst [vmem:[#allocation166_spill] sm:$0xff] %v14768_v48  ;;  %v14772_v16 = vpop.permute.xlu0 %1812 }
 0x277   : > { %19591 = vst [vmem:[#allocation167_spill] sm:$0xff] %v14770_v53  ;;  %v2118_v53 = vld [vmem:[%s14115_s25 + $0x8c] sm:$0xff] }
 0x278   : > { %19592 = vst [vmem:[#allocation168_spill] sm:$0xff] %v14772_v16  ;;  %v2123_v16 = vld [vmem:[%s14115_s25 + $0xb4] sm:$0xff] }
 0x27b   : > { %2201 = vperm.xlu2 %13833, %v2117_v13   ;;  %2196 = vperm.xlu1 %13832, %v2116_v20  }
 0x27c   : > { %2191 = vperm.xlu0 %13831, %v2115_v0  }
 0x27d   : > { %v14777_v49 = vpop.permute.xlu2 %1959  ;;  %v14779_v19 = vpop.permute.xlu1 %1832 }
 0x27e   : > { %19593 = vst [vmem:[#allocation169_spill] sm:$0xff] %v14777_v49  ;;  %v14781_v61 = vpop.permute.xlu0 %1827  ;;  %v14901_v49 = vld [vmem:[%s14115_s25 + $0x39] sm:$0xff] }
 0x27f   : > { %19594 = vst [vmem:[#allocation170_spill] sm:$0xff] %v14779_v19  ;;  %v2121_v19 = vld [vmem:[%s14115_s25 + $0xa4] sm:$0xff] }
 0x280   : > { %19595 = vst [vmem:[#allocation171_spill] sm:$0xff] %v14781_v61  ;;  %v2125_v61 = vld [vmem:[%s14115_s25 + $0xc4] sm:$0xff] }
 0x283   : > { %2216 = vperm.xlu2 %13833, %v2120_v17   ;;  %2211 = vperm.xlu1 %13832, %v2119_v62  }
 0x284   : > { %2206 = vperm.xlu0 %13831, %v2118_v53  }
 0x285   : > { %v14786_v13 = vpop.permute.xlu2 %1974  ;;  %v14788_v20 = vpop.permute.xlu1 %1847 }
 0x286   : > { %19596 = vst [vmem:[#allocation172_spill] sm:$0xff] %v14786_v13  ;;  %v14790_v0 = vpop.permute.xlu0 %1842  ;;  %v2126_v13 = vld [vmem:[%s14115_s25 + $0xcc] sm:$0xff] }
 0x287   : > { %19597 = vst [vmem:[#allocation173_spill] sm:$0xff] %v14788_v20  ;;  %v2124_v20 = vld [vmem:[%s14115_s25 + $0xbc] sm:$0xff] }
 0x288   : > { %19598 = vst [vmem:[#allocation174_spill] sm:$0xff] %v14790_v0  ;;  %v2301_v0 = vld [vmem:[%s14115_s25 + $0x28] sm:$0xff] }
 0x28b   : > { %2231 = vperm.xlu2 %13833, %v2123_v16   ;;  %2226 = vperm.xlu1 %13832, %v2122_v32  }
 0x28c   : > { %2221 = vperm.xlu0 %13831, %v2121_v19  }
 0x28d   : > { %v14795_v17 = vpop.permute.xlu2 %1989  ;;  %v14797_v62 = vpop.permute.xlu1 %1939 }
 0x28e   : > { %19599 = vst [vmem:[#allocation175_spill] sm:$0xff] %v14795_v17  ;;  %v14799_v53 = vpop.permute.xlu0 %1934  ;;  %v2302_v17 = vld [vmem:[%s14115_s25 + $0x30] sm:$0xff] }
 0x28f   : > { %19600 = vst [vmem:[#allocation176_spill] sm:$0xff] %v14797_v62  ;;  %v15207_v62 = vld [vmem:[%s14115_s25 + $0x6c] sm:$0xff] }
 0x290   : > { %19601 = vst [vmem:[#allocation177_spill] sm:$0xff] %v14799_v53  ;;  %v15204_v53 = vld [vmem:[%s14115_s25 + $0x74] sm:$0xff] }
 0x291   : > { %19711 = vst [vmem:[#allocation287_spill] sm:$0xff] %v15204_v53 }
 0x293   : > { %2246 = vperm.xlu2 %13833, %v2126_v13   ;;  %2241 = vperm.xlu1 %13832, %v2125_v61  }
 0x294   : > { %2236 = vperm.xlu0 %13831, %v2124_v20  }
 0x295   : > { %v14804_v16 = vpop.permute.xlu2 %2004  ;;  %v14806_v32 = vpop.permute.xlu1 %1954 }
 0x296   : > { %19602 = vst [vmem:[#allocation178_spill] sm:$0xff] %v14804_v16  ;;  %v14808_v19 = vpop.permute.xlu0 %1949  ;;  %v2305_v16 = vld [vmem:[%s14115_s25 + $0x48] sm:$0xff] }
 0x297   : > { %19603 = vst [vmem:[#allocation179_spill] sm:$0xff] %v14806_v32  ;;  %v2316_v32 = vld [vmem:[%s14115_s25 + $0xa0] sm:$0xff] }
 0x298   : > { %19604 = vst [vmem:[#allocation180_spill] sm:$0xff] %v14808_v19 }
 0x29b   : > { %2338 = vperm.xlu2 %13833, %v2302_v17   ;;  %2333 = vperm.xlu1 %13832, %v2301_v0  }
 0x29c   : > { %2328 = vperm.xlu0 %13831, %v2300_v44  }
 0x29d   : > { %v14813_v13 = vpop.permute.xlu2 %2019  ;;  %v14815_v61 = vpop.permute.xlu1 %1969 }
 0x29e   : > { %19605 = vst [vmem:[#allocation181_spill] sm:$0xff] %v14813_v13  ;;  %v14817_v20 = vpop.permute.xlu0 %1964  ;;  %v2308_v13 = vld [vmem:[%s14115_s25 + $0x60] sm:$0xff] }
 0x29f   : > { %19606 = vst [vmem:[#allocation182_spill] sm:$0xff] %v14815_v61  ;;  %v2306_v61 = vld [vmem:[%s14115_s25 + $0x50] sm:$0xff] }
 0x2a0   : > { %19607 = vst [vmem:[#allocation183_spill] sm:$0xff] %v14817_v20  ;;  %v2310_v20 = vld [vmem:[%s14115_s25 + $0x70] sm:$0xff] }
 0x2a3   : > { %2353 = vperm.xlu2 %13833, %v2305_v16   ;;  %2348 = vperm.xlu1 %13832, %v2304_v38  }
 0x2a4   : > { %2343 = vperm.xlu0 %13831, %v2303_v63  }
 0x2a5   : > { %v14822_v17 = vpop.permute.xlu2 %2034  ;;  %v14824_v0 = vpop.permute.xlu1 %1984 }
 0x2a6   : > { %19608 = vst [vmem:[#allocation184_spill] sm:$0xff] %v14822_v17  ;;  %v14826_v44 = vpop.permute.xlu0 %1979  ;;  %v2311_v17 = vld [vmem:[%s14115_s25 + $0x78] sm:$0xff] }
 0x2a7   : > { %19609 = vst [vmem:[#allocation185_spill] sm:$0xff] %v14824_v0  ;;  %v2309_v0 = vld [vmem:[%s14115_s25 + $0x68] sm:$0xff] }
 0x2a8   : > { %19610 = vst [vmem:[#allocation186_spill] sm:$0xff] %v14826_v44  ;;  %v2313_v44 = vld [vmem:[%s14115_s25 + $0x88] sm:$0xff] }
 0x2ab   : > { %2368 = vperm.xlu2 %13833, %v2308_v13   ;;  %2363 = vperm.xlu1 %13832, %v2307_v46  }
 0x2ac   : > { %2358 = vperm.xlu0 %13831, %v2306_v61  }
 0x2ad   : > { %v14831_v16 = vpop.permute.xlu2 %2049  ;;  %v14833_v38 = vpop.permute.xlu1 %1999 }
 0x2ae   : > { %19611 = vst [vmem:[#allocation187_spill] sm:$0xff] %v14831_v16  ;;  %v14835_v63 = vpop.permute.xlu0 %1994  ;;  %v2314_v16 = vld [vmem:[%s14115_s25 + $0x90] sm:$0xff] }
 0x2af   : > { %19612 = vst [vmem:[#allocation188_spill] sm:$0xff] %v14833_v38  ;;  %v2312_v38 = vld [vmem:[%s14115_s25 + $0x80] sm:$0xff] }
 0x2b0   : > { %19613 = vst [vmem:[#allocation189_spill] sm:$0xff] %v14835_v63  ;;  %v2317_v63 = vld [vmem:[%s14115_s25 + $0xa8] sm:$0xff] }
 0x2b3   : > { %2383 = vperm.xlu2 %13833, %v2311_v17   ;;  %2378 = vperm.xlu1 %13832, %v2310_v20  }
 0x2b4   : > { %2373 = vperm.xlu0 %13831, %v2309_v0  }
 0x2b5   : > { %v14840_v13 = vpop.permute.xlu2 %2141  ;;  %v14842_v46 = vpop.permute.xlu1 %2014 }
 0x2b6   : > { %19614 = vst [vmem:[#allocation190_spill] sm:$0xff] %v14840_v13  ;;  %v14844_v61 = vpop.permute.xlu0 %2009  ;;  %v3102_v13 = vld [vmem:[%s14115_s25 + $0x94] sm:$0xff] }
 0x2b7   : > { %19615 = vst [vmem:[#allocation191_spill] sm:$0xff] %v14842_v46  ;;  %v2315_v46 = vld [vmem:[%s14115_s25 + $0x98] sm:$0xff] }
 0x2b8   : > { %19616 = vst [vmem:[#allocation192_spill] sm:$0xff] %v14844_v61  ;;  %v2320_v61 = vld [vmem:[%s14115_s25 + $0xc0] sm:$0xff] }
 0x2bb   : > { %2398 = vperm.xlu2 %13833, %v2314_v16   ;;  %2393 = vperm.xlu1 %13832, %v2313_v44  }
 0x2bc   : > { %2388 = vperm.xlu0 %13831, %v2312_v38  }
 0x2bd   : > { %v14849_v17 = vpop.permute.xlu2 %2156  ;;  %v14851_v20 = vpop.permute.xlu1 %2029 }
 0x2be   : > { %19617 = vst [vmem:[#allocation193_spill] sm:$0xff] %v14849_v17  ;;  %v14853_v0 = vpop.permute.xlu0 %2024  ;;  %v2319_v17 = vld [vmem:[%s14115_s25 + $0xb8] sm:$0xff] }
 0x2bf   : > { %19618 = vst [vmem:[#allocation194_spill] sm:$0xff] %v14851_v20  ;;  %v2318_v20 = vld [vmem:[%s14115_s25 + $0xb0] sm:$0xff] }
 0x2c0   : > { %19619 = vst [vmem:[#allocation195_spill] sm:$0xff] %v14853_v0  ;;  %v2322_v0 = vld [vmem:[%s14115_s25 + $0xd0] sm:$0xff] }
 0x2c3   : > { %2413 = vperm.xlu2 %13833, %v2317_v63   ;;  %2408 = vperm.xlu1 %13832, %v2316_v32  }
 0x2c4   : > { %2403 = vperm.xlu0 %13831, %v2315_v46  }
 0x2c5   : > { %v14858_v16 = vpop.permute.xlu2 %2171  ;;  %v14860_v44 = vpop.permute.xlu1 %2044 }
 0x2c6   : > { %19620 = vst [vmem:[#allocation196_spill] sm:$0xff] %v14858_v16  ;;  %v14862_v38 = vpop.permute.xlu0 %2039  ;;  %v2323_v16 = vld [vmem:[%s14115_s25 + $0xd8] sm:$0xff] }
 0x2c7   : > { %19621 = vst [vmem:[#allocation197_spill] sm:$0xff] %v14860_v44  ;;  %v2321_v44 = vld [vmem:[%s14115_s25 + $0xc8] sm:$0xff] }
 0x2c8   : > { %19622 = vst [vmem:[#allocation198_spill] sm:$0xff] %v14862_v38  ;;  %v2498_v38 = vld [vmem:[%s14115_s25 + $0x29] sm:$0xff] }
 0x2cb   : > { %2428 = vperm.xlu2 %13833, %v2320_v61   ;;  %2423 = vperm.xlu1 %13832, %v2319_v17  }
 0x2cc   : > { %2418 = vperm.xlu0 %13831, %v2318_v20  }
 0x2cd   : > { %v14867_v63 = vpop.permute.xlu2 %2186  ;;  %v14869_v32 = vpop.permute.xlu1 %2136 }
 0x2ce   : > { %19623 = vst [vmem:[#allocation199_spill] sm:$0xff] %v14867_v63  ;;  %v14871_v46 = vpop.permute.xlu0 %2131  ;;  %v14883_v63 = vld [vmem:[%s14115_s25 + $0x31] sm:$0xff] }
 0x2cf   : > { %19624 = vst [vmem:[#allocation200_spill] sm:$0xff] %v14869_v32 }
 0x2d0   : > { %19625 = vst [vmem:[#allocation201_spill] sm:$0xff] %v14871_v46  ;;  %v2904_v46 = vld [vmem:[%s14115_s25 + $0x8b] sm:$0xff] }
 0x2d3   : > { %2443 = vperm.xlu2 %13833, %v2323_v16   ;;  %2438 = vperm.xlu1 %13832, %v2322_v0  }
 0x2d4   : > { %2433 = vperm.xlu0 %13831, %v2321_v44  }
 0x2d5   : > { %v14876_v61 = vpop.permute.xlu2 %2201  ;;  %v14878_v17 = vpop.permute.xlu1 %2151 }
 0x2d6   : > { %19626 = vst [vmem:[#allocation202_spill] sm:$0xff] %v14876_v61  ;;  %v14880_v20 = vpop.permute.xlu0 %2146  ;;  %v14895_v61 = vld [vmem:[%s14115_s25 + $0x49] sm:$0xff] }
 0x2d7   : > { %19627 = vst [vmem:[#allocation203_spill] sm:$0xff] %v14878_v17  ;;  %v14898_v17 = vld [vmem:[%s14115_s25 + $0x41] sm:$0xff] }
 0x2d8   : > { %19628 = vst [vmem:[#allocation204_spill] sm:$0xff] %v14880_v20  ;;  %v2902_v20 = vld [vmem:[%s14115_s25 + $0x7b] sm:$0xff] }
 0x2db   : > { %2535 = vperm.xlu2 %13833, %v14883_v63   ;;  %2530 = vperm.xlu1 %13832, %v2498_v38  }
 0x2dc   : > { %2525 = vperm.xlu0 %13831, %v2497_v55  }
 0x2dd   : > { %v14888_v0 = vpop.permute.xlu2 %2216  ;;  %v14890_v16 = vpop.permute.xlu1 %2166 }
 0x2de   : > { %19629 = vst [vmem:[#allocation205_spill] sm:$0xff] %v14888_v0  ;;  %v14892_v44 = vpop.permute.xlu0 %2161 }
 0x2df   : > { %19630 = vst [vmem:[#allocation206_spill] sm:$0xff] %v14890_v16  ;;  %v2505_v16 = vld [vmem:[%s14115_s25 + $0x61] sm:$0xff] }
 0x2e0   : > { %19631 = vst [vmem:[#allocation207_spill] sm:$0xff] %v14892_v44  ;;  %v2504_v44 = vld [vmem:[%s14115_s25 + $0x59] sm:$0xff] }
 0x2e3   : > { %2550 = vperm.xlu2 %13833, %v14895_v61   ;;  %2545 = vperm.xlu1 %13832, %v14898_v17  }
 0x2e4   : > { %2540 = vperm.xlu0 %13831, %v14901_v49  }
 0x2e5   : > { %v14906_v55 = vpop.permute.xlu2 %2231  ;;  %v14908_v38 = vpop.permute.xlu1 %2181 }
 0x2e6   : > { %19632 = vst [vmem:[#allocation208_spill] sm:$0xff] %v14906_v55  ;;  %v14910_v0 = vpop.permute.xlu0 %2176  ;;  %v2508_v55 = vld [vmem:[%s14115_s25 + $0x79] sm:$0xff] }
 0x2e7   : > { %19633 = vst [vmem:[#allocation209_spill] sm:$0xff] %v14908_v38  ;;  %v2506_v38 = vld [vmem:[%s14115_s25 + $0x69] sm:$0xff] }
 0x2e8   : > { %19634 = vst [vmem:[#allocation210_spill] sm:$0xff] %v14910_v0  ;;  %v2510_v0 = vld [vmem:[%s14115_s25 + $0x89] sm:$0xff] }
 0x2eb   : > { %2565 = vperm.xlu2 %13833, %v2505_v16   ;;  %2560 = vperm.xlu1 %13832, %v2504_v44  }
 0x2ec   : > { %2555 = vperm.xlu0 %13831, %v2503_v22  }
 0x2ed   : > { %v14915_v42 = vpop.permute.xlu2 %2246  ;;  %v14917_v24 = vpop.permute.xlu1 %2196 }
 0x2ee   : > { %19635 = vst [vmem:[#allocation211_spill] sm:$0xff] %v14915_v42  ;;  %v14919_v15 = vpop.permute.xlu0 %2191  ;;  %v2511_v42 = vld [vmem:[%s14115_s25 + $0x91] sm:$0xff] }
 0x2ef   : > { %19636 = vst [vmem:[#allocation212_spill] sm:$0xff] %v14917_v24  ;;  %v2509_v24 = vld [vmem:[%s14115_s25 + $0x81] sm:$0xff] }
 0x2f0   : > { %19637 = vst [vmem:[#allocation213_spill] sm:$0xff] %v14919_v15  ;;  %v2514_v15 = vld [vmem:[%s14115_s25 + $0xa9] sm:$0xff] }
 0x2f3   : > { %2580 = vperm.xlu2 %13833, %v2508_v55   ;;  %2575 = vperm.xlu1 %13832, %v2507_v52  }
 0x2f4   : > { %2570 = vperm.xlu0 %13831, %v2506_v38  }
 0x2f5   : > { %v14924_v16 = vpop.permute.xlu2 %2338  ;;  %v14926_v44 = vpop.permute.xlu1 %2211 }
 0x2f6   : > { %19638 = vst [vmem:[#allocation214_spill] sm:$0xff] %v14924_v16  ;;  %v14928_v22 = vpop.permute.xlu0 %2206  ;;  %v2907_v16 = vld [vmem:[%s14115_s25 + $0xa3] sm:$0xff] }
 0x2f7   : > { %19639 = vst [vmem:[#allocation215_spill] sm:$0xff] %v14926_v44  ;;  %v2512_v44 = vld [vmem:[%s14115_s25 + $0x99] sm:$0xff] }
 0x2f8   : > { %19640 = vst [vmem:[#allocation216_spill] sm:$0xff] %v14928_v22  ;;  %v2517_v22 = vld [vmem:[%s14115_s25 + $0xc1] sm:$0xff] }
 0x2fb   : > { %2595 = vperm.xlu2 %13833, %v2511_v42   ;;  %2590 = vperm.xlu1 %13832, %v2510_v0  }
 0x2fc   : > { %2585 = vperm.xlu0 %13831, %v2509_v24  }
 0x2fd   : > { %v14933_v55 = vpop.permute.xlu2 %2353  ;;  %v14935_v52 = vpop.permute.xlu1 %2226 }
 0x2fe   : > { %19641 = vst [vmem:[#allocation217_spill] sm:$0xff] %v14933_v55  ;;  %v14937_v38 = vpop.permute.xlu0 %2221  ;;  %v2516_v55 = vld [vmem:[%s14115_s25 + $0xb9] sm:$0xff] }
 0x2ff   : > { %19642 = vst [vmem:[#allocation218_spill] sm:$0xff] %v14935_v52  ;;  %v2515_v52 = vld [vmem:[%s14115_s25 + $0xb1] sm:$0xff] }
 0x300   : > { %19643 = vst [vmem:[#allocation219_spill] sm:$0xff] %v14937_v38  ;;  %v2519_v38 = vld [vmem:[%s14115_s25 + $0xd1] sm:$0xff] }
 0x303   : > { %2610 = vperm.xlu2 %13833, %v2514_v15   ;;  %2605 = vperm.xlu1 %13832, %v2513_v8  }
 0x304   : > { %2600 = vperm.xlu0 %13831, %v2512_v44  }
 0x305   : > { %v14942_v42 = vpop.permute.xlu2 %2368  ;;  %v14944_v0 = vpop.permute.xlu1 %2241 }
 0x306   : > { %19644 = vst [vmem:[#allocation220_spill] sm:$0xff] %v14942_v42  ;;  %v14946_v24 = vpop.permute.xlu0 %2236  ;;  %v2520_v42 = vld [vmem:[%s14115_s25 + $0xd9] sm:$0xff] }
 0x307   : > { %19645 = vst [vmem:[#allocation221_spill] sm:$0xff] %v14944_v0  ;;  %v2518_v0 = vld [vmem:[%s14115_s25 + $0xc9] sm:$0xff] }
 0x308   : > { %19646 = vst [vmem:[#allocation222_spill] sm:$0xff] %v14946_v24  ;;  %v2695_v24 = vld [vmem:[%s14115_s25 + $0x2a] sm:$0xff] }
 0x30b   : > { %2625 = vperm.xlu2 %13833, %v2517_v22   ;;  %2620 = vperm.xlu1 %13832, %v2516_v55  }
 0x30c   : > { %2615 = vperm.xlu0 %13831, %v2515_v52  }
 0x30d   : > { %v14951_v15 = vpop.permute.xlu2 %2383  ;;  %v14953_v8 = vpop.permute.xlu1 %2333 }
 0x30e   : > { %19647 = vst [vmem:[#allocation223_spill] sm:$0xff] %v14951_v15  ;;  %v14955_v44 = vpop.permute.xlu0 %2328  ;;  %v14967_v15 = vld [vmem:[%s14115_s25 + $0x32] sm:$0xff] }
 0x30f   : > { %19648 = vst [vmem:[#allocation224_spill] sm:$0xff] %v14953_v8  ;;  %v15107_v8 = vld [vmem:[%s14115_s25 + $0x6b] sm:$0xff] }
 0x310   : > { %19649 = vst [vmem:[#allocation225_spill] sm:$0xff] %v14955_v44  ;;  %v2901_v44 = vld [vmem:[%s14115_s25 + $0x73] sm:$0xff] }
 0x313   : > { %2640 = vperm.xlu2 %13833, %v2520_v42   ;;  %2635 = vperm.xlu1 %13832, %v2519_v38  }
 0x314   : > { %2630 = vperm.xlu0 %13831, %v2518_v0  }
 0x315   : > { %v14960_v22 = vpop.permute.xlu2 %2398  ;;  %v14962_v55 = vpop.permute.xlu1 %2348 }
 0x316   : > { %19650 = vst [vmem:[#allocation226_spill] sm:$0xff] %v14960_v22  ;;  %v14964_v52 = vpop.permute.xlu0 %2343  ;;  %v14979_v22 = vld [vmem:[%s14115_s25 + $0x4a] sm:$0xff] }
 0x317   : > { %19651 = vst [vmem:[#allocation227_spill] sm:$0xff] %v14962_v55  ;;  %v14982_v55 = vld [vmem:[%s14115_s25 + $0x42] sm:$0xff] }
 0x318   : > { %19652 = vst [vmem:[#allocation228_spill] sm:$0xff] %v14964_v52  ;;  %v2710_v52 = vld [vmem:[%s14115_s25 + $0xa2] sm:$0xff] }
 0x31b   : > { %2732 = vperm.xlu2 %13833, %v14967_v15   ;;  %2727 = vperm.xlu1 %13832, %v2695_v24  }
 0x31c   : > { %2722 = vperm.xlu0 %13831, %v2694_v35  }
 0x31d   : > { %v14972_v38 = vpop.permute.xlu2 %2413  ;;  %v14974_v42 = vpop.permute.xlu1 %2363 }
 0x31e   : > { %19653 = vst [vmem:[#allocation229_spill] sm:$0xff] %v14972_v38  ;;  %v14976_v0 = vpop.permute.xlu0 %2358 }
 0x31f   : > { %19654 = vst [vmem:[#allocation230_spill] sm:$0xff] %v14974_v42  ;;  %v2702_v42 = vld [vmem:[%s14115_s25 + $0x62] sm:$0xff] }
 0x320   : > { %19655 = vst [vmem:[#allocation231_spill] sm:$0xff] %v14976_v0  ;;  %v14998_v0 = vld [vmem:[%s14115_s25 + $0x5a] sm:$0xff] }
 0x323   : > { %2747 = vperm.xlu2 %13833, %v14979_v22   ;;  %2742 = vperm.xlu1 %13832, %v14982_v55  }
 0x324   : > { %2737 = vperm.xlu0 %13831, %v14985_v11  }
 0x325   : > { %v14990_v35 = vpop.permute.xlu2 %2428  ;;  %v14992_v24 = vpop.permute.xlu1 %2378 }
 0x326   : > { %19656 = vst [vmem:[#allocation232_spill] sm:$0xff] %v14990_v35  ;;  %v14994_v38 = vpop.permute.xlu0 %2373 }
 0x327   : > { %19657 = vst [vmem:[#allocation233_spill] sm:$0xff] %v14992_v24 }
 0x328   : > { %19658 = vst [vmem:[#allocation234_spill] sm:$0xff] %v14994_v38  ;;  %v2705_v38 = vld [vmem:[%s14115_s25 + $0x7a] sm:$0xff] }
 0x32b   : > { %2762 = vperm.xlu2 %13833, %v2702_v42   ;;  %2757 = vperm.xlu1 %13832, %v14998_v0  }
 0x32c   : > { %2752 = vperm.xlu0 %13831, %v15001_v43  }
 0x32d   : > { %v15005_v28 = vpop.permute.xlu2 %2443  ;;  %v15007_v35 = vpop.permute.xlu1 %2393 }
 0x32e   : > { %19659 = vst [vmem:[#allocation235_spill] sm:$0xff] %v15005_v28  ;;  %v15009_v24 = vpop.permute.xlu0 %2388  ;;  %v2708_v28 = vld [vmem:[%s14115_s25 + $0x92] sm:$0xff] }
 0x32f   : > { %19660 = vst [vmem:[#allocation236_spill] sm:$0xff] %v15007_v35  ;;  %v2706_v35 = vld [vmem:[%s14115_s25 + $0x82] sm:$0xff] }
 0x330   : > { %19661 = vst [vmem:[#allocation237_spill] sm:$0xff] %v15009_v24  ;;  %v2711_v24 = vld [vmem:[%s14115_s25 + $0xaa] sm:$0xff] }
 0x333   : > { %2777 = vperm.xlu2 %13833, %v2705_v38   ;;  %2772 = vperm.xlu1 %13832, %v2704_v58  }
 0x334   : > { %2767 = vperm.xlu0 %13831, %v2703_v30  }
 0x335   : > { %v15014_v42 = vpop.permute.xlu2 %2535  ;;  %v15016_v41 = vpop.permute.xlu1 %2408 }
 0x336   : > { %19662 = vst [vmem:[#allocation238_spill] sm:$0xff] %v15014_v42  ;;  %v15018_v40 = vpop.permute.xlu0 %2403 }
 0x337   : > { %19663 = vst [vmem:[#allocation239_spill] sm:$0xff] %v15016_v41  ;;  %v2709_v41 = vld [vmem:[%s14115_s25 + $0x9a] sm:$0xff] }
 0x338   : > { %19664 = vst [vmem:[#allocation240_spill] sm:$0xff] %v15018_v40  ;;  %v2714_v40 = vld [vmem:[%s14115_s25 + $0xc2] sm:$0xff] }
 0x33b   : > { %2792 = vperm.xlu2 %13833, %v2708_v28   ;;  %2787 = vperm.xlu1 %13832, %v2707_v37  }
 0x33c   : > { %2782 = vperm.xlu0 %13831, %v2706_v35  }
 0x33d   : > { %v15023_v38 = vpop.permute.xlu2 %2550  ;;  %v15025_v58 = vpop.permute.xlu1 %2423 }
 0x33e   : > { %19665 = vst [vmem:[#allocation241_spill] sm:$0xff] %v15023_v38  ;;  %v15027_v30 = vpop.permute.xlu0 %2418  ;;  %v2713_v38 = vld [vmem:[%s14115_s25 + $0xba] sm:$0xff] }
 0x33f   : > { %19666 = vst [vmem:[#allocation242_spill] sm:$0xff] %v15025_v58  ;;  %v2712_v58 = vld [vmem:[%s14115_s25 + $0xb2] sm:$0xff] }
 0x340   : > { %19667 = vst [vmem:[#allocation243_spill] sm:$0xff] %v15027_v30  ;;  %v2716_v30 = vld [vmem:[%s14115_s25 + $0xd2] sm:$0xff] }
 0x343   : > { %2807 = vperm.xlu2 %13833, %v2711_v24   ;;  %2802 = vperm.xlu1 %13832, %v2710_v52  }
 0x344   : > { %2797 = vperm.xlu0 %13831, %v2709_v41  }
 0x345   : > { %v15032_v28 = vpop.permute.xlu2 %2565  ;;  %v15034_v37 = vpop.permute.xlu1 %2438 }
 0x346   : > { %19668 = vst [vmem:[#allocation244_spill] sm:$0xff] %v15032_v28  ;;  %v15036_v35 = vpop.permute.xlu0 %2433  ;;  %v2717_v28 = vld [vmem:[%s14115_s25 + $0xda] sm:$0xff] }
 0x347   : > { %19669 = vst [vmem:[#allocation245_spill] sm:$0xff] %v15034_v37  ;;  %v2715_v37 = vld [vmem:[%s14115_s25 + $0xca] sm:$0xff] }
 0x348   : > { %19670 = vst [vmem:[#allocation246_spill] sm:$0xff] %v15036_v35  ;;  %v2892_v35 = vld [vmem:[%s14115_s25 + $0x2b] sm:$0xff] }
 0x34b   : > { %2822 = vperm.xlu2 %13833, %v2714_v40   ;;  %2817 = vperm.xlu1 %13832, %v2713_v38  }
 0x34c   : > { %2812 = vperm.xlu0 %13831, %v2712_v58  }
 0x34d   : > { %v15041_v24 = vpop.permute.xlu2 %2580  ;;  %v15043_v52 = vpop.permute.xlu1 %2530 }
 0x34e   : > { %19671 = vst [vmem:[#allocation247_spill] sm:$0xff] %v15041_v24  ;;  %v15045_v41 = vpop.permute.xlu0 %2525  ;;  %v15057_v24 = vld [vmem:[%s14115_s25 + $0x33] sm:$0xff] }
 0x34f   : > { %19672 = vst [vmem:[#allocation248_spill] sm:$0xff] %v15043_v52  ;;  %v2891_v52 = vld [vmem:[%s14115_s25 + $0x23] sm:$0xff] }
 0x350   : > { %19673 = vst [vmem:[#allocation249_spill] sm:$0xff] %v15045_v41  ;;  %v15093_v41 = vld [vmem:[%s14115_s25 + $0x53] sm:$0xff] }
 0x353   : > { %2837 = vperm.xlu2 %13833, %v2717_v28   ;;  %2832 = vperm.xlu1 %13832, %v2716_v30  }
 0x354   : > { %2827 = vperm.xlu0 %13831, %v2715_v37  }
 0x355   : > { %v15050_v40 = vpop.permute.xlu2 %2595  ;;  %v15052_v38 = vpop.permute.xlu1 %2545 }
 0x356   : > { %19674 = vst [vmem:[#allocation250_spill] sm:$0xff] %v15050_v40  ;;  %v15054_v58 = vpop.permute.xlu0 %2540  ;;  %v15069_v40 = vld [vmem:[%s14115_s25 + $0x4b] sm:$0xff] }
 0x357   : > { %19675 = vst [vmem:[#allocation251_spill] sm:$0xff] %v15052_v38  ;;  %v15072_v38 = vld [vmem:[%s14115_s25 + $0x43] sm:$0xff] }
 0x358   : > { %19676 = vst [vmem:[#allocation252_spill] sm:$0xff] %v15054_v58  ;;  %v15075_v58 = vld [vmem:[%s14115_s25 + $0x3b] sm:$0xff] }
 0x35b   : > { %2929 = vperm.xlu2 %13833, %v15057_v24   ;;  %2924 = vperm.xlu1 %13832, %v2892_v35  }
 0x35c   : > { %2919 = vperm.xlu0 %13831, %v2891_v52  }
 0x35d   : > { %v15062_v30 = vpop.permute.xlu2 %2610  ;;  %v15064_v28 = vpop.permute.xlu1 %2560 }
 0x35e   : > { %19677 = vst [vmem:[#allocation253_spill] sm:$0xff] %v15062_v30  ;;  %v15066_v37 = vpop.permute.xlu0 %2555 }
 0x35f   : > { %19678 = vst [vmem:[#allocation254_spill] sm:$0xff] %v15064_v28  ;;  %v15087_v28 = vld [vmem:[%s14115_s25 + $0x63] sm:$0xff] }
 0x360   : > { %19679 = vst [vmem:[#allocation255_spill] sm:$0xff] %v15066_v37  ;;  %v15090_v37 = vld [vmem:[%s14115_s25 + $0x5b] sm:$0xff] }
 0x363   : > { %2944 = vperm.xlu2 %13833, %v15069_v40   ;;  %2939 = vperm.xlu1 %13832, %v15072_v38  }
 0x364   : > { %2934 = vperm.xlu0 %13831, %v15075_v58  }
 0x365   : > { %v15080_v35 = vpop.permute.xlu2 %2625  ;;  %v15082_v52 = vpop.permute.xlu1 %2575 }
 0x366   : > { %19680 = vst [vmem:[#allocation256_spill] sm:$0xff] %v15080_v35  ;;  %v15084_v30 = vpop.permute.xlu0 %2570 }
 0x367   : > { %19681 = vst [vmem:[#allocation257_spill] sm:$0xff] %v15082_v52 }
 0x368   : > { %19682 = vst [vmem:[#allocation258_spill] sm:$0xff] %v15084_v30 }
 0x36b   : > { %2959 = vperm.xlu2 %13833, %v15087_v28   ;;  %2954 = vperm.xlu1 %13832, %v15090_v37  }
 0x36c   : > { %2949 = vperm.xlu0 %13831, %v15093_v41  }
 0x36d   : > { %v15098_v35 = vpop.permute.xlu2 %2640  ;;  %v15100_v52 = vpop.permute.xlu1 %2590 }
 0x36e   : > { %19683 = vst [vmem:[#allocation259_spill] sm:$0xff] %v15098_v35  ;;  %v15102_v30 = vpop.permute.xlu0 %2585 }
 0x36f   : > { %19684 = vst [vmem:[#allocation260_spill] sm:$0xff] %v15100_v52  ;;  %v2905_v52 = vld [vmem:[%s14115_s25 + $0x93] sm:$0xff] }
 0x370   : > { %19685 = vst [vmem:[#allocation261_spill] sm:$0xff] %v15102_v30  ;;  %v2903_v30 = vld [vmem:[%s14115_s25 + $0x83] sm:$0xff] }
 0x373   : > { %2974 = vperm.xlu2 %13833, %v2902_v20   ;;  %2969 = vperm.xlu1 %13832, %v2901_v44  }
 0x374   : > { %2964 = vperm.xlu0 %13831, %v15107_v8  }
 0x375   : > { %v15110_v42 = vpop.permute.xlu2 %2732  ;;  %v15112_v19 = vpop.permute.xlu1 %2605 }
 0x376   : > { %19686 = vst [vmem:[#allocation262_spill] sm:$0xff] %v15110_v42  ;;  %v15114_v35 = vpop.permute.xlu0 %2600  ;;  %v2908_v42 = vld [vmem:[%s14115_s25 + $0xab] sm:$0xff] }
 0x377   : > { %19687 = vst [vmem:[#allocation263_spill] sm:$0xff] %v15112_v19  ;;  %v2906_v19 = vld [vmem:[%s14115_s25 + $0x9b] sm:$0xff] }
 0x378   : > { %19688 = vst [vmem:[#allocation264_spill] sm:$0xff] %v15114_v35  ;;  %v2911_v35 = vld [vmem:[%s14115_s25 + $0xc3] sm:$0xff] }
 0x37b   : > { %2989 = vperm.xlu2 %13833, %v2905_v52   ;;  %2984 = vperm.xlu1 %13832, %v2904_v46  }
 0x37c   : > { %2979 = vperm.xlu0 %13831, %v2903_v30  }
 0x37d   : > { %v15119_v20 = vpop.permute.xlu2 %2747  ;;  %v15121_v44 = vpop.permute.xlu1 %2620 }
 0x37e   : > { %19689 = vst [vmem:[#allocation265_spill] sm:$0xff] %v15119_v20  ;;  %v15123_v32 = vpop.permute.xlu0 %2615  ;;  %v2910_v20 = vld [vmem:[%s14115_s25 + $0xbb] sm:$0xff] }
 0x37f   : > { %19690 = vst [vmem:[#allocation266_spill] sm:$0xff] %v15121_v44  ;;  %v2909_v44 = vld [vmem:[%s14115_s25 + $0xb3] sm:$0xff] }
 0x380   : > { %19691 = vst [vmem:[#allocation267_spill] sm:$0xff] %v15123_v32  ;;  %v2913_v32 = vld [vmem:[%s14115_s25 + $0xd3] sm:$0xff] }
 0x383   : > { %3004 = vperm.xlu2 %13833, %v2908_v42   ;;  %2999 = vperm.xlu1 %13832, %v2907_v16  }
 0x384   : > { %2994 = vperm.xlu0 %13831, %v2906_v19  }
 0x385   : > { %v15128_v52 = vpop.permute.xlu2 %2762  ;;  %v15130_v46 = vpop.permute.xlu1 %2635 }
 0x386   : > { %19692 = vst [vmem:[#allocation268_spill] sm:$0xff] %v15128_v52  ;;  %v15132_v30 = vpop.permute.xlu0 %2630  ;;  %v2914_v52 = vld [vmem:[%s14115_s25 + $0xdb] sm:$0xff] }
 0x387   : > { %19693 = vst [vmem:[#allocation269_spill] sm:$0xff] %v15130_v46  ;;  %v2912_v46 = vld [vmem:[%s14115_s25 + $0xcb] sm:$0xff] }
 0x388   : > { %19694 = vst [vmem:[#allocation270_spill] sm:$0xff] %v15132_v30  ;;  %v3089_v30 = vld [vmem:[%s14115_s25 + $0x2c] sm:$0xff] }
 0x38b   : > { %3019 = vperm.xlu2 %13833, %v2911_v35   ;;  %3014 = vperm.xlu1 %13832, %v2910_v20  }
 0x38c   : > { %3009 = vperm.xlu0 %13831, %v2909_v44  }
 0x38d   : > { %v15137_v42 = vpop.permute.xlu2 %2777  ;;  %v15139_v16 = vpop.permute.xlu1 %2727 }
 0x38e   : > { %19695 = vst [vmem:[#allocation271_spill] sm:$0xff] %v15137_v42  ;;  %v15141_v19 = vpop.permute.xlu0 %2722  ;;  %v15153_v42 = vld [vmem:[%s14115_s25 + $0x34] sm:$0xff] }
 0x38f   : > { %19696 = vst [vmem:[#allocation272_spill] sm:$0xff] %v15139_v16  ;;  %v3088_v16 = vld [vmem:[%s14115_s25 + $0x24] sm:$0xff] }
 0x390   : > { %19697 = vst [vmem:[#allocation273_spill] sm:$0xff] %v15141_v19  ;;  %v15189_v19 = vld [vmem:[%s14115_s25 + $0x54] sm:$0xff] }
 0x393   : > { %3034 = vperm.xlu2 %13833, %v2914_v52   ;;  %3029 = vperm.xlu1 %13832, %v2913_v32  }
 0x394   : > { %3024 = vperm.xlu0 %13831, %v2912_v46  }
 0x395   : > { %v15146_v35 = vpop.permute.xlu2 %2792  ;;  %v15148_v20 = vpop.permute.xlu1 %2742 }
 0x396   : > { %19698 = vst [vmem:[#allocation274_spill] sm:$0xff] %v15146_v35  ;;  %v15150_v44 = vpop.permute.xlu0 %2737  ;;  %v15165_v35 = vld [vmem:[%s14115_s25 + $0x4c] sm:$0xff] }
 0x397   : > { %19699 = vst [vmem:[#allocation275_spill] sm:$0xff] %v15148_v20  ;;  %v15168_v20 = vld [vmem:[%s14115_s25 + $0x44] sm:$0xff] }
 0x398   : > { %19700 = vst [vmem:[#allocation276_spill] sm:$0xff] %v15150_v44  ;;  %v15171_v44 = vld [vmem:[%s14115_s25 + $0x3c] sm:$0xff] }
 0x39b   : > { %3126 = vperm.xlu2 %13833, %v15153_v42   ;;  %3121 = vperm.xlu1 %13832, %v3089_v30  }
 0x39c   : > { %3116 = vperm.xlu0 %13831, %v3088_v16  }
 0x39d   : > { %v15158_v32 = vpop.permute.xlu2 %2807  ;;  %v15160_v52 = vpop.permute.xlu1 %2757 }
 0x39e   : > { %19701 = vst [vmem:[#allocation277_spill] sm:$0xff] %v15158_v32  ;;  %v15162_v46 = vpop.permute.xlu0 %2752 }
 0x39f   : > { %19702 = vst [vmem:[#allocation278_spill] sm:$0xff] %v15160_v52  ;;  %v15183_v52 = vld [vmem:[%s14115_s25 + $0x64] sm:$0xff] }
 0x3a0   : > { %19703 = vst [vmem:[#allocation279_spill] sm:$0xff] %v15162_v46  ;;  %v15186_v46 = vld [vmem:[%s14115_s25 + $0x5c] sm:$0xff] }
 0x3a3   : > { %3141 = vperm.xlu2 %13833, %v15165_v35   ;;  %3136 = vperm.xlu1 %13832, %v15168_v20  }
 0x3a4   : > { %3131 = vperm.xlu0 %13831, %v15171_v44  }
 0x3a5   : > { %v15176_v30 = vpop.permute.xlu2 %2822  ;;  %v15178_v16 = vpop.permute.xlu1 %2772 }
 0x3a6   : > { %19704 = vst [vmem:[#allocation280_spill] sm:$0xff] %v15176_v30  ;;  %v15180_v32 = vpop.permute.xlu0 %2767 }
 0x3a7   : > { %19705 = vst [vmem:[#allocation281_spill] sm:$0xff] %v15178_v16 }
 0x3a8   : > { %19706 = vst [vmem:[#allocation282_spill] sm:$0xff] %v15180_v32 }
 0x3ab   : > { %3156 = vperm.xlu2 %13833, %v15183_v52   ;;  %3151 = vperm.xlu1 %13832, %v15186_v46  }
 0x3ac   : > { %3146 = vperm.xlu0 %13831, %v15189_v19  }
 0x3ad   : > { %v15194_v30 = vpop.permute.xlu2 %2837  ;;  %v15196_v16 = vpop.permute.xlu1 %2787 }
 0x3ae   : > { %19707 = vst [vmem:[#allocation283_spill] sm:$0xff] %v15194_v30  ;;  %v15198_v32 = vpop.permute.xlu0 %2782 }
 0x3af   : > { %19708 = vst [vmem:[#allocation284_spill] sm:$0xff] %v15196_v16 }
 0x3b0   : > { %19709 = vst [vmem:[#allocation285_spill] sm:$0xff] %v15198_v32 }
 0x3b3   : > { %3171 = vperm.xlu2 %13833, %v15201_v5   ;;  %3166 = vperm.xlu1 %13832, %v15204_v53  }
 0x3b4   : > { %3161 = vperm.xlu0 %13831, %v15207_v62  }
 0x3b5   : > { %v15212_v30 = vpop.permute.xlu2 %2929  ;;  %v15214_v16 = vpop.permute.xlu1 %2802 }
 0x3b6   : > { %19712 = vst [vmem:[#allocation288_spill] sm:$0xff] %v15212_v30  ;;  %v15216_v32 = vpop.permute.xlu0 %2797  ;;  %v3105_v30 = vld [vmem:[%s14115_s25 + $0xac] sm:$0xff] }
 0x3b7   : > { %19713 = vst [vmem:[#allocation289_spill] sm:$0xff] %v15214_v16  ;;  %v3103_v16 = vld [vmem:[%s14115_s25 + $0x9c] sm:$0xff] }
 0x3b8   : > { %19714 = vst [vmem:[#allocation290_spill] sm:$0xff] %v15216_v32  ;;  %v3285_v32 = vld [vmem:[%s14115_s25 + $0x30] sm:$0xff] }
 0x3bb   : > { %3186 = vperm.xlu2 %13833, %v3102_v13   ;;  %3181 = vperm.xlu1 %13832, %v3101_v45  }
 0x3bc   : > { %3176 = vperm.xlu0 %13831, %v3100_v39  }
 0x3bd   : > { %v15221_v5 = vpop.permute.xlu2 %2944  ;;  %v15223_v53 = vpop.permute.xlu1 %2817 }
 0x3be   : > { %19715 = vst [vmem:[#allocation291_spill] sm:$0xff] %v15221_v5  ;;  %v15225_v48 = vpop.permute.xlu0 %2812  ;;  %v3107_v5 = vld [vmem:[%s14115_s25 + $0xbc] sm:$0xff] }
 0x3bf   : > { %19716 = vst [vmem:[#allocation292_spill] sm:$0xff] %v15223_v53  ;;  %v3106_v53 = vld [vmem:[%s14115_s25 + $0xb4] sm:$0xff] }
 0x3c0   : > { %19717 = vst [vmem:[#allocation293_spill] sm:$0xff] %v15225_v48 }
 0x3c3   : > { %3201 = vperm.xlu2 %13833, %v3105_v30   ;;  %3196 = vperm.xlu1 %13832, %v3104_v34   ;;  %v3288_v34 = vld [vmem:[%s14115_s25 + $0x48] sm:$0xff] }
 0x3c4   : > { %3191 = vperm.xlu0 %13831, %v3103_v16   ;;  %v3287_v16 = vld [vmem:[%s14115_s25 + $0x40] sm:$0xff] }
 0x3c5   : > { %v15230_v13 = vpop.permute.xlu2 %2959  ;;  %v15232_v45 = vpop.permute.xlu1 %2832 }
 0x3c6   : > { %19718 = vst [vmem:[#allocation294_spill] sm:$0xff] %v15230_v13  ;;  %v15234_v39 = vpop.permute.xlu0 %2827 }
 0x3c7   : > { %19719 = vst [vmem:[#allocation295_spill] sm:$0xff] %v15232_v45 }
 0x3c8   : > { %19720 = vst [vmem:[#allocation296_spill] sm:$0xff] %v15234_v39 }
 0x3cb   : > { %3313 = vperm.xlu2 %13833, %v3285_v32   ;;  %3211 = vperm.xlu1 %13832, %v3107_v5  }
 0x3cc   : > { %3206 = vperm.xlu0 %13831, %v3106_v53  }
 0x3cd   : > { %v15239_v48 = vpop.permute.xlu2 %2974  ;;  %v15241_v60 = vpop.permute.xlu1 %2924 }
 0x3ce   : > { %19721 = vst [vmem:[#allocation297_spill] sm:$0xff] %v15239_v48  ;;  %v15243_v30 = vpop.permute.xlu0 %2919  ;;  %v4469_v48 = vld [vmem:[%s14115_s25 + $0x51] sm:$0xff] }
 0x3d3   : > { %3328 = vperm.xlu2 %13833, %v3288_v34   ;;  %3323 = vperm.xlu1 %13832, %v3287_v16  }
 0x3d4   : > { %3318 = vperm.xlu0 %13831, %v3286_v23  }
 0x3d5   : > { %v15248_v45 = vpop.permute.xlu2 %2989  ;;  %v15250_v39 = vpop.permute.xlu1 %2939 }
 0x3d6   : > { %19722 = vst [vmem:[#allocation298_spill] sm:$0xff] %v15248_v45  ;;  %v15252_v13 = vpop.permute.xlu0 %2934 }
 0x3d7   : > { %19723 = vst [vmem:[#allocation299_spill] sm:$0xff] %v15250_v39 }
 0x3db   : > { %3520 = vperm.xlu2 %13833, %v14898_v17   ;;  %3515 = vperm.xlu1 %13832, %v14901_v49  }
 0x3dc   : > { %3510 = vperm.xlu0 %13831, %v14883_v63  }
 0x3dd   : > { %v15257_v5 = vpop.permute.xlu2 %3004  ;;  %v15259_v53 = vpop.permute.xlu1 %2954 }
 0x3de   : > { %19724 = vst [vmem:[#allocation300_spill] sm:$0xff] %v15257_v5  ;;  %v15261_v32 = vpop.permute.xlu0 %2949  ;;  %v4470_v5 = vld [vmem:[%s14115_s25 + $0x59] sm:$0xff] }
 0x3df   : > { %19725 = vst [vmem:[#allocation301_spill] sm:$0xff] %v15259_v53 }
 0x3e0   : > { %19726 = vst [vmem:[#allocation302_spill] sm:$0xff] %v15261_v32 }
 0x3e3   : > { %3712 = vperm.xlu2 %13833, %v14985_v11   ;;  %3707 = vperm.xlu1 %13832, %v14967_v15  }
 0x3e4   : > { %3525 = vperm.xlu0 %13831, %v14895_v61  }
 0x3e5   : > { %v15266_v23 = vpop.permute.xlu2 %3019  ;;  %v15268_v45 = vpop.permute.xlu1 %2969 }
 0x3e6   : > { %19727 = vst [vmem:[#allocation303_spill] sm:$0xff] %v15266_v23  ;;  %v15270_v17 = vpop.permute.xlu0 %2964  ;;  %v4272_v23 = vld [vmem:[%s14115_s25 + $0x50] sm:$0xff] }
 0x3e7   : > { %19728 = vst [vmem:[#allocation304_spill] sm:$0xff] %v15268_v45  ;;  %v4468_v45 = vld [vmem:[%s14115_s25 + $0x49] sm:$0xff] }
 0x3e8   : > { %19729 = vst [vmem:[#allocation305_spill] sm:$0xff] %v15270_v17 }
 0x3eb   : > { %3904 = vperm.xlu2 %13833, %v15057_v24   ;;  %3722 = vperm.xlu1 %13832, %v14979_v22  }
 0x3ec   : > { %3717 = vperm.xlu0 %13831, %v14982_v55  }
 0x3ed   : > { %v15275_v49 = vpop.permute.xlu2 %3034  ;;  %v15277_v63 = vpop.permute.xlu1 %2984 }
 0x3ee   : > { %19730 = vst [vmem:[#allocation306_spill] sm:$0xff] %v15275_v49  ;;  %v15279_v11 = vpop.permute.xlu0 %2979 }
 0x3ef   : > { %19731 = vst [vmem:[#allocation307_spill] sm:$0xff] %v15277_v63 }
 0x3f0   : > { %19732 = vst [vmem:[#allocation308_spill] sm:$0xff] %v15279_v11 }
 0x3f3   : > { %3919 = vperm.xlu2 %13833, %v15069_v40   ;;  %3914 = vperm.xlu1 %13832, %v15072_v38  }
 0x3f4   : > { %3909 = vperm.xlu0 %13831, %v15075_v58  }
 0x3f5   : > { %v15284_v61 = vpop.permute.xlu2 %3126  ;;  %v15286_v15 = vpop.permute.xlu1 %2999 }
 0x3f6   : > { %19733 = vst [vmem:[#allocation309_spill] sm:$0xff] %v15286_v15  ;;  %v15288_v24 = vpop.permute.xlu0 %2994  ;;  %v4273_v15 = vld [vmem:[%s14115_s25 + $0x58] sm:$0xff] }
 0x3f7   : > { %19734 = vst [vmem:[#allocation310_spill] sm:$0xff] %v15288_v24 }
 0x3fb   : > { %4111 = vperm.xlu2 %13833, %v15168_v20   ;;  %4106 = vperm.xlu1 %13832, %v15171_v44  }
 0x3fc   : > { %4101 = vperm.xlu0 %13831, %v15153_v42   ;;  %v4467_v42 = vld [vmem:[%s14115_s25 + $0x41] sm:$0xff] }
 0x3fd   : > { %v15293_v49 = vpop.permute.xlu2 %3141  ;;  %v15295_v11 = vpop.permute.xlu1 %3014 }
 0x3fe   : > { %19735 = vst [vmem:[#allocation311_spill] sm:$0xff] %v15293_v49  ;;  %v15297_v58 = vpop.permute.xlu0 %3009 }
 0x3ff   : > { %19736 = vst [vmem:[#allocation312_spill] sm:$0xff] %v15295_v11 }
 0x400   : > { %19737 = vst [vmem:[#allocation313_spill] sm:$0xff] %v15297_v58 }
 0x403   : > { %4303 = vperm.xlu2 %13833, %v3288_v34   ;;  %4298 = vperm.xlu1 %13832, %v3287_v16  }
 0x404   : > { %4116 = vperm.xlu0 %13831, %v15165_v35  }
 0x405   : > { %v15300_v24 = vpop.permute.xlu2 %3156  ;;  %v15302_v63 = vpop.permute.xlu1 %3029 }
 0x406   : > { %19738 = vst [vmem:[#allocation314_spill] sm:$0xff] %v15300_v24  ;;  %v15304_v44 = vpop.permute.xlu0 %3024 }
 0x407   : > { %19739 = vst [vmem:[#allocation315_spill] sm:$0xff] %v15302_v63 }
 0x408   : > { %19740 = vst [vmem:[#allocation316_spill] sm:$0xff] %v15304_v44 }
 0x40b   : > { %4495 = vperm.xlu2 %13833, %v4467_v42   ;;  %4313 = vperm.xlu1 %13832, %v4273_v15  }
 0x40c   : > { %4308 = vperm.xlu0 %13831, %v4272_v23  }
 0x40d   : > { %v15309_v58 = vpop.permute.xlu2 %3171  ;;  %v15311_v34 = vpop.permute.xlu1 %3121 }
 0x40e   : > { %19741 = vst [vmem:[#allocation317_spill] sm:$0xff] %v15309_v58  ;;  %v15313_v16 = vpop.permute.xlu0 %3116 }
 0x413   : > { %4510 = vperm.xlu2 %13833, %v4470_v5   ;;  %4505 = vperm.xlu1 %13832, %v4469_v48  }
 0x414   : > { %4500 = vperm.xlu0 %13831, %v4468_v45  }
 0x415   : > { %v15318_v63 = vpop.permute.xlu2 %3186  ;;  %v15320_v44 = vpop.permute.xlu1 %3136 }
 0x416   : > { %19742 = vst [vmem:[#allocation318_spill] sm:$0xff] %v15318_v63  ;;  %v15322_v24 = vpop.permute.xlu0 %3131 }
 0x417   : > { %19743 = vst [vmem:[#allocation319_spill] sm:$0xff] %v15320_v44 }
 0x41b   : > { %4702 = vperm.xlu2 %13833, %v15001_v43   ;;  %4697 = vperm.xlu1 %13832, %v14979_v22  }
 0x41c   : > { %4692 = vperm.xlu0 %13831, %v14982_v55  }
 0x41d   : > { %v15327_v42 = vpop.permute.xlu2 %3201  ;;  %v15329_v58 = vpop.permute.xlu1 %3151 }
 0x41e   : > { %19744 = vst [vmem:[#allocation320_spill] sm:$0xff] %v15327_v42  ;;  %v15331_v11 = vpop.permute.xlu0 %3146 }
 0x41f   : > { %19745 = vst [vmem:[#allocation321_spill] sm:$0xff] %v15329_v58 }
 0x420   : > { %19746 = vst [vmem:[#allocation322_spill] sm:$0xff] %v15331_v11  ;;  %v4669_v11 = vld [vmem:[%s14115_s25 + $0x6a] sm:$0xff] }
 0x423   : > { %3338 = vperm.xlu2 %13833, %v4273_v15   ;;  %3333 = vperm.xlu1 %13832, %v4272_v23  }
 0x424   : > { %4707 = vperm.xlu0 %13831, %v14998_v0  }
 0x425   : > { %v15334_v45 = vpop.permute.xlu2 %3313  ;;  %v15336_v63 = vpop.permute.xlu1 %3166 }
 0x426   : > { %19747 = vst [vmem:[#allocation323_spill] sm:$0xff] %v15336_v63  ;;  %v15338_v17 = vpop.permute.xlu0 %3161  ;;  %v4472_v63 = vld [vmem:[%s14115_s25 + $0x69] sm:$0xff] }
 0x427   : > { %19748 = vst [vmem:[#allocation324_spill] sm:$0xff] %v15338_v17 }
 0x42b   : > { %4899 = vperm.xlu2 %13833, %v15093_v41   ;;  %4894 = vperm.xlu1 %13832, %v15069_v40  }
 0x42c   : > { %4889 = vperm.xlu0 %13831, %v15072_v38  }
 0x42d   : > { %v15343_v43 = vpop.permute.xlu2 %3328  ;;  %v15345_v22 = vpop.permute.xlu1 %3181 }
 0x42e   : > { %19749 = vst [vmem:[#allocation325_spill] sm:$0xff] %v15345_v22  ;;  %v15347_v55 = vpop.permute.xlu0 %3176 }
 0x42f   : > { %19750 = vst [vmem:[#allocation326_spill] sm:$0xff] %v15347_v55  ;;  %v3683_v55 = vld [vmem:[%s14115_s25 + $0x52] sm:$0xff] }
 0x433   : > { %3535 = vperm.xlu2 %13833, %v4470_v5   ;;  %3530 = vperm.xlu1 %13832, %v4469_v48   ;;  %v3684_v5 = vld [vmem:[%s14115_s25 + $0x5a] sm:$0xff] }
 0x434   : > { %4904 = vperm.xlu0 %13831, %v15090_v37  }
 0x435   : > { %v15350_v0 = vpop.permute.xlu2 %3520  ;;  %v15352_v23 = vpop.permute.xlu1 %3196 }
 0x436   : > { %19751 = vst [vmem:[#allocation327_spill] sm:$0xff] %v15352_v23  ;;  %v15354_v15 = vpop.permute.xlu0 %3191  ;;  %v4274_v23 = vld [vmem:[%s14115_s25 + $0x60] sm:$0xff] }
 0x437   : > { %19752 = vst [vmem:[#allocation328_spill] sm:$0xff] %v15354_v15 }
 0x43b   : > { %5096 = vperm.xlu2 %13833, %v15189_v19   ;;  %5091 = vperm.xlu1 %13832, %v15165_v35  }
 0x43c   : > { %5086 = vperm.xlu0 %13831, %v15168_v20  }
 0x43d   : > { %v15359_v40 = vpop.permute.xlu2 %3712  ;;  %v15361_v38 = vpop.permute.xlu1 %3211 }
 0x43e   : > { %19753 = vst [vmem:[#allocation329_spill] sm:$0xff] %v15361_v38  ;;  %v15363_v48 = vpop.permute.xlu0 %3206  ;;  %v4471_v38 = vld [vmem:[%s14115_s25 + $0x61] sm:$0xff] }
 0x43f   : > { %19754 = vst [vmem:[#allocation330_spill] sm:$0xff] %v15363_v48  ;;  %v4275_v48 = vld [vmem:[%s14115_s25 + $0x68] sm:$0xff] }
 0x443   : > { %3732 = vperm.xlu2 %13833, %v3684_v5   ;;  %3727 = vperm.xlu1 %13832, %v3683_v55  }
 0x444   : > { %5101 = vperm.xlu0 %13831, %v15186_v46  }
 0x445   : > { %v15368_v15 = vpop.permute.xlu2 %3904  ;;  %v15370_v22 = vpop.permute.xlu1 %3323 }
 0x446   : > { %v15372_v35 = vpop.permute.xlu0 %3318 }
 0x44b   : > { %4121 = vperm.xlu2 %13833, %v15189_v19   ;;  %3929 = vperm.xlu1 %13832, %v15090_v37  }
 0x44c   : > { %3924 = vperm.xlu0 %13831, %v15093_v41   ;;  %v4668_v41 = vld [vmem:[%s14115_s25 + $0x62] sm:$0xff] }
 0x44d   : > { %v15377_v20 = vpop.permute.xlu2 %3919  ;;  %v15379_v55 = vpop.permute.xlu1 %3515 }
 0x44e   : > { %19755 = vst [vmem:[#allocation331_spill] sm:$0xff] %v15377_v20  ;;  %v15381_v5 = vpop.permute.xlu0 %3510 }
 0x453   : > { %4323 = vperm.xlu2 %13833, %v4275_v48   ;;  %4318 = vperm.xlu1 %13832, %v4274_v23  }
 0x454   : > { %4126 = vperm.xlu0 %13831, %v15186_v46  }
 0x455   : > { %v15386_v42 = vpop.permute.xlu2 %4111  ;;  %v15388_v19 = vpop.permute.xlu1 %3707 }
 0x456   : > { %19756 = vst [vmem:[#allocation332_spill] sm:$0xff] %v15386_v42  ;;  %v15390_v37 = vpop.permute.xlu0 %3525 }
 0x45b   : > { %4712 = vperm.xlu2 %13833, %v4668_v41   ;;  %4520 = vperm.xlu1 %13832, %v4472_v63  }
 0x45c   : > { %4515 = vperm.xlu0 %13831, %v4471_v38  }
 0x45d   : > { %v15395_v17 = vpop.permute.xlu2 %4303  ;;  %v15397_v58 = vpop.permute.xlu1 %3722 }
 0x45e   : > { %19757 = vst [vmem:[#allocation333_spill] sm:$0xff] %v15395_v17  ;;  %v15399_v53 = vpop.permute.xlu0 %3717  ;;  %v3882_v17 = vld [vmem:[%s14115_s25 + $0x63] sm:$0xff] }
 0x45f   : > { %19758 = vst [vmem:[#allocation334_spill] sm:$0xff] %v15397_v58  ;;  %v15456_v58 = vld [vmem:[%s19385_s1 + $0x4] ss:$0 sm:$0xff] }
 0x460   : > { %19768 = vst [vmem:[#allocation344_spill] sm:$0xff] %v15456_v58 }
 0x463   : > { %3348 = vperm.xlu2 %13833, %v4275_v48   ;;  %3343 = vperm.xlu1 %13832, %v4274_v23   ;;  %v15419_v23 = vld [vmem:[%s19385_s1 + $0x1] ss:$0 sm:$0xff] }
 0x464   : > { %4717 = vperm.xlu0 %13831, %v4669_v11   ;;  %v676_v42 = vmul.f32 %v15419_v23, %v14295_v6 }
 0x465   : > { %v15402_v46 = vpop.permute.xlu2 %4495  ;;  %v15404_v32 = vpop.permute.xlu1 %3914 }
 0x466   : > { %19759 = vst [vmem:[#allocation335_spill] sm:$0xff] %v15402_v46  ;;  %v15406_v44 = vpop.permute.xlu0 %3909  ;;  %v678_v46 = vmul.f32 %v15419_v23, %v14264_v33 }
 0x46b   : > { %3540 = vperm.xlu2 %13833, %v4471_v38   ;;  %4914 = vperm.xlu1 %13832, %v15107_v8   ;;  %v15426_v8 = vld [vmem:[%s19385_s1 + $0x2] ss:$0 sm:$0xff] }
 0x46c   : > { %4909 = vperm.xlu0 %13831, %v15087_v28   ;;  %19763 = vst [vmem:[#allocation339_spill] sm:$0xff] %v15426_v8 }
 0x46d   : > { %v15410_v39 = vpop.permute.xlu2 %4510  ;;  %v15412_v49 = vpop.permute.xlu1 %4106 }
 0x46e   : > { %19760 = vst [vmem:[#allocation336_spill] sm:$0xff] %v15410_v39  ;;  %v15414_v20 = vpop.permute.xlu0 %4101  ;;  %v15437_v39 = vld [vmem:[%s19385_s1] ss:$0 sm:$0xff] }
 0x46f   : > { %19761 = vst [vmem:[#allocation337_spill] sm:$0xff] %v15412_v49  ;;  %v480_v33 = vmul.f32 %v15437_v39, %v14232_v57  ;;  %v15471_v49 = vld [vmem:[%s19385_s1 + $0x5] ss:$0 sm:$0xff]  ;;  %v479_v57 = vmul.f32 %v15437_v39, %v14223_v51  ;;  %v482_v6 = vmul.f32 %v15437_v39, %v14230_v56  ;;  %v15488_v51 = vld [vmem:[%s19385_s1 + $0x6] ss:$0 sm:$0xff] }
 0x470   : > { %19762 = vst [vmem:[#allocation338_spill] sm:$0xff] %v15414_v20 }
 0x471   : > { %19769 = vst [vmem:[#allocation345_spill] sm:$0xff] %v15471_v49 }
 0x472   : > { %19770 = vst [vmem:[#allocation346_spill] sm:$0xff] %v15488_v51 }
 0x473   : > { %5111 = vperm.xlu2 %13833, %v15207_v62   ;;  %5106 = vperm.xlu1 %13832, %v15183_v52  }
 0x474   : > { %3545 = vperm.xlu0 %13831, %v4472_v63   ;;  %v15444_v63 = vld [vmem:[%s19385_s1 + $0x3] ss:$0 sm:$0xff] }
 0x475   : > { %v15428_v28 = vpop.permute.xlu2 %4702  ;;  %v15430_v38 = vpop.permute.xlu1 %4298  ;;  %19767 = vst [vmem:[#allocation343_spill] sm:$0xff] %v15444_v63 }
 0x476   : > { %19764 = vst [vmem:[#allocation340_spill] sm:$0xff] %v15428_v28  ;;  %v15432_v48 = vpop.permute.xlu0 %4116  ;;  %v481_v28 = vmul.f32 %v15437_v39, %v14221_v50  ;;  %v679_v50 = vmul.f32 %v15419_v23, %v14304_v31  ;;  %v873_v31 = vmul.f32 %v15426_v8, %v14367_v29 }
 0x477   : > { %19765 = vst [vmem:[#allocation341_spill] sm:$0xff] %v15430_v38  ;;  %v875_v38 = vmul.f32 %v15426_v8, %v14336_v25  ;;  %v1072_v25 = vmul.f32 %v15444_v63, %v14408_v47 }
 0x478   : > { %19766 = vst [vmem:[#allocation342_spill] sm:$0xff] %v15432_v48  ;;  %v677_v48 = vmul.f32 %v15419_v23, %v14293_v3  ;;  %v702_v20 = vadd.f32 %v678_v46, %v481_v28  ;;  %v874_v3 = vmul.f32 %v15426_v8, %v14365_v26  ;;  %v876_v26 = vmul.f32 %v15426_v8, %v14376_v54  ;;  %v19800_v8 = vld [vmem:[#allocation228_spill] sm:$0xff] }
 0x479   : > { %v1071_v28 = vmul.f32 %v15444_v63, %v14437_v59  ;;  %v703_v54 = vadd.f32 %v679_v50, %v482_v6  ;;  %v1073_v59 = vmul.f32 %v15444_v63, %v14448_v36  ;;  %v1267_v36 = vmul.f32 %v15456_v58, %v14511_v14 }
 0x47a   : > { %v701_v47 = vadd.f32 %v677_v48, %v480_v33  ;;  %v899_v46 = vadd.f32 %v875_v38, %v702_v20  ;;  %v1070_v20 = vmul.f32 %v15444_v63, %v14439_v27  ;;  %v1466_v48 = vmul.f32 %v15471_v49, %v14552_v7  ;;  %v15505_v33 = vld [vmem:[%s19385_s1 + $0x7] ss:$0 sm:$0xff]  ;;  %v19798_v63 = vld [vmem:[#allocation272_spill] sm:$0xff] }
 0x47b   : > { %3934 = vperm.xlu2 %13833, %v3882_v17   ;;  %3742 = vperm.xlu1 %13832, %v4669_v11   ;;  %v1269_v17 = vmul.f32 %v15456_v58, %v14480_v4  ;;  %v700_v11 = vadd.f32 %v676_v42, %v479_v57  ;;  %19772 = vst [vmem:[#allocation348_spill] sm:$0xff] %v15505_v33 }
 0x47c   : > { %3737 = vperm.xlu0 %13831, %v4668_v41   ;;  %v898_v4 = vadd.f32 %v874_v3, %v701_v47  ;;  %v1096_v38 = vadd.f32 %v1072_v25, %v899_v46  ;;  %v900_v50 = vadd.f32 %v876_v26, %v703_v54  ;;  %v1268_v27 = vmul.f32 %v15456_v58, %v14509_v21  ;;  %v15518_v25 = vld [vmem:[%s19385_s1 + $0x8] ss:$0 sm:$0xff] }
 0x47d   : > { %v15490_v56 = vpop.permute.xlu2 %3338  ;;  %v15492_v29 = vpop.permute.xlu1 %4313  ;;  %v897_v42 = vadd.f32 %v873_v31, %v700_v11  ;;  %v1270_v3 = vmul.f32 %v15456_v58, %v14520_v2  ;;  %v1663_v7 = vmul.f32 %v15488_v51, %v14624_v18  ;;  %19773 = vst [vmem:[#allocation349_spill] sm:$0xff] %v15518_v25  ;;  %v3883_v31 = vld [vmem:[%s14115_s25 + $0x6b] sm:$0xff]  ;;  %v1465_v21 = vmul.f32 %v15471_v49, %v14581_v1  ;;  %v19775_v11 = vld [vmem:[#allocation129_spill] sm:$0xff] }
 0x47e   : > { %19771 = vst [vmem:[#allocation347_spill] sm:$0xff] %v15490_v56  ;;  %v15498_v41 = vpop.permute.xlu0 %4308  ;;  %v1095_v57 = vadd.f32 %v1071_v28, %v898_v4  ;;  %v1293_v6 = vadd.f32 %v1269_v17, %v1096_v38  ;;  %v1097_v47 = vadd.f32 %v1073_v59, %v900_v50  ;;  %v1464_v14 = vmul.f32 %v15471_v49, %v14583_v10  ;;  %v15532_v28 = vld [vmem:[%s19385_s1 + $0x9] ss:$0 sm:$0xff]  ;;  %v19777_v59 = vld [vmem:[#allocation133_spill] sm:$0xff] }
 0x47f   : > { %v1094_v26 = vadd.f32 %v1070_v20, %v897_v42  ;;  %v1467_v2 = vmul.f32 %v15471_v49, %v14592_v9  ;;  %v1860_v18 = vmul.f32 %v15505_v33, %v14696_v12  ;;  %19774 = vst [vmem:[#allocation350_spill] sm:$0xff] %v15532_v28  ;;  %v1662_v10 = vmul.f32 %v15488_v51, %v19775_v11  ;;  %v19776_v54 = vld [vmem:[#allocation130_spill] sm:$0xff] }
 0x480   : > { %v1490_v46 = vadd.f32 %v1466_v48, %v1293_v6  ;;  %v1292_v1 = vadd.f32 %v1268_v27, %v1095_v57  ;;  %v1661_v9 = vmul.f32 %v15488_v51, %v19776_v54  ;;  %v1294_v20 = vadd.f32 %v1270_v3, %v1097_v47  ;;  %v19778_v38 = vld [vmem:[#allocation166_spill] sm:$0xff]  ;;  %v19780_v6 = vld [vmem:[#allocation153_spill] sm:$0xff] }
 0x481   : > { %v1291_v17 = vadd.f32 %v1267_v36, %v1094_v26  ;;  %v1664_v4 = vmul.f32 %v15488_v51, %v19777_v59  ;;  %v2057_v48 = vmul.f32 %v15518_v25, %v19778_v38  ;;  %v19779_v36 = vld [vmem:[#allocation152_spill] sm:$0xff]  ;;  %v1858_v3 = vmul.f32 %v15505_v33, %v19780_v6  ;;  %v19781_v47 = vld [vmem:[#allocation190_spill] sm:$0xff]  ;;  %v19783_v54 = vld [vmem:[#allocation177_spill] sm:$0xff] }
 0x482   : > { %v1687_v12 = vadd.f32 %v1663_v7, %v1490_v46  ;;  %v1489_v50 = vadd.f32 %v1465_v21, %v1292_v1  ;;  %v1859_v57 = vmul.f32 %v15505_v33, %v19779_v36  ;;  %v2254_v46 = vmul.f32 %v15532_v28, %v19781_v47  ;;  %v15564_v11 = vld [vmem:[%s19385_s1 + $0xb] ss:$0 sm:$0xff]  ;;  %v19782_v1 = vld [vmem:[#allocation176_spill] sm:$0xff] }
 0x483   : > { %4136 = vperm.xlu2 %13833, %v15207_v62   ;;  %4131 = vperm.xlu1 %13832, %v15183_v52   ;;  %v15547_v62 = vld [vmem:[%s19385_s1 + $0xa] ss:$0 sm:$0xff]  ;;  %v1488_v27 = vadd.f32 %v1464_v14, %v1291_v17  ;;  %v2056_v17 = vmul.f32 %v15518_v25, %v19782_v1  ;;  %v2055_v59 = vmul.f32 %v15518_v25, %v19783_v54  ;;  %v15571_v38 = vld [vmem:[%s14115_s25 + $0x71] sm:$0xff] }
 0x484   : > { %3939 = vperm.xlu0 %13831, %v3883_v31   ;;  %v1491_v31 = vadd.f32 %v1467_v2, %v1294_v20  ;;  %v1884_v26 = vadd.f32 %v1860_v18, %v1687_v12  ;;  %v1686_v21 = vadd.f32 %v1662_v10, %v1489_v50  ;;  %v15574_v2 = vld [vmem:[%s14115_s25 + $0x78] sm:$0xff]  ;;  %v19785_v6 = vld [vmem:[#allocation214_spill] sm:$0xff] }
 0x485   : > { %v15549_v52 = vpop.permute.xlu2 %4899  ;;  %v15551_v42 = vpop.permute.xlu1 %4505  ;;  %v1685_v14 = vadd.f32 %v1661_v9, %v1488_v27  ;;  %v19784_v20 = vld [vmem:[#allocation156_spill] sm:$0xff]  ;;  %v2451_v47 = vmul.f32 %v15547_v62, %v19785_v6  ;;  %v15583_v10 = vld [vmem:[%s19385_s1 + $0xc] ss:$0 sm:$0xff] }
 0x486   : > { %v15557_v7 = vpop.permute.xlu0 %4500  ;;  %v1688_v18 = vadd.f32 %v1664_v4, %v1491_v31  ;;  %v1861_v12 = vmul.f32 %v15505_v33, %v19784_v20  ;;  %v2081_v36 = vadd.f32 %v2057_v48, %v1884_v26  ;;  %v15586_v9 = vld [vmem:[%s14115_s25 + $0x70] sm:$0xff]  ;;  %v1883_v50 = vadd.f32 %v1859_v57, %v1686_v21  ;;  %v19787_v4 = vld [vmem:[#allocation201_spill] sm:$0xff]  ;;  %v19789_v6 = vld [vmem:[#allocation238_spill] sm:$0xff] }
 0x487   : > { %v1882_v27 = vadd.f32 %v1858_v3, %v1685_v14  ;;  %v19786_v1 = vld [vmem:[#allocation200_spill] sm:$0xff]  ;;  %v2252_v31 = vmul.f32 %v15532_v28, %v19787_v4  ;;  %v2648_v56 = vmul.f32 %v15564_v11, %v19789_v6  ;;  %v15599_v33 = vld [vmem:[%s19385_s1 + $0xd] ss:$0 sm:$0xff] }
 0x488   : > { %v2253_v54 = vmul.f32 %v15532_v28, %v19786_v1  ;;  %v19788_v20 = vld [vmem:[#allocation180_spill] sm:$0xff]  ;;  %v2278_v26 = vadd.f32 %v2254_v46, %v2081_v36  ;;  %v2080_v57 = vadd.f32 %v2056_v17, %v1883_v50  ;;  %v19791_v1 = vld [vmem:[#allocation225_spill] sm:$0xff]  ;;  %v1885_v36 = vadd.f32 %v1861_v12, %v1688_v18  ;;  %v15615_v17 = vld [vmem:[%s19385_s1 + $0xe] ss:$0 sm:$0xff] }
 0x489   : > { %v2058_v48 = vmul.f32 %v15518_v25, %v19788_v20  ;;  %v2079_v3 = vadd.f32 %v2055_v59, %v1882_v27  ;;  %v19790_v21 = vld [vmem:[#allocation224_spill] sm:$0xff]  ;;  %v2449_v46 = vmul.f32 %v15547_v62, %v19791_v1  ;;  %v19793_v25 = vld [vmem:[#allocation262_spill] sm:$0xff] }
 0x48a   : > { %v2450_v14 = vmul.f32 %v15547_v62, %v19790_v21  ;;  %v19792_v4 = vld [vmem:[#allocation204_spill] sm:$0xff]  ;;  %v2475_v6 = vadd.f32 %v2451_v47, %v2278_v26  ;;  %v2845_v51 = vmul.f32 %v15583_v10, %v19793_v25  ;;  %v2277_v27 = vadd.f32 %v2253_v54, %v2080_v57  ;;  %v19796_v47 = vld [vmem:[#allocation249_spill] sm:$0xff] }
 0x48b   : > { %4525 = vperm.xlu2 %13833, %v15571_v38   ;;  %4333 = vperm.xlu1 %13832, %v15574_v2   ;;  %v2255_v20 = vmul.f32 %v15532_v28, %v19792_v4  ;;  %v2276_v18 = vadd.f32 %v2252_v31, %v2079_v3  ;;  %v19795_v12 = vld [vmem:[#allocation248_spill] sm:$0xff]  ;;  %v2646_v26 = vmul.f32 %v15564_v11, %v19796_v47  ;;  %v19799_v31 = vld [vmem:[#allocation273_spill] sm:$0xff] }
 0x48c   : > { %4328 = vperm.xlu0 %13831, %v15586_v9   ;;  %v2647_v21 = vmul.f32 %v15564_v11, %v19795_v12  ;;  %v2082_v1 = vadd.f32 %v2058_v48, %v1885_v36  ;;  %v2672_v4 = vadd.f32 %v2648_v56, %v2475_v6  ;;  %v19797_v28 = vld [vmem:[#allocation288_spill] sm:$0xff]  ;;  %v2474_v58 = vadd.f32 %v2450_v14, %v2277_v27  ;;  %v15646_v14 = vld [vmem:[%s19385_s1 + $0xf] ss:$0 sm:$0xff] }
 0x48d   : > { %v15617_v59 = vpop.permute.xlu2 %3535  ;;  %v15619_v50 = vpop.permute.xlu1 %4697  ;;  %v3042_v49 = vmul.f32 %v15599_v33, %v19797_v28  ;;  %v2844_v54 = vmul.f32 %v15583_v10, %v19798_v63  ;;  %v2843_v57 = vmul.f32 %v15583_v10, %v19799_v31  ;;  %v15634_v3 = vld [vmem:[%s14115_s25 + $0x7a] sm:$0xff]  ;;  %v15637_v12 = vld [vmem:[%s14115_s25 + $0x72] sm:$0xff]  ;;  %v2452_v48 = vmul.f32 %v15547_v62, %v19800_v8 }
 0x48e   : > { %19794 = vst [vmem:[#allocation129_spill] sm:$0xff] %v15617_v59  ;;  %v15625_v25 = vpop.permute.xlu0 %4692  ;;  %v2473_v59 = vadd.f32 %v2449_v46, %v2276_v18  ;;  %v2279_v47 = vadd.f32 %v2255_v20, %v2082_v1  ;;  %v2869_v56 = vadd.f32 %v2845_v51, %v2672_v4  ;;  %v3239_v28 = vmul.f32 %v15615_v17, %v15284_v61  ;;  %v15649_v63 = vld [vmem:[%s14115_s25 + $0x79] sm:$0xff] }
 0x48f   : > { %v2671_v46 = vadd.f32 %v2647_v21, %v2474_v58  ;;  %v3041_v6 = vmul.f32 %v15599_v33, %v15241_v60  ;;  %v3040_v20 = vmul.f32 %v15599_v33, %v15243_v30  ;;  %v19801_v8 = vld [vmem:[#allocation252_spill] sm:$0xff]  ;;  %v3436_v61 = vmul.f32 %v15646_v14, %v15370_v22  ;;  %v15671_v22 = vld [vmem:[%s19385_s1 + $0x10] ss:$0 sm:$0xff] }
 0x490   : > { %v2670_v36 = vadd.f32 %v2646_v26, %v2473_v59  ;;  %v2649_v51 = vmul.f32 %v15564_v11, %v19801_v8  ;;  %v3066_v27 = vadd.f32 %v3042_v49, %v2869_v56  ;;  %v3238_v59 = vmul.f32 %v15615_v17, %v15311_v34  ;;  %v19802_v21 = vld [vmem:[#allocation276_spill] sm:$0xff]  ;;  %v15702_v8 = vld [vmem:[%s19385_s1 + $0x12] ss:$0 sm:$0xff] }
 0x491   : > { %v2868_v18 = vadd.f32 %v2844_v54, %v2671_v46  ;;  %v3237_v60 = vmul.f32 %v15615_v17, %v15313_v16  ;;  %v2476_v30 = vadd.f32 %v2452_v48, %v2279_v47  ;;  %v2846_v49 = vmul.f32 %v15583_v10, %v19802_v21  ;;  %v15686_v48 = vld [vmem:[%s19385_s1 + $0x11] ss:$0 sm:$0xff] }
 0x492   : > { %v2867_v58 = vadd.f32 %v2843_v57, %v2670_v36  ;;  %v3263_v26 = vadd.f32 %v3239_v28, %v3066_v27  ;;  %v3434_v16 = vmul.f32 %v15646_v14, %v15334_v45  ;;  %v3435_v31 = vmul.f32 %v15646_v14, %v15372_v35 }
 0x493   : > { %4727 = vperm.xlu2 %13833, %v15634_v3   ;;  %4722 = vperm.xlu1 %13832, %v15637_v12   ;;  %v3065_v34 = vadd.f32 %v3041_v6, %v2868_v18  ;;  %v2673_v47 = vadd.f32 %v2649_v51, %v2476_v30  ;;  %v3632_v36 = vmul.f32 %v15671_v22, %v15379_v55  ;;  %v15693_v6 = vld [vmem:[%s14115_s25 + $0x73] sm:$0xff] }
 0x494   : > { %4530 = vperm.xlu0 %13831, %v15649_v63   ;;  %v3064_v54 = vadd.f32 %v3040_v20, %v2867_v58  ;;  %v3460_v56 = vadd.f32 %v3436_v61, %v3263_v26  ;;  %v3631_v45 = vmul.f32 %v15671_v22, %v15381_v5  ;;  %v3043_v35 = vmul.f32 %v15599_v33, %v15252_v13 }
 0x495   : > { %v15673_v1 = vpop.permute.xlu2 %5096  ;;  %v15675_v4 = vpop.permute.xlu1 %3333  ;;  %v3262_v28 = vadd.f32 %v3238_v59, %v3065_v34  ;;  %v3633_v20 = vmul.f32 %v15671_v22, %v15350_v0  ;;  %v3830_v51 = vmul.f32 %v15686_v48, %v15399_v53  ;;  %v2870_v55 = vadd.f32 %v2846_v49, %v2673_v47  ;;  %v15733_v34 = vld [vmem:[%s19385_s1 + $0x14] ss:$0 sm:$0xff] }
 0x496   : > { %v15681_v57 = vpop.permute.xlu0 %4707  ;;  %v3261_v46 = vadd.f32 %v3237_v60, %v3064_v54  ;;  %v3828_v5 = vmul.f32 %v15686_v48, %v15388_v19  ;;  %v3240_v13 = vmul.f32 %v15615_v17, %v15322_v24  ;;  %v4027_v0 = vmul.f32 %v15702_v8, %v15404_v32  ;;  %v15720_v24 = vld [vmem:[%s19385_s1 + $0x13] ss:$0 sm:$0xff] }
 0x497   : > { %v3459_v61 = vadd.f32 %v3435_v31, %v3262_v28  ;;  %v3657_v18 = vadd.f32 %v3633_v20, %v3460_v56  ;;  %v3067_v53 = vadd.f32 %v3043_v35, %v2870_v55  ;;  %v3437_v60 = vmul.f32 %v15646_v14, %v15343_v43  ;;  %v19803_v31 = vld [vmem:[#allocation337_spill] sm:$0xff]  ;;  %v19804_v56 = vld [vmem:[#allocation338_spill] sm:$0xff] }
 0x498   : > { %v3458_v27 = vadd.f32 %v3434_v16, %v3261_v46  ;;  %v4025_v43 = vmul.f32 %v15702_v8, %v15368_v15  ;;  %v3634_v16 = vmul.f32 %v15671_v22, %v15390_v37  ;;  %v4223_v47 = vmul.f32 %v15720_v24, %v19803_v31  ;;  %v19805_v46 = vld [vmem:[#allocation332_spill] sm:$0xff]  ;;  %v19806_v35 = vld [vmem:[#allocation334_spill] sm:$0xff] }
 0x499   : > { %v3656_v58 = vadd.f32 %v3632_v36, %v3459_v61  ;;  %v3854_v19 = vadd.f32 %v3830_v51, %v3657_v18  ;;  %v3264_v26 = vadd.f32 %v3240_v13, %v3067_v53  ;;  %v4224_v15 = vmul.f32 %v15720_v24, %v19805_v46  ;;  %v15746_v36 = vld [vmem:[%s19385_s1 + $0x15] ss:$0 sm:$0xff]  ;;  %v15751_v37 = vld [vmem:[%s14115_s25 + $0x7b] sm:$0xff] }
 0x49a   : > { %v3655_v59 = vadd.f32 %v3631_v45, %v3458_v27  ;;  %v4421_v45 = vmul.f32 %v15733_v34, %v15498_v41  ;;  %v3831_v20 = vmul.f32 %v15686_v48, %v19806_v35  ;;  %v19807_v27 = vld [vmem:[#allocation341_spill] sm:$0xff]  ;;  %v4618_v13 = vmul.f32 %v15746_v36, %v15551_v42 }
 0x49b   : > { %4919 = vperm.xlu2 %13833, %v15693_v6   ;;  %3358 = vperm.xlu1 %13832, %v15574_v2   ;;  %v3829_v2 = vmul.f32 %v15686_v48, %v15359_v40  ;;  %v4051_v54 = vadd.f32 %v4027_v0, %v3854_v19  ;;  %v3461_v28 = vadd.f32 %v3437_v60, %v3264_v26  ;;  %v19808_v42 = vld [vmem:[#allocation333_spill] sm:$0xff]  ;;  %v19809_v26 = vld [vmem:[#allocation331_spill] sm:$0xff] }
 0x49c   : > { %3353 = vperm.xlu0 %13831, %v15586_v9   ;;  %v3852_v21 = vadd.f32 %v3828_v5, %v3655_v59  ;;  %v4026_v9 = vmul.f32 %v15702_v8, %v15406_v44  ;;  %v4222_v44 = vmul.f32 %v15720_v24, %v19804_v56  ;;  %v4419_v61 = vmul.f32 %v15733_v34, %v19807_v27  ;;  %v3301_v56 = vld [vmem:[%s14115_s25 + $0xb0] sm:$0xff] }
 0x49d   : > { %v15722_v30 = vpop.permute.xlu2 %3732  ;;  %v4895_v32 = vpop.permute.xlu1 %4894  ;;  %v3853_v40 = vadd.f32 %v3829_v2, %v3656_v58  ;;  %v4248_v5 = vadd.f32 %v4224_v15, %v4051_v54  ;;  %v3658_v18 = vadd.f32 %v3634_v16, %v3461_v28  ;;  %v15765_v58 = vld [vmem:[%s19385_s1 + $0x16] ss:$0 sm:$0xff]  ;;  %v4617_v2 = vmul.f32 %v15746_v36, %v15557_v7  ;;  %v19810_v54 = vld [vmem:[#allocation335_spill] sm:$0xff]  ;;  %v19812_v28 = vld [vmem:[#allocation342_spill] sm:$0xff] }
 0x49e   : > { %v4890_v49 = vpop.permute.xlu0 %4889  ;;  %v4049_v55 = vadd.f32 %v4025_v43, %v3852_v21  ;;  %v4028_v43 = vmul.f32 %v15702_v8, %v19809_v26  ;;  %v4616_v16 = vmul.f32 %v15746_v36, %v19810_v54  ;;  %v4225_v46 = vmul.f32 %v15720_v24, %v19812_v28  ;;  %v15825_v28 = vld [vmem:[%s19386_s2] ss:$0 sm:$0xff] }
 0x49f   : > { %v4050_v51 = vadd.f32 %v4026_v9, %v3853_v40  ;;  %v4445_v59 = vadd.f32 %v4421_v45, %v4248_v5  ;;  %v15782_v40 = vld [vmem:[%s19385_s1 + $0x17] ss:$0 sm:$0xff]  ;;  %v4813_v15 = vmul.f32 %v15765_v58, %v15625_v25  ;;  %v15796_v45 = vld [vmem:[%s19385_s1 + $0x18] ss:$0 sm:$0xff]  ;;  %v19813_v5 = vld [vmem:[#allocation286_spill] sm:$0xff] }
 0x4a0   : > { %v4246_v0 = vadd.f32 %v4222_v44, %v4049_v55  ;;  %v19811_v44 = vld [vmem:[#allocation340_spill] sm:$0xff]  ;;  %v4422_v55 = vmul.f32 %v15733_v34, %v15492_v29 }
 0x4a1   : > { %v4247_v41 = vadd.f32 %v4223_v47, %v4050_v51  ;;  %v4642_v9 = vadd.f32 %v4618_v13, %v4445_v59  ;;  %v4814_v47 = vmul.f32 %v15765_v58, %v15619_v50  ;;  %v4815_v7 = vmul.f32 %v15765_v58, %v19811_v44  ;;  %v19814_v13 = vld [vmem:[#allocation287_spill] sm:$0xff] }
 0x4a2   : > { %v4443_v19 = vadd.f32 %v4419_v61, %v4246_v0  ;;  %v5011_v50 = vmul.f32 %v15782_v40, %v4895_v32  ;;  %v5010_v61 = vmul.f32 %v15782_v40, %v4890_v49  ;;  %v5209_v32 = vmul.f32 %v15796_v45, %v15673_v1  ;;  %v19817_v1 = vld [vmem:[#allocation7_spill] sm:$0xff] }
 0x4a3   : > { %3555 = vperm.xlu2 %13833, %v15649_v63   ;;  %3550 = vperm.xlu1 %13832, %v15571_v38   ;;  %v4420_v63 = vmul.f32 %v15733_v34, %v19808_v42  ;;  %v3855_v38 = vadd.f32 %v3831_v20, %v3658_v18  ;;  %v4839_v27 = vadd.f32 %v4815_v7, %v4642_v9  ;;  %v19815_v42 = vld [vmem:[#allocation6_spill] sm:$0xff]  ;;  %v19820_v44 = vld [vmem:[#allocation339_spill] sm:$0xff] }
 0x4a4   : > { %4924 = vperm.xlu0 %13831, %v15751_v37   ;;  %v4640_v51 = vadd.f32 %v4616_v16, %v4443_v19  ;;  %v483_v49 = vmul.f32 %v15437_v39, %v19815_v42  ;;  %v484_v16 = vmul.f32 %v15437_v39, %v19817_v1  ;;  %v19827_v42 = vld [vmem:[#allocation82_spill] sm:$0xff] }
 0x4a5   : > { %v15767_v53 = vpop.permute.xlu2 %4121  ;;  %v15769_v60 = vpop.permute.xlu1 %3530  ;;  %v4444_v31 = vadd.f32 %v4420_v63, %v4247_v41  ;;  %v4052_v35 = vadd.f32 %v4028_v43, %v3855_v38  ;;  %v5012_v41 = vmul.f32 %v15782_v40, %v15549_v52  ;;  %v19816_v63 = vld [vmem:[#allocation22_spill] sm:$0xff] }
 0x4a6   : > { %v4905_v21 = vpop.permute.xlu0 %4904  ;;  %v4837_v0 = vadd.f32 %v4813_v15, %v4640_v51  ;;  %v681_v38 = vmul.f32 %v15419_v23, %v19816_v63  ;;  %v19821_v15 = vld [vmem:[#allocation336_spill] sm:$0xff]  ;;  %v4816_v51 = vmul.f32 %v15765_v58, %v15681_v57  ;;  %v19831_v1 = vld [vmem:[#allocation102_spill] sm:$0xff] }
 0x4a7   : > { %v4641_v20 = vadd.f32 %v4617_v2, %v4444_v31  ;;  %v4249_v18 = vadd.f32 %v4225_v46, %v4052_v35  ;;  %v5036_v52 = vadd.f32 %v5012_v41, %v4839_v27  ;;  %v19818_v31 = vld [vmem:[#allocation30_spill] sm:$0xff]  ;;  %v4619_v35 = vmul.f32 %v15746_v36, %v19821_v15  ;;  %v19828_v63 = vld [vmem:[#allocation344_spill] sm:$0xff] }
 0x4a8   : > { %v5034_v43 = vadd.f32 %v5010_v61, %v4837_v0  ;;  %v705_v27 = vadd.f32 %v681_v38, %v484_v16  ;;  %v19822_v61 = vld [vmem:[#allocation50_spill] sm:$0xff]  ;;  %v1272_v38 = vmul.f32 %v19828_v63, %v19827_v42  ;;  %v19832_v16 = vld [vmem:[#allocation345_spill] sm:$0xff] }
 0x4a9   : > { %v4838_v25 = vadd.f32 %v4814_v47, %v4641_v20  ;;  %v4446_v26 = vadd.f32 %v4422_v55, %v4249_v18  ;;  %v680_v47 = vmul.f32 %v15419_v23, %v19818_v31  ;;  %v5233_v20 = vadd.f32 %v5209_v32, %v5036_v52  ;;  %v3302_v55 = vld [vmem:[%s14115_s25 + $0xb8] sm:$0xff]  ;;  %v15871_v42 = vld [vmem:[%s14115_s25 + $0xc0] sm:$0xff] }
 0x4ab   : > { %3393 = vperm.xlu2 %13833, %v3301_v56   ;;  %5121 = vperm.xlu1 %13832, %v19813_v5   ;;  %v5035_v19 = vadd.f32 %v5011_v50, %v4838_v25  ;;  %v19819_v56 = vld [vmem:[#allocation42_spill] sm:$0xff]  ;;  %v877_v5 = vmul.f32 %v19820_v44, %v19822_v61  ;;  %v4643_v0 = vadd.f32 %v4619_v35, %v4446_v26  ;;  %v3498_v61 = vld [vmem:[%s14115_s25 + $0xb1] sm:$0xff] }
 0x4ac   : > { %5116 = vperm.xlu0 %13831, %v19814_v13   ;;  %v878_v7 = vmul.f32 %v19820_v44, %v19819_v56  ;;  %v19823_v25 = vld [vmem:[#allocation62_spill] sm:$0xff]  ;;  %v19824_v13 = vld [vmem:[#allocation343_spill] sm:$0xff] }
 0x4ad   : > { %v15808_v59 = vpop.permute.xlu2 %4323  ;;  %v5092_v29 = vpop.permute.xlu1 %5091  ;;  %v1075_v18 = vmul.f32 %v19824_v13, %v19823_v25  ;;  %v4840_v26 = vadd.f32 %v4816_v51, %v4643_v0  ;;  %v15867_v25 = vld [vmem:[%s14115_s25 + $0xc8] sm:$0xff] }
 0x4ae   : > { %v5208_v2 = vmul.f32 %v15796_v45, %v5092_v29  ;;  %v5087_v9 = vpop.permute.xlu0 %5086  ;;  %v5013_v29 = vmul.f32 %v15782_v40, %v4905_v21  ;;  %v902_v57 = vadd.f32 %v878_v7, %v705_v27 }
 0x4af   : > { %v5207_v54 = vmul.f32 %v15796_v45, %v5087_v9  ;;  %v15849_v9 = vadd.f32 %v15825_v28, %v5233_v20  ;;  %v19833_v20 = vld [vmem:[#allocation90_spill] sm:$0xff] }
 0x4b0   : > { %v5232_v46 = vadd.f32 %v5208_v2, %v5035_v19  ;;  %v704_v2 = vadd.f32 %v680_v47, %v483_v49  ;;  %v1469_v49 = vmul.f32 %v19832_v16, %v19831_v1  ;;  %v5037_v7 = vadd.f32 %v5013_v29, %v4840_v26  ;;  %v19837_v26 = vld [vmem:[#allocation145_spill] sm:$0xff] }
 0x4b1   : > { %v5231_v50 = vadd.f32 %v5207_v54, %v5034_v43  ;;  %19829 = vst [vmem:[#allocation166_spill] sm:$0xff] %v15849_v9  ;;  %v19830_v43 = vld [vmem:[#allocation70_spill] sm:$0xff]  ;;  %v1271_v51 = vmul.f32 %v19828_v63, %v19833_v20  ;;  %v5285_v0 = vmax.f32 %v15849_v9, 0.0 }
 0x4b2   : > { %v15837_v41 = vadd.f32 %v15825_v28, %v5232_v46  ;;  %v1074_v54 = vmul.f32 %v19824_v13, %v19830_v43  ;;  %v901_v56 = vadd.f32 %v877_v5, %v704_v2  ;;  %v19836_v2 = vld [vmem:[#allocation110_spill] sm:$0xff] }
 0x4b3   : > { %v15841_v32 = vadd.f32 %v15825_v28, %v5231_v50  ;;  %3752 = vperm.xlu2 %13833, %v15634_v3   ;;  %3747 = vperm.xlu1 %13832, %v15637_v12   ;;  %v1099_v12 = vadd.f32 %v1075_v18, %v902_v57  ;;  %v19834_v50 = vld [vmem:[#allocation122_spill] sm:$0xff] }
 0x4b4   : > { %19825 = vst [vmem:[#allocation130_spill] sm:$0xff] %v15837_v41  ;;  %v5284_v19 = vmax.f32 %v15837_v41, 0.0  ;;  %3398 = vperm.xlu0 %13831, %v3302_v55   ;;  %v19835_v55 = vld [vmem:[#allocation346_spill] sm:$0xff]  ;;  %v1098_v29 = vadd.f32 %v1074_v54, %v901_v56  ;;  %v19843_v56 = vld [vmem:[#allocation349_spill] sm:$0xff] }
 0x4b5   : > { %19826 = vst [vmem:[#allocation133_spill] sm:$0xff] %v15841_v32  ;;  %v5283_v21 = vmax.f32 %v15841_v32, 0.0  ;;  %v15852_v52 = vpop.permute.xlu2 %4712  ;;  %v15854_v3 = vpop.permute.xlu1 %3727  ;;  %v1296_v35 = vadd.f32 %v1272_v38, %v1099_v12  ;;  %v1666_v27 = vmul.f32 %v19835_v55, %v19834_v50  ;;  %v1468_v38 = vmul.f32 %v19832_v16, %v19836_v2 }
 0x4b6   : > { %v5308_v31 = vpack.c.bf16 %v5284_v19, %v5284_v19  ;;  %v5102_v47 = vpop.permute.xlu0 %5101 }
 0x4b7   : > { %v5307_v46 = vpack.c.bf16 %v5283_v21, %v5283_v21  ;;  %v5210_v15 = vmul.f32 %v15796_v45, %v5102_v47  ;;  %v1493_v19 = vadd.f32 %v1469_v49, %v1296_v35  ;;  %v19838_v21 = vld [vmem:[#allocation348_spill] sm:$0xff]  ;;  %v19842_v49 = vld [vmem:[#allocation169_spill] sm:$0xff] }
 0x4b8   : > { %v5428_v18 = vunpack.c.l.b16 %v5308_v31  ;;  %v1863_v12 = vmul.f32 %v19838_v21, %v19837_v26  ;;  %v1295_v31 = vadd.f32 %v1271_v51, %v1098_v29 }
 0x4b9   : > { %v5234_v57 = vadd.f32 %v5210_v15, %v5037_v7  ;;  %v5427_v5 = vunpack.c.l.b16 %v5307_v46  ;;  %v1690_v47 = vadd.f32 %v1666_v27, %v1493_v19  ;;  %v19841_v7 = vld [vmem:[#allocation132_spill] sm:$0xff]  ;;  %v2060_v46 = vmul.f32 %v19843_v56, %v19842_v49  ;;  %v19845_v27 = vld [vmem:[#allocation193_spill] sm:$0xff]  ;;  %v19847_v49 = vld [vmem:[#allocation179_spill] sm:$0xff] }
 0x4ba   : > { %v1665_v54 = vmul.f32 %v19835_v55, %v19841_v7  ;;  %v5309_v15 = vpack.c.bf16 %v5285_v0, %v5285_v0  ;;  %v2059_v0 = vmul.f32 %v19843_v56, %v19847_v49 }
 0x4bb   : > { %v15878_v43 = vadd.f32 %v15825_v28, %v5234_v57  ;;  %3590 = vperm.xlu2 %13833, %v3498_v61   ;;  %3408 = vperm.xlu1 %13832, %v15867_v25   ;;  %v15881_v1 = vpack.c.b16 %v5428_v18, %v5427_v5  ;;  %v1492_v61 = vadd.f32 %v1468_v38, %v1295_v31  ;;  %v19844_v57 = vld [vmem:[#allocation155_spill] sm:$0xff]  ;;  %v19846_v5 = vld [vmem:[#allocation350_spill] sm:$0xff] }
 0x4bc   : > { %3403 = vperm.xlu0 %13831, %v15871_v42   ;;  %v1887_v18 = vadd.f32 %v1863_v12, %v1690_v47  ;;  %v1862_v51 = vmul.f32 %v19838_v21, %v19844_v57  ;;  %v2257_v29 = vmul.f32 %v19846_v5, %v19845_v27  ;;  %v5429_v38 = vunpack.c.l.b16 %v5309_v15  ;;  %v19849_v57 = vld [vmem:[#allocation203_spill] sm:$0xff]  ;;  %v19850_v27 = vld [vmem:[#allocation241_spill] sm:$0xff] }
 0x4bd   : > { %19839 = vst [vmem:[#allocation152_spill] sm:$0xff] %v15878_v43  ;;  %v5286_v35 = vmax.f32 %v15878_v43, 0.0  ;;  %v15889_v20 = vpop.permute.xlu2 %3348  ;;  %v3930_v50 = vpop.permute.xlu1 %3929  ;;  %v1689_v26 = vadd.f32 %v1665_v54, %v1492_v61  ;;  %v3499_v43 = vld [vmem:[%s14115_s25 + $0xb9] sm:$0xff]  ;;  %v2256_v32 = vmul.f32 %v19846_v5, %v19849_v57  ;;  %v2651_v41 = vmul.f32 %v15564_v11, %v19850_v27  ;;  %v15926_v27 = vld [vmem:[%s14115_s25 + $0xc9] sm:$0xff] }
 0x4be   : > { %19840 = vst [vmem:[#allocation153_spill] sm:$0xff] %v15881_v1  ;;  %v15895_v19 = vpop.permute.xlu0 %3924  ;;  %v2084_v7 = vadd.f32 %v2060_v46, %v1887_v18  ;;  %v19848_v1 = vld [vmem:[#allocation217_spill] sm:$0xff]  ;;  %v3695_v57 = vld [vmem:[%s14115_s25 + $0xb2] sm:$0xff] }
 0x4bf   : > { %v5310_v2 = vpack.c.bf16 %v5286_v35, %v5286_v35  ;;  %v2454_v9 = vmul.f32 %v15547_v62, %v19848_v1  ;;  %v1886_v31 = vadd.f32 %v1862_v51, %v1689_v26  ;;  %v19852_v35 = vld [vmem:[#allocation227_spill] sm:$0xff]  ;;  %v19853_v61 = vld [vmem:[#allocation265_spill] sm:$0xff] }
 0x4c0   : > { %v2281_v47 = vadd.f32 %v2257_v29, %v2084_v7  ;;  %v2453_v15 = vmul.f32 %v15547_v62, %v19852_v35  ;;  %v2848_v18 = vmul.f32 %v15583_v10, %v19853_v61  ;;  %v19855_v7 = vld [vmem:[#allocation291_spill] sm:$0xff] }
 0x4c1   : > { %v5430_v12 = vunpack.c.l.b16 %v5310_v2  ;;  %v2083_v46 = vadd.f32 %v2059_v0, %v1886_v31  ;;  %v19859_v61 = vld [vmem:[#allocation347_spill] sm:$0xff] }
 0x4c2   : > { %v2478_v1 = vadd.f32 %v2454_v9, %v2281_v47  ;;  %v3045_v9 = vmul.f32 %v15599_v33, %v19855_v7  ;;  %v19857_v47 = vld [vmem:[#allocation311_spill] sm:$0xff]  ;;  %v19861_v7 = vld [vmem:[#allocation129_spill] sm:$0xff] }
 0x4c3   : > { %3949 = vperm.xlu2 %13833, %v15751_v37   ;;  %3944 = vperm.xlu1 %13832, %v15693_v6   ;;  %v15908_v54 = vpack.c.b16 %v5430_v12, %v5429_v38  ;;  %v2280_v37 = vadd.f32 %v2256_v32, %v2083_v46  ;;  %v19854_v6 = vld [vmem:[#allocation251_spill] sm:$0xff]  ;;  %v15929_v32 = vld [vmem:[%s14115_s25 + $0xc1] sm:$0xff] }
 0x4c4   : > { %3595 = vperm.xlu0 %13831, %v3499_v43   ;;  %v2675_v2 = vadd.f32 %v2651_v41, %v2478_v1  ;;  %v2650_v26 = vmul.f32 %v15564_v11, %v19854_v6  ;;  %v19856_v12 = vld [vmem:[#allocation275_spill] sm:$0xff]  ;;  %v3242_v43 = vmul.f32 %v15615_v17, %v19857_v47  ;;  %v3438_v47 = vmul.f32 %v15646_v14, %v15675_v4 }
 0x4c5   : > { %19851 = vst [vmem:[#allocation190_spill] sm:$0xff] %v15908_v54  ;;  %v15914_v51 = vpop.permute.xlu2 %3540  ;;  %v4319_v29 = vpop.permute.xlu1 %4318  ;;  %v2477_v0 = vadd.f32 %v2453_v15, %v2280_v37  ;;  %v2847_v31 = vmul.f32 %v15583_v10, %v19856_v12  ;;  %v19858_v1 = vld [vmem:[#allocation299_spill] sm:$0xff]  ;;  %v3439_v15 = vmul.f32 %v15646_v14, %v19859_v61  ;;  %v4082_v61 = vld [vmem:[%s14115_s25 + $0x7c] sm:$0xff] }
 0x4c6   : > { %v4127_v49 = vpop.permute.xlu0 %4126  ;;  %v2872_v38 = vadd.f32 %v2848_v18, %v2675_v2  ;;  %v3044_v35 = vmul.f32 %v15599_v33, %v19858_v1  ;;  %v19860_v2 = vld [vmem:[#allocation319_spill] sm:$0xff]  ;;  %v4030_v1 = vmul.f32 %v15702_v8, %v3930_v50 }
 0x4c7   : > { %v2674_v41 = vadd.f32 %v2650_v26, %v2477_v0  ;;  %v3241_v6 = vmul.f32 %v15615_v17, %v19860_v2  ;;  %v3636_v26 = vmul.f32 %v15671_v22, %v19861_v7  ;;  %v4081_v2 = vld [vmem:[%s14115_s25 + $0x74] sm:$0xff]  ;;  %v4227_v4 = vmul.f32 %v15720_v24, %v4127_v49 }
 0x4c8   : > { %v3069_v46 = vadd.f32 %v3045_v9, %v2872_v38  ;;  %v3696_v7 = vld [vmem:[%s14115_s25 + $0xba] sm:$0xff]  ;;  %v4424_v49 = vmul.f32 %v15733_v34, %v15808_v59 }
 0x4c9   : > { %v2871_v18 = vadd.f32 %v2847_v31, %v2674_v41  ;;  %v3833_v31 = vmul.f32 %v15686_v48, %v15722_v30 }
 0x4ca   : > { %v3266_v37 = vadd.f32 %v3242_v43, %v3069_v46  ;;  %v3635_v46 = vmul.f32 %v15671_v22, %v15769_v60  ;;  %v4029_v60 = vmul.f32 %v15702_v8, %v15895_v19  ;;  %v4226_v19 = vmul.f32 %v15720_v24, %v15767_v53 }
 0x4cb   : > { %3787 = vperm.xlu2 %13833, %v3695_v57   ;;  %3605 = vperm.xlu1 %13832, %v15926_v27   ;;  %v3068_v38 = vadd.f32 %v3044_v35, %v2871_v18 }
 0x4cc   : > { %3600 = vperm.xlu0 %13831, %v15929_v32   ;;  %v3463_v12 = vadd.f32 %v3439_v15, %v3266_v37  ;;  %v3832_v15 = vmul.f32 %v15686_v48, %v15854_v3 }
 0x4cd   : > { %v5112_v9 = vpop.permute.xlu2 %5111  ;;  %v4521_v0 = vpop.permute.xlu1 %4520  ;;  %v3265_v57 = vadd.f32 %v3241_v6, %v3068_v38 }
 0x4ce   : > { %v4516_v43 = vpop.permute.xlu0 %4515  ;;  %v3660_v41 = vadd.f32 %v3636_v26, %v3463_v12  ;;  %v4621_v12 = vmul.f32 %v15746_v36, %v4521_v0 }
 0x4cf   : > { %v3462_v54 = vadd.f32 %v3438_v47, %v3265_v57  ;;  %v3892_v47 = vld [vmem:[%s14115_s25 + $0xb3] sm:$0xff]  ;;  %v4423_v57 = vmul.f32 %v15733_v34, %v4319_v29 }
 0x4d0   : > { %v3857_v35 = vadd.f32 %v3833_v31, %v3660_v41  ;;  %v15968_v31 = vld [vmem:[%s14115_s25 + $0xc2] sm:$0xff] }
 0x4d1   : > { %v3659_v30 = vadd.f32 %v3635_v46, %v3462_v54  ;;  %v15965_v54 = vld [vmem:[%s14115_s25 + $0xca] sm:$0xff] }
 0x4d2   : > { %v4054_v18 = vadd.f32 %v4030_v1, %v3857_v35  ;;  %v4620_v1 = vmul.f32 %v15746_v36, %v4516_v43  ;;  %v4817_v43 = vmul.f32 %v15765_v58, %v15852_v52 }
 0x4d3   : > { %4146 = vperm.xlu2 %13833, %v4082_v61   ;;  %4141 = vperm.xlu1 %13832, %v4081_v2   ;;  %v3856_v6 = vadd.f32 %v3832_v15, %v3659_v30  ;;  %v5212_v15 = vmul.f32 %v15796_v45, %v5112_v9 }
 0x4d4   : > { %3792 = vperm.xlu0 %13831, %v3696_v7   ;;  %v4251_v26 = vadd.f32 %v4227_v4, %v4054_v18  ;;  %v15982_v18 = vld [vmem:[%s14115_s25 + $0x88] sm:$0xff] }
 0x4d5   : > { %v15956_v50 = vpop.permute.xlu2 %3934  ;;  %v15958_v37 = vpop.permute.xlu1 %3343  ;;  %v4053_v38 = vadd.f32 %v4029_v60, %v3856_v6  ;;  %v15985_v60 = vld [vmem:[%s14115_s25 + $0x80] sm:$0xff] }
 0x4d6   : > { %v4718_v3 = vpop.permute.xlu0 %4717  ;;  %v4448_v41 = vadd.f32 %v4424_v49, %v4251_v26  ;;  %v3893_v6 = vld [vmem:[%s14115_s25 + $0xbb] sm:$0xff] }
 0x4d7   : > { %v4818_v46 = vmul.f32 %v15765_v58, %v4718_v3  ;;  %v4250_v59 = vadd.f32 %v4226_v19, %v4053_v38 }
 0x4d8   : > { %v4645_v0 = vadd.f32 %v4621_v12, %v4448_v41 }
 0x4d9   : > { %v4447_v2 = vadd.f32 %v4423_v57, %v4250_v59  ;;  %v19863_v57 = vld [vmem:[#allocation33_spill] sm:$0xff]  ;;  %v4089_v59 = vld [vmem:[%s14115_s25 + $0xb4] sm:$0xff] }
 0x4da   : > { %v4842_v29 = vadd.f32 %v4818_v46, %v4645_v0  ;;  %v682_v41 = vmul.f32 %v15419_v23, %v19863_v57  ;;  %v16005_v0 = vld [vmem:[%s14115_s25 + $0xcb] sm:$0xff] }
 0x4db   : > { %3984 = vperm.xlu2 %13833, %v3892_v47   ;;  %3802 = vperm.xlu1 %13832, %v15965_v54   ;;  %v4644_v4 = vadd.f32 %v4620_v1, %v4447_v2 }
 0x4dc   : > { %3797 = vperm.xlu0 %13831, %v15968_v31  }
 0x4dd   : > { %v15977_v61 = vpop.permute.xlu2 %4136  ;;  %v4915_v53 = vpop.permute.xlu1 %4914  ;;  %v4841_v49 = vadd.f32 %v4817_v43, %v4644_v4  ;;  %v19869_v43 = vld [vmem:[#allocation73_spill] sm:$0xff] }
 0x4de   : > { %v5015_v7 = vmul.f32 %v15782_v40, %v4915_v53  ;;  %v4910_v35 = vpop.permute.xlu0 %4909  ;;  %v19864_v53 = vld [vmem:[#allocation13_spill] sm:$0xff] }
 0x4df   : > { %v5014_v3 = vmul.f32 %v15782_v40, %v4910_v35  ;;  %v485_v2 = vmul.f32 %v15437_v39, %v19864_v53  ;;  %v16013_v35 = vld [vmem:[%s14115_s25 + $0xc3] sm:$0xff] }
 0x4e0   : > { %v5039_v30 = vadd.f32 %v5015_v7, %v4842_v29  ;;  %v19865_v29 = vld [vmem:[#allocation53_spill] sm:$0xff]  ;;  %19866 = vst [vmem:[#allocation177_spill] sm:$0xff] %v16013_v35 }
 0x4e1   : > { %v5038_v47 = vadd.f32 %v5014_v3, %v4841_v49  ;;  %v879_v7 = vmul.f32 %v19820_v44, %v19865_v29  ;;  %v19870_v3 = vld [vmem:[#allocation12_spill] sm:$0xff] }
 0x4e2   : > { %v5236_v26 = vadd.f32 %v5212_v15, %v5039_v30  ;;  %v19867_v15 = vld [vmem:[#allocation32_spill] sm:$0xff]  ;;  %v486_v49 = vmul.f32 %v15437_v39, %v19870_v3  ;;  %v19874_v3 = vld [vmem:[#allocation113_spill] sm:$0xff] }
 0x4e3   : > { %4343 = vperm.xlu2 %13833, %v15982_v18   ;;  %4338 = vperm.xlu1 %13832, %v15985_v60   ;;  %v683_v4 = vmul.f32 %v15419_v23, %v19867_v15 }
 0x4e4   : > { %v15994_v9 = vadd.f32 %v15825_v28, %v5236_v26  ;;  %3989 = vperm.xlu0 %13831, %v3893_v6   ;;  %v706_v6 = vadd.f32 %v682_v41, %v485_v2  ;;  %v1076_v26 = vmul.f32 %v19824_v13, %v19869_v43  ;;  %v19872_v41 = vld [vmem:[#allocation93_spill] sm:$0xff]  ;;  %v19873_v2 = vld [vmem:[#allocation72_spill] sm:$0xff] }
 0x4e5   : > { %v15996_v38 = vpop.permute.xlu2 %4525  ;;  %v5107_v12 = vpop.permute.xlu1 %5106  ;;  %v707_v39 = vadd.f32 %v683_v4, %v486_v49 }
 0x4e6   : > { %19862 = vst [vmem:[#allocation176_spill] sm:$0xff] %v15994_v9  ;;  %v5211_v52 = vmul.f32 %v15796_v45, %v5107_v12  ;;  %v15999_v19 = vpop.permute.xlu0 %3545  ;;  %v5288_v1 = vmax.f32 %v15994_v9, 0.0  ;;  %v19871_v12 = vld [vmem:[#allocation52_spill] sm:$0xff]  ;;  %v903_v57 = vadd.f32 %v879_v7, %v706_v6  ;;  %v16047_v9 = vld [vmem:[%s14115_s25 + $0x81] sm:$0xff] }
 0x4e7   : > { %v19875_v6 = vld [vmem:[#allocation92_spill] sm:$0xff] }
 0x4e8   : > { %v5235_v46 = vadd.f32 %v5211_v52, %v5038_v47  ;;  %v880_v47 = vmul.f32 %v19820_v44, %v19871_v12  ;;  %v5312_v23 = vpack.c.bf16 %v5288_v1, %v5288_v1  ;;  %v1077_v44 = vmul.f32 %v19824_v13, %v19873_v2 }
 0x4e9   : > { %v1100_v43 = vadd.f32 %v1076_v26, %v903_v57  ;;  %v1470_v1 = vmul.f32 %v19832_v16, %v19874_v3  ;;  %v1274_v12 = vmul.f32 %v19828_v63, %v19875_v6  ;;  %v19877_v26 = vld [vmem:[#allocation112_spill] sm:$0xff] }
 0x4ea   : > { %v16018_v30 = vadd.f32 %v15825_v28, %v5235_v46  ;;  %v1273_v46 = vmul.f32 %v19828_v63, %v19872_v41  ;;  %v904_v7 = vadd.f32 %v880_v47, %v707_v39  ;;  %v16044_v41 = vld [vmem:[%s14115_s25 + $0x89] sm:$0xff]  ;;  %v1471_v57 = vmul.f32 %v19832_v16, %v19877_v26 }
 0x4eb   : > { %4181 = vperm.xlu2 %13833, %v4089_v59   ;;  %3999 = vperm.xlu1 %13832, %v16005_v0   ;;  %v19879_v39 = vld [vmem:[#allocation159_spill] sm:$0xff]  ;;  %v19884_v26 = vld [vmem:[#allocation182_spill] sm:$0xff] }
 0x4ec   : > { %19868 = vst [vmem:[#allocation156_spill] sm:$0xff] %v16018_v30  ;;  %v5287_v52 = vmax.f32 %v16018_v30, 0.0  ;;  %3994 = vperm.xlu0 %13831, %v16013_v35   ;;  %v5432_v30 = vunpack.c.l.b16 %v5312_v23  ;;  %v1297_v49 = vadd.f32 %v1273_v46, %v1100_v43  ;;  %v19876_v35 = vld [vmem:[#allocation136_spill] sm:$0xff]  ;;  %v1101_v2 = vadd.f32 %v1077_v44, %v904_v7  ;;  %v19880_v46 = vld [vmem:[#allocation135_spill] sm:$0xff]  ;;  %v19882_v7 = vld [vmem:[#allocation158_spill] sm:$0xff] }
 0x4ed   : > { %v16031_v59 = vpop.permute.xlu2 %4727  ;;  %v16033_v53 = vpop.permute.xlu1 %3742  ;;  %v1667_v13 = vmul.f32 %v19835_v55, %v19876_v35  ;;  %v1864_v63 = vmul.f32 %v19838_v21, %v19879_v39  ;;  %v1668_v35 = vmul.f32 %v19835_v55, %v19880_v46  ;;  %v1865_v6 = vmul.f32 %v19838_v21, %v19882_v7  ;;  %v19885_v39 = vld [vmem:[#allocation231_spill] sm:$0xff] }
 0x4ee   : > { %v5311_v29 = vpack.c.bf16 %v5287_v52, %v5287_v52  ;;  %v16037_v15 = vpop.permute.xlu0 %3737  ;;  %v4090_v52 = vld [vmem:[%s14115_s25 + $0xbc] sm:$0xff]  ;;  %v1494_v47 = vadd.f32 %v1470_v1, %v1297_v49  ;;  %v1298_v23 = vadd.f32 %v1274_v12, %v1101_v2  ;;  %v19883_v12 = vld [vmem:[#allocation207_spill] sm:$0xff]  ;;  %v2455_v46 = vmul.f32 %v15547_v62, %v19885_v39  ;;  %v19891_v39 = vld [vmem:[#allocation302_spill] sm:$0xff] }
 0x4ef   : > { %v2258_v2 = vmul.f32 %v19846_v5, %v19883_v12 }
 0x4f0   : > { %v5431_v4 = vunpack.c.l.b16 %v5311_v29  ;;  %v1691_v44 = vadd.f32 %v1667_v13, %v1494_v47  ;;  %v19881_v29 = vld [vmem:[#allocation183_spill] sm:$0xff]  ;;  %v1495_v1 = vadd.f32 %v1471_v57, %v1298_v23  ;;  %v2062_v13 = vmul.f32 %v19843_v56, %v19884_v26  ;;  %v19886_v23 = vld [vmem:[#allocation206_spill] sm:$0xff] }
 0x4f1   : > { %v2061_v16 = vmul.f32 %v19843_v56, %v19881_v29  ;;  %v16080_v29 = vld [vmem:[%s14115_s25 + $0xc4] sm:$0xff]  ;;  %v2259_v21 = vmul.f32 %v19846_v5, %v19886_v23 }
 0x4f2   : > { %v16054_v3 = vpack.c.b16 %v5432_v30, %v5431_v4  ;;  %v1888_v49 = vadd.f32 %v1864_v63, %v1691_v44  ;;  %v1692_v55 = vadd.f32 %v1668_v35, %v1495_v1  ;;  %v19887_v44 = vld [vmem:[#allocation255_spill] sm:$0xff]  ;;  %v19888_v35 = vld [vmem:[#allocation230_spill] sm:$0xff] }
 0x4f3   : > { %4540 = vperm.xlu2 %13833, %v16044_v41   ;;  %4535 = vperm.xlu1 %13832, %v16047_v9   ;;  %v2652_v7 = vmul.f32 %v15564_v11, %v19887_v44 }
 0x4f4   : > { %19878 = vst [vmem:[#allocation214_spill] sm:$0xff] %v16054_v3  ;;  %4186 = vperm.xlu0 %13831, %v4090_v52   ;;  %v16075_v52 = vld [vmem:[%s14115_s25 + $0xcc] sm:$0xff]  ;;  %v2085_v47 = vadd.f32 %v2061_v16, %v1888_v49  ;;  %v1889_v57 = vadd.f32 %v1865_v6, %v1692_v55  ;;  %v2456_v16 = vmul.f32 %v15547_v62, %v19888_v35  ;;  %v19925_v3 = vld [vmem:[#allocation45_spill] sm:$0xff] }
 0x4f5   : > { %v16064_v30 = vpop.permute.xlu2 %4919  ;;  %v16066_v43 = vpop.permute.xlu1 %4131  ;;  %v19889_v6 = vld [vmem:[#allocation279_spill] sm:$0xff]  ;;  %v19890_v55 = vld [vmem:[#allocation254_spill] sm:$0xff] }
 0x4f6   : > { %v3940_v4 = vpop.permute.xlu0 %3939  ;;  %v2282_v63 = vadd.f32 %v2258_v2, %v2085_v47  ;;  %v2086_v56 = vadd.f32 %v2062_v13, %v1889_v57  ;;  %v2849_v5 = vmul.f32 %v15583_v10, %v19889_v6  ;;  %v3046_v13 = vmul.f32 %v15599_v33, %v19891_v39  ;;  %v19892_v62 = vld [vmem:[#allocation278_spill] sm:$0xff]  ;;  %v19894_v6 = vld [vmem:[#allocation301_spill] sm:$0xff] }
 0x4f7   : > { %v2850_v23 = vmul.f32 %v15583_v10, %v19892_v62  ;;  %v19893_v35 = vld [vmem:[#allocation322_spill] sm:$0xff]  ;;  %v16125_v62 = vld [vmem:[%s14115_s25 + $0xd0] sm:$0xff] }
 0x4f8   : > { %v2479_v1 = vadd.f32 %v2455_v46, %v2282_v63  ;;  %v2283_v2 = vadd.f32 %v2259_v21, %v2086_v56  ;;  %v16102_v46 = vld [vmem:[%s14115_s25 + $0x8a] sm:$0xff]  ;;  %v16105_v63 = vld [vmem:[%s14115_s25 + $0x82] sm:$0xff]  ;;  %v3243_v21 = vmul.f32 %v15615_v17, %v19893_v35 }
 0x4fa   : > { %v2676_v47 = vadd.f32 %v2652_v7, %v2479_v1  ;;  %v2480_v57 = vadd.f32 %v2456_v16, %v2283_v2  ;;  %v3440_v16 = vmul.f32 %v15646_v14, %v15958_v37  ;;  %v19895_v1 = vld [vmem:[#allocation321_spill] sm:$0xff] }
 0x4fb   : > { %4378 = vperm.xlu2 %13833, %v15871_v42   ;;  %4196 = vperm.xlu1 %13832, %v16075_v52   ;;  %v2653_v42 = vmul.f32 %v15564_v11, %v19890_v55  ;;  %v3047_v11 = vmul.f32 %v15599_v33, %v19894_v6  ;;  %v16149_v6 = vld [vmem:[%s14115_s25 + $0xd8] sm:$0xff] }
 0x4fc   : > { %4191 = vperm.xlu0 %13831, %v16080_v29   ;;  %v2873_v44 = vadd.f32 %v2849_v5, %v2676_v47  ;;  %v3244_v5 = vmul.f32 %v15615_v17, %v19895_v1  ;;  %v3441_v47 = vmul.f32 %v15646_v14, %v15889_v20  ;;  %v3637_v17 = vmul.f32 %v15671_v22, %v15914_v51  ;;  %v16169_v1 = vld [vmem:[%s14115_s25 + $0x83] sm:$0xff] }
 0x4fd   : > { %v16093_v49 = vpop.permute.xlu2 %3555  ;;  %v4334_v12 = vpop.permute.xlu1 %4333  ;;  %v2677_v56 = vadd.f32 %v2653_v42, %v2480_v57  ;;  %v3638_v57 = vmul.f32 %v15671_v22, %v15999_v19  ;;  %v4032_v20 = vmul.f32 %v15702_v8, %v3940_v4 }
 0x4fe   : > { %v4329_v26 = vpop.permute.xlu0 %4328  ;;  %v3070_v7 = vadd.f32 %v3046_v13, %v2873_v44  ;;  %v3835_v44 = vmul.f32 %v15686_v48, %v16033_v53  ;;  %v4228_v53 = vmul.f32 %v15720_v24, %v16066_v43 }
 0x4ff   : > { %v2874_v10 = vadd.f32 %v2850_v23, %v2677_v56  ;;  %v4425_v4 = vmul.f32 %v15733_v34, %v4329_v26 }
 0x500   : > { %v3267_v2 = vadd.f32 %v3243_v21, %v3070_v7 }
 0x501   : > { %v3071_v33 = vadd.f32 %v3047_v11, %v2874_v10  ;;  %v4426_v11 = vmul.f32 %v15733_v34, %v4334_v12  ;;  %v4622_v34 = vmul.f32 %v15746_v36, %v15996_v38  ;;  %v16166_v10 = vld [vmem:[%s14115_s25 + $0x8b] sm:$0xff] }
 0x502   : > { %v3464_v37 = vadd.f32 %v3440_v16, %v3267_v2 }
 0x503   : > { %4737 = vperm.xlu2 %13833, %v16102_v46   ;;  %4732 = vperm.xlu1 %13832, %v16105_v63   ;;  %v3268_v13 = vadd.f32 %v3244_v5, %v3071_v33  ;;  %v4820_v5 = vmul.f32 %v15765_v58, %v16031_v59 }
 0x504   : > { %4383 = vperm.xlu0 %13831, %v15867_v25   ;;  %v3834_v25 = vmul.f32 %v15686_v48, %v16037_v15  ;;  %v3661_v35 = vadd.f32 %v3637_v17, %v3464_v37  ;;  %v4031_v48 = vmul.f32 %v15702_v8, %v15956_v50 }
 0x505   : > { %v16118_v55 = vpop.permute.xlu2 %3393  ;;  %v4723_v42 = vpop.permute.xlu1 %4722  ;;  %v3465_v23 = vadd.f32 %v3441_v47, %v3268_v13 }
 0x506   : > { %19896 = vst [vmem:[#allocation200_spill] sm:$0xff] %v16118_v55  ;;  %v4531_v39 = vpop.permute.xlu0 %4530  ;;  %v3858_v19 = vadd.f32 %v3834_v25, %v3661_v35  ;;  %v4819_v12 = vmul.f32 %v15765_v58, %v4723_v42 }
 0x507   : > { %v3662_v14 = vadd.f32 %v3638_v57, %v3465_v23  ;;  %v4623_v50 = vmul.f32 %v15746_v36, %v4531_v39  ;;  %v5016_v36 = vmul.f32 %v15782_v40, %v16064_v30 }
 0x508   : > { %v4055_v56 = vadd.f32 %v4031_v48, %v3858_v19 }
 0x509   : > { %v3859_v15 = vadd.f32 %v3835_v44, %v3662_v14 }
 0x50a   : > { %v4252_v7 = vadd.f32 %v4228_v53, %v4055_v56  ;;  %v16215_v56 = vld [vmem:[%s14115_s25 + $0x8c] sm:$0xff] }
 0x50b   : > { %4388 = vperm.xlu2 %13833, %v16125_v62   ;;  %3368 = vperm.xlu1 %13832, %v15982_v18   ;;  %v4056_v18 = vadd.f32 %v4032_v20, %v3859_v15  ;;  %v16201_v20 = vld [vmem:[%s14115_s25 + $0xd9] sm:$0xff] }
 0x50c   : > { %3363 = vperm.xlu0 %13831, %v15985_v60   ;;  %v4229_v60 = vmul.f32 %v15720_v24, %v15977_v61  ;;  %v4449_v43 = vadd.f32 %v4425_v4, %v4252_v7  ;;  %v16218_v4 = vld [vmem:[%s14115_s25 + $0x84] sm:$0xff] }
 0x50d   : > { %v16137_v22 = vpop.permute.xlu2 %3752  ;;  %v16139_v51 = vpop.permute.xlu1 %3358 }
 0x50e   : > { %v16141_v21 = vpop.permute.xlu0 %3353  ;;  %v4253_v8 = vadd.f32 %v4229_v60, %v4056_v18 }
 0x510   : > { %v4450_v24 = vadd.f32 %v4426_v11, %v4253_v8 }
 0x513   : > { %4580 = vperm.xlu2 %13833, %v15926_v27   ;;  %4575 = vperm.xlu1 %13832, %v15929_v32   ;;  %v4647_v27 = vadd.f32 %v4623_v50, %v4450_v24  ;;  %v4646_v32 = vadd.f32 %v4622_v34, %v4449_v43  ;;  %v16239_v43 = vld [vmem:[%s14115_s25 + $0xda] sm:$0xff] }
 0x514   : > { %4393 = vperm.xlu0 %13831, %v16149_v6   ;;  %v13863_v24 = vld [vmem:[%s19385_s1] ss:$0 sm:$0xff] }
 0x515   : > { %v16158_v26 = vpop.permute.xlu2 %3590  ;;  %v16160_v16 = vpop.permute.xlu1 %3550  ;;  %v4843_v33 = vadd.f32 %v4819_v12, %v4646_v32  ;;  %v4844_v47 = vadd.f32 %v4820_v5, %v4647_v27  ;;  %v19910_v12 = vld [vmem:[#allocation9_spill] sm:$0xff]  ;;  %v19911_v32 = vld [vmem:[#allocation11_spill] sm:$0xff] }
 0x516   : > { %19897 = vst [vmem:[#allocation201_spill] sm:$0xff] %v16158_v26  ;;  %v4925_v61 = vpop.permute.xlu0 %4924  ;;  %v490_v27 = vmul.f32 %v13863_v24, %v19910_v12  ;;  %v496_v5 = vmul.f32 %v13863_v24, %v19911_v32  ;;  %v19922_v32 = vld [vmem:[#allocation40_spill] sm:$0xff] }
 0x517   : > { %v5017_v2 = vmul.f32 %v15782_v40, %v4925_v61  ;;  %v5040_v59 = vadd.f32 %v5016_v36, %v4843_v33  ;;  %v19909_v61 = vld [vmem:[#allocation8_spill] sm:$0xff] }
 0x518   : > { %v487_v34 = vmul.f32 %v13863_v24, %v19909_v61  ;;  %v19914_v36 = vld [vmem:[#allocation16_spill] sm:$0xff] }
 0x519   : > { %v5041_v39 = vadd.f32 %v5017_v2, %v4844_v47  ;;  %v19912_v2 = vld [vmem:[#allocation14_spill] sm:$0xff]  ;;  %v19913_v47 = vld [vmem:[#allocation15_spill] sm:$0xff]  ;;  %v19921_v61 = vld [vmem:[#allocation36_spill] sm:$0xff] }
 0x51a   : > { %v499_v33 = vmul.f32 %v13863_v24, %v19912_v2 }
 0x51b   : > { %3216 = vperm.xlu2 %13833, %v16080_v29   ;;  %4934 = vperm.xlu1 %13832, %v16166_v10  }
 0x51c   : > { %4929 = vperm.xlu0 %13831, %v16169_v1  }
 0x51d   : > { %v16179_v38 = vpop.permute.xlu2 %3949  ;;  %v5122_v42 = vpop.permute.xlu1 %5121 }
 0x51e   : > { %v5214_v37 = vmul.f32 %v15796_v45, %v5122_v42  ;;  %v5117_v58 = vpop.permute.xlu0 %5116  ;;  %v488_v42 = vmul.f32 %v13863_v24, %v19914_v36 }
 0x51f   : > { %v5213_v13 = vmul.f32 %v15796_v45, %v5117_v58  ;;  %v13864_v58 = vld [vmem:[%s19385_s1 + $0x1] ss:$0 sm:$0xff] }
 0x520   : > { %v5238_v57 = vadd.f32 %v5214_v37, %v5041_v39  ;;  %v19915_v39 = vld [vmem:[#allocation20_spill] sm:$0xff]  ;;  %v685_v12 = vmul.f32 %v13864_v58, %v19921_v61  ;;  %v692_v2 = vmul.f32 %v13864_v58, %v19922_v32 }
 0x521   : > { %v5237_v17 = vadd.f32 %v5213_v13, %v5040_v59  ;;  %v495_v37 = vmul.f32 %v13863_v24, %v19915_v39  ;;  %v19916_v59 = vld [vmem:[#allocation25_spill] sm:$0xff]  ;;  %v19924_v39 = vld [vmem:[#allocation44_spill] sm:$0xff] }
 0x522   : > { %v16184_v25 = vadd.f32 %v15825_v28, %v5238_v57  ;;  %v684_v13 = vmul.f32 %v13864_v58, %v19916_v59  ;;  %v19917_v57 = vld [vmem:[#allocation28_spill] sm:$0xff]  ;;  %v13865_v59 = vld [vmem:[%s19385_s1 + $0x2] ss:$0 sm:$0xff] }
 0x523   : > { %v16187_v23 = vadd.f32 %v15825_v28, %v5237_v17  ;;  %3565 = vperm.xlu2 %13833, %v16044_v41   ;;  %3560 = vperm.xlu1 %13832, %v16047_v9   ;;  %v4485_v9 = vld [vmem:[%s14115_s25 + $0xd1] sm:$0xff]  ;;  %v687_v17 = vmul.f32 %v13864_v58, %v19917_v57  ;;  %v881_v57 = vmul.f32 %v13865_v59, %v19925_v3 }
 0x524   : > { %19898 = vst [vmem:[#allocation180_spill] sm:$0xff] %v16184_v25  ;;  %v5290_v40 = vmax.f32 %v16184_v25, 0.0  ;;  %3221 = vperm.xlu0 %13831, %v16075_v52   ;;  %v19927_v25 = vld [vmem:[#allocation48_spill] sm:$0xff] }
 0x525   : > { %19899 = vst [vmem:[#allocation238_spill] sm:$0xff] %v16187_v23  ;;  %v5289_v30 = vmax.f32 %v16187_v23, 0.0  ;;  %v16194_v45 = vpop.permute.xlu2 %3787  ;;  %v16196_v44 = vpop.permute.xlu1 %3747  ;;  %v19926_v23 = vld [vmem:[#allocation47_spill] sm:$0xff]  ;;  %v19929_v32 = vld [vmem:[#allocation24_spill] sm:$0xff] }
 0x526   : > { %19900 = vst [vmem:[#allocation224_spill] sm:$0xff] %v16194_v45  ;;  %v5314_v35 = vpack.c.bf16 %v5290_v40, %v5290_v40  ;;  %v16198_v14 = vpop.permute.xlu0 %3398  ;;  %v19918_v40 = vld [vmem:[#allocation31_spill] sm:$0xff]  ;;  %v711_v45 = vadd.f32 %v687_v17, %v490_v27  ;;  %v19937_v17 = vld [vmem:[#allocation60_spill] sm:$0xff] }
 0x527   : > { %19901 = vst [vmem:[#allocation225_spill] sm:$0xff] %v16198_v14  ;;  %v5313_v28 = vpack.c.bf16 %v5289_v30, %v5289_v30  ;;  %v693_v30 = vmul.f32 %v13864_v58, %v19918_v40  ;;  %v697_v40 = vmul.f32 %v13864_v58, %v19926_v23  ;;  %v19935_v27 = vld [vmem:[#allocation55_spill] sm:$0xff] }
 0x528   : > { %v5434_v41 = vunpack.c.l.b16 %v5314_v35  ;;  %v19919_v35 = vld [vmem:[#allocation34_spill] sm:$0xff] }
 0x529   : > { %v5433_v19 = vunpack.c.l.b16 %v5313_v28  ;;  %v696_v28 = vmul.f32 %v13864_v58, %v19919_v35  ;;  %v884_v35 = vmul.f32 %v13865_v59, %v19927_v25  ;;  %v717_v3 = vadd.f32 %v693_v30, %v496_v5 }
 0x52a   : > { %v883_v5 = vmul.f32 %v13865_v59, %v19935_v27  ;;  %v889_v30 = vmul.f32 %v13865_v59, %v19937_v17 }
 0x52b   : > { %4772 = vperm.xlu2 %13833, %v15968_v31   ;;  %4590 = vperm.xlu1 %13832, %v16201_v20   ;;  %v16206_v15 = vpack.c.b16 %v5434_v41, %v5433_v19  ;;  %v19920_v41 = vld [vmem:[#allocation35_spill] sm:$0xff]  ;;  %v720_v14 = vadd.f32 %v696_v28, %v499_v33  ;;  %v19936_v33 = vld [vmem:[#allocation56_spill] sm:$0xff] }
 0x52c   : > { %4585 = vperm.xlu0 %13831, %v4485_v9   ;;  %v686_v19 = vmul.f32 %v13864_v58, %v19920_v41  ;;  %v19928_v41 = vld [vmem:[#allocation23_spill] sm:$0xff] }
 0x52d   : > { %19902 = vst [vmem:[#allocation204_spill] sm:$0xff] %v16206_v15  ;;  %v16208_v48 = vpop.permute.xlu2 %4146  ;;  %v16210_v53 = vpop.permute.xlu1 %3408  ;;  %v694_v15 = vmul.f32 %v13864_v58, %v19924_v39  ;;  %v498_v61 = vmul.f32 %v13863_v24, %v19928_v41  ;;  %v19931_v39 = vld [vmem:[#allocation51_spill] sm:$0xff] }
 0x52e   : > { %v16212_v18 = vpop.permute.xlu0 %3403  ;;  %v19938_v28 = vld [vmem:[#allocation63_spill] sm:$0xff] }
 0x52f   : > { %19903 = vst [vmem:[#allocation262_spill] sm:$0xff] %v16212_v18 }
 0x533   : > { %5131 = vperm.xlu2 %13833, %v16215_v56   ;;  %5126 = vperm.xlu1 %13832, %v16218_v4  }
 0x534   : > { %4777 = vperm.xlu0 %13831, %v15965_v54   ;;  %v16242_v54 = vld [vmem:[%s14115_s25 + $0xd2] sm:$0xff] }
 0x535   : > { %v16223_v31 = vpop.permute.xlu2 %3984  ;;  %v16225_v60 = vpop.permute.xlu1 %3944 }
 0x536   : > { %19904 = vst [vmem:[#allocation248_spill] sm:$0xff] %v16223_v31  ;;  %v16227_v11 = vpop.permute.xlu0 %3595 }
 0x537   : > { %19905 = vst [vmem:[#allocation249_spill] sm:$0xff] %v16227_v11  ;;  %v19932_v11 = vld [vmem:[#allocation177_spill] sm:$0xff] }
 0x53b   : > { %3757 = vperm.xlu2 %13833, %v16105_v63   ;;  %3418 = vperm.xlu1 %13832, %v16149_v6  }
 0x53c   : > { %3413 = vperm.xlu0 %13831, %v16125_v62  }
 0x53d   : > { %v16232_v7 = vpop.permute.xlu2 %4343  ;;  %v16234_v8 = vpop.permute.xlu1 %3605 }
 0x53e   : > { %v16236_v50 = vpop.permute.xlu0 %3600 }
 0x53f   : > { %19906 = vst [vmem:[#allocation288_spill] sm:$0xff] %v16236_v50  ;;  %v708_v50 = vadd.f32 %v684_v13, %v487_v34  ;;  %v882_v13 = vmul.f32 %v13865_v59, %v19936_v33 }
 0x543   : > { %4787 = vperm.xlu2 %13833, %v16239_v43   ;;  %4782 = vperm.xlu1 %13832, %v16242_v54  }
 0x544   : > { %3762 = vperm.xlu0 %13831, %v16102_v46   ;;  %v489_v46 = vmul.f32 %v13863_v24, %v19913_v47  ;;  %v19923_v47 = vld [vmem:[#allocation43_spill] sm:$0xff] }
 0x545   : > { %v16247_v63 = vpop.permute.xlu2 %4181  ;;  %v16249_v6 = vpop.permute.xlu1 %4141  ;;  %v695_v36 = vmul.f32 %v13864_v58, %v19923_v47  ;;  %v19930_v47 = vld [vmem:[#allocation27_spill] sm:$0xff]  ;;  %v716_v58 = vadd.f32 %v692_v2, %v495_v37 }
 0x546   : > { %19907 = vst [vmem:[#allocation272_spill] sm:$0xff] %v16247_v63  ;;  %v16251_v62 = vpop.permute.xlu0 %3792  ;;  %v497_v63 = vmul.f32 %v13863_v24, %v19929_v32  ;;  %v500_v31 = vmul.f32 %v13863_v24, %v19930_v47  ;;  %v905_v24 = vadd.f32 %v881_v57, %v708_v50  ;;  %v19940_v50 = vld [vmem:[#allocation65_spill] sm:$0xff] }
 0x547   : > { %19908 = vst [vmem:[#allocation273_spill] sm:$0xff] %v16251_v62  ;;  %v890_v62 = vmul.f32 %v13865_v59, %v19931_v39  ;;  %v719_v41 = vadd.f32 %v695_v36, %v498_v61  ;;  %v908_v39 = vadd.f32 %v884_v35, %v711_v45  ;;  %v19941_v45 = vld [vmem:[#allocation67_spill] sm:$0xff]  ;;  %v19944_v36 = vld [vmem:[#allocation74_spill] sm:$0xff]  ;;  %v19946_v61 = vld [vmem:[#allocation76_spill] sm:$0xff] }
 0x548   : > { %v718_v32 = vadd.f32 %v694_v15, %v497_v63  ;;  %v721_v47 = vadd.f32 %v697_v40, %v500_v31  ;;  %v13866_v15 = vld [vmem:[%s19385_s1 + $0x3] ss:$0 sm:$0xff]  ;;  %v894_v63 = vmul.f32 %v13865_v59, %v19941_v45  ;;  %v19945_v40 = vld [vmem:[#allocation75_spill] sm:$0xff] }
 0x549   : > { %v914_v18 = vadd.f32 %v890_v62, %v717_v3  ;;  %v1078_v31 = vmul.f32 %v13866_v15, %v19940_v50  ;;  %v19942_v62 = vld [vmem:[#allocation68_spill] sm:$0xff]  ;;  %v1090_v57 = vmul.f32 %v13866_v15, %v19944_v36  ;;  %v1080_v35 = vmul.f32 %v13866_v15, %v19945_v40 }
 0x54a   : > { %v1079_v3 = vmul.f32 %v13866_v15, %v19946_v61  ;;  %v913_v50 = vadd.f32 %v889_v30, %v716_v58  ;;  %v918_v61 = vadd.f32 %v894_v63, %v721_v47  ;;  %v16328_v30 = vld [vmem:[%s14115_s25 + $0xdb] sm:$0xff] }
 0x54b   : > { %3610 = vperm.xlu2 %13833, %v4485_v9   ;;  %4974 = vperm.xlu1 %13832, %v16005_v0   ;;  %v710_v9 = vadd.f32 %v686_v19, %v489_v46  ;;  %v709_v0 = vadd.f32 %v685_v12, %v488_v42  ;;  %v892_v46 = vmul.f32 %v13865_v59, %v19938_v28  ;;  %v19939_v42 = vld [vmem:[#allocation64_spill] sm:$0xff]  ;;  %v19943_v12 = vld [vmem:[#allocation71_spill] sm:$0xff] }
 0x54c   : > { %4969 = vperm.xlu0 %13831, %v19932_v11   ;;  %v19934_v11 = vld [vmem:[#allocation54_spill] sm:$0xff]  ;;  %v891_v37 = vmul.f32 %v13865_v59, %v19939_v42  ;;  %v1081_v19 = vmul.f32 %v13866_v15, %v19942_v62  ;;  %v1087_v2 = vmul.f32 %v13866_v15, %v19943_v12  ;;  %v1102_v12 = vadd.f32 %v1078_v31, %v905_v24  ;;  %v19953_v24 = vld [vmem:[#allocation85_spill] sm:$0xff] }
 0x54d   : > { %v16287_v23 = vpop.permute.xlu2 %4540  ;;  %v16289_v25 = vpop.permute.xlu1 %3802  ;;  %v893_v34 = vmul.f32 %v13865_v59, %v19934_v11  ;;  %v19947_v11 = vld [vmem:[#allocation80_spill] sm:$0xff]  ;;  %v907_v17 = vadd.f32 %v883_v5, %v710_v9  ;;  %v906_v28 = vadd.f32 %v882_v13, %v709_v0  ;;  %v19948_v59 = vld [vmem:[#allocation83_spill] sm:$0xff]  ;;  %v916_v45 = vadd.f32 %v892_v46, %v719_v41  ;;  %v19957_v31 = vld [vmem:[#allocation94_spill] sm:$0xff] }
 0x54e   : > { %v16291_v26 = vpop.permute.xlu0 %3797  ;;  %v1086_v27 = vmul.f32 %v13866_v15, %v19947_v11  ;;  %v1089_v42 = vmul.f32 %v13866_v15, %v19948_v59  ;;  %v915_v62 = vadd.f32 %v891_v37, %v718_v32  ;;  %v1111_v11 = vadd.f32 %v1087_v2, %v914_v18  ;;  %v13867_v32 = vld [vmem:[%s19385_s1 + $0x4] ss:$0 sm:$0xff]  ;;  %v19954_v13 = vld [vmem:[#allocation87_spill] sm:$0xff]  ;;  %v19962_v59 = vld [vmem:[#allocation104_spill] sm:$0xff] }
 0x54f   : > { %19933 = vst [vmem:[#allocation228_spill] sm:$0xff] %v16291_v26  ;;  %v917_v33 = vadd.f32 %v893_v34, %v720_v14  ;;  %v1104_v9 = vadd.f32 %v1080_v35, %v907_v17  ;;  %v1103_v0 = vadd.f32 %v1079_v3, %v906_v28  ;;  %v1275_v5 = vmul.f32 %v13867_v32, %v19953_v24  ;;  %v19956_v46 = vld [vmem:[#allocation91_spill] sm:$0xff] }
 0x550   : > { %v1110_v34 = vadd.f32 %v1086_v27, %v913_v50  ;;  %v1113_v41 = vadd.f32 %v1089_v42, %v916_v45  ;;  %v1091_v47 = vmul.f32 %v13866_v15, %v19954_v13  ;;  %v1284_v37 = vmul.f32 %v13867_v32, %v19956_v46  ;;  %v16335_v3 = vld [vmem:[%s14115_s25 + $0xd3] sm:$0xff]  ;;  %v13868_v42 = vld [vmem:[%s19385_s1 + $0x5] ss:$0 sm:$0xff] }
 0x551   : > { %v1287_v63 = vmul.f32 %v13867_v32, %v19957_v31  ;;  %v19960_v27 = vld [vmem:[#allocation100_spill] sm:$0xff]  ;;  %v19961_v17 = vld [vmem:[#allocation103_spill] sm:$0xff]  ;;  %v19963_v50 = vld [vmem:[#allocation105_spill] sm:$0xff] }
 0x552   : > { %v1286_v28 = vmul.f32 %v13867_v32, %v19961_v17  ;;  %v1472_v45 = vmul.f32 %v13868_v42, %v19963_v50  ;;  %v19965_v13 = vld [vmem:[#allocation108_spill] sm:$0xff]  ;;  %v19966_v46 = vld [vmem:[#allocation111_spill] sm:$0xff]  ;;  %v19967_v17 = vld [vmem:[#allocation114_spill] sm:$0xff] }
 0x553   : > { %3959 = vperm.xlu2 %13833, %v16166_v10   ;;  %3954 = vperm.xlu1 %13832, %v16169_v1   ;;  %v1105_v10 = vadd.f32 %v1081_v19, %v908_v39  ;;  %v1114_v1 = vadd.f32 %v1090_v57, %v917_v33  ;;  %v19955_v39 = vld [vmem:[#allocation88_spill] sm:$0xff]  ;;  %v19958_v19 = vld [vmem:[#allocation95_spill] sm:$0xff]  ;;  %v1283_v33 = vmul.f32 %v13867_v32, %v19960_v27 }
 0x554   : > { %3615 = vperm.xlu0 %13831, %v16201_v20   ;;  %v19952_v20 = vld [vmem:[#allocation84_spill] sm:$0xff]  ;;  %v1278_v18 = vmul.f32 %v13867_v32, %v19955_v39  ;;  %v1277_v2 = vmul.f32 %v13867_v32, %v19958_v19  ;;  %v1475_v39 = vmul.f32 %v13868_v42, %v19965_v13  ;;  %v1481_v31 = vmul.f32 %v13868_v42, %v19966_v46 }
 0x555   : > { %v16314_v36 = vpop.permute.xlu2 %4378  ;;  %v16316_v40 = vpop.permute.xlu1 %4338  ;;  %v1088_v58 = vmul.f32 %v13866_v15, %v19952_v20  ;;  %v19959_v57 = vld [vmem:[#allocation96_spill] sm:$0xff]  ;;  %v1285_v15 = vmul.f32 %v13867_v32, %v19962_v59  ;;  %v19964_v20 = vld [vmem:[#allocation107_spill] sm:$0xff]  ;;  %v1115_v27 = vadd.f32 %v1091_v47, %v918_v61  ;;  %v1484_v59 = vmul.f32 %v13868_v42, %v19967_v17  ;;  %v19980_v17 = vld [vmem:[#allocation137_spill] sm:$0xff] }
 0x556   : > { %19949 = vst [vmem:[#allocation252_spill] sm:$0xff] %v16314_v36  ;;  %v16318_v14 = vpop.permute.xlu0 %3989  ;;  %v1276_v35 = vmul.f32 %v13867_v32, %v19959_v57  ;;  %v1288_v24 = vmul.f32 %v13867_v32, %v19964_v20  ;;  %v1299_v57 = vadd.f32 %v1275_v5, %v1102_v12  ;;  %v1302_v36 = vadd.f32 %v1278_v18, %v1105_v10  ;;  %v19968_v47 = vld [vmem:[#allocation115_spill] sm:$0xff] }
 0x557   : > { %19950 = vst [vmem:[#allocation276_spill] sm:$0xff] %v16316_v40  ;;  %v1112_v19 = vadd.f32 %v1088_v58, %v915_v62  ;;  %v1311_v50 = vadd.f32 %v1287_v63, %v1114_v1  ;;  %v1301_v26 = vadd.f32 %v1277_v2, %v1104_v9  ;;  %v1307_v46 = vadd.f32 %v1283_v33, %v1110_v34  ;;  %v19970_v9 = vld [vmem:[#allocation120_spill] sm:$0xff]  ;;  %v19972_v2 = vld [vmem:[#allocation130_spill] sm:$0xff]  ;;  %v19973_v34 = vld [vmem:[#allocation133_spill] sm:$0xff] }
 0x558   : > { %19951 = vst [vmem:[#allocation337_spill] sm:$0xff] %v16318_v14  ;;  %v1308_v14 = vadd.f32 %v1284_v37, %v1111_v11  ;;  %v1300_v13 = vadd.f32 %v1276_v35, %v1103_v0  ;;  %v1496_v62 = vadd.f32 %v1472_v45, %v1299_v57  ;;  %v1312_v12 = vadd.f32 %v1288_v24, %v1115_v27  ;;  %v19969_v11 = vld [vmem:[#allocation116_spill] sm:$0xff]  ;;  %v19971_v37 = vld [vmem:[#allocation123_spill] sm:$0xff]  ;;  %v19979_v57 = vld [vmem:[#allocation134_spill] sm:$0xff] }
 0x559   : > { %v1309_v55 = vadd.f32 %v1285_v15, %v1112_v19  ;;  %v1499_v61 = vadd.f32 %v1475_v39, %v1302_v36  ;;  %v1508_v5 = vadd.f32 %v1484_v59, %v1311_v50  ;;  %v1474_v10 = vmul.f32 %v13868_v42, %v19968_v47  ;;  %v19974_v35 = vld [vmem:[#allocation152_spill] sm:$0xff]  ;;  %v13869_v36 = vld [vmem:[%s19385_s1 + $0x6] ss:$0 sm:$0xff]  ;;  %v19977_v24 = vld [vmem:[#allocation127_spill] sm:$0xff] }
 0x55a   : > { %v1505_v58 = vadd.f32 %v1481_v31, %v1308_v14  ;;  %v1473_v1 = vmul.f32 %v13868_v42, %v19969_v11  ;;  %v1480_v18 = vmul.f32 %v13868_v42, %v19970_v9  ;;  %v1483_v63 = vmul.f32 %v13868_v42, %v19971_v37  ;;  %v19976_v14 = vld [vmem:[#allocation125_spill] sm:$0xff]  ;;  %v19978_v31 = vld [vmem:[#allocation128_spill] sm:$0xff]  ;;  %v19981_v50 = vld [vmem:[#allocation138_spill] sm:$0xff] }
 0x55b   : > { %5166 = vperm.xlu2 %13833, %v16080_v29   ;;  %4984 = vperm.xlu1 %13832, %v16328_v30   ;;  %v1310_v29 = vadd.f32 %v1286_v28, %v1113_v41  ;;  %v5332_v0 = vsub.f32 0.0, %v19972_v2  ;;  %v5331_v41 = vsub.f32 0.0, %v19973_v34  ;;  %v5334_v33 = vsub.f32 0.0, %v19974_v35  ;;  %v19975_v28 = vld [vmem:[#allocation124_spill] sm:$0xff]  ;;  %v19982_v11 = vld [vmem:[#allocation166_spill] sm:$0xff]  ;;  %v19983_v35 = vld [vmem:[#allocation139_spill] sm:$0xff] }
 0x55c   : > { %4979 = vperm.xlu0 %13831, %v16335_v3   ;;  %v1482_v15 = vmul.f32 %v13868_v42, %v19975_v28  ;;  %v1669_v45 = vmul.f32 %v13869_v36, %v19976_v14  ;;  %v1485_v39 = vmul.f32 %v13868_v42, %v19977_v24  ;;  %v1672_v19 = vmul.f32 %v13869_v36, %v19978_v31 }
 0x55d   : > { %v16351_v32 = vpop.permute.xlu2 %4737  ;;  %v16353_v20 = vpop.permute.xlu1 %3999  ;;  %v1678_v27 = vmul.f32 %v13869_v36, %v19979_v57  ;;  %v1681_v59 = vmul.f32 %v13869_v36, %v19980_v17  ;;  %v1671_v47 = vmul.f32 %v13869_v36, %v19981_v50  ;;  %v5333_v9 = vsub.f32 0.0, %v19982_v11 }
 0x55e   : > { %v16355_v40 = vpop.permute.xlu0 %3994  ;;  %v1498_v37 = vadd.f32 %v1474_v10, %v1301_v26  ;;  %v1497_v2 = vadd.f32 %v1473_v1, %v1300_v13  ;;  %v1504_v34 = vadd.f32 %v1480_v18, %v1307_v46  ;;  %v1670_v28 = vmul.f32 %v13869_v36, %v19983_v35  ;;  %v16389_v35 = vld [vmem:[%s14115_s25 + $0xd4] sm:$0xff] }
 0x55f   : > { %v1507_v42 = vadd.f32 %v1483_v63, %v1310_v29  ;;  %v5356_v14 = vmax.f32 %v5332_v0, 0.0  ;;  %v5355_v24 = vmax.f32 %v5331_v41, 0.0  ;;  %v5358_v31 = vmax.f32 %v5334_v33, 0.0  ;;  %v19986_v29 = vld [vmem:[#allocation143_spill] sm:$0xff]  ;;  %v19987_v63 = vld [vmem:[#allocation146_spill] sm:$0xff] }
 0x560   : > { %v1506_v50 = vadd.f32 %v1482_v15, %v1309_v55  ;;  %v1509_v11 = vadd.f32 %v1485_v39, %v1312_v12  ;;  %v1702_v13 = vadd.f32 %v1678_v27, %v1505_v58  ;;  %v1705_v46 = vadd.f32 %v1681_v59, %v1508_v5  ;;  %v19988_v41 = vld [vmem:[#allocation147_spill] sm:$0xff]  ;;  %v13870_v55 = vld [vmem:[%s19385_s1 + $0x7] ss:$0 sm:$0xff]  ;;  %v19992_v27 = vld [vmem:[#allocation157_spill] sm:$0xff] }
 0x561   : > { %v1695_v10 = vadd.f32 %v1671_v47, %v1498_v37  ;;  %v5357_v1 = vmax.f32 %v5333_v9, 0.0  ;;  %v1677_v18 = vmul.f32 %v13869_v36, %v19986_v29  ;;  %v1680_v0 = vmul.f32 %v13869_v36, %v19987_v63  ;;  %v19990_v15 = vld [vmem:[#allocation150_spill] sm:$0xff]  ;;  %v19991_v39 = vld [vmem:[#allocation151_spill] sm:$0xff]  ;;  %v19993_v47 = vld [vmem:[#allocation160_spill] sm:$0xff] }
 0x562   : > { %v1679_v33 = vmul.f32 %v13869_v36, %v19988_v41  ;;  %v5379_v58 = vpack.c.bf16 %v5355_v24, %v5355_v24  ;;  %v5382_v5 = vpack.c.bf16 %v5358_v31, %v5358_v31  ;;  %v1875_v59 = vmul.f32 %v13870_v55, %v19992_v27  ;;  %v19994_v37 = vld [vmem:[#allocation161_spill] sm:$0xff]  ;;  %v19996_v41 = vld [vmem:[#allocation167_spill] sm:$0xff] }
 0x563   : > { %3812 = vperm.xlu2 %13833, %v16239_v43   ;;  %3807 = vperm.xlu1 %13832, %v16242_v54   ;;  %v1693_v43 = vadd.f32 %v1669_v45, %v1496_v62  ;;  %v1696_v54 = vadd.f32 %v1672_v19, %v1499_v61  ;;  %v19989_v62 = vld [vmem:[#allocation148_spill] sm:$0xff]  ;;  %v5380_v61 = vpack.c.bf16 %v5356_v14, %v5356_v14 }
 0x564   : > { %5171 = vperm.xlu0 %13831, %v16075_v52   ;;  %v1694_v52 = vadd.f32 %v1670_v28, %v1497_v2  ;;  %v1866_v12 = vmul.f32 %v13870_v55, %v19989_v62  ;;  %v1682_v45 = vmul.f32 %v13869_v36, %v19990_v15  ;;  %v1869_v19 = vmul.f32 %v13870_v55, %v19991_v39  ;;  %v19995_v28 = vld [vmem:[#allocation162_spill] sm:$0xff] }
 0x565   : > { %v16379_v57 = vpop.permute.xlu2 %4388  ;;  %v16381_v17 = vpop.permute.xlu1 %4535  ;;  %v1878_v9 = vmul.f32 %v13870_v55, %v19993_v47  ;;  %v1868_v2 = vmul.f32 %v13870_v55, %v19994_v37  ;;  %v1867_v29 = vmul.f32 %v13870_v55, %v19995_v28  ;;  %v5381_v63 = vpack.c.bf16 %v5357_v1, %v5357_v1 }
 0x566   : > { %19984 = vst [vmem:[#allocation338_spill] sm:$0xff] %v16379_v57  ;;  %v16383_v26 = vpop.permute.xlu0 %4186  ;;  %v1701_v14 = vadd.f32 %v1677_v18, %v1504_v34  ;;  %v1704_v24 = vadd.f32 %v1680_v0, %v1507_v42  ;;  %v1703_v31 = vadd.f32 %v1679_v33, %v1506_v50  ;;  %v1874_v36 = vmul.f32 %v13870_v55, %v19996_v41  ;;  %v19999_v33 = vld [vmem:[#allocation171_spill] sm:$0xff]  ;;  %v16421_v41 = vld [vmem:[%s14115_s25 + $0xdc] sm:$0xff] }
 0x567   : > { %19985 = vst [vmem:[#allocation332_spill] sm:$0xff] %v16383_v26  ;;  %v1890_v62 = vadd.f32 %v1866_v12, %v1693_v43  ;;  %v5488_v15 = vunpack.c.l.b16 %v5380_v61  ;;  %v5487_v39 = vunpack.c.l.b16 %v5379_v58  ;;  %v5490_v27 = vunpack.c.l.b16 %v5382_v5  ;;  %v13871_v61 = vld [vmem:[%s19385_s1 + $0x8] ss:$0 sm:$0xff]  ;;  %v20000_v58 = vld [vmem:[#allocation172_spill] sm:$0xff] }
 0x568   : > { %v1706_v1 = vadd.f32 %v1682_v45, %v1509_v11  ;;  %v1893_v28 = vadd.f32 %v1869_v19, %v1696_v54  ;;  %v1899_v26 = vadd.f32 %v1875_v59, %v1702_v13  ;;  %v1902_v50 = vadd.f32 %v1878_v9, %v1705_v46  ;;  %v20001_v5 = vld [vmem:[#allocation174_spill] sm:$0xff]  ;;  %v20002_v13 = vld [vmem:[#allocation175_spill] sm:$0xff]  ;;  %v20003_v19 = vld [vmem:[#allocation181_spill] sm:$0xff] }
 0x569   : > { %v1892_v18 = vadd.f32 %v1868_v2, %v1695_v10  ;;  %v1891_v0 = vadd.f32 %v1867_v29, %v1694_v52  ;;  %v1898_v43 = vadd.f32 %v1874_v36, %v1701_v14  ;;  %v1876_v12 = vmul.f32 %v13870_v55, %v19999_v33  ;;  %v20004_v9 = vld [vmem:[#allocation184_spill] sm:$0xff]  ;;  %v20005_v29 = vld [vmem:[#allocation185_spill] sm:$0xff]  ;;  %v20006_v14 = vld [vmem:[#allocation186_spill] sm:$0xff] }
 0x56a   : > { %v2063_v11 = vmul.f32 %v13871_v61, %v20000_v58  ;;  %v1879_v54 = vmul.f32 %v13870_v55, %v20001_v5  ;;  %v2066_v45 = vmul.f32 %v13871_v61, %v20002_v13  ;;  %v2072_v59 = vmul.f32 %v13871_v61, %v20003_v19  ;;  %v20008_v58 = vld [vmem:[#allocation194_spill] sm:$0xff] }
 0x56b   : > { %5176 = vperm.xlu2 %13833, %v16389_v35   ;;  %4156 = vperm.xlu1 %13832, %v16215_v56   ;;  %v19998_v56 = vld [vmem:[#allocation170_spill] sm:$0xff]  ;;  %v5511_v46 = vpack.c.b16 %v5488_v15, %v5487_v39  ;;  %v2075_v2 = vmul.f32 %v13871_v61, %v20004_v9  ;;  %v2064_v36 = vmul.f32 %v13871_v61, %v20006_v14 }
 0x56c   : > { %4151 = vperm.xlu0 %13831, %v16218_v4   ;;  %v1877_v34 = vmul.f32 %v13870_v55, %v19998_v56  ;;  %v5489_v4 = vunpack.c.l.b16 %v5381_v63  ;;  %v2065_v63 = vmul.f32 %v13871_v61, %v20005_v29  ;;  %v20007_v56 = vld [vmem:[#allocation191_spill] sm:$0xff]  ;;  %v1900_v15 = vadd.f32 %v1876_v12, %v1703_v31  ;;  %v20012_v14 = vld [vmem:[#allocation210_spill] sm:$0xff] }
 0x56d   : > { %v16405_v47 = vpop.permute.xlu2 %4580  ;;  %v16407_v37 = vpop.permute.xlu1 %4196  ;;  %v2071_v33 = vmul.f32 %v13871_v61, %v20007_v56  ;;  %v20009_v55 = vld [vmem:[#allocation195_spill] sm:$0xff]  ;;  %v2087_v39 = vadd.f32 %v2063_v11, %v1890_v62  ;;  %v1903_v19 = vadd.f32 %v1879_v54, %v1706_v1  ;;  %v2090_v9 = vadd.f32 %v2066_v45, %v1893_v28  ;;  %v20015_v1 = vld [vmem:[#allocation234_spill] sm:$0xff] }
 0x56e   : > { %19997 = vst [vmem:[#allocation334_spill] sm:$0xff] %v16405_v47  ;;  %v16410_v42 = vpop.permute.xlu0 %4191  ;;  %v5512_v10 = vpack.c.b16 %v5490_v27, %v5489_v4  ;;  %v1901_v52 = vadd.f32 %v1877_v34, %v1704_v24  ;;  %v2074_v47 = vmul.f32 %v13871_v61, %v20008_v58  ;;  %v2073_v5 = vmul.f32 %v13871_v61, %v20009_v55  ;;  %v13872_v24 = vld [vmem:[%s19385_s1 + $0x9] ss:$0 sm:$0xff]  ;;  %v20010_v27 = vld [vmem:[#allocation196_spill] sm:$0xff] }
 0x56f   : > { %v2260_v34 = vmul.f32 %v13872_v24, %v20010_v27  ;;  %v20011_v4 = vld [vmem:[#allocation198_spill] sm:$0xff]  ;;  %v2096_v29 = vadd.f32 %v2072_v59, %v1899_v26  ;;  %v2261_v56 = vmul.f32 %v13872_v24, %v20012_v14  ;;  %v2099_v62 = vadd.f32 %v2075_v2, %v1902_v50  ;;  %v20016_v59 = vld [vmem:[#allocation205_spill] sm:$0xff]  ;;  %v20017_v50 = vld [vmem:[#allocation208_spill] sm:$0xff] }
 0x570   : > { %v2076_v13 = vmul.f32 %v13871_v61, %v20011_v4  ;;  %v2089_v12 = vadd.f32 %v2065_v63, %v1892_v18  ;;  %v2088_v11 = vadd.f32 %v2064_v36, %v1891_v0  ;;  %v2095_v61 = vadd.f32 %v2071_v33, %v1898_v43  ;;  %v13873_v26 = vld [vmem:[%s19385_s1 + $0xa] ss:$0 sm:$0xff]  ;;  %v16452_v0 = vld [vmem:[%s14115_s25 + $0x90] sm:$0xff]  ;;  %v20018_v2 = vld [vmem:[#allocation209_spill] sm:$0xff] }
 0x571   : > { %v2098_v27 = vadd.f32 %v2074_v47, %v1901_v52  ;;  %v2097_v4 = vadd.f32 %v2073_v5, %v1900_v15  ;;  %v2458_v28 = vmul.f32 %v13873_v26, %v20015_v1  ;;  %v2284_v54 = vadd.f32 %v2260_v34, %v2087_v39  ;;  %v20019_v43 = vld [vmem:[#allocation215_spill] sm:$0xff]  ;;  %v16459_v52 = vld [vmem:[%s19385_s1 + $0xb] ss:$0 sm:$0xff] }
 0x572   : > { %v2100_v45 = vadd.f32 %v2076_v13, %v1903_v19  ;;  %v2269_v14 = vmul.f32 %v13872_v24, %v20016_v59  ;;  %v2272_v18 = vmul.f32 %v13872_v24, %v20017_v50  ;;  %v2262_v63 = vmul.f32 %v13872_v24, %v20018_v2  ;;  %v20020_v33 = vld [vmem:[#allocation258_spill] sm:$0xff]  ;;  %v20022_v13 = vld [vmem:[#allocation219_spill] sm:$0xff] }
 0x573   : > { %5523 = vrot.lane.b32.xlu1 %v5511_v46, %s14007_s14  ;;  %5525 = vrot.lane.b32.xlu2 %v5512_v10, %s14007_s14  ;;  %v20013_v10 = vld [vmem:[#allocation199_spill] sm:$0xff]  ;;  %v2285_v36 = vadd.f32 %v2261_v56, %v2088_v11  ;;  %v2268_v47 = vmul.f32 %v13872_v24, %v20019_v43  ;;  %v2655_v5 = vmul.f32 %v16459_v52, %v20020_v33  ;;  %v20021_v39 = vld [vmem:[#allocation218_spill] sm:$0xff] }
 0x574   : > { %5181 = vperm.xlu0 %13831, %v16421_v41   ;;  %v2263_v58 = vmul.f32 %v13872_v24, %v20013_v10  ;;  %v2271_v34 = vmul.f32 %v13872_v24, %v20021_v39  ;;  %v2270_v19 = vmul.f32 %v13872_v24, %v20022_v13  ;;  %v20023_v10 = vld [vmem:[#allocation220_spill] sm:$0xff]  ;;  %v20024_v59 = vld [vmem:[#allocation222_spill] sm:$0xff]  ;;  %v20026_v33 = vld [vmem:[#allocation223_spill] sm:$0xff] }
 0x575   : > { %v16438_v46 = vpop.permute.xlu2 %3216  ;;  %v16440_v31 = vpop.permute.xlu1 %4732  ;;  %v2457_v1 = vmul.f32 %v13873_v26, %v20023_v10  ;;  %v2273_v50 = vmul.f32 %v13872_v24, %v20024_v59  ;;  %v2482_v56 = vadd.f32 %v2458_v28, %v2285_v36  ;;  %v16470_v11 = vld [vmem:[%s19385_s1 + $0xc] ss:$0 sm:$0xff]  ;;  %v2460_v39 = vmul.f32 %v13873_v26, %v20026_v33  ;;  %v20027_v13 = vld [vmem:[#allocation229_spill] sm:$0xff]  ;;  %v16482_v59 = vld [vmem:[%s19385_s1 + $0xd] ss:$0 sm:$0xff] }
 0x576   : > { %v16443_v55 = vpop.permute.xlu0 %4383  ;;  %v2287_v15 = vadd.f32 %v2263_v58, %v2090_v9  ;;  %v20025_v2 = vld [vmem:[#allocation282_spill] sm:$0xff]  ;;  %v2293_v9 = vadd.f32 %v2269_v14, %v2096_v29  ;;  %v2296_v58 = vadd.f32 %v2272_v18, %v2099_v62  ;;  %v2466_v10 = vmul.f32 %v13873_v26, %v20027_v13  ;;  %v20031_v18 = vld [vmem:[#allocation232_spill] sm:$0xff] }
 0x577   : > { %20014 = vst [vmem:[#allocation341_spill] sm:$0xff] %v16443_v55  ;;  %v2852_v43 = vmul.f32 %v16470_v11, %v20025_v2  ;;  %v2286_v24 = vadd.f32 %v2262_v63, %v2089_v12  ;;  %v2292_v28 = vadd.f32 %v2268_v47, %v2095_v61  ;;  %v2679_v36 = vadd.f32 %v2655_v5, %v2482_v56  ;;  %v20028_v2 = vld [vmem:[#allocation305_spill] sm:$0xff]  ;;  %v16497_v56 = vld [vmem:[%s19385_s1 + $0xe] ss:$0 sm:$0xff]  ;;  %v20033_v13 = vld [vmem:[#allocation324_spill] sm:$0xff] }
 0x578   : > { %v2295_v62 = vadd.f32 %v2271_v34, %v2098_v27  ;;  %v2294_v14 = vadd.f32 %v2270_v19, %v2097_v4  ;;  %v2469_v33 = vmul.f32 %v13873_v26, %v20031_v18  ;;  %v2481_v63 = vadd.f32 %v2457_v1, %v2284_v54  ;;  %v20034_v34 = vld [vmem:[#allocation239_spill] sm:$0xff]  ;;  %v20035_v18 = vld [vmem:[#allocation242_spill] sm:$0xff] }
 0x579   : > { %v2297_v47 = vadd.f32 %v2273_v50, %v2100_v45  ;;  %v2876_v5 = vadd.f32 %v2852_v43, %v2679_v36  ;;  %v2484_v27 = vadd.f32 %v2460_v39, %v2287_v15  ;;  %v2490_v4 = vadd.f32 %v2466_v10, %v2293_v9  ;;  %v16509_v1 = vld [vmem:[%s19385_s1 + $0xf] ss:$0 sm:$0xff]  ;;  %v16514_v15 = vld [vmem:[%s14115_s25 + $0x98] sm:$0xff]  ;;  %v20038_v39 = vld [vmem:[#allocation246_spill] sm:$0xff] }
 0x57a   : > { %v2465_v19 = vmul.f32 %v13873_v26, %v20034_v34  ;;  %v3443_v50 = vmul.f32 %v16509_v1, %v16139_v51  ;;  %v2493_v43 = vadd.f32 %v2469_v33, %v2296_v58  ;;  %v2470_v10 = vmul.f32 %v13873_v26, %v20038_v39  ;;  %v20039_v36 = vld [vmem:[#allocation247_spill] sm:$0xff]  ;;  %v20042_v58 = vld [vmem:[#allocation257_spill] sm:$0xff] }
 0x57b   : > { %4009 = vperm.xlu1 %13832, %v16328_v30   ;;  %4348 = vperm.xlu2 %13833, %v16452_v0   ;;  %v3049_v30 = vmul.f32 %v16482_v59, %v20028_v2  ;;  %v3246_v2 = vmul.f32 %v16497_v56, %v20033_v13  ;;  %v20040_v13 = vld [vmem:[#allocation253_spill] sm:$0xff] }
 0x57c   : > { %4004 = vperm.xlu0 %13831, %v16335_v3   ;;  %v20032_v3 = vld [vmem:[#allocation233_spill] sm:$0xff]  ;;  %v2489_v51 = vadd.f32 %v2465_v19, %v2292_v28 }
 0x57d   : > { %v16486_v55 = vpop.permute.xlu2 %3565  ;;  %v16488_v29 = vpop.permute.xlu1 %3368  ;;  %v2459_v12 = vmul.f32 %v13873_v26, %v20032_v3  ;;  %v2468_v3 = vmul.f32 %v13873_v26, %v20035_v18  ;;  %v3073_v45 = vadd.f32 %v3049_v30, %v2876_v5  ;;  %v2663_v30 = vmul.f32 %v16459_v52, %v20040_v13 }
 0x57e   : > { %20029 = vst [vmem:[#allocation333_spill] sm:$0xff] %v16486_v55  ;;  %v16492_v61 = vpop.permute.xlu0 %3363  ;;  %v20036_v55 = vld [vmem:[#allocation243_spill] sm:$0xff] }
 0x57f   : > { %20030 = vst [vmem:[#allocation331_spill] sm:$0xff] %v16488_v29  ;;  %v2467_v57 = vmul.f32 %v13873_v26, %v20036_v55  ;;  %v20037_v29 = vld [vmem:[#allocation244_spill] sm:$0xff]  ;;  %v2483_v9 = vadd.f32 %v2459_v12, %v2286_v24  ;;  %v2657_v55 = vmul.f32 %v16459_v52, %v20039_v36  ;;  %v3270_v34 = vadd.f32 %v3246_v2, %v3073_v45  ;;  %v20043_v26 = vld [vmem:[#allocation263_spill] sm:$0xff]  ;;  %v20044_v36 = vld [vmem:[#allocation266_spill] sm:$0xff] }
 0x580   : > { %v2654_v54 = vmul.f32 %v16459_v52, %v20037_v29  ;;  %v20041_v29 = vld [vmem:[#allocation256_spill] sm:$0xff]  ;;  %v2492_v18 = vadd.f32 %v2468_v3, %v2295_v62  ;;  %v2656_v24 = vmul.f32 %v16459_v52, %v20042_v58  ;;  %v2662_v33 = vmul.f32 %v16459_v52, %v20043_v26  ;;  %v20047_v62 = vld [vmem:[#allocation267_spill] sm:$0xff] }
 0x581   : > { %v2666_v5 = vmul.f32 %v16459_v52, %v20041_v29  ;;  %v2491_v12 = vadd.f32 %v2467_v57, %v2294_v14  ;;  %v2665_v13 = vmul.f32 %v16459_v52, %v20044_v36  ;;  %v3467_v2 = vadd.f32 %v3443_v50, %v3270_v34  ;;  %v20048_v3 = vld [vmem:[#allocation268_spill] sm:$0xff]  ;;  %v16547_v34 = vld [vmem:[%s19385_s1 + $0x10] ss:$0 sm:$0xff] }
 0x582   : > { %v2678_v39 = vadd.f32 %v2654_v54, %v2481_v63  ;;  %v2681_v28 = vadd.f32 %v2657_v55, %v2484_v27  ;;  %v2664_v19 = vmul.f32 %v16459_v52, %v20047_v62  ;;  %v2851_v29 = vmul.f32 %v16470_v11, %v20048_v3  ;;  %v20049_v54 = vld [vmem:[#allocation270_spill] sm:$0xff]  ;;  %v20050_v55 = vld [vmem:[#allocation271_spill] sm:$0xff]  ;;  %v20051_v26 = vld [vmem:[#allocation292_spill] sm:$0xff] }
 0x583   : > { %4201 = vperm.xlu1 %13832, %v16389_v35   ;;  %4206 = vperm.xlu2 %13833, %v16421_v41   ;;  %v2494_v41 = vadd.f32 %v2470_v10, %v2297_v47  ;;  %v2687_v14 = vadd.f32 %v2663_v30, %v2490_v4  ;;  %v2690_v63 = vadd.f32 %v2666_v5, %v2493_v43  ;;  %v16558_v43 = vld [vmem:[%s14115_s25 + $0x99] sm:$0xff] }
 0x584   : > { %4353 = vperm.xlu0 %13831, %v16514_v15   ;;  %v2667_v50 = vmul.f32 %v16459_v52, %v20049_v54  ;;  %v3640_v47 = vmul.f32 %v16547_v34, %v16093_v49  ;;  %v2680_v27 = vadd.f32 %v2656_v24, %v2483_v9  ;;  %v16551_v10 = vadd.f32 %v2662_v33, %v2489_v51  ;;  %v4290_v52 = vld [vmem:[%s14115_s25 + $0xe0] sm:$0xff]  ;;  %v20053_v62 = vld [vmem:[#allocation280_spill] sm:$0xff] }
 0x585   : > { %v16532_v45 = vpop.permute.xlu2 %4772  ;;  %v16534_v35 = vpop.permute.xlu1 %4575  ;;  %v2854_v58 = vmul.f32 %v16470_v11, %v20050_v55  ;;  %v2862_v4 = vmul.f32 %v16470_v11, %v20051_v26  ;;  %v2689_v30 = vadd.f32 %v2665_v13, %v2492_v18  ;;  %v20052_v5 = vld [vmem:[#allocation277_spill] sm:$0xff]  ;;  %v2863_v3 = vmul.f32 %v16470_v11, %v20053_v62  ;;  %v16566_v9 = vld [vmem:[%s14115_s25 + $0x91] sm:$0xff] }
 0x586   : > { %20045 = vst [vmem:[#allocation335_spill] sm:$0xff] %v16532_v45  ;;  %v16540_v57 = vpop.permute.xlu0 %4393  ;;  %v2860_v36 = vmul.f32 %v16470_v11, %v20052_v5  ;;  %v3664_v49 = vadd.f32 %v3640_v47, %v3467_v2  ;;  %v2688_v51 = vadd.f32 %v2664_v19, %v2491_v12  ;;  %v2875_v24 = vadd.f32 %v2851_v29, %v2678_v39  ;;  %v20054_v33 = vld [vmem:[#allocation281_spill] sm:$0xff]  ;;  %v20055_v55 = vld [vmem:[#allocation312_spill] sm:$0xff]  ;;  %v16577_v18 = vld [vmem:[%s19385_s1 + $0x11] ss:$0 sm:$0xff] }
 0x587   : > { %20046 = vst [vmem:[#allocation340_spill] sm:$0xff] %v16534_v35  ;;  %v2853_v54 = vmul.f32 %v16470_v11, %v20054_v33  ;;  %v3059_v26 = vmul.f32 %v16482_v59, %v20055_v55  ;;  %v16572_v45 = vadd.f32 %v2667_v50, %v2494_v41  ;;  %v3837_v13 = vmul.f32 %v16577_v18, %v16137_v22  ;;  %v16584_v12 = vld [vmem:[%s19385_s1 + $0x12] ss:$0 sm:$0xff]  ;;  %v20056_v19 = vld [vmem:[#allocation294_spill] sm:$0xff]  ;;  %v20057_v50 = vld [vmem:[#allocation329_spill] sm:$0xff] }
 0x588   : > { %v4034_v39 = vmul.f32 %v16584_v12, %v16179_v38  ;;  %v16589_v2 = vadd.f32 %v2854_v58, %v2681_v28  ;;  %v2886_v41 = vadd.f32 %v2862_v4, %v2689_v30  ;;  %v3048_v29 = vmul.f32 %v16482_v59, %v20056_v19  ;;  %v16603_v38 = vld [vmem:[%s19385_s1 + $0x13] ss:$0 sm:$0xff]  ;;  %v20058_v30 = vld [vmem:[#allocation304_spill] sm:$0xff]  ;;  %v20060_v33 = vld [vmem:[#allocation289_spill] sm:$0xff] }
 0x589   : > { %v3256_v22 = vmul.f32 %v16497_v56, %v20057_v50  ;;  %v16596_v47 = vadd.f32 %v2860_v36, %v2687_v14  ;;  %v16598_v5 = vadd.f32 %v2863_v3, %v2690_v63  ;;  %v3861_v62 = vadd.f32 %v3837_v13, %v3664_v49  ;;  %v20059_v36 = vld [vmem:[#allocation314_spill] sm:$0xff]  ;;  %v20062_v50 = vld [vmem:[#allocation323_spill] sm:$0xff] }
 0x58a   : > { %v4231_v28 = vmul.f32 %v16603_v38, %v16208_v48  ;;  %v3050_v14 = vmul.f32 %v16482_v59, %v20058_v30  ;;  %v3083_v63 = vadd.f32 %v3059_v26, %v2886_v41  ;;  %v3245_v3 = vmul.f32 %v16497_v56, %v20059_v36  ;;  %v20061_v26 = vld [vmem:[#allocation293_spill] sm:$0xff] }
 0x58b   : > { %4550 = vperm.xlu1 %13832, %v16558_v43   ;;  %4398 = vperm.xlu2 %13833, %v4290_v52   ;;  %v2877_v52 = vadd.f32 %v2853_v54, %v2680_v27  ;;  %v2859_v55 = vmul.f32 %v16470_v11, %v20060_v33  ;;  %v4058_v48 = vadd.f32 %v4034_v39, %v3861_v62  ;;  %v16622_v27 = vld [vmem:[%s19385_s1 + $0x14] ss:$0 sm:$0xff]  ;;  %v16634_v62 = vld [vmem:[%s14115_s25 + $0x9a] sm:$0xff] }
 0x58c   : > { %4545 = vperm.xlu0 %13831, %v16566_v9   ;;  %v3453_v13 = vmul.f32 %v16509_v1, %v16210_v53  ;;  %v4428_v54 = vmul.f32 %v16622_v27, %v16232_v7  ;;  %v2861_v41 = vmul.f32 %v16470_v11, %v20061_v26  ;;  %v3072_v19 = vadd.f32 %v3048_v29, %v2875_v24  ;;  %v16631_v39 = vld [vmem:[%s14115_s25 + $0x92] sm:$0xff]  ;;  %v4291_v29 = vld [vmem:[%s14115_s25 + $0xe8] sm:$0xff] }
 0x58d   : > { %v16607_v58 = vpop.permute.xlu2 %5131  ;;  %v4935_v4 = vpop.permute.xlu1 %4934  ;;  %v3247_v30 = vmul.f32 %v16497_v56, %v20062_v50  ;;  %v3280_v36 = vadd.f32 %v3256_v22, %v3083_v63  ;;  %v3442_v53 = vmul.f32 %v16509_v1, %v16141_v21  ;;  %v4255_v33 = vadd.f32 %v4231_v28, %v4058_v48  ;;  %v16643_v7 = vld [vmem:[%s19385_s1 + $0x15] ss:$0 sm:$0xff] }
 0x58e   : > { %v16613_v49 = vpop.permute.xlu0 %4929  ;;  %v3650_v35 = vmul.f32 %v16547_v34, %v16234_v8  ;;  %v4625_v24 = vmul.f32 %v16643_v7, %v16287_v23  ;;  %v3074_v22 = vadd.f32 %v3050_v14, %v2877_v52  ;;  %v3269_v63 = vadd.f32 %v3245_v3, %v3072_v19 }
 0x58f   : > { %v3639_v26 = vmul.f32 %v16547_v34, %v16160_v16  ;;  %v3444_v21 = vmul.f32 %v16509_v1, %v16492_v61  ;;  %v3477_v28 = vadd.f32 %v3453_v13, %v3280_v36  ;;  %v4452_v48 = vadd.f32 %v4428_v54, %v4255_v33  ;;  %v16662_v16 = vld [vmem:[%s19385_s1 + $0x16] ss:$0 sm:$0xff] }
 0x590   : > { %v3847_v8 = vmul.f32 %v16577_v18, %v16289_v25  ;;  %v2883_v23 = vadd.f32 %v2859_v55, %v16551_v10  ;;  %v16657_v50 = vadd.f32 %v2861_v41, %v2688_v51  ;;  %v3271_v52 = vadd.f32 %v3247_v30, %v3074_v22  ;;  %v16673_v41 = vld [vmem:[%s19385_s1 + $0x17] ss:$0 sm:$0xff] }
 0x591   : > { %v4822_v61 = vmul.f32 %v16662_v16, %v16351_v32  ;;  %v3466_v14 = vadd.f32 %v3442_v53, %v3269_v63  ;;  %v3836_v25 = vmul.f32 %v16577_v18, %v16196_v44  ;;  %v3674_v3 = vadd.f32 %v3650_v35, %v3477_v28  ;;  %v20063_v44 = vld [vmem:[#allocation296_spill] sm:$0xff]  ;;  %v20064_v63 = vld [vmem:[#allocation297_spill] sm:$0xff] }
 0x592   : > { %v4649_v13 = vadd.f32 %v4625_v24, %v4452_v48  ;;  %v4044_v51 = vmul.f32 %v16584_v12, %v16353_v20  ;;  %v3468_v55 = vadd.f32 %v3444_v21, %v3271_v52  ;;  %v5019_v32 = vmul.f32 %v16673_v41, %v4935_v4  ;;  %v4487_v4 = vld [vmem:[%s14115_s25 + $0xe1] sm:$0xff]  ;;  %v20065_v28 = vld [vmem:[#allocation300_spill] sm:$0xff] }
 0x593   : > { %4742 = vperm.xlu1 %13832, %v16631_v39   ;;  %4747 = vperm.xlu2 %13833, %v16634_v62   ;;  %v2864_v35 = vmul.f32 %v16470_v11, %v20063_v44  ;;  %v3663_v36 = vadd.f32 %v3639_v26, %v3466_v14  ;;  %v4033_v53 = vmul.f32 %v16584_v12, %v16225_v60 }
 0x594   : > { %4403 = vperm.xlu0 %13831, %v4291_v29   ;;  %v3871_v20 = vadd.f32 %v3847_v8, %v3674_v3  ;;  %v4846_v33 = vadd.f32 %v4822_v61, %v4649_v13  ;;  %v4241_v24 = vmul.f32 %v16603_v38, %v16407_v37  ;;  %v3051_v21 = vmul.f32 %v16482_v59, %v20064_v63  ;;  %v20066_v61 = vld [vmem:[#allocation303_spill] sm:$0xff]  ;;  %v20067_v3 = vld [vmem:[#allocation309_spill] sm:$0xff] }
 0x595   : > { %v3758_v54 = vpop.permute.xlu2 %3757  ;;  %v3561_v10 = vpop.permute.xlu1 %3560  ;;  %v3057_v48 = vmul.f32 %v16482_v59, %v20065_v28  ;;  %v3860_v11 = vadd.f32 %v3836_v25, %v3663_v36  ;;  %v4230_v26 = vmul.f32 %v16603_v38, %v16249_v6  ;;  %v4438_v8 = vmul.f32 %v16622_v27, %v16540_v57  ;;  %v20068_v6 = vld [vmem:[#allocation276_spill] sm:$0xff] }
 0x596   : > { %v3641_v19 = vmul.f32 %v16547_v34, %v3561_v10  ;;  %v16677_v30 = vpop.permute.xlu0 %3221  ;;  %v3838_v29 = vmul.f32 %v16577_v18, %v3758_v54  ;;  %v4068_v60 = vadd.f32 %v4044_v51, %v3871_v20  ;;  %v5043_v52 = vadd.f32 %v5019_v32, %v4846_v33  ;;  %v16710_v51 = vld [vmem:[%s19385_s1 + $0x18] ss:$0 sm:$0xff] }
 0x597   : > { %v3060_v14 = vmul.f32 %v16482_v59, %v20066_v61  ;;  %v3056_v13 = vmul.f32 %v16482_v59, %v20067_v3  ;;  %v4057_v54 = vadd.f32 %v4033_v53, %v3860_v11  ;;  %v16703_v25 = vadd.f32 %v2864_v35, %v16572_v45  ;;  %v16738_v11 = vld [vmem:[%s14115_s25 + $0x93] sm:$0xff]  ;;  %v4488_v3 = vld [vmem:[%s14115_s25 + $0xe9] sm:$0xff] }
 0x598   : > { %v3665_v22 = vadd.f32 %v3641_v19, %v3468_v55  ;;  %v4427_v10 = vmul.f32 %v16622_v27, %v20068_v6  ;;  %v4265_v57 = vadd.f32 %v4241_v24, %v4068_v60  ;;  %v5216_v55 = vmul.f32 %v16710_v51, %v16607_v58  ;;  %v20069_v19 = vld [vmem:[#allocation313_spill] sm:$0xff]  ;;  %v20072_v60 = vld [vmem:[#allocation316_spill] sm:$0xff] }
 0x599   : > { %v3075_v45 = vadd.f32 %v3051_v21, %v16589_v2  ;;  %v3081_v32 = vadd.f32 %v3057_v48, %v16596_v47  ;;  %v3058_v44 = vmul.f32 %v16482_v59, %v20069_v19  ;;  %v4254_v35 = vadd.f32 %v4230_v26, %v4057_v54  ;;  %v16741_v26 = vld [vmem:[%s14115_s25 + $0x9b] sm:$0xff] }
 0x59a   : > { %v16695_v37 = vadd.f32 %v3838_v29, %v3665_v22  ;;  %v4624_v58 = vmul.f32 %v16643_v7, %v16381_v17  ;;  %v5240_v20 = vadd.f32 %v5216_v55, %v5043_v52  ;;  %v16728_v2 = vadd.f32 %v3060_v14, %v16598_v5  ;;  %v20070_v29 = vld [vmem:[#allocation320_spill] sm:$0xff]  ;;  %v20073_v52 = vld [vmem:[#allocation330_spill] sm:$0xff]  ;;  %v16757_v54 = vld [vmem:[%s19386_s2] ss:$0 sm:$0xff] }
 0x59b   : > { %3378 = vperm.xlu1 %13832, %v16514_v15   ;;  %4595 = vperm.xlu2 %13833, %v4487_v4   ;;  %v13427_v15 = vld [vmem:[%s19387_s3 + $0xf8] sm:$0xff]  ;;  %v3080_v47 = vadd.f32 %v3056_v13, %v2883_v23  ;;  %v3254_v22 = vmul.f32 %v16497_v56, %v20070_v29  ;;  %v20071_v4 = vld [vmem:[#allocation327_spill] sm:$0xff]  ;;  %v4451_v21 = vadd.f32 %v4427_v10, %v4254_v35 }
 0x59c   : > { %3373 = vperm.xlu0 %13831, %v16452_v0   ;;  %v4462_v0 = vadd.f32 %v4438_v8, %v4265_v57  ;;  %6444 = vmatpush.bf16.msra.mxu3 %v13427_v15  ;;  %v3253_v63 = vmul.f32 %v16497_v56, %v20071_v4  ;;  %v4821_v17 = vmul.f32 %v16662_v16, %v16440_v31  ;;  %v13426_v5 = vld [vmem:[%s19387_s3 + $0xf0] sm:$0xff]  ;;  %v20075_v10 = vld [vmem:[#allocation317_spill] sm:$0xff]  ;;  %v20076_v15 = vld [vmem:[#allocation262_spill] sm:$0xff] }
 0x59d   : > { %v4788_v36 = vpop.permute.xlu2 %4787  ;;  %v4591_v53 = vpop.permute.xlu1 %4590  ;;  %v3082_v23 = vadd.f32 %v3058_v44, %v16657_v50  ;;  %v3061_v8 = vmul.f32 %v16482_v59, %v20072_v60  ;;  %v3255_v61 = vmul.f32 %v16497_v56, %v20073_v52  ;;  %v20074_v31 = vld [vmem:[#allocation200_spill] sm:$0xff]  ;;  %v4648_v13 = vadd.f32 %v4624_v58, %v4451_v21  ;;  %v20077_v35 = vld [vmem:[#allocation201_spill] sm:$0xff] }
 0x59e   : > { %v4635_v33 = vmul.f32 %v16643_v7, %v4591_v53  ;;  %v16725_v24 = vpop.permute.xlu0 %4585  ;;  %v4832_v28 = vmul.f32 %v16662_v16, %v4788_v36  ;;  %v3450_v14 = vmul.f32 %v16509_v1, %v20074_v31  ;;  %v5268_v6 = vadd.f32 %v16757_v54, %v5240_v20  ;;  %v20078_v53 = vld [vmem:[#allocation225_spill] sm:$0xff]  ;;  %v20080_v4 = vld [vmem:[#allocation288_spill] sm:$0xff] }
 0x59f   : > { %v5018_v50 = vmul.f32 %v16673_v41, %v16613_v49  ;;  %v3248_v57 = vmul.f32 %v16497_v56, %v20075_v10  ;;  %v3277_v55 = vadd.f32 %v3253_v63, %v3080_v47  ;;  %v3452_v19 = vmul.f32 %v16509_v1, %v20076_v15  ;;  %v20079_v47 = vld [vmem:[#allocation224_spill] sm:$0xff]  ;;  %v20081_v21 = vld [vmem:[#allocation249_spill] sm:$0xff] }
 0x5a0   : > { %v4659_v48 = vadd.f32 %v4635_v33, %v4462_v0  ;;  %6445 = vmatpush.bf16.msra.mxu3 %v13426_v5  ;;  %v3278_v44 = vadd.f32 %v3254_v22, %v3081_v32  ;;  %v3647_v36 = vmul.f32 %v16547_v34, %v20077_v35  ;;  %v3451_v49 = vmul.f32 %v16509_v1, %v20078_v53  ;;  %v13425_v0 = vld [vmem:[%s19387_s3 + $0xe8] sm:$0xff]  ;;  %v20082_v31 = vld [vmem:[#allocation228_spill] sm:$0xff]  ;;  %v20083_v53 = vld [vmem:[#allocation273_spill] sm:$0xff] }
 0x5a1   : > { %v4845_v58 = vadd.f32 %v4821_v17, %v4648_v13  ;;  %v3279_v20 = vadd.f32 %v3255_v61, %v3082_v23  ;;  %v3474_v33 = vadd.f32 %v3450_v14, %v3277_v55  ;;  %v3844_v29 = vmul.f32 %v16577_v18, %v20079_v47  ;;  %v4684_v55 = vld [vmem:[%s14115_s25 + $0xe2] sm:$0xff] }
 0x5a2   : > { %v16762_v59 = vadd.f32 %v4832_v28, %v4659_v48  ;;  %v3649_v32 = vmul.f32 %v16547_v34, %v20080_v4  ;;  %v3648_v17 = vmul.f32 %v16547_v34, %v20081_v21  ;;  %v5340_v28 = vsub.f32 0.0, %v5268_v6 }
 0x5a3   : > { %4939 = vperm.xlu1 %13832, %v16738_v11   ;;  %4944 = vperm.xlu2 %13833, %v16741_v26   ;;  %v5042_v48 = vadd.f32 %v5018_v50, %v4845_v58  ;;  %v3085_v23 = vadd.f32 %v3061_v8, %v16703_v25  ;;  %v16789_v52 = vadd.f32 %v3248_v57, %v3075_v45  ;;  %v13424_v50 = vld [vmem:[%s19387_s3 + $0xe0] sm:$0xff]  ;;  %v5292_v15 = vmax.f32 %v5268_v6, 0.0 }
 0x5a4   : > { %4600 = vperm.xlu0 %13831, %v4488_v3   ;;  %6446 = vmatpush.bf16.msra.mxu3 %v13425_v0  ;;  %v3476_v61 = vadd.f32 %v3452_v19, %v3279_v20  ;;  %v3846_v14 = vmul.f32 %v16577_v18, %v20082_v31  ;;  %v3671_v3 = vadd.f32 %v3647_v36, %v3474_v33  ;;  %v5364_v19 = vmax.f32 %v5340_v28, 0.0  ;;  %v13423_v33 = vld [vmem:[%s19387_s3 + $0xd8] sm:$0xff] }
 0x5a5   : > { %v16781_v22 = vpop.permute.xlu2 %3610  ;;  %v5127_v63 = vpop.permute.xlu1 %5126  ;;  %v3475_v13 = vadd.f32 %v3451_v49, %v3278_v44  ;;  %v3845_v58 = vmul.f32 %v16577_v18, %v20083_v53  ;;  %v4043_v25 = vmul.f32 %v16584_v12, %v16355_v40  ;;  %v3258_v45 = vmul.f32 %v16497_v56, %v16677_v30  ;;  %v20084_v40 = vld [vmem:[#allocation248_spill] sm:$0xff] }
 0x5a6   : > { %v5215_v5 = vmul.f32 %v16710_v51, %v5127_v63  ;;  %v16786_v60 = vpop.permute.xlu0 %4777  ;;  %v3673_v35 = vadd.f32 %v3649_v32, %v3476_v61  ;;  %v3868_v8 = vadd.f32 %v3844_v29, %v3671_v3  ;;  %v4240_v6 = vmul.f32 %v16603_v38, %v16410_v42  ;;  %v20085_v42 = vld [vmem:[#allocation337_spill] sm:$0xff]  ;;  %v20086_v61 = vld [vmem:[#allocation331_spill] sm:$0xff]  ;;  %v20088_v53 = vld [vmem:[#allocation332_spill] sm:$0xff] }
 0x5a7   : > { %v3672_v57 = vadd.f32 %v3648_v17, %v3475_v13  ;;  %v3257_v49 = vmul.f32 %v16497_v56, %v16438_v46  ;;  %v4041_v0 = vmul.f32 %v16584_v12, %v20084_v40  ;;  %v5316_v47 = vpack.c.bf16 %v5292_v15, %v5292_v15 }
 0x5a8   : > { %v5239_v10 = vadd.f32 %v5215_v5, %v5042_v48  ;;  %6447 = vmatpush.bf16.msra.mxu3 %v13424_v50  ;;  %v3870_v36 = vadd.f32 %v3846_v14, %v3673_v35  ;;  %v4042_v4 = vmul.f32 %v16584_v12, %v20085_v42  ;;  %v3282_v56 = vadd.f32 %v3258_v45, %v3085_v23  ;;  %v13422_v50 = vld [vmem:[%s19387_s3 + $0xd0] sm:$0xff]  ;;  %v20087_v35 = vld [vmem:[#allocation338_spill] sm:$0xff] }
 0x5a9   : > { %v3869_v29 = vadd.f32 %v3845_v58, %v3672_v57  ;;  %v5388_v28 = vpack.c.bf16 %v5364_v19, %v5364_v19  ;;  %v3281_v5 = vadd.f32 %v3257_v49, %v16728_v2  ;;  %v3445_v31 = vmul.f32 %v16509_v1, %v20086_v61  ;;  %v4685_v45 = vld [vmem:[%s14115_s25 + $0xea] sm:$0xff]  ;;  %v20093_v61 = vld [vmem:[#allocation340_spill] sm:$0xff] }
 0x5aa   : > { %v5267_v44 = vadd.f32 %v16757_v54, %v5239_v10  ;;  %v4067_v46 = vadd.f32 %v4043_v25, %v3870_v36  ;;  %v16825_v10 = vld [vmem:[%s14115_s25 + $0x94] sm:$0xff]  ;;  %v5436_v15 = vunpack.c.l.b16 %v5316_v47  ;;  %v4437_v2 = vmul.f32 %v16622_v27, %v20087_v35 }
 0x5ab   : > { %3575 = vperm.xlu1 %13832, %v16558_v43   ;;  %4792 = vperm.xlu2 %13833, %v4684_v55   ;;  %v16828_v55 = vld [vmem:[%s14115_s25 + $0x9c] sm:$0xff]  ;;  %v4239_v58 = vmul.f32 %v16603_v38, %v20088_v53  ;;  %v4634_v57 = vmul.f32 %v16643_v7, %v16725_v24  ;;  %v3469_v40 = vadd.f32 %v3445_v31, %v16789_v52  ;;  %v13421_v52 = vld [vmem:[%s19387_s3 + $0xc8] sm:$0xff] }
 0x5ac   : > { %v5291_v30 = vmax.f32 %v5267_v44, 0.0  ;;  %v5339_v20 = vsub.f32 0.0, %v5267_v44  ;;  %3570 = vperm.xlu0 %13831, %v16566_v9   ;;  %6448 = vmatpush.bf16.msra.mxu3 %v13423_v33  ;;  %v4264_v48 = vadd.f32 %v4240_v6, %v4067_v46  ;;  %v16844_v44 = vunpack.c.l.b16 %v5388_v28  ;;  %v20089_v6 = vld [vmem:[#allocation272_spill] sm:$0xff] }
 0x5ad   : > { %v3960_v43 = vpop.permute.xlu2 %3959  ;;  %v3419_v32 = vpop.permute.xlu1 %3418  ;;  %v4238_v49 = vmul.f32 %v16603_v38, %v20089_v6  ;;  %v16856_v24 = vld [vmem:[%s19387_s3 + $0x38] sm:$0xff]  ;;  %v4065_v46 = vadd.f32 %v4041_v0, %v3868_v8  ;;  %v4632_v8 = vmul.f32 %v16643_v7, %v20093_v61 }
 0x5ae   : > { %v5315_v63 = vpack.c.bf16 %v5291_v30, %v5291_v30  ;;  %v5363_v21 = vmax.f32 %v5339_v20, 0.0  ;;  %v3455_v17 = vmul.f32 %v16509_v1, %v3419_v32  ;;  %v3414_v9 = vpop.permute.xlu0 %3413  ;;  %v4066_v30 = vadd.f32 %v4042_v4, %v3869_v29  ;;  %v20090_v20 = vld [vmem:[#allocation341_spill] sm:$0xff]  ;;  %6060 = vmatpush.bf16.msra.mxu1 %v16856_v24 }
 0x5af   : > { %v3454_v23 = vmul.f32 %v16509_v1, %v3414_v9  ;;  %v3651_v1 = vmul.f32 %v16547_v34, %v16781_v22  ;;  %v4436_v33 = vmul.f32 %v16622_v27, %v20090_v20  ;;  %v4461_v47 = vadd.f32 %v4437_v2, %v4264_v48 }
 0x5b0   : > { %v5387_v14 = vpack.c.bf16 %v5363_v21, %v5363_v21  ;;  %v5435_v3 = vunpack.c.l.b16 %v5315_v63  ;;  %v16822_v13 = vadd.f32 %v3455_v17, %v3282_v56  ;;  %6449 = vmatpush.bf16.msra.mxu3 %v13422_v50  ;;  %v20091_v56 = vld [vmem:[#allocation252_spill] sm:$0xff]  ;;  %v20092_v63 = vld [vmem:[#allocation333_spill] sm:$0xff]  ;;  %v4263_v17 = vadd.f32 %v4239_v58, %v4066_v30  ;;  %v20094_v58 = vld [vmem:[#allocation334_spill] sm:$0xff] }
 0x5b1   : > { %v3478_v25 = vadd.f32 %v3454_v23, %v3281_v5  ;;  %v4435_v32 = vmul.f32 %v16622_v27, %v20091_v56  ;;  %v3642_v21 = vmul.f32 %v16547_v34, %v20092_v63  ;;  %v4658_v9 = vadd.f32 %v4634_v57, %v4461_v47  ;;  %v16879_v23 = vld [vmem:[%s19387_s3 + $0x30] sm:$0xff]  ;;  %v4881_v50 = vld [vmem:[%s14115_s25 + $0xe3] sm:$0xff] }
 0x5b2   : > { %v16842_v19 = vunpack.c.l.b16 %v5387_v14  ;;  %v16846_v36 = vpack.c.b16 %v5436_v15, %v5435_v3  ;;  %v4262_v5 = vadd.f32 %v4238_v49, %v4065_v46  ;;  %v4460_v14 = vadd.f32 %v4436_v33, %v4263_v17  ;;  %v13420_v15 = vld [vmem:[%s19387_s3 + $0xc0] sm:$0xff]  ;;  %6061 = vmatpush.bf16.msra.mxu1 %v16879_v23  ;;  %v16903_v49 = vld [vmem:[%s19387_s3 + $0x28] sm:$0xff]  ;;  %v20096_v56 = vld [vmem:[#allocation156_spill] sm:$0xff] }
 0x5b3   : > { %5136 = vperm.xlu1 %13832, %v16825_v10   ;;  %5141 = vperm.xlu2 %13833, %v16828_v55   ;;  %v16858_v22 = vadd.f32 %v3651_v1, %v3478_v25  ;;  %v3666_v0 = vadd.f32 %v3642_v21, %v3469_v40  ;;  %v4036_v2 = vmul.f32 %v16584_v12, %v3960_v43  ;;  %v4882_v17 = vld [vmem:[%s14115_s25 + $0xeb] sm:$0xff] }
 0x5b4   : > { %4797 = vperm.xlu0 %13831, %v4685_v45   ;;  %6450 = vmatpush.bf16.msra.mxu3 %v13421_v52  ;;  %v4459_v35 = vadd.f32 %v4435_v32, %v4262_v5  ;;  %v4633_v1 = vmul.f32 %v16643_v7, %v20094_v58  ;;  %v4830_v25 = vmul.f32 %v16662_v16, %v16786_v60  ;;  %v13401_v45 = vld [vmem:[%s19387_s3 + $0x78] sm:$0xff]  ;;  %v20095_v60 = vld [vmem:[#allocation335_spill] sm:$0xff]  ;;  %v5335_v32 = vsub.f32 0.0, %v20096_v56 }
 0x5b5   : > { %v5167_v29 = vpop.permute.xlu2 %5166  ;;  %v4783_v4 = vpop.permute.xlu1 %4782  ;;  %5943 = vmatpush.bf16.msra.mxu0 %v13401_v45  ;;  %v4829_v40 = vmul.f32 %v16662_v16, %v20095_v60  ;;  %13773 = vmatpush.bf16.msra.mxu2 %v13401_v45 }
 0x5b6   : > { %v4831_v28 = vmul.f32 %v16662_v16, %v4783_v4  ;;  %v3763_v48 = vpop.permute.xlu0 %3762  ;;  %v4656_v57 = vadd.f32 %v4632_v8, %v4459_v35  ;;  %v4657_v43 = vadd.f32 %v4633_v1, %v4460_v14  ;;  %6062 = vmatpush.bf16.msra.mxu1 %v16903_v49  ;;  %v16916_v16 = vld [vmem:[%s19387_s3 + $0x20] sm:$0xff]  ;;  %v5223_v21 = vmul.f32 %v16710_v51, %v5167_v29  ;;  %v16933_v29 = vld [vmem:[%s19387_s3 + $0x18] sm:$0xff] }
 0x5b7   : > { %v3839_v31 = vmul.f32 %v16577_v18, %v3763_v48  ;;  %v13399_v48 = vld [vmem:[%s19387_s3 + $0x68] sm:$0xff]  ;;  %v5359_v61 = vmax.f32 %v5335_v32, 0.0  ;;  %v16982_v32 = vld [vmem:[%s14115_s25 + $0xa0] sm:$0xff] }
 0x5b8   : > { %v16881_v3 = vadd.f32 %v4831_v28, %v4658_v9  ;;  %6451 = vmatpush.bf16.msra.mxu3 %v13420_v15  ;;  %v4853_v52 = vadd.f32 %v4829_v40, %v4656_v57  ;;  %v20097_v9 = vld [vmem:[#allocation176_spill] sm:$0xff] }
 0x5b9   : > { %v3863_v53 = vadd.f32 %v3839_v31, %v3666_v0  ;;  %v5336_v28 = vsub.f32 0.0, %v20097_v9  ;;  %v16944_v15 = vld [vmem:[%s19387_s3 + $0x10] sm:$0xff]  ;;  %v5383_v35 = vpack.c.bf16 %v5359_v61, %v5359_v61 }
 0x5ba   : > { %6063 = vmatpush.bf16.msra.mxu1 %v16916_v16 }
 0x5bb   : > { %3772 = vperm.xlu1 %13832, %v16634_v62   ;;  %4989 = vperm.xlu2 %13833, %v4881_v50   ;;  %v16897_v6 = vadd.f32 %v4036_v2, %v3863_v53  ;;  %v4854_v62 = vadd.f32 %v4830_v25, %v4657_v43  ;;  %v5360_v31 = vmax.f32 %v5336_v28, 0.0  ;;  %v5079_v53 = vld [vmem:[%s14115_s25 + $0xec] sm:$0xff]  ;;  %v5078_v25 = vld [vmem:[%s14115_s25 + $0xe4] sm:$0xff] }
 0x5bc   : > { %3767 = vperm.xlu0 %13831, %v16631_v39   ;;  %v13400_v39 = vld [vmem:[%s19387_s3 + $0x70] sm:$0xff] }
 0x5bd   : > { %v3813_v30 = vpop.permute.xlu2 %3812  ;;  %v4975_v20 = vpop.permute.xlu1 %4974  ;;  %5944 = vmatpush.bf16.msra.mxu0 %v13400_v39  ;;  %13774 = vmatpush.bf16.msra.mxu2 %v13400_v39  ;;  %v5384_v45 = vpack.c.bf16 %v5360_v31, %v5360_v31  ;;  %v13394_v31 = vld [vmem:[%s19387_s3 + $0x40] sm:$0xff] }
 0x5be   : > { %v5027_v33 = vmul.f32 %v16673_v41, %v4975_v20  ;;  %v4970_v47 = vpop.permute.xlu0 %4969  ;;  %6064 = vmatpush.bf16.msra.mxu1 %v16933_v29  ;;  %v3849_v58 = vmul.f32 %v16577_v18, %v3813_v30  ;;  %v20098_v30 = vld [vmem:[#allocation190_spill] sm:$0xff] }
 0x5bf   : > { %v5026_v46 = vmul.f32 %v16673_v41, %v4970_v47 }
 0x5c0   : > { %v16919_v63 = vadd.f32 %v5027_v33, %v4854_v62  ;;  %v5492_v62 = vunpack.c.l.b16 %v5384_v45  ;;  %v13396_v33 = vld [vmem:[%s19387_s3 + $0x50] sm:$0xff] }
 0x5c1   : > { %v5050_v4 = vadd.f32 %v5026_v46, %v4853_v52  ;;  %5945 = vmatpush.bf16.msra.mxu0 %v13399_v48  ;;  %13775 = vmatpush.bf16.msra.mxu2 %v13399_v48  ;;  %v16976_v46 = vld [vmem:[%s19387_s3] sm:$0xff] }
 0x5c2   : > { %6065 = vmatpush.bf16.msra.mxu1 %v16944_v15 }
 0x5c3   : > { %v5247_v5 = vadd.f32 %v5223_v21, %v5050_v4  ;;  %3964 = vperm.xlu1 %13832, %v16738_v11   ;;  %3969 = vperm.xlu2 %13833, %v16741_v26   ;;  %v13398_v11 = vld [vmem:[%s19387_s3 + $0x60] sm:$0xff] }
 0x5c4   : > { %4994 = vperm.xlu0 %13831, %v4882_v17  }
 0x5c5   : > { %v5177_v8 = vpop.permute.xlu2 %5176  ;;  %v3955_v0 = vpop.permute.xlu1 %3954  ;;  %5946 = vmatpush.bf16.msra.mxu0 %v13398_v11  ;;  %13776 = vmatpush.bf16.msra.mxu2 %v13398_v11 }
 0x5c6   : > { %v4035_v14 = vmul.f32 %v16584_v12, %v3955_v0  ;;  %v3616_v50 = vpop.permute.xlu0 %3615  ;;  %v5225_v4 = vmul.f32 %v16710_v51, %v5177_v8 }
 0x5c7   : > { %v3652_v26 = vmul.f32 %v16547_v34, %v3616_v50  ;;  %v13397_v34 = vld [vmem:[%s19387_s3 + $0x58] sm:$0xff] }
 0x5c8   : > { %v16947_v2 = vadd.f32 %v4035_v14, %v16695_v37  ;;  %v16961_v37 = vld [vmem:[%s19387_s3 + $0x8] sm:$0xff] }
 0x5c9   : > { %v3676_v1 = vadd.f32 %v3652_v26, %v16822_v13  ;;  %v5491_v13 = vunpack.c.l.b16 %v5383_v35  ;;  %5947 = vmatpush.bf16.msra.mxu0 %v13397_v34  ;;  %13777 = vmatpush.bf16.msra.mxu2 %v13397_v34  ;;  %v17006_v26 = vld [vmem:[%s14115_s25 + $0xa1] sm:$0xff] }
 0x5ca   : > { %6066 = vmatpush.bf16.msra.mxu1 %v16961_v37 }
 0x5cb   : > { %5191 = vperm.xlu1 %13832, %v5079_v53   ;;  %4161 = vperm.xlu2 %13833, %v16825_v10   ;;  %v16963_v57 = vadd.f32 %v3849_v58, %v3676_v1  ;;  %v5513_v21 = vpack.c.b16 %v5492_v62, %v5491_v13  ;;  %v4283_v53 = vld [vmem:[%s14115_s25 + $0xa8] sm:$0xff] }
 0x5cc   : > { %5186 = vperm.xlu0 %13831, %v5078_v25  }
 0x5cd   : > { %v4985_v43 = vpop.permute.xlu1 %4984  ;;  %v5526_v60 = vpop.permute.xlu2 %5525  ;;  %5948 = vmatpush.bf16.msra.mxu0 %v13396_v33  ;;  %13778 = vmatpush.bf16.msra.mxu2 %v13396_v33 }
 0x5ce   : > { %v5029_v40 = vmul.f32 %v16673_v41, %v4985_v43  ;;  %v5553_v10 = vsel %vm5547_vm0, %v20098_v30, %v5526_v60  ;;  %v4980_v20 = vpop.permute.xlu0 %4979  ;;  %6067 = vmatpush.bf16.msra.mxu1 %v16976_v46  ;;  %v17019_v30 = vld [vmem:[%s14115_s25 + $0xaa] sm:$0xff] }
 0x5cf   : > { %v5598_v47 = vunpack.c.l.b16 %v5553_v10  ;;  %v5599_v39 = vunpack.c.h.b16 %v5553_v10  ;;  %v5028_v52 = vmul.f32 %v16673_v41, %v4980_v20  ;;  %v5275_v41 = vadd.f32 %v16757_v54, %v5247_v5 }
 0x5d0   : > { %v16979_v56 = vadd.f32 %v5029_v40, %v16762_v59  ;;  %v13395_v59 = vld [vmem:[%s19387_s3 + $0x48] sm:$0xff] }
 0x5d1   : > { %v5622_v17 = vpack.c.b16 %v5598_v47, %v5598_v47  ;;  %v5623_v9 = vpack.c.b16 %v5599_v39, %v5599_v39  ;;  %v5052_v28 = vadd.f32 %v5028_v52, %v16881_v3  ;;  %5949 = vmatpush.bf16.msra.mxu0 %v13395_v59  ;;  %13779 = vmatpush.bf16.msra.mxu2 %v13395_v59  ;;  %v5347_v61 = vsub.f32 0.0, %v5275_v41  ;;  %v17024_v39 = vld [vmem:[%s14115_s25 + $0xa2] sm:$0xff] }
 0x5d2   : > { %v5299_v50 = vmax.f32 %v5275_v41, 0.0 }
 0x5d3   : > { %5670 = vst [vmem:[#allocation2 + $0x8] sm:$0xf] %v5622_v17  ;;  %v5249_v48 = vadd.f32 %v5225_v4, %v5052_v28  ;;  %4358 = vperm.xlu2 %13833, %v16982_v32   ;;  %5527 = vrot.lane.b32.xlu1 %v5513_v21, %s14007_s14  ;;  %v20099_v28 = vld [vmem:[#allocation153_spill] sm:$0xff] }
 0x5d4   : > { %5671 = vst [vmem:[#allocation2 + $0xc] sm:$0xf] %v5623_v9  ;;  %4166 = vperm.xlu0 %13831, %v16828_v55   ;;  %v17003_v55 = vld [vmem:[%s14115_s25 + $0xa9] sm:$0xff]  ;;  %v5323_v1 = vpack.c.bf16 %v5299_v50, %v5299_v50 }
 0x5d5   : > { %v3808_v3 = vpop.permute.xlu1 %3807  ;;  %v4349_v5 = vpop.permute.xlu2 %4348  ;;  %5950 = vmatpush.bf16.msra.mxu0 %v13394_v31  ;;  %13780 = vmatpush.bf16.msra.mxu2 %v13394_v31 }
 0x5d6   : > { %v3848_v8 = vmul.f32 %v16577_v18, %v3808_v3  ;;  %v5172_v0 = vpop.permute.xlu0 %5171  ;;  %v5371_v18 = vmax.f32 %v5347_v61, 0.0  ;;  %v5443_v10 = vunpack.c.l.b16 %v5323_v1  ;;  %v4429_v20 = vmul.f32 %v16622_v27, %v4349_v5  ;;  %v17048_v61 = vld [vmem:[%s14115_s25 + $0xab] sm:$0xff] }
 0x5d7   : > { %v5224_v14 = vmul.f32 %v16710_v51, %v5172_v0 }
 0x5d8   : > { %v17000_v11 = vadd.f32 %v3848_v8, %v16858_v22  ;;  %v5395_v13 = vpack.c.bf16 %v5371_v18, %v5371_v18  ;;  %v17051_v8 = vld [vmem:[%s14115_s25 + $0xa3] sm:$0xff] }
 0x5d9   : > { %v5248_v35 = vadd.f32 %v5224_v14, %v16919_v63  ;;  %13781 = vmatpush.bf16.msrb.mxu2 %v16856_v24 }
 0x5da   : > { %v17026_v52 = vunpack.c.l.b16 %v5395_v13 }
 0x5db   : > { %v5276_v58 = vadd.f32 %v16757_v54, %v5248_v35  ;;  %4560 = vperm.xlu2 %13833, %v17003_v55   ;;  %4555 = vperm.xlu1 %13832, %v17006_v26   ;;  %v13410_v22 = vld [vmem:[#allocation2 + $0x8] sm:$0xff] }
 0x5dc   : > { %4363 = vperm.xlu0 %13831, %v4283_v53   ;;  %6452 = vmatmul.bf16.vlgmr.msra.gmra.mxu3 %v13410_v22 }
 0x5dd   : > { %v5300_v25 = vmax.f32 %v5276_v58, 0.0  ;;  %v5348_v45 = vsub.f32 0.0, %v5276_v58  ;;  %v17014_v34 = vpop.permute.xlu1 %4156  ;;  %v4207_v63 = vpop.permute.xlu2 %4206  ;;  %13782 = vmatpush.bf16.msrb.mxu2 %v16879_v23  ;;  %v5277_v23 = vadd.f32 %v16757_v54, %v5249_v48 }
 0x5de   : > { %v4152_v43 = vpop.permute.xlu0 %4151 }
 0x5df   : > { %v5324_v24 = vpack.c.bf16 %v5300_v25, %v5300_v25  ;;  %v5372_v60 = vmax.f32 %v5348_v45, 0.0  ;;  %v4232_v40 = vmul.f32 %v16603_v38, %v4152_v43  ;;  %v5301_v0 = vmax.f32 %v5277_v23, 0.0 }
 0x5e1   : > { %v5396_v62 = vpack.c.bf16 %v5372_v60, %v5372_v60  ;;  %v5444_v33 = vunpack.c.l.b16 %v5324_v24  ;;  %v4256_v47 = vadd.f32 %v4232_v40, %v16947_v2  ;;  %13783 = vmatpush.bf16.msrb.mxu2 %v16903_v49  ;;  %v5325_v25 = vpack.c.bf16 %v5301_v0, %v5301_v0  ;;  %v17066_v40 = vld [vmem:[%s14115_s25 + $0xa4] sm:$0xff] }
 0x5e2   : > { %v4243_v60 = vmul.f32 %v16603_v38, %v4207_v63 }
 0x5e3   : > { %v17030_v21 = vunpack.c.l.b16 %v5396_v62  ;;  %3383 = vperm.xlu2 %13833, %v16982_v32   ;;  %4757 = vperm.xlu1 %13832, %v17019_v30   ;;  %v17034_v4 = vadd.f32 %v4429_v20, %v4256_v47  ;;  %v17036_v17 = vpack.c.b16 %v5444_v33, %v5443_v10  ;;  %v5349_v32 = vsub.f32 0.0, %v5277_v23  ;;  %v17068_v10 = vld [vmem:[#allocation2 + $0x8] sm:$0xff] }
 0x5e4   : > { %4752 = vperm.xlu0 %13831, %v17024_v39   ;;  %v5445_v47 = vunpack.c.l.b16 %v5325_v25 }
 0x5e5   : > { %v5524_v2 = vpop.permute.xlu1 %5523  ;;  %v17039_v9 = vpop.permute.xlu2 %4398  ;;  %13784 = vmatpush.bf16.msrb.mxu2 %v16916_v16  ;;  %v5373_v35 = vmax.f32 %v5349_v32, 0.0 }
 0x5e6   : > { %v5550_v41 = vsel %vm5547_vm0, %v20099_v28, %v5524_v2  ;;  %v5182_v59 = vpop.permute.xlu0 %5181  ;;  %v5809_v2 = vshll.u32 %v17068_v10, 16 }
 0x5e7   : > { %v5596_v48 = vunpack.c.l.b16 %v5550_v41  ;;  %v5597_v3 = vunpack.c.h.b16 %v5550_v41  ;;  %v5226_v5 = vmul.f32 %v16710_v51, %v5182_v59  ;;  %v5397_v45 = vpack.c.bf16 %v5373_v35, %v5373_v35  ;;  %v20101_v35 = vld [vmem:[#allocation238_spill] sm:$0xff] }
 0x5e8   : > { %v17092_v0 = vrot.slane %v5809_v2, 1  ;;  %v20107_v2 = vld [vmem:[#allocation59_spill] sm:$0xff] }
 0x5e9   : > { %v5620_v31 = vpack.c.b16 %v5596_v48, %v5596_v48  ;;  %v5621_v14 = vpack.c.b16 %v5597_v3, %v5597_v3  ;;  %v5250_v50 = vadd.f32 %v5226_v5, %v16979_v56  ;;  %13785 = vmatpush.bf16.msrb.mxu2 %v16933_v29 }
 0x5eb   : > { %5668 = vst [vmem:[#allocation2] sm:$0xf] %v5620_v31  ;;  %v5278_v16 = vadd.f32 %v16757_v54, %v5250_v50  ;;  %4954 = vperm.xlu2 %13833, %v17048_v61   ;;  %4949 = vperm.xlu1 %13832, %v17051_v8   ;;  %v20100_v31 = vld [vmem:[#allocation180_spill] sm:$0xff]  ;;  %v17096_v50 = vld [vmem:[%s14115_s25 + $0xac] sm:$0xff] }
 0x5ec   : > { %5669 = vst [vmem:[#allocation2 + $0x4] sm:$0xf] %v5621_v14  ;;  %3388 = vperm.xlu0 %13831, %v4283_v53   ;;  %v5338_v14 = vsub.f32 0.0, %v20100_v31  ;;  %v20109_v31 = vld [vmem:[#allocation79_spill] sm:$0xff] }
 0x5ed   : > { %v5302_v18 = vmax.f32 %v5278_v16, 0.0  ;;  %v5350_v58 = vsub.f32 0.0, %v5278_v16  ;;  %v4010_v22 = vpop.permute.xlu1 %4009  ;;  %v17058_v1 = vpop.permute.xlu2 %4747  ;;  %13786 = vmatpush.bf16.msrb.mxu2 %v16944_v15  ;;  %v5337_v16 = vsub.f32 0.0, %v20101_v35 }
 0x5ee   : > { %v4046_v56 = vmul.f32 %v16584_v12, %v4010_v22  ;;  %v4005_v29 = vpop.permute.xlu0 %4004 }
 0x5ef   : > { %v5326_v13 = vpack.c.bf16 %v5302_v18, %v5302_v18  ;;  %v5374_v43 = vmax.f32 %v5350_v58, 0.0  ;;  %v4045_v24 = vmul.f32 %v16584_v12, %v4005_v29  ;;  %v20102_v29 = vld [vmem:[#allocation38_spill] sm:$0xff] }
 0x5f0   : > { %v4070_v53 = vadd.f32 %v4046_v56, %v16963_v57  ;;  %v17078_v57 = vunpack.c.l.b16 %v5397_v45  ;;  %v17114_v56 = vld [vmem:[%s19385_s1 + $0x1] ss:$0 sm:$0xff] }
 0x5f1   : > { %v5398_v20 = vpack.c.bf16 %v5374_v43, %v5374_v43  ;;  %v5446_v62 = vunpack.c.l.b16 %v5326_v13  ;;  %v4069_v33 = vadd.f32 %v4045_v24, %v17000_v11  ;;  %13787 = vmatpush.bf16.msrb.mxu2 %v16961_v37  ;;  %v689_v45 = vmul.f32 %v17114_v56, %v20102_v29  ;;  %v20103_v24 = vld [vmem:[#allocation39_spill] sm:$0xff] }
 0x5f2   : > { %v17071_v23 = vadd.f32 %v4243_v60, %v4070_v53  ;;  %v5362_v13 = vmax.f32 %v5338_v14, 0.0  ;;  %v17125_v60 = vld [vmem:[%s19385_s1] ss:$0 sm:$0xff]  ;;  %v20104_v53 = vld [vmem:[#allocation18_spill] sm:$0xff]  ;;  %v20111_v29 = vld [vmem:[#allocation99_spill] sm:$0xff] }
 0x5f3   : > { %v17074_v15 = vunpack.c.l.b16 %v5398_v20  ;;  %v13705_v12 = vld [vmem:[#allocation2] sm:$0xff]   ;;  %5146 = vperm.xlu2 %13833, %v17066_v40   ;;  %3585 = vperm.xlu1 %13832, %v17003_v55   ;;  %v17080_v63 = vpack.c.b16 %v5446_v62, %v5445_v47  ;;  %v492_v20 = vmul.f32 %v17125_v60, %v20104_v53 }
 0x5f4   : > { %6068 = vmatmul.bf16.vlgmr.msra.gmra.mxu1 %v13705_v12  ;;  %3580 = vperm.xlu0 %13831, %v17006_v26   ;;  %v5804_v11 = vshll.u32 %v13705_v12, 16  ;;  %v5802_v55 = vshrl.u32 %v13705_v12, 16  ;;  %v4439_v26 = vmul.f32 %v16622_v27, %v17039_v9  ;;  %v17132_v62 = vld [vmem:[%s19385_s1 + $0x2] ss:$0 sm:$0xff]  ;;  %v20106_v12 = vld [vmem:[#allocation19_spill] sm:$0xff] }
 0x5f5   : > { %v4202_v28 = vpop.permute.xlu1 %4201  ;;  %v4596_v37 = vpop.permute.xlu2 %4595  ;;  %v5520_v41 = vpack.c.b16 %v17074_v15, %v17078_v57  ;;  %13788 = vmatpush.bf16.msrb.mxu2 %v16976_v46  ;;  %v17350_v15 = vld [vmem:[%s19385_s1 + $0x11] ss:$0 sm:$0xff] }
 0x5f6   : > { %v4242_v59 = vmul.f32 %v16603_v38, %v4202_v28  ;;  %v17087_v32 = vpop.permute.xlu0 %4353  ;;  %v5806_v48 = vrot.slane %v5804_v11, 1  ;;  %v4636_v58 = vmul.f32 %v16643_v7, %v4596_v37  ;;  %v491_v11 = vmul.f32 %v17125_v60, %v20106_v12  ;;  %v20113_v12 = vld [vmem:[#allocation119_spill] sm:$0xff] }
 0x5f7   : > { %v885_v28 = vmul.f32 %v17132_v62, %v20107_v2  ;;  %v713_v37 = vadd.f32 %v689_v45, %v492_v20  ;;  %v17180_v2 = vld [vmem:[%s19385_s1 + $0x6] ss:$0 sm:$0xff] }
 0x5f8   : > { %v4266_v3 = vadd.f32 %v4242_v59, %v4069_v33  ;;  %v5807_v5 = vor.u32 %v5806_v48, %v5802_v55  ;;  %v20105_v33 = vld [vmem:[#allocation58_spill] sm:$0xff]  ;;  %v17143_v59 = vld [vmem:[%s19385_s1 + $0x3] ss:$0 sm:$0xff] }
 0x5f9   : > { %v886_v47 = vmul.f32 %v17132_v62, %v20105_v33  ;;  %v20108_v55 = vld [vmem:[#allocation78_spill] sm:$0xff]  ;;  %v1082_v14 = vmul.f32 %v17143_v59, %v20109_v31 }
 0x5fa   : > { %v4463_v18 = vadd.f32 %v4439_v26, %v4266_v3  ;;  %v5812_v46 = vsel %vm5800_vm1, %v5807_v5, %v17092_v0  ;;  %v1083_v48 = vmul.f32 %v17143_v59, %v20108_v55  ;;  %v5386_v26 = vpack.c.bf16 %v5362_v13, %v5362_v13  ;;  %v4284_v55 = vld [vmem:[%s14115_s25 + $0xb0] sm:$0xff]  ;;  %v17190_v31 = vld [vmem:[%s19385_s1 + $0x7] ss:$0 sm:$0xff] }
 0x5fb   : > { %5951 = vmatmul.bf16.vlgmr.msra.gmra.mxu0 %v5812_v46  ;;  %3782 = vperm.xlu2 %13833, %v17019_v30   ;;  %v5361_v30 = vmax.f32 %v5337_v16, 0.0  ;;  %v910_v35 = vadd.f32 %v886_v47, %v713_v37  ;;  %v17153_v16 = vld [vmem:[%s19385_s1 + $0x4] ss:$0 sm:$0xff] }
 0x5fc   : > { %v17103_v9 = vadd.f32 %v4636_v58, %v4463_v18  ;;  %3777 = vperm.xlu1 %13832, %v17024_v39   ;;  %5151 = vperm.xlu0 %13831, %v17096_v50   ;;  %v688_v39 = vmul.f32 %v17114_v56, %v20103_v24  ;;  %v20110_v18 = vld [vmem:[#allocation98_spill] sm:$0xff]  ;;  %v1279_v45 = vmul.f32 %v17153_v16, %v20111_v29  ;;  %v17169_v24 = vld [vmem:[%s19385_s1 + $0x5] ss:$0 sm:$0xff]  ;;  %v5494_v53 = vunpack.c.l.b16 %v5386_v26 }
 0x5fd   : > { %v17107_v22 = vpop.permute.xlu1 %4550  ;;  %v17109_v25 = vpop.permute.xlu2 %4944  ;;  %v5385_v3 = vpack.c.bf16 %v5361_v30, %v5361_v30  ;;  %v1280_v58 = vmul.f32 %v17153_v16, %v20110_v18  ;;  %v1107_v30 = vadd.f32 %v1083_v48, %v910_v35 }
 0x5fe   : > { %v17118_v43 = vpop.permute.xlu0 %4545  ;;  %v712_v5 = vadd.f32 %v688_v39, %v491_v11  ;;  %v20112_v39 = vld [vmem:[#allocation118_spill] sm:$0xff] }
 0x5ff   : > { %v5493_v20 = vunpack.c.l.b16 %v5385_v3  ;;  %v1304_v11 = vadd.f32 %v1280_v58, %v1107_v30 }
 0x600   : > { %v909_v46 = vadd.f32 %v885_v28, %v712_v5  ;;  %v20114_v28 = vld [vmem:[#allocation141_spill] sm:$0xff]  ;;  %v20115_v5 = vld [vmem:[#allocation142_spill] sm:$0xff] }
 0x601   : > { %v1674_v37 = vmul.f32 %v17180_v2, %v20114_v28  ;;  %v1673_v26 = vmul.f32 %v17180_v2, %v20115_v5  ;;  %v5514_v18 = vpack.c.b16 %v5494_v53, %v5493_v20  ;;  %v20119_v20 = vld [vmem:[#allocation189_spill] sm:$0xff] }
 0x602   : > { %v1106_v47 = vadd.f32 %v1082_v14, %v909_v46  ;;  %v20116_v14 = vld [vmem:[#allocation164_spill] sm:$0xff]  ;;  %v20117_v46 = vld [vmem:[#allocation165_spill] sm:$0xff] }
 0x603   : > { %4171 = vperm.xlu2 %13833, %v17066_v40   ;;  %v1871_v35 = vmul.f32 %v17190_v31, %v20116_v14  ;;  %v1870_v29 = vmul.f32 %v17190_v31, %v20117_v46  ;;  %v17223_v14 = vld [vmem:[%s19385_s1 + $0xa] ss:$0 sm:$0xff] }
 0x604   : > { %6073 = vmatmul.bf16.gmra.mxu1 %v17068_v10  ;;  %3979 = vperm.xlu1 %13832, %v17048_v61   ;;  %v1477_v61 = vmul.f32 %v17169_v24, %v20112_v39  ;;  %v1303_v48 = vadd.f32 %v1279_v45, %v1106_v47  ;;  %v17199_v45 = vld [vmem:[%s19385_s1 + $0x8] ss:$0 sm:$0xff]  ;;  %v20118_v39 = vld [vmem:[#allocation188_spill] sm:$0xff]  ;;  %v4233_v47 = vmul.f32 %v16603_v38, %v17014_v34 }
 0x605   : > { %3974 = vperm.xlu0 %13831, %v17051_v8   ;;  %v17162_v40 = vpop.permute.xlu1 %4742  ;;  %v17164_v13 = vpop.permute.xlu2 %4792  ;;  %v1476_v8 = vmul.f32 %v17169_v24, %v20113_v12  ;;  %v2067_v12 = vmul.f32 %v17199_v45, %v20119_v20  ;;  %v4430_v34 = vmul.f32 %v16622_v27, %v17087_v32  ;;  %v4627_v27 = vmul.f32 %v16643_v7, %v17107_v22  ;;  %v4482_v32 = vld [vmem:[%s14115_s25 + $0xb9] sm:$0xff] }
 0x606   : > { %v17173_v33 = vpop.permute.xlu0 %4403  ;;  %v1501_v3 = vadd.f32 %v1477_v61, %v1304_v11  ;;  %v2068_v61 = vmul.f32 %v17199_v45, %v20118_v39  ;;  %v4481_v39 = vld [vmem:[%s14115_s25 + $0xb1] sm:$0xff] }
 0x607   : > { %v1500_v58 = vadd.f32 %v1476_v8, %v1303_v48  ;;  %v20124_v20 = vld [vmem:[#allocation260_spill] sm:$0xff] }
 0x608   : > { %v1698_v30 = vadd.f32 %v1674_v37, %v1501_v3  ;;  %v17212_v37 = vld [vmem:[%s19385_s1 + $0x9] ss:$0 sm:$0xff] }
 0x609   : > { %v1697_v53 = vadd.f32 %v1673_v26, %v1500_v58  ;;  %v20121_v26 = vld [vmem:[#allocation213_spill] sm:$0xff]  ;;  %v4257_v58 = vadd.f32 %v4233_v47, %v16897_v6 }
 0x60a   : > { %v1895_v28 = vadd.f32 %v1871_v35, %v1698_v30  ;;  %v20122_v35 = vld [vmem:[#allocation236_spill] sm:$0xff] }
 0x60b   : > { %4368 = vperm.xlu2 %13833, %v4284_v55   ;;  %v20120_v55 = vld [vmem:[#allocation212_spill] sm:$0xff]  ;;  %v1894_v5 = vadd.f32 %v1870_v29, %v1697_v53  ;;  %v20123_v29 = vld [vmem:[#allocation237_spill] sm:$0xff]  ;;  %v17237_v53 = vld [vmem:[%s19385_s1 + $0xb] ss:$0 sm:$0xff] }
 0x60c   : > { %5529 = vrot.lane.b32.xlu1 %v5514_v18, %s14007_s14  ;;  %v2265_v38 = vmul.f32 %v17212_v37, %v20120_v55  ;;  %v2092_v3 = vadd.f32 %v2068_v61, %v1895_v28  ;;  %v2462_v18 = vmul.f32 %v17223_v14, %v20122_v35  ;;  %v2461_v30 = vmul.f32 %v17223_v14, %v20123_v29  ;;  %v4285_v6 = vld [vmem:[%s14115_s25 + $0xb8] sm:$0xff] }
 0x60d   : > { %4176 = vperm.xlu0 %13831, %v17096_v50   ;;  %v3379_v8 = vpop.permute.xlu1 %3378  ;;  %v5142_v11 = vpop.permute.xlu2 %5141  ;;  %v2264_v50 = vmul.f32 %v17212_v37, %v20121_v26  ;;  %v2091_v46 = vadd.f32 %v2067_v12, %v1894_v5  ;;  %v2659_v28 = vmul.f32 %v17237_v53, %v20124_v20  ;;  %v4454_v55 = vadd.f32 %v4430_v34, %v4257_v58  ;;  %v20125_v26 = vld [vmem:[#allocation261_spill] sm:$0xff]  ;;  %v17247_v12 = vld [vmem:[%s19385_s1 + $0xc] ss:$0 sm:$0xff] }
 0x60e   : > { %v3374_v48 = vpop.permute.xlu0 %3373  ;;  %v2289_v61 = vadd.f32 %v2265_v38, %v2092_v3  ;;  %v2658_v7 = vmul.f32 %v17237_v53, %v20125_v26  ;;  %v20126_v38 = vld [vmem:[#allocation284_spill] sm:$0xff]  ;;  %v20127_v29 = vld [vmem:[#allocation285_spill] sm:$0xff] }
 0x60f   : > { %v2288_v47 = vadd.f32 %v2264_v50, %v2091_v46  ;;  %v2856_v5 = vmul.f32 %v17247_v12, %v20126_v38  ;;  %v4651_v3 = vadd.f32 %v4627_v27, %v4454_v55  ;;  %v2855_v34 = vmul.f32 %v17247_v12, %v20127_v29  ;;  %v20128_v46 = vld [vmem:[#allocation307_spill] sm:$0xff]  ;;  %v20130_v26 = vld [vmem:[#allocation325_spill] sm:$0xff] }
 0x610   : > { %v2486_v22 = vadd.f32 %v2462_v18, %v2289_v61  ;;  %v4875_v29 = vld [vmem:[%s14115_s25 + $0xb3] sm:$0xff] }
 0x611   : > { %v2485_v35 = vadd.f32 %v2461_v30, %v2288_v47  ;;  %v17265_v30 = vld [vmem:[%s19385_s1 + $0x16] ss:$0 sm:$0xff]  ;;  %v17276_v47 = vld [vmem:[%s19385_s1 + $0xe] ss:$0 sm:$0xff] }
 0x612   : > { %v2683_v18 = vadd.f32 %v2659_v28, %v2486_v22  ;;  %v20129_v28 = vld [vmem:[#allocation308_spill] sm:$0xff]  ;;  %v3250_v22 = vmul.f32 %v17276_v47, %v20130_v26 }
 0x613   : > { %4570 = vperm.xlu2 %13833, %v4482_v32   ;;  %v17258_v32 = vld [vmem:[%s19385_s1 + $0xd] ss:$0 sm:$0xff]  ;;  %v2682_v20 = vadd.f32 %v2658_v7, %v2485_v35  ;;  %v4679_v7 = vld [vmem:[%s14115_s25 + $0xba] sm:$0xff] }
 0x614   : > { %4565 = vperm.xlu1 %13832, %v4481_v39   ;;  %v3053_v27 = vmul.f32 %v17258_v32, %v20128_v46  ;;  %v4824_v39 = vmul.f32 %v17265_v30, %v17058_v1  ;;  %v3052_v55 = vmul.f32 %v17258_v32, %v20129_v28  ;;  %v20131_v1 = vld [vmem:[#allocation326_spill] sm:$0xff]  ;;  %v17294_v28 = vld [vmem:[%s19385_s1 + $0xf] ss:$0 sm:$0xff] }
 0x615   : > { %4373 = vperm.xlu0 %13831, %v4285_v6   ;;  %v4940_v50 = vpop.permute.xlu1 %4939  ;;  %v17253_v58 = vpop.permute.xlu2 %4989  ;;  %v2880_v6 = vadd.f32 %v2856_v5, %v2683_v18  ;;  %v2879_v46 = vadd.f32 %v2855_v34, %v2682_v20  ;;  %v3249_v42 = vmul.f32 %v17276_v47, %v20131_v1  ;;  %v17287_v5 = vld [vmem:[%s19385_s1 + $0x17] ss:$0 sm:$0xff]  ;;  %v5218_v34 = vmul.f32 %v16710_v51, %v5142_v11 }
 0x616   : > { %v17269_v61 = vpop.permute.xlu0 %4600  ;;  %v4848_v38 = vadd.f32 %v4824_v39, %v4651_v3  ;;  %v5021_v18 = vmul.f32 %v17287_v5, %v17109_v25  ;;  %v3447_v3 = vmul.f32 %v17294_v28, %v3379_v8  ;;  %v4678_v39 = vld [vmem:[%s14115_s25 + $0xb2] sm:$0xff] }
 0x617   : > { %v3077_v35 = vadd.f32 %v3053_v27, %v2880_v6  ;;  %v3076_v20 = vadd.f32 %v3052_v55, %v2879_v46  ;;  %v3446_v27 = vmul.f32 %v17294_v28, %v3374_v48  ;;  %v17303_v8 = vld [vmem:[%s19385_s1 + $0x15] ss:$0 sm:$0xff]  ;;  %v17310_v55 = vld [vmem:[%s19385_s1 + $0x10] ss:$0 sm:$0xff]  ;;  %v4823_v46 = vmul.f32 %v17265_v30, %v17162_v40 }
 0x618   : > { %v5045_v26 = vadd.f32 %v5021_v18, %v4848_v38  ;;  %v4626_v51 = vmul.f32 %v17303_v8, %v17118_v43  ;;  %v5072_v18 = vld [vmem:[%s14115_s25 + $0xb4] sm:$0xff] }
 0x619   : > { %v3274_v6 = vadd.f32 %v3250_v22, %v3077_v35  ;;  %v3273_v1 = vadd.f32 %v3249_v42, %v3076_v20  ;;  %v5073_v35 = vld [vmem:[%s14115_s25 + $0xbc] sm:$0xff] }
 0x61a   : > { %v5242_v48 = vadd.f32 %v5218_v34, %v5045_v26  ;;  %v4876_v20 = vld [vmem:[%s14115_s25 + $0xbb] sm:$0xff] }
 0x61b   : > { %4959 = vperm.xlu2 %13833, %v4875_v29   ;;  %v3471_v11 = vadd.f32 %v3447_v3, %v3274_v6  ;;  %v3470_v38 = vadd.f32 %v3446_v27, %v3273_v1  ;;  %v4650_v3 = vadd.f32 %v4626_v51, %v17034_v4 }
 0x61c   : > { %4767 = vperm.xlu1 %13832, %v4679_v7   ;;  %v5270_v34 = vadd.f32 %v16757_v54, %v5242_v48 }
 0x61d   : > { %4762 = vperm.xlu0 %13831, %v4678_v39   ;;  %v3576_v25 = vpop.permute.xlu1 %3575  ;;  %v3970_v49 = vpop.permute.xlu2 %3969  ;;  %v5020_v39 = vmul.f32 %v17287_v5, %v4940_v50  ;;  %v4847_v6 = vadd.f32 %v4823_v46, %v4650_v3  ;;  %v20132_v46 = vpack.c.b16 %v17030_v21, %v17026_v52 }
 0x61e   : > { %v3644_v42 = vmul.f32 %v17310_v55, %v3576_v25  ;;  %v3571_v22 = vpop.permute.xlu0 %3570  ;;  %v5342_v40 = vsub.f32 0.0, %v5270_v34  ;;  %v17329_v25 = vld [vmem:[%s19385_s1 + $0x18] ss:$0 sm:$0xff] }
 0x61f   : > { %v3643_v29 = vmul.f32 %v17310_v55, %v3571_v22  ;;  %v5044_v1 = vadd.f32 %v5020_v39, %v4847_v6 }
 0x620   : > { %v3668_v7 = vadd.f32 %v3644_v42, %v3471_v11  ;;  %v5294_v11 = vmax.f32 %v5270_v34, 0.0  ;;  %v5366_v48 = vmax.f32 %v5342_v40, 0.0 }
 0x621   : > { %v17317_v43 = vadd.f32 %v3643_v29, %v3470_v38 }
 0x622   : > { %v5318_v22 = vpack.c.bf16 %v5294_v11, %v5294_v11  ;;  %v5390_v3 = vpack.c.bf16 %v5366_v48, %v5366_v48  ;;  %v17368_v11 = vld [vmem:[%s19385_s1 + $0x14] ss:$0 sm:$0xff] }
 0x623   : > { %5161 = vperm.xlu2 %13833, %v5073_v35   ;;  %v20133_v35 = vpack.c.b16 %v16844_v44, %v16842_v19  ;;  %v17358_v19 = vld [vmem:[%s19385_s1 + $0x12] ss:$0 sm:$0xff] }
 0x624   : > { %5156 = vperm.xlu1 %13832, %v5072_v18   ;;  %v5438_v21 = vunpack.c.l.b16 %v5318_v22  ;;  %v4038_v44 = vmul.f32 %v17358_v19, %v3970_v49 }
 0x625   : > { %4964 = vperm.xlu0 %13831, %v4876_v20   ;;  %v5137_v27 = vpop.permute.xlu1 %5136  ;;  %v17324_v26 = vpop.permute.xlu2 %4161 }
 0x626   : > { %v5217_v4 = vmul.f32 %v17329_v25, %v5137_v27  ;;  %v4798_v51 = vpop.permute.xlu0 %4797  ;;  %v5498_v27 = vunpack.c.l.b16 %v5390_v3 }
 0x628   : > { %v5241_v50 = vadd.f32 %v5217_v4, %v5044_v1 }
 0x62a   : > { %v5269_v42 = vadd.f32 %v16757_v54, %v5241_v50  ;;  %v4440_v50 = vmul.f32 %v17368_v11, %v17173_v33 }
 0x62b   : > { %5541 = vrot.lane.b32.xlu2 %v5520_v41, %s14007_s14 }
 0x62c   : > { %v5293_v38 = vmax.f32 %v5269_v42, 0.0  ;;  %v5341_v29 = vsub.f32 0.0, %v5269_v42  ;;  %5539 = vrot.lane.b32.xlu1 %v20132_v46, %s14007_s14  ;;  %v4833_v46 = vmul.f32 %v17265_v30, %v17164_v13 }
 0x62d   : > { %5531 = vrot.lane.b32.xlu0 %v20133_v35, %s14007_s14  ;;  %v3773_v18 = vpop.permute.xlu1 %3772  ;;  %v17345_v54 = vpop.permute.xlu2 %4358 }
 0x62e   : > { %v5317_v34 = vpack.c.bf16 %v5293_v38, %v5293_v38  ;;  %v5365_v39 = vmax.f32 %v5341_v29, 0.0  ;;  %v3841_v57 = vmul.f32 %v17350_v15, %v3773_v18  ;;  %v17353_v52 = vpop.permute.xlu0 %3767  ;;  %v4464_v38 = vadd.f32 %v4440_v50, %v17071_v23 }
 0x62f   : > { %v4834_v29 = vmul.f32 %v17265_v30, %v4798_v51  ;;  %v5030_v18 = vmul.f32 %v17287_v5, %v17253_v58 }
 0x630   : > { %v5389_v41 = vpack.c.bf16 %v5365_v39, %v5365_v39  ;;  %v5437_v20 = vunpack.c.l.b16 %v5317_v34  ;;  %v3865_v6 = vadd.f32 %v3841_v57, %v3668_v7  ;;  %v4637_v7 = vmul.f32 %v17303_v8, %v17269_v61 }
 0x631   : > { %v4857_v34 = vadd.f32 %v4833_v46, %v17103_v9 }
 0x632   : > { %v5497_v40 = vunpack.c.l.b16 %v5389_v41  ;;  %v17361_v1 = vadd.f32 %v4038_v44, %v3865_v6  ;;  %v17363_v4 = vpack.c.b16 %v5438_v21, %v5437_v20  ;;  %v4661_v35 = vadd.f32 %v4637_v7, %v4464_v38  ;;  %v17392_v20 = vld [vmem:[%s19386_s2] ss:$0 sm:$0xff] }
 0x633   : > { %v5054_v51 = vadd.f32 %v5030_v18, %v4857_v34 }
 0x634   : > { %v5516_v48 = vpack.c.b16 %v5498_v27, %v5497_v40  ;;  %v4858_v3 = vadd.f32 %v4834_v29, %v4661_v35  ;;  %v20134_v29 = vld [vmem:[#allocation214_spill] sm:$0xff] }
 0x635   : > { %v3965_v42 = vpop.permute.xlu1 %3964  ;;  %v17372_v49 = vpop.permute.xlu2 %4560 }
 0x636   : > { %v4995_v22 = vpop.permute.xlu0 %4994  ;;  %5533 = vrot.lane.b32.xlu0 %v5516_v48, %s14007_s14 }
 0x637   : > { %v5031_v33 = vmul.f32 %v17287_v5, %v4995_v22 }
 0x639   : > { %v5055_v57 = vadd.f32 %v5031_v33, %v4858_v3 }
 0x63d   : > { %v5192_v61 = vpop.permute.xlu1 %5191  ;;  %v17385_v39 = vpop.permute.xlu2 %3383 }
 0x63e   : > { %v5228_v23 = vmul.f32 %v17329_v25, %v5192_v61  ;;  %v5187_v21 = vpop.permute.xlu0 %5186 }
 0x63f   : > { %v5227_v44 = vmul.f32 %v17329_v25, %v5187_v21 }
 0x640   : > { %v5252_v13 = vadd.f32 %v5228_v23, %v5055_v57 }
 0x641   : > { %v5251_v41 = vadd.f32 %v5227_v44, %v5054_v51 }
 0x642   : > { %v5280_v58 = vadd.f32 %v17392_v20, %v5252_v13 }
 0x643   : > { %v5279_v9 = vadd.f32 %v17392_v20, %v5251_v41 }
 0x644   : > { %v5304_v6 = vmax.f32 %v5280_v58, 0.0  ;;  %v5352_v27 = vsub.f32 0.0, %v5280_v58 }
 0x645   : > { %v5303_v40 = vmax.f32 %v5279_v9, 0.0  ;;  %v5351_v50 = vsub.f32 0.0, %v5279_v9  ;;  %v17396_v48 = vpop.permute.xlu2 %4954  ;;  %v5528_v7 = vpop.permute.xlu1 %5527 }
 0x646   : > { %v5328_v22 = vpack.c.bf16 %v5304_v6, %v5304_v6  ;;  %v5376_v38 = vmax.f32 %v5352_v27, 0.0  ;;  %v5556_v46 = vsel %vm5547_vm0, %v20134_v29, %v5528_v7  ;;  %v4167_v35 = vpop.permute.xlu0 %4166  ;;  %v4037_v7 = vmul.f32 %v17358_v19, %v3965_v42 }
 0x647   : > { %v5327_v33 = vpack.c.bf16 %v5303_v40, %v5303_v40  ;;  %v5375_v18 = vmax.f32 %v5351_v50, 0.0  ;;  %v5600_v3 = vunpack.c.l.b16 %v5556_v46  ;;  %v5601_v34 = vunpack.c.h.b16 %v5556_v46  ;;  %v3110_v46 = vld [vmem:[%s14115_s25 + $0xd4] sm:$0xff] }
 0x648   : > { %v5400_v61 = vpack.c.bf16 %v5376_v38, %v5376_v38  ;;  %v5448_v57 = vunpack.c.l.b16 %v5328_v22  ;;  %v3840_v50 = vmul.f32 %v17350_v15, %v17353_v52  ;;  %v5813_v52 = vshrl.u32 %v17068_v10, 16 }
 0x649   : > { %v5399_v23 = vpack.c.bf16 %v5375_v18, %v5375_v18  ;;  %v5447_v21 = vunpack.c.l.b16 %v5327_v33  ;;  %v5624_v51 = vpack.c.b16 %v5600_v3, %v5600_v3  ;;  %v5625_v44 = vpack.c.b16 %v5601_v34, %v5601_v34 }
 0x64a   : > { %v5508_v13 = vunpack.c.l.b16 %v5400_v61  ;;  %v3864_v22 = vadd.f32 %v3840_v50, %v17317_v43  ;;  %v17418_v43 = vld [vmem:[%s19385_s1 + $0x13] ss:$0 sm:$0xff] }
 0x64b   : > { %v5507_v41 = vunpack.c.l.b16 %v5399_v23  ;;  %5672 = vst [vmem:[#allocation2 + $0x10] sm:$0xf] %v5624_v51  ;;  %v17400_v58 = vpack.c.b16 %v5448_v57, %v5447_v21  ;;  %v4234_v42 = vmul.f32 %v17418_v43, %v17324_v26  ;;  %v5815_v57 = vor.u32 %v5813_v52, %v17092_v0  ;;  %v20136_v52 = vld [vmem:[#allocation10_spill] sm:$0xff] }
 0x64c   : > { %5673 = vst [vmem:[#allocation2 + $0x14] sm:$0xf] %v5625_v44  ;;  %v4061_v33 = vadd.f32 %v4037_v7, %v3864_v22  ;;  %v4431_v51 = vmul.f32 %v17368_v11, %v17345_v54  ;;  %v4235_v7 = vmul.f32 %v17418_v43, %v4167_v35 }
 0x64d   : > { %v5147_v9 = vpop.permute.xlu2 %5146  ;;  %v4556_v6 = vpop.permute.xlu1 %4555  ;;  %v5521_v27 = vpack.c.b16 %v5508_v13, %v5507_v41  ;;  %v3308_v13 = vld [vmem:[%s14115_s25 + $0xe8] sm:$0xff] }
 0x64e   : > { %v4364_v40 = vpop.permute.xlu0 %4363  ;;  %v4258_v21 = vadd.f32 %v4234_v42, %v4061_v33  ;;  %v4628_v44 = vmul.f32 %v17303_v8, %v4556_v6 }
 0x64f   : > { %5543 = vrot.lane.b32.xlu1 %v5521_v27, %s14007_s14  ;;  %v4432_v6 = vmul.f32 %v17368_v11, %v4364_v40 }
 0x650   : > { %v4455_v41 = vadd.f32 %v4431_v51, %v4258_v21 }
 0x652   : > { %v4652_v22 = vadd.f32 %v4628_v44, %v4455_v41  ;;  %v3701_v44 = vld [vmem:[%s14115_s25 + $0xe2] sm:$0xff] }
 0x653   : > { %v17407_v38 = vld [vmem:[#allocation2 + $0x10] sm:$0xff] }
 0x654   : > { %v13411_v29 = vld [vmem:[#allocation2 + $0x10] sm:$0xff]  ;;  %6078 = vmatmul.bf16.gmra.mxu1 %v17407_v38  ;;  %v5817_v34 = vshll.u32 %v17407_v38, 16 }
 0x655   : > { %v17410_v18 = vpop.permute.xlu2 %3782  ;;  %v4758_v3 = vpop.permute.xlu1 %4757  ;;  %6457 = vmatmul.bf16.gmra.mxu3 %v13411_v29 }
 0x656   : > { %v4753_v61 = vpop.permute.xlu0 %4752  ;;  %v17423_v23 = vrot.slane %v5817_v34, 1  ;;  %v493_v34 = vmul.f32 %v17125_v60, %v20136_v52  ;;  %v20140_v52 = vld [vmem:[#allocation89_spill] sm:$0xff] }
 0x657   : > { %3226 = vperm.xlu1 %13832, %v3110_v46   ;;  %v4825_v27 = vmul.f32 %v17265_v30, %v4753_v61  ;;  %v20135_v46 = vld [vmem:[#allocation29_spill] sm:$0xff] }
 0x658   : > { %v5820_v10 = vsel %vm5800_vm1, %v5815_v57, %v17423_v23  ;;  %v690_v54 = vmul.f32 %v17114_v56, %v20135_v46  ;;  %v20137_v61 = vld [vmem:[#allocation49_spill] sm:$0xff]  ;;  %v4259_v57 = vadd.f32 %v4235_v7, %v17361_v1  ;;  %v1281_v1 = vmul.f32 %v17153_v16, %v20140_v52 }
 0x659   : > { %5956 = vmatmul.bf16.gmra.mxu0 %v5820_v10  ;;  %v4849_v33 = vadd.f32 %v4825_v27, %v4652_v22  ;;  %v887_v42 = vmul.f32 %v17132_v62, %v20137_v61  ;;  %v20138_v10 = vld [vmem:[#allocation69_spill] sm:$0xff] }
 0x65a   : > { %v714_v35 = vadd.f32 %v690_v54, %v493_v34  ;;  %v1084_v51 = vmul.f32 %v17143_v59, %v20138_v10  ;;  %v4456_v41 = vadd.f32 %v4432_v6, %v4259_v57  ;;  %v20139_v27 = vld [vmem:[#allocation41_spill] sm:$0xff]  ;;  %v4826_v54 = vmul.f32 %v17265_v30, %v4758_v3  ;;  %v20145_v3 = vld [vmem:[#allocation131_spill] sm:$0xff] }
 0x65b   : > { %v691_v22 = vmul.f32 %v17114_v56, %v20139_v27  ;;  %v20141_v6 = vld [vmem:[#allocation21_spill] sm:$0xff] }
 0x65c   : > { %v911_v46 = vadd.f32 %v887_v42, %v714_v35  ;;  %v20142_v34 = vld [vmem:[#allocation61_spill] sm:$0xff] }
 0x65d   : > { %v17432_v26 = vpop.permute.xlu2 %4171  ;;  %v4950_v0 = vpop.permute.xlu1 %4949  ;;  %v888_v56 = vmul.f32 %v17132_v62, %v20142_v34  ;;  %v20143_v42 = vld [vmem:[#allocation109_spill] sm:$0xff] }
 0x65e   : > { %v17434_v50 = vpop.permute.xlu0 %3388  ;;  %v5022_v29 = vmul.f32 %v17287_v5, %v4950_v0  ;;  %v1108_v61 = vadd.f32 %v1084_v51, %v911_v46  ;;  %v1478_v57 = vmul.f32 %v17169_v24, %v20143_v42  ;;  %v20144_v27 = vld [vmem:[#allocation81_spill] sm:$0xff]  ;;  %v20147_v46 = vld [vmem:[#allocation154_spill] sm:$0xff] }
 0x65f   : > { %3428 = vperm.xlu1 %13832, %v3308_v13   ;;  %v5219_v13 = vmul.f32 %v17329_v25, %v5147_v9  ;;  %v1872_v34 = vmul.f32 %v17190_v31, %v20147_v46 }
 0x660   : > { %v5046_v21 = vadd.f32 %v5022_v29, %v4849_v33  ;;  %v4629_v29 = vmul.f32 %v17303_v8, %v17372_v49  ;;  %v494_v33 = vmul.f32 %v17125_v60, %v20141_v6  ;;  %v1085_v49 = vmul.f32 %v17143_v59, %v20144_v27  ;;  %v20146_v6 = vld [vmem:[#allocation101_spill] sm:$0xff] }
 0x661   : > { %v1305_v52 = vadd.f32 %v1281_v1, %v1108_v61  ;;  %v1282_v62 = vmul.f32 %v17153_v16, %v20146_v6  ;;  %v20152_v6 = vld [vmem:[#allocation168_spill] sm:$0xff] }
 0x662   : > { %v5243_v9 = vadd.f32 %v5219_v13, %v5046_v21  ;;  %v4653_v35 = vadd.f32 %v4629_v29, %v4456_v41  ;;  %v715_v10 = vadd.f32 %v691_v22, %v494_v33  ;;  %v1675_v21 = vmul.f32 %v17180_v2, %v20145_v3  ;;  %v3899_v41 = vld [vmem:[%s14115_s25 + $0xeb] sm:$0xff]  ;;  %v20148_v29 = vld [vmem:[#allocation121_spill] sm:$0xff] }
 0x663   : > { %v1502_v51 = vadd.f32 %v1478_v57, %v1305_v52  ;;  %v5023_v22 = vmul.f32 %v17287_v5, %v17396_v48  ;;  %v20150_v48 = vld [vmem:[#allocation144_spill] sm:$0xff]  ;;  %v20151_v52 = vld [vmem:[#allocation202_spill] sm:$0xff] }
 0x664   : > { %v5271_v13 = vadd.f32 %v17392_v20, %v5243_v9  ;;  %v912_v60 = vadd.f32 %v888_v56, %v715_v10  ;;  %v20149_v9 = vld [vmem:[#allocation178_spill] sm:$0xff]  ;;  %v1676_v27 = vmul.f32 %v17180_v2, %v20150_v48 }
 0x665   : > { %v17450_v0 = vpop.permute.xlu2 %4368  ;;  %v17452_v40 = vpop.permute.xlu1 %3585  ;;  %v1699_v33 = vadd.f32 %v1675_v21, %v1502_v51  ;;  %v2069_v56 = vmul.f32 %v17199_v45, %v20149_v9  ;;  %v1873_v51 = vmul.f32 %v17190_v31, %v20152_v6  ;;  %v4292_v9 = vld [vmem:[%s14115_s25 + $0xf0] sm:$0xff]  ;;  %v20157_v48 = vld [vmem:[#allocation274_spill] sm:$0xff] }
 0x666   : > { %v17458_v7 = vpop.permute.xlu0 %3580  ;;  %v1109_v1 = vadd.f32 %v1085_v49, %v912_v60  ;;  %v5343_v42 = vsub.f32 0.0, %v5271_v13  ;;  %v5295_v3 = vmax.f32 %v5271_v13, 0.0  ;;  %v20158_v6 = vld [vmem:[#allocation240_spill] sm:$0xff] }
 0x667   : > { %3817 = vperm.xlu1 %13832, %v3701_v44   ;;  %v4850_v44 = vadd.f32 %v4826_v54, %v4653_v35  ;;  %v1479_v54 = vmul.f32 %v17169_v24, %v20148_v29  ;;  %v1896_v49 = vadd.f32 %v1872_v34, %v1699_v33  ;;  %v2266_v24 = vmul.f32 %v17212_v37, %v20151_v52  ;;  %v20154_v29 = vld [vmem:[#allocation192_spill] sm:$0xff]  ;;  %v20155_v33 = vld [vmem:[#allocation250_spill] sm:$0xff] }
 0x668   : > { %v1306_v10 = vadd.f32 %v1282_v62, %v1109_v1  ;;  %v2070_v2 = vmul.f32 %v17199_v45, %v20154_v29  ;;  %v2660_v13 = vmul.f32 %v17237_v53, %v20155_v33  ;;  %v5319_v31 = vpack.c.bf16 %v5295_v3, %v5295_v3  ;;  %v20160_v33 = vld [vmem:[#allocation264_spill] sm:$0xff] }
 0x669   : > { %v5047_v57 = vadd.f32 %v5023_v22, %v4850_v44  ;;  %v2093_v46 = vadd.f32 %v2069_v56, %v1896_v49  ;;  %v20153_v44 = vld [vmem:[#allocation226_spill] sm:$0xff] }
 0x66a   : > { %v1503_v60 = vadd.f32 %v1479_v54, %v1306_v10  ;;  %v2463_v22 = vmul.f32 %v17223_v14, %v20153_v44 }
 0x66b   : > { %v2290_v34 = vadd.f32 %v2266_v24, %v2093_v46  ;;  %v2464_v46 = vmul.f32 %v17223_v14, %v20158_v6 }
 0x66c   : > { %v1700_v1 = vadd.f32 %v1676_v27, %v1503_v60  ;;  %v2857_v27 = vmul.f32 %v17247_v12, %v20157_v48 }
 0x66d   : > { %v17481_v59 = vpop.permute.xlu2 %4570  ;;  %v2487_v10 = vadd.f32 %v2463_v22, %v2290_v34 }
 0x66e   : > { %v17487_v61 = vpop.permute.xlu1 %3777  ;;  %v5152_v16 = vpop.permute.xlu0 %5151  ;;  %v1897_v56 = vadd.f32 %v1873_v51, %v1700_v1  ;;  %v20159_v51 = vld [vmem:[#allocation298_spill] sm:$0xff] }
 0x66f   : > { %v5220_v35 = vmul.f32 %v17329_v25, %v5152_v16  ;;  %4019 = vperm.xlu1 %13832, %v3899_v41   ;;  %v5367_v41 = vmax.f32 %v5343_v42, 0.0  ;;  %v2684_v3 = vadd.f32 %v2660_v13, %v2487_v10  ;;  %v3054_v44 = vmul.f32 %v17258_v32, %v20159_v51  ;;  %v20162_v10 = vld [vmem:[#allocation290_spill] sm:$0xff]  ;;  %v20164_v51 = vld [vmem:[#allocation204_spill] sm:$0xff] }
 0x670   : > { %v2094_v60 = vadd.f32 %v2070_v2, %v1897_v56  ;;  %v2858_v48 = vmul.f32 %v17247_v12, %v20162_v10 }
 0x671   : > { %v5244_v21 = vadd.f32 %v5220_v35, %v5047_v57  ;;  %v20156_v35 = vld [vmem:[#allocation216_spill] sm:$0xff]  ;;  %v5391_v45 = vpack.c.bf16 %v5367_v41, %v5367_v41  ;;  %v5439_v41 = vunpack.c.l.b16 %v5319_v31  ;;  %v2881_v2 = vadd.f32 %v2857_v27, %v2684_v3 }
 0x672   : > { %v2267_v42 = vmul.f32 %v17212_v37, %v20156_v35  ;;  %v6069_v37 = vpop.f32.mrf.mxu1  ;;  %v3448_v31 = vmul.f32 %v17294_v28, %v17385_v39 }
 0x673   : > { %v5272_v62 = vadd.f32 %v17392_v20, %v5244_v21 }
 0x674   : > { %v2291_v34 = vadd.f32 %v2267_v42, %v2094_v60  ;;  %v20163_v60 = vld [vmem:[#allocation310_spill] sm:$0xff] }
 0x675   : > { %v5296_v54 = vmax.f32 %v5272_v62, 0.0  ;;  %v5344_v16 = vsub.f32 0.0, %v5272_v62  ;;  %v17504_v57 = vpop.permute.xlu2 %4959  ;;  %v3055_v6 = vmul.f32 %v17258_v32, %v20163_v60 }
 0x676   : > { %v17510_v49 = vpop.permute.xlu1 %3979  ;;  %v2488_v35 = vadd.f32 %v2464_v46, %v2291_v34  ;;  %v3645_v46 = vmul.f32 %v17310_v55, %v17458_v7  ;;  %v3449_v34 = vmul.f32 %v17294_v28, %v17434_v50 }
 0x677   : > { %v5320_v52 = vpack.c.bf16 %v5296_v54, %v5296_v54  ;;  %v5368_v24 = vmax.f32 %v5344_v16, 0.0  ;;  %v3975_v21 = vpop.permute.xlu0 %3974  ;;  %4408 = vperm.xlu1 %13832, %v4292_v9   ;;  %v2661_v9 = vmul.f32 %v17237_v53, %v20160_v33  ;;  %v20161_v54 = vld [vmem:[#allocation318_spill] sm:$0xff]  ;;  %v5499_v16 = vunpack.c.l.b16 %v5391_v45 }
 0x678   : > { %v5952_v22 = vpop.f32.mrf.mxu0  ;;  %v3251_v14 = vmul.f32 %v17276_v47, %v20161_v54  ;;  %v4039_v54 = vmul.f32 %v17358_v19, %v3975_v21  ;;  %v4040_v60 = vmul.f32 %v17358_v19, %v17510_v49  ;;  %v5821_v49 = vshrl.u32 %v17407_v38, 16 }
 0x679   : > { %v5392_v62 = vpack.c.bf16 %v5368_v24, %v5368_v24  ;;  %v5440_v1 = vunpack.c.l.b16 %v5320_v52  ;;  %v17516_v29 = vadd.f32 %v6069_v37, %v5952_v22  ;;  %v4490_v52 = vld [vmem:[%s14115_s25 + $0xf9] sm:$0xff]  ;;  %v3078_v24 = vadd.f32 %v3054_v44, %v2881_v2 }
 0x67a   : > { %v2685_v27 = vadd.f32 %v2661_v9, %v2488_v35  ;;  %v20165_v44 = vld [vmem:[#allocation328_spill] sm:$0xff] }
 0x67b   : > { %v5500_v13 = vunpack.c.l.b16 %v5392_v62  ;;  %v17522_v56 = vpack.c.b16 %v5440_v1, %v5439_v41  ;;  %v3275_v45 = vadd.f32 %v3251_v14, %v3078_v24  ;;  %v3252_v22 = vmul.f32 %v17276_v47, %v20165_v44  ;;  %v4883_v47 = vld [vmem:[%s14115_s25 + $0xf3] sm:$0xff] }
 0x67c   : > { %v2882_v39 = vadd.f32 %v2858_v48, %v2685_v27  ;;  %v3842_v41 = vmul.f32 %v17350_v15, %v17487_v61  ;;  %v3843_v27 = vmul.f32 %v17350_v15, %v17410_v18 }
 0x67d   : > { %v17529_v42 = vpop.permute.xlu2 %5161  ;;  %v5517_v53 = vpack.c.b16 %v5500_v13, %v5499_v16  ;;  %v3472_v1 = vadd.f32 %v3448_v31, %v3275_v45  ;;  %v3646_v13 = vmul.f32 %v17310_v55, %v17452_v40  ;;  %v3111_v16 = vld [vmem:[%s14115_s25 + $0xdc] sm:$0xff]  ;;  %v4236_v40 = vmul.f32 %v17418_v43, %v17432_v26 }
 0x67e   : > { %v5530_v3 = vpop.permute.xlu1 %5529  ;;  %v3079_v7 = vadd.f32 %v3055_v6, %v2882_v39  ;;  %v5081_v6 = vld [vmem:[%s14115_s25 + $0xfc] sm:$0xff]  ;;  %v4433_v26 = vmul.f32 %v17368_v11, %v17450_v0 }
 0x67f   : > { %v5559_v12 = vsel %vm5547_vm0, %v20164_v51, %v5530_v3  ;;  %v4177_v37 = vpop.permute.xlu0 %4176  ;;  %4610 = vperm.xlu1 %13832, %v4490_v52   ;;  %5535 = vrot.lane.b32.xlu2 %v5517_v53, %s14007_s14  ;;  %v3669_v2 = vadd.f32 %v3645_v46, %v3472_v1 }
 0x680   : > { %v5602_v62 = vunpack.c.l.b16 %v5559_v12  ;;  %v5603_v32 = vunpack.c.h.b16 %v5559_v12  ;;  %v3276_v14 = vadd.f32 %v3252_v22, %v3079_v7  ;;  %v4237_v45 = vmul.f32 %v17418_v43, %v4177_v37  ;;  %v3504_v12 = vld [vmem:[%s14115_s25 + $0xe1] sm:$0xff] }
 0x681   : > { %v3866_v35 = vadd.f32 %v3842_v41, %v3669_v2  ;;  %v5024_v2 = vmul.f32 %v17287_v5, %v17504_v57 }
 0x682   : > { %v5626_v33 = vpack.c.b16 %v5602_v62, %v5602_v62  ;;  %v5627_v9 = vpack.c.b16 %v5603_v32, %v5603_v32  ;;  %v3473_v61 = vadd.f32 %v3449_v34, %v3276_v14  ;;  %v5823_v62 = vor.u32 %v5821_v49, %v17423_v23 }
 0x683   : > { %v4063_v50 = vadd.f32 %v4039_v54, %v3866_v35  ;;  %v4631_v34 = vmul.f32 %v17303_v8, %v17481_v59 }
 0x684   : > { %5674 = vst [vmem:[#allocation2 + $0x18] sm:$0xf] %v5626_v33  ;;  %v3670_v55 = vadd.f32 %v3646_v13, %v3473_v61 }
 0x685   : > { %5675 = vst [vmem:[#allocation2 + $0x1c] sm:$0xf] %v5627_v9  ;;  %v5542_v10 = vpop.permute.xlu2 %5541  ;;  %v3702_v9 = vld [vmem:[%s14115_s25 + $0xea] sm:$0xff] }
 0x686   : > { %v4566_v48 = vpop.permute.xlu1 %4565  ;;  %v5577_v28 = vsel %vm5547_vm0, %v17080_v63, %v5542_v10  ;;  %v4260_v63 = vadd.f32 %v4236_v40, %v4063_v50  ;;  %v3867_v3 = vadd.f32 %v3843_v27, %v3670_v55 }
 0x687   : > { %v5614_v52 = vunpack.c.l.b16 %v5577_v28  ;;  %v5615_v24 = vunpack.c.h.b16 %v5577_v28  ;;  %v4374_v21 = vpop.permute.xlu0 %4373  ;;  %4999 = vperm.xlu1 %13832, %v4883_v47   ;;  %3231 = vperm.xlu2 %13833, %v3111_v16   ;;  %v4630_v39 = vmul.f32 %v17303_v8, %v4566_v48  ;;  %v5222_v8 = vmul.f32 %v17329_v25, %v17529_v42  ;;  %v4095_v48 = vld [vmem:[%s14115_s25 + $0xe4] sm:$0xff] }
 0x688   : > { %v4064_v15 = vadd.f32 %v4040_v60, %v3867_v3  ;;  %v4434_v18 = vmul.f32 %v17368_v11, %v4374_v21  ;;  %v4457_v37 = vadd.f32 %v4433_v26, %v4260_v63 }
 0x689   : > { %v5638_v31 = vpack.c.b16 %v5614_v52, %v5614_v52  ;;  %v5639_v53 = vpack.c.b16 %v5615_v24, %v5615_v24 }
 0x68a   : > { %v4261_v22 = vadd.f32 %v4237_v45, %v4064_v15  ;;  %v4654_v11 = vadd.f32 %v4630_v39, %v4457_v37 }
 0x68b   : > { %5686 = vst [vmem:[#allocation2 + $0x48] sm:$0xf] %v5638_v31 }
 0x68c   : > { %5687 = vst [vmem:[#allocation2 + $0x4c] sm:$0xf] %v5639_v53  ;;  %v17559_v46 = vld [vmem:[#allocation2 + $0x18] sm:$0xff]  ;;  %v4458_v1 = vadd.f32 %v4434_v18, %v4261_v22 }
 0x68d   : > { %v13412_v51 = vld [vmem:[#allocation2 + $0x18] sm:$0xff]  ;;  %6083 = vmatmul.bf16.gmra.mxu1 %v17559_v46  ;;  %v5825_v43 = vshll.u32 %v17559_v46, 16 }
 0x68e   : > { %v4768_v19 = vpop.permute.xlu1 %4767  ;;  %6462 = vmatmul.bf16.gmra.mxu3 %v13412_v51  ;;  %v4655_v23 = vadd.f32 %v4631_v34, %v4458_v1  ;;  %v4686_v1 = vld [vmem:[%s14115_s25 + $0xf2] sm:$0xff] }
 0x68f   : > { %v4763_v44 = vpop.permute.xlu0 %4762  ;;  %5201 = vperm.xlu1 %13832, %v5081_v6   ;;  %3620 = vperm.xlu2 %13833, %v3504_v12   ;;  %v17571_v32 = vrot.slane %v5825_v43, 1  ;;  %v4828_v33 = vmul.f32 %v17265_v30, %v4768_v19  ;;  %v4293_v12 = vld [vmem:[%s14115_s25 + $0xf8] sm:$0xff] }
 0x690   : > { %v4827_v0 = vmul.f32 %v17265_v30, %v4763_v44 }
 0x691   : > { %v5828_v41 = vsel %vm5800_vm1, %v5823_v62, %v17571_v32  ;;  %v4852_v16 = vadd.f32 %v4828_v33, %v4655_v23  ;;  %v5829_v23 = vshrl.u32 %v17559_v46, 16 }
 0x692   : > { %v4851_v7 = vadd.f32 %v4827_v0, %v4654_v11  ;;  %5961 = vmatmul.bf16.gmra.mxu0 %v5828_v41 }
 0x693   : > { %v17598_v0 = vld [vmem:[#allocation2 + $0x48] sm:$0xff] }
 0x694   : > { %v5048_v14 = vadd.f32 %v5024_v2, %v4851_v7  ;;  %v13444_v7 = vld [vmem:[%s19387_s3 + $0x138] sm:$0xff]  ;;  %v3307_v2 = vld [vmem:[%s14115_s25 + $0xe0] sm:$0xff] }
 0x695   : > { %6756 = vmatpush.bf16.msrb.mxu0 %v13444_v7 }
 0x696   : > { %v5157_v54 = vpop.permute.xlu1 %5156 }
 0x697   : > { %v5221_v13 = vmul.f32 %v17329_v25, %v5157_v54  ;;  %v4965_v47 = vpop.permute.xlu0 %4964  ;;  %3822 = vperm.xlu2 %13833, %v3702_v9   ;;  %v5873_v9 = vshll.u32 %v17598_v0, 16 }
 0x698   : > { %v5025_v35 = vmul.f32 %v17287_v5, %v4965_v47  ;;  %v5831_v47 = vor.u32 %v5829_v23, %v17571_v32  ;;  %v3898_v32 = vld [vmem:[%s14115_s25 + $0xe3] sm:$0xff] }
 0x699   : > { %v5245_v10 = vadd.f32 %v5221_v13, %v5048_v14 }
 0x69a   : > { %v5049_v30 = vadd.f32 %v5025_v35, %v4852_v16 }
 0x69b   : > { %v5273_v59 = vadd.f32 %v17392_v20, %v5245_v10  ;;  %v5875_v10 = vrot.slane %v5873_v9, 1  ;;  %v13402_v9 = vld [vmem:[%s19387_s3 + $0x80] sm:$0xff] }
 0x69c   : > { %v5246_v61 = vadd.f32 %v5222_v8, %v5049_v30 }
 0x69d   : > { %v5297_v57 = vmax.f32 %v5273_v59, 0.0  ;;  %v5345_v28 = vsub.f32 0.0, %v5273_v59  ;;  %v4884_v59 = vld [vmem:[%s14115_s25 + $0xfb] sm:$0xff] }
 0x69e   : > { %v5274_v50 = vadd.f32 %v17392_v20, %v5246_v61  ;;  %v5540_v52 = vpop.permute.xlu1 %5539  ;;  %v3505_v61 = vld [vmem:[%s14115_s25 + $0xe9] sm:$0xff] }
 0x69f   : > { %v5369_v24 = vmax.f32 %v5345_v28, 0.0  ;;  %v5574_v21 = vsel %vm5547_vm0, %v17036_v17, %v5540_v52  ;;  %v5532_v55 = vpop.permute.xlu0 %5531  ;;  %4211 = vperm.xlu2 %13833, %v4095_v48   ;;  %v5321_v31 = vpack.c.bf16 %v5297_v57, %v5297_v57 }
 0x6a0   : > { %v5298_v5 = vmax.f32 %v5274_v50, 0.0  ;;  %v5346_v40 = vsub.f32 0.0, %v5274_v50  ;;  %v5612_v25 = vunpack.c.l.b16 %v5574_v21  ;;  %v5613_v42 = vunpack.c.h.b16 %v5574_v21 }
 0x6a1   : > { %v5393_v53 = vpack.c.bf16 %v5369_v24, %v5369_v24  ;;  %v5562_v27 = vsel %vm5547_vm0, %v16846_v36, %v5532_v55  ;;  %v5441_v26 = vunpack.c.l.b16 %v5321_v31  ;;  %v13443_v24 = vld [vmem:[%s19387_s3 + $0x130] sm:$0xff] }
 0x6a2   : > { %v5370_v60 = vmax.f32 %v5346_v40, 0.0  ;;  %v5636_v63 = vpack.c.b16 %v5612_v25, %v5612_v25  ;;  %v5637_v20 = vpack.c.b16 %v5613_v42, %v5613_v42  ;;  %v5604_v6 = vunpack.c.l.b16 %v5562_v27  ;;  %6757 = vmatpush.bf16.msrb.mxu0 %v13443_v24 }
 0x6a3   : > { %v5605_v3 = vunpack.c.h.b16 %v5562_v27  ;;  %v5322_v45 = vpack.c.bf16 %v5298_v5, %v5298_v5  ;;  %v5501_v18 = vunpack.c.l.b16 %v5393_v53  ;;  %v4096_v27 = vld [vmem:[%s14115_s25 + $0xec] sm:$0xff] }
 0x6a4   : > { %v5394_v51 = vpack.c.bf16 %v5370_v60, %v5370_v60  ;;  %5684 = vst [vmem:[#allocation2 + $0x40] sm:$0xf] %v5636_v63  ;;  %v5628_v17 = vpack.c.b16 %v5604_v6, %v5604_v6  ;;  %v13409_v60 = vld [vmem:[%s19387_s3 + $0xb8] sm:$0xff]  ;;  %v13407_v6 = vld [vmem:[%s19387_s3 + $0xa8] sm:$0xff] }
 0x6a5   : > { %5685 = vst [vmem:[#allocation2 + $0x44] sm:$0xf] %v5637_v20  ;;  %v5629_v39 = vpack.c.b16 %v5605_v3, %v5605_v3  ;;  %v5442_v15 = vunpack.c.l.b16 %v5322_v45  ;;  %v13442_v20 = vld [vmem:[%s19387_s3 + $0x128] sm:$0xff]  ;;  %v4489_v3 = vld [vmem:[%s14115_s25 + $0xf1] sm:$0xff] }
 0x6a6   : > { %5676 = vst [vmem:[#allocation2 + $0x20] sm:$0xf] %v5628_v17  ;;  %v5502_v19 = vunpack.c.l.b16 %v5394_v51  ;;  %v20166_v51 = vmov 0   ;;  %6758 = vmatpush.bf16.msrb.mxu0 %v13442_v20 }
 0x6a7   : > { %5677 = vst [vmem:[#allocation2 + $0x24] sm:$0xf] %v5629_v39  ;;  %4413 = vperm.xlu2 %13833, %v4293_v12   ;;  %v17593_v36 = vpack.c.b16 %v5442_v15, %v5441_v26  ;;  %v13406_v12 = vld [vmem:[%s19387_s3 + $0xa0] sm:$0xff]  ;;  %v5877_v26 = vshrl.u32 %v17598_v0, 16 }
 0x6a8   : > { %v5518_v49 = vpack.c.b16 %v5502_v19, %v5501_v18  ;;  %v5534_v43 = vpop.permute.xlu0 %5533 }
 0x6a9   : > { %v5565_v37 = vsel %vm5547_vm0, %v17363_v4, %v5534_v43  ;;  %v5879_v15 = vor.u32 %v5877_v26, %v5875_v10  ;;  %v13405_v43 = vld [vmem:[%s19387_s3 + $0x98] sm:$0xff]  ;;  %v13438_v26 = vld [vmem:[%s19387_s3 + $0x108] sm:$0xff] }
 0x6aa   : > { %5537 = vrot.lane.b32.xlu0 %v5518_v49, %s14007_s14  ;;  %v5606_v44 = vunpack.c.l.b16 %v5565_v37  ;;  %v5607_v22 = vunpack.c.h.b16 %v5565_v37  ;;  %v4687_v49 = vld [vmem:[%s14115_s25 + $0xfa] sm:$0xff] }
 0x6ac   : > { %v5630_v62 = vpack.c.b16 %v5606_v44, %v5606_v44  ;;  %v5631_v11 = vpack.c.b16 %v5607_v22, %v5607_v22  ;;  %v17601_v41 = vld [vmem:[#allocation2 + $0x40] sm:$0xff]  ;;  %v13404_v22 = vld [vmem:[%s19387_s3 + $0x90] sm:$0xff] }
 0x6ad   : > { %v5865_v33 = vshll.u32 %v17601_v41, 16  ;;  %v5869_v13 = vshrl.u32 %v17601_v41, 16 }
 0x6ae   : > { %5678 = vst [vmem:[#allocation2 + $0x28] sm:$0xf] %v5630_v62  ;;  %v17606_v34 = vld [vmem:[#allocation2 + $0x20] sm:$0xff] }
 0x6af   : > { %v13413_v4 = vld [vmem:[#allocation2 + $0x20] sm:$0xff]  ;;  %5679 = vst [vmem:[#allocation2 + $0x2c] sm:$0xf] %v5631_v11  ;;  %4802 = vperm.xlu2 %13833, %v4686_v1   ;;  %6088 = vmatmul.bf16.gmra.mxu1 %v17606_v34  ;;  %v5833_v54 = vshll.u32 %v17606_v34, 16  ;;  %v17614_v14 = vrot.slane %v5865_v33, 1  ;;  %v5837_v50 = vshrl.u32 %v17606_v34, 16 }
 0x6b0   : > { %6467 = vmatmul.bf16.gmra.mxu3 %v13413_v4  ;;  %v13441_v62 = vld [vmem:[%s19387_s3 + $0x120] sm:$0xff]  ;;  %v5080_v33 = vld [vmem:[%s14115_s25 + $0xf4] sm:$0xff] }
 0x6b1   : > { %v5835_v16 = vrot.slane %v5833_v54, 1  ;;  %v5871_v35 = vor.u32 %v5869_v13, %v17614_v14  ;;  %6759 = vmatpush.bf16.msrb.mxu0 %v13441_v62  ;;  %v20169_v62 = vld [vmem:[#allocation17_spill] sm:$0xff] }
 0x6b2   : > { %3423 = vperm.xlu0 %13831, %v3307_v2  }
 0x6b3   : > { %v5836_v8 = vsel %vm5800_vm1, %v5831_v47, %v5835_v16  ;;  %v5876_v30 = vsel %vm5800_vm1, %v5871_v35, %v5875_v10  ;;  %v5839_v5 = vor.u32 %v5837_v50, %v5835_v16  ;;  %v13440_v10 = vld [vmem:[%s19387_s3 + $0x118] sm:$0xff] }
 0x6b4   : > { %5966 = vmatmul.bf16.gmra.mxu0 %v5836_v8  ;;  %5991 = vmatmul.bf16.vlgmr.msra.gmra.mxu2 %v5876_v30  ;;  %v17694_v8 = vpop.f32.mrf.mxu1  ;;  %v17696_v30 = vpop.f32.mrf.mxu0 }
 0x6b5   : > { %6220 = vmatpush.bf16.msra.mxu2 %v13409_v60  ;;  %6760 = vmatpush.bf16.msrb.mxu0 %v13440_v10  ;;  %v13448_v60 = vld [vmem:[%s19387_s3 + $0x158] sm:$0xff] }
 0x6b6   : > { %v17623_v48 = vld [vmem:[#allocation2 + $0x28] sm:$0xff] }
 0x6b7   : > { %5004 = vperm.xlu2 %13833, %v4884_v59   ;;  %v5841_v57 = vshll.u32 %v17623_v48, 16  ;;  %v13414_v28 = vld [vmem:[#allocation2 + $0x28] sm:$0xff]  ;;  %v5845_v54 = vshrl.u32 %v17623_v48, 16  ;;  %v13740_v59 = vld [vmem:[#allocation2] sm:$0xf0] }
 0x6b9   : > { %v17629_v52 = vrot.slane %v5841_v57, 1  ;;  %v13452_v57 = vld [vmem:[%s19387_s3 + $0x178] sm:$0xff] }
 0x6ba   : > { %3625 = vperm.xlu0 %13831, %v3505_v61   ;;  %v13741_v61 = vld [vmem:[#allocation2] sm:$0xe]  ;;  %6935 = vmatpush.bf16.msrb.mxu1 %v13452_v57  ;;  %v20174_v57 = vld [vmem:[#allocation86_spill] sm:$0xff] }
 0x6bb   : > { %v5844_v42 = vsel %vm5800_vm1, %v5839_v5, %v17629_v52  ;;  %v5847_v47 = vor.u32 %v5845_v54, %v17629_v52  ;;  %v13742_v50 = vor.u32 %v13741_v61, %v13740_v59  ;;  %v13451_v52 = vld [vmem:[%s19387_s3 + $0x170] sm:$0xff]  ;;  %v13915_v5 = vld [vmem:[#allocation2 + $0x8] sm:$0xff] }
 0x6bd   : > { %v6141_v24 = vrot.slane %v13742_v50, 1 }
 0x6be   : > { %6936 = vmatpush.bf16.msrb.mxu1 %v13451_v52 }
 0x6bf   : > { %6093 = vmatmul.bf16.gmra.mxu1 %v17623_v48 }
 0x6c0   : > { %6472 = vmatmul.bf16.gmra.mxu3 %v13414_v28  ;;  %v17702_v28 = vpop.f32.mrf.mxu1 }
 0x6c1   : > { %v5544_v21 = vpop.permute.xlu1 %5543 }
 0x6c2   : > { %v5580_v55 = vsel %vm5547_vm0, %v17400_v58, %v5544_v21  ;;  %4014 = vperm.xlu0 %13831, %v3898_v32   ;;  %v13408_v58 = vld [vmem:[%s19387_s3 + $0xb0] sm:$0xff] }
 0x6c3   : > { %v5616_v40 = vunpack.c.l.b16 %v5580_v55  ;;  %v5617_v25 = vunpack.c.h.b16 %v5580_v55  ;;  %6221 = vmatpush.bf16.msra.mxu2 %v13408_v58  ;;  %v13439_v21 = vld [vmem:[%s19387_s3 + $0x110] sm:$0xff]  ;;  %v13450_v55 = vld [vmem:[%s19387_s3 + $0x168] sm:$0xff] }
 0x6c4   : > { %5971 = vmatmul.bf16.gmra.mxu0 %v5844_v42  ;;  %6937 = vmatpush.bf16.msrb.mxu1 %v13450_v55  ;;  %v20175_v55 = vld [vmem:[#allocation97_spill] sm:$0xff] }
 0x6c5   : > { %v5640_v31 = vpack.c.b16 %v5616_v40, %v5616_v40  ;;  %v5641_v53 = vpack.c.b16 %v5617_v25, %v5617_v25  ;;  %v6142_v40 = vrot.slane %v13915_v5, 1  ;;  %6761 = vmatpush.bf16.msrb.mxu0 %v13439_v21  ;;  %v13920_v21 = vld [vmem:[%s19385_s1 + $0x4] ss:$0 sm:$0xff] }
 0x6c6   : > { %v1290_v5 = vmul.f32 %v13920_v21, %v20175_v55 }
 0x6c7   : > { %5688 = vst [vmem:[#allocation2 + $0x50] sm:$0xf] %v5640_v31  ;;  %6222 = vmatpush.bf16.msra.mxu2 %v13407_v6  ;;  %v6143_v42 = vsel %vm6140_vm2, %v6141_v24, %v6142_v40  ;;  %v13447_v6 = vld [vmem:[%s19387_s3 + $0x150] sm:$0xff] }
 0x6c8   : > { %5689 = vst [vmem:[#allocation2 + $0x54] sm:$0xf] %v5641_v53  ;;  %v17718_v31 = vpop.f32.mrf.mxu1 }
 0x6c9   : > { %v17715_v25 = vpop.permute.xlu1 %3226  ;;  %6762 = vmatpush.bf16.msrb.mxu0 %v13438_v26  ;;  %v13921_v26 = vld [vmem:[%s19385_s1 + $0x5] ss:$0 sm:$0xff] }
 0x6ca   : > { %4216 = vperm.xlu0 %13831, %v4096_v27   ;;  %v13449_v27 = vld [vmem:[%s19387_s3 + $0x160] sm:$0xff] }
 0x6cb   : > { %6223 = vmatpush.bf16.msra.mxu2 %v13406_v12  ;;  %6938 = vmatpush.bf16.msrb.mxu1 %v13449_v27  ;;  %v6144_v12 = vrot.slane %v17407_v38, 1  ;;  %v20176_v27 = vld [vmem:[#allocation106_spill] sm:$0xff] }
 0x6ce   : > { %v5729_v63 = vld [vmem:[#allocation2 + $0x50] sm:$0x1] }
 0x6cf   : > { %v5788_v45 = vunpack.c.l.b16 %v5729_v63  ;;  %8093 = vst [vmem:[#allocation2 + $0x50] sm:$0x1] %v20166_v51  ;;  %6224 = vmatpush.bf16.msra.mxu2 %v13405_v43  ;;  %6939 = vmatpush.bf16.msrb.mxu1 %v13448_v60  ;;  %v20168_v43 = vld [vmem:[#allocation46_spill] sm:$0xff]  ;;  %v1289_v60 = vmul.f32 %v13920_v21, %v20176_v27 }
 0x6d1   : > { %v17653_v17 = vpack.c.b16 %v5788_v45, %v5788_v45  ;;  %v6079_v63 = vpop.f32.mrf.mxu1 }
 0x6d2   : > { %4605 = vperm.xlu0 %13831, %v4489_v3   ;;  %v17733_v3 = vpop.permute.xlu1 %3428 }
 0x6d3   : > { %v5881_v39 = vshll.u32 %v17653_v17, 16  ;;  %6225 = vmatpush.bf16.msra.mxu2 %v13404_v22  ;;  %6940 = vmatpush.bf16.msrb.mxu1 %v13447_v6  ;;  %v13917_v22 = vld [vmem:[%s19385_s1] ss:$0 sm:$0xff] }
 0x6d5   : > { %v5883_v18 = vrot.slane %v5881_v39, 1  ;;  %v13446_v39 = vld [vmem:[%s19387_s3 + $0x148] sm:$0xff] }
 0x6d6   : > { %v17704_v32 = vpop.f32.mrf.mxu0 }
 0x6d7   : > { %v5884_v19 = vsel %vm5800_vm1, %v5879_v15, %v5883_v18  ;;  %6941 = vmatpush.bf16.msrb.mxu1 %v13446_v39  ;;  %v13916_v15 = vld [vmem:[%s19385_s1 + $0x1] ss:$0 sm:$0xff] }
 0x6d8   : > { %5996 = vmatmul.bf16.gmra.mxu2 %v5884_v19  ;;  %v20167_v18 = vld [vmem:[#allocation37_spill] sm:$0xff] }
 0x6d9   : > { %v5536_v37 = vpop.permute.xlu2 %5535  ;;  %v699_v19 = vmul.f32 %v13916_v15, %v20167_v18  ;;  %v20177_v39 = vld [vmem:[#allocation117_spill] sm:$0xff] }
 0x6da   : > { %v5568_v44 = vsel %vm5547_vm0, %v17522_v56, %v5536_v37  ;;  %4807 = vperm.xlu0 %13831, %v4687_v49   ;;  %v13403_v56 = vld [vmem:[%s19387_s3 + $0x88] sm:$0xff]  ;;  %v6145_v49 = vsel %vm6140_vm2, %v6142_v40, %v6144_v12  ;;  %v698_v37 = vmul.f32 %v13916_v15, %v20168_v43  ;;  %v17771_v59 = vpop.permute.xlu1 %3817  ;;  %v1487_v15 = vmul.f32 %v13921_v26, %v20177_v39  ;;  %v20186_v39 = vld [vmem:[#allocation221_spill] sm:$0xff] }
 0x6db   : > { %v5608_v11 = vunpack.c.l.b16 %v5568_v44  ;;  %v5609_v1 = vunpack.c.h.b16 %v5568_v44  ;;  %6226 = vmatpush.bf16.msra.mxu2 %v13403_v56  ;;  %v13445_v44 = vld [vmem:[%s19387_s3 + $0x140] sm:$0xff] }
 0x6dc   : > { %6942 = vmatpush.bf16.msrb.mxu1 %v13445_v44 }
 0x6dd   : > { %v5632_v7 = vpack.c.b16 %v5608_v11, %v5608_v11  ;;  %v5633_v4 = vpack.c.b16 %v5609_v1, %v5609_v1  ;;  %v502_v11 = vmul.f32 %v13917_v22, %v20169_v62  ;;  %v13918_v1 = vld [vmem:[%s19385_s1 + $0x2] ss:$0 sm:$0xff] }
 0x6de   : > { %v17720_v53 = vpop.f32.mrf.mxu0 }
 0x6df   : > { %5680 = vst [vmem:[#allocation2 + $0x30] sm:$0xf] %v5632_v7  ;;  %6227 = vmatpush.bf16.msra.mxu2 %v13402_v9  ;;  %v20170_v7 = vld [vmem:[#allocation57_spill] sm:$0xff] }
 0x6e0   : > { %5681 = vst [vmem:[#allocation2 + $0x34] sm:$0xf] %v5633_v4  ;;  %v896_v4 = vmul.f32 %v13918_v1, %v20170_v7 }
 0x6e1   : > { %v17728_v58 = vpop.permute.xlu2 %3231 }
 0x6e2   : > { %5196 = vperm.xlu0 %13831, %v5080_v33   ;;  %v20171_v33 = vld [vmem:[#allocation26_spill] sm:$0xff]  ;;  %v17808_v55 = vpop.permute.xlu1 %4019 }
 0x6e3   : > { %v501_v9 = vmul.f32 %v13917_v22, %v20171_v33  ;;  %v20179_v22 = vld [vmem:[#allocation140_spill] sm:$0xff]  ;;  %v13923_v33 = vld [vmem:[%s19385_s1 + $0x7] ss:$0 sm:$0xff] }
 0x6e5   : > { %v722_v61 = vadd.f32 %v698_v37, %v501_v9  ;;  %v20181_v9 = vld [vmem:[#allocation163_spill] sm:$0xff] }
 0x6e7   : > { %v17680_v2 = vld [vmem:[#allocation2 + $0x30] sm:$0xff] }
 0x6e8   : > { %v13415_v23 = vld [vmem:[#allocation2 + $0x30] sm:$0xff]  ;;  %6108 = vmatmul.bf16.vlgmr.msrb.gmra.mxu2 %v17601_v41  ;;  %6098 = vmatmul.bf16.gmra.mxu1 %v17680_v2  ;;  %v5849_v13 = vshll.u32 %v17680_v2, 16 }
 0x6e9   : > { %6477 = vmatmul.bf16.gmra.mxu3 %v13415_v23  ;;  %v17763_v56 = vpop.permute.xlu2 %3620  ;;  %v20172_v23 = vld [vmem:[#allocation66_spill] sm:$0xff] }
 0x6ea   : > { %v17687_v16 = vrot.slane %v5849_v13, 1  ;;  %v895_v54 = vmul.f32 %v13918_v1, %v20172_v23  ;;  %v723_v13 = vadd.f32 %v699_v19, %v502_v11  ;;  %v20178_v19 = vld [vmem:[#allocation126_spill] sm:$0xff]  ;;  %v20180_v1 = vld [vmem:[#allocation149_spill] sm:$0xff]  ;;  %v1881_v23 = vmul.f32 %v13923_v33, %v20181_v9 }
 0x6eb   : > { %v13487_v9 = vld [vmem:[%s19387_s3 + $0x1f8] sm:$0xff] }
 0x6ec   : > { %v5852_v35 = vsel %vm5800_vm1, %v5847_v47, %v17687_v16  ;;  %v13919_v47 = vld [vmem:[%s19385_s1 + $0x3] ss:$0 sm:$0xff]  ;;  %v920_v24 = vadd.f32 %v896_v4, %v723_v13  ;;  %v6146_v13 = vrot.slane %v17559_v46, 1  ;;  %7471 = vmatpush.bf16.msrb.mxu3 %v13487_v9  ;;  %v13745_v9 = vld [vmem:[#allocation2 + $0x8] sm:$0xe] }
 0x6ed   : > { %5976 = vmatmul.bf16.gmra.mxu0 %v5852_v35  ;;  %v20173_v35 = vld [vmem:[#allocation77_spill] sm:$0xff]  ;;  %v1092_v50 = vmul.f32 %v13919_v47, %v20174_v57 }
 0x6ee   : > { %v1093_v10 = vmul.f32 %v13919_v47, %v20173_v35  ;;  %v13437_v47 = vld [vmem:[%s19387_s3 + $0x100] sm:$0xff] }
 0x6ef   : > { %6763 = vmatpush.bf16.msrb.mxu0 %v13437_v47  ;;  %v20190_v47 = vld [vmem:[#allocation269_spill] sm:$0xff] }
 0x6f0   : > { %v1117_v6 = vadd.f32 %v1093_v10, %v920_v24  ;;  %v20182_v10 = vld [vmem:[#allocation173_spill] sm:$0xff]  ;;  %v20183_v24 = vld [vmem:[#allocation187_spill] sm:$0xff] }
 0x6f2   : > { %v1314_v44 = vadd.f32 %v1290_v5, %v1117_v6  ;;  %v6147_v6 = vsel %vm6140_vm2, %v6144_v12, %v6146_v13 }
 0x6f4   : > { %v1511_v4 = vadd.f32 %v1487_v15, %v1314_v44  ;;  %v13470_v44 = vld [vmem:[%s19387_s3 + $0x1b8] sm:$0xff] }
 0x6f5   : > { %7159 = vmatpush.bf16.msrb.mxu2 %v13470_v44 }
 0x6f8   : > { %6113 = vmatmul.bf16.gmra.mxu2 %v17598_v0 }
 0x708   : > { %6228 = vmatmul.bf16.vlgmr.msra.gmra.mxu2 %v6143_v42  ;;  %v919_v42 = vadd.f32 %v895_v54, %v722_v61  ;;  %v17795_v54 = vpop.permute.xlu2 %3822  ;;  %v1880_v61 = vmul.f32 %v13923_v33, %v20182_v10 }
 0x70a   : > { %v1116_v18 = vadd.f32 %v1092_v50, %v919_v42 }
 0x70c   : > { %v1313_v11 = vadd.f32 %v1289_v60, %v1116_v18  ;;  %v13925_v60 = vld [vmem:[%s19385_s1 + $0x9] ss:$0 sm:$0xff]  ;;  %v17821_v18 = vpop.f32.mrf.mxu1 }
 0x70d   : > { %v2274_v15 = vmul.f32 %v13925_v60, %v20186_v39  ;;  %v20193_v39 = vld [vmem:[#allocation306_spill] sm:$0xff] }
 0x70f   : > { %v5962_v20 = vpop.f32.mrf.mxu0 }
 0x710   : > { %v17735_v45 = vadd.f32 %v6079_v63, %v5962_v20 }
 0x718   : > { %6233 = vmatmul.bf16.gmra.mxu2 %v6145_v49  ;;  %v1486_v49 = vmul.f32 %v13921_v26, %v20178_v19 }
 0x71a   : > { %v1510_v35 = vadd.f32 %v1486_v49, %v1313_v11  ;;  %v13926_v49 = vld [vmem:[%s19385_s1 + $0xa] ss:$0 sm:$0xff] }
 0x71c   : > { %v5538_v52 = vpop.permute.xlu0 %5537 }
 0x71d   : > { %v5571_v40 = vsel %vm5547_vm0, %v17593_v36, %v5538_v52  ;;  %v13922_v36 = vld [vmem:[%s19385_s1 + $0x6] ss:$0 sm:$0xff]  ;;  %v13924_v52 = vld [vmem:[%s19385_s1 + $0x8] ss:$0 sm:$0xff] }
 0x71e   : > { %v5610_v63 = vunpack.c.l.b16 %v5571_v40  ;;  %v5611_v20 = vunpack.c.h.b16 %v5571_v40  ;;  %v1684_v62 = vmul.f32 %v13922_v36, %v20179_v22  ;;  %v1683_v7 = vmul.f32 %v13922_v36, %v20180_v1  ;;  %v20184_v40 = vld [vmem:[#allocation197_spill] sm:$0xff]  ;;  %v17831_v22 = vpop.f32.mrf.mxu0 }
 0x71f   : > { %v2078_v21 = vmul.f32 %v13924_v52, %v20183_v24  ;;  %v2077_v42 = vmul.f32 %v13924_v52, %v20184_v40  ;;  %v20188_v36 = vld [vmem:[#allocation245_spill] sm:$0xff]  ;;  %v13928_v24 = vld [vmem:[%s19385_s1 + $0xc] ss:$0 sm:$0xff]  ;;  %v17850_v40 = vpop.permute.xlu2 %4211 }
 0x720   : > { %v5634_v43 = vpack.c.b16 %v5610_v63, %v5610_v63  ;;  %v5635_v37 = vpack.c.b16 %v5611_v20, %v5611_v20  ;;  %v1708_v50 = vadd.f32 %v1684_v62, %v1511_v4  ;;  %v1707_v5 = vadd.f32 %v1683_v7, %v1510_v35  ;;  %v20185_v63 = vld [vmem:[#allocation211_spill] sm:$0xff]  ;;  %v13927_v7 = vld [vmem:[%s19385_s1 + $0xb] ss:$0 sm:$0xff] }
 0x721   : > { %v2275_v20 = vmul.f32 %v13925_v60, %v20185_v63  ;;  %v2471_v12 = vmul.f32 %v13926_v49, %v20188_v36  ;;  %v20189_v4 = vld [vmem:[#allocation259_spill] sm:$0xff]  ;;  %v2668_v35 = vmul.f32 %v13927_v7, %v20190_v47 }
 0x722   : > { %5682 = vst [vmem:[#allocation2 + $0x38] sm:$0xf] %v5634_v43  ;;  %v1905_v27 = vadd.f32 %v1881_v23, %v1708_v50  ;;  %v1904_v26 = vadd.f32 %v1880_v61, %v1707_v5  ;;  %v20187_v43 = vld [vmem:[#allocation235_spill] sm:$0xff]  ;;  %v2669_v33 = vmul.f32 %v13927_v7, %v20189_v4  ;;  %v5853_v61 = vshrl.u32 %v17680_v2, 16 }
 0x723   : > { %5683 = vst [vmem:[#allocation2 + $0x3c] sm:$0xf] %v5635_v37  ;;  %v2472_v37 = vmul.f32 %v13926_v49, %v20187_v43  ;;  %v6084_v43 = vpop.f32.mrf.mxu1  ;;  %v13744_v4 = vld [vmem:[#allocation2 + $0x8] sm:$0xf0] }
 0x724   : > { %v17802_v57 = vpop.permute.xlu0 %3423  ;;  %v2102_v19 = vadd.f32 %v2078_v21, %v1905_v27  ;;  %v2101_v38 = vadd.f32 %v2077_v42, %v1904_v26  ;;  %v20191_v21 = vld [vmem:[#allocation283_spill] sm:$0xff]  ;;  %v5855_v63 = vor.u32 %v5853_v61, %v17687_v16  ;;  %v13929_v26 = vld [vmem:[%s19385_s1 + $0xd] ss:$0 sm:$0xff]  ;;  %v6148_v61 = vrot.slane %v17606_v34, 1 }
 0x725   : > { %v2866_v5 = vmul.f32 %v13928_v24, %v20191_v21  ;;  %v20192_v27 = vld [vmem:[#allocation295_spill] sm:$0xff] }
 0x726   : > { %v2299_v1 = vadd.f32 %v2275_v20, %v2102_v19  ;;  %v2298_v23 = vadd.f32 %v2274_v15, %v2101_v38  ;;  %v2865_v60 = vmul.f32 %v13928_v24, %v20192_v27  ;;  %v3063_v15 = vmul.f32 %v13929_v26, %v20193_v39  ;;  %v17858_v19 = vpop.permute.xlu1 %4408  ;;  %v20194_v38 = vld [vmem:[#allocation315_spill] sm:$0xff]  ;;  %v13495_v39 = vld [vmem:[%s19387_s3 + $0x238] sm:$0xff] }
 0x727   : > { %v3062_v36 = vmul.f32 %v13929_v26, %v20194_v38  ;;  %v13930_v16 = vld [vmem:[%s19385_s1 + $0xe] ss:$0 sm:$0xff]  ;;  %v13931_v24 = vld [vmem:[%s19385_s1 + $0xf] ss:$0 sm:$0xff]  ;;  %7650 = vmatpush.bf16.msra.mxu0 %v13495_v39  ;;  %v13937_v34 = vld [vmem:[%s19385_s1 + $0x15] ss:$0 sm:$0xff] }
 0x728   : > { %6238 = vmatmul.bf16.gmra.mxu2 %v6147_v6  ;;  %v2496_v52 = vadd.f32 %v2472_v37, %v2299_v1  ;;  %v2495_v42 = vadd.f32 %v2471_v12, %v2298_v23  ;;  %v3260_v12 = vmul.f32 %v13930_v16, %v17728_v58  ;;  %v3259_v47 = vmul.f32 %v13930_v16, %v17715_v25  ;;  %v13481_v39 = vld [vmem:[%s19387_s3 + $0x1c8] sm:$0xff] }
 0x729   : > { %v3456_v21 = vmul.f32 %v13931_v24, %v17802_v57  ;;  %v6149_v57 = vsel %vm6140_vm2, %v6146_v13, %v6148_v61  ;;  %v13417_v13 = vld [vmem:[#allocation2 + $0x40] sm:$0xff] }
 0x72a   : > { %v17833_v62 = vld [vmem:[#allocation2 + $0x38] sm:$0xff]  ;;  %v2693_v6 = vadd.f32 %v2669_v33, %v2496_v52  ;;  %v2692_v49 = vadd.f32 %v2668_v35, %v2495_v42  ;;  %v17869_v33 = vld [vmem:[#allocation2 + $0x10] sm:$0xff]  ;;  %v13485_v42 = vld [vmem:[%s19387_s3 + $0x1e8] sm:$0xff] }
 0x72b   : > { %v13416_v11 = vld [vmem:[#allocation2 + $0x38] sm:$0xff]  ;;  %6103 = vmatmul.bf16.gmra.mxu1 %v17833_v62  ;;  %v5857_v50 = vshll.u32 %v17833_v62, 16  ;;  %v6857_v25 = vrot.slane %v17869_v33, 1 }
 0x72c   : > { %6482 = vmatmul.bf16.gmra.mxu3 %v13416_v11  ;;  %v3626_v10 = vpop.permute.xlu0 %3625  ;;  %v2890_v44 = vadd.f32 %v2866_v5, %v2693_v6  ;;  %v13486_v11 = vld [vmem:[%s19387_s3 + $0x1f0] sm:$0xff]  ;;  %v2889_v1 = vadd.f32 %v2865_v60, %v2692_v49  ;;  %v13746_v5 = vor.u32 %v13745_v9, %v13744_v4  ;;  %v3457_v60 = vmul.f32 %v13931_v24, %v17733_v3 }
 0x72d   : > { %v5859_v20 = vrot.slane %v5857_v50, 1  ;;  %7472 = vmatpush.bf16.msrb.mxu3 %v13486_v11  ;;  %v13932_v6 = vld [vmem:[%s19385_s1 + $0x10] ss:$0 sm:$0xff] }
 0x72e   : > { %v3087_v23 = vadd.f32 %v3063_v15, %v2890_v44  ;;  %v3086_v50 = vadd.f32 %v3062_v36, %v2889_v1  ;;  %v3654_v26 = vmul.f32 %v13932_v6, %v3626_v10  ;;  %v17895_v15 = vpop.permute.xlu1 %4610  ;;  %v13484_v10 = vld [vmem:[%s19387_s3 + $0x1e0] sm:$0xff]  ;;  %v5861_v44 = vshrl.u32 %v17833_v62, 16  ;;  %v13933_v1 = vld [vmem:[%s19385_s1 + $0x11] ss:$0 sm:$0xff] }
 0x72f   : > { %v5860_v37 = vsel %vm5800_vm1, %v5855_v63, %v5859_v20  ;;  %v4414_v63 = vpop.permute.xlu2 %4413  ;;  %v3653_v38 = vmul.f32 %v13932_v6, %v17763_v56  ;;  %v13483_v56 = vld [vmem:[%s19387_s3 + $0x1d8] sm:$0xff]  ;;  %v3850_v9 = vmul.f32 %v13933_v1, %v17771_v59  ;;  %v13469_v59 = vld [vmem:[%s19387_s3 + $0x1b0] sm:$0xff] }
 0x730   : > { %5981 = vmatmul.bf16.gmra.mxu0 %v5860_v37  ;;  %v3284_v52 = vadd.f32 %v3260_v12, %v3087_v23  ;;  %v3283_v27 = vadd.f32 %v3259_v47, %v3086_v50  ;;  %v17900_v37 = vpop.f32.mrf.mxu1  ;;  %v5863_v11 = vor.u32 %v5861_v44, %v5859_v20  ;;  %v13934_v47 = vld [vmem:[%s19385_s1 + $0x12] ss:$0 sm:$0xff]  ;;  %7160 = vmatpush.bf16.msrb.mxu2 %v13469_v59 }
 0x731   : > { %v5967_v7 = vpop.f32.mrf.mxu0  ;;  %7473 = vmatpush.bf16.msrb.mxu3 %v13485_v42 }
 0x732   : > { %v17872_v35 = vadd.f32 %v6084_v43, %v5967_v7  ;;  %v3480_v3 = vadd.f32 %v3456_v21, %v3283_v27  ;;  %v3481_v49 = vadd.f32 %v3457_v60, %v3284_v52  ;;  %v6856_v43 = vrot.slane %v13746_v5, 1  ;;  %v13935_v21 = vld [vmem:[%s19385_s1 + $0x13] ss:$0 sm:$0xff]  ;;  %v13743_v27 = vld [vmem:[#allocation2 + $0x8] sm:$0xff]  }
 0x733   : > { %v3851_v7 = vmul.f32 %v13933_v1, %v17795_v54  ;;  %v5868_v20 = vsel %vm5800_vm1, %v5863_v11, %v17614_v14  ;;  %v4048_v52 = vmul.f32 %v13934_v47, %v17808_v55  ;;  %v6617_v44 = vshll.u32 %v13743_v27, 16  ;;  %v13480_v1 = vld [vmem:[%s19387_s3 + $0x1c0] sm:$0xff] }
 0x734   : > { %v4015_v58 = vpop.permute.xlu0 %4014  ;;  %v3678_v36 = vadd.f32 %v3654_v26, %v3481_v49  ;;  %v6858_v16 = vsel %vm6140_vm2, %v6856_v43, %v6857_v25  ;;  %v3677_v4 = vadd.f32 %v3653_v38, %v3480_v3  ;;  %v6150_v26 = vrot.slane %v17623_v48, 1  ;;  %v13494_v3 = vld [vmem:[%s19387_s3 + $0x230] sm:$0xff] }
 0x735   : > { %7474 = vmatpush.bf16.msrb.mxu3 %v13484_v10  ;;  %v4047_v50 = vmul.f32 %v13934_v47, %v4015_v58  ;;  %v13482_v58 = vld [vmem:[%s19387_s3 + $0x1d0] sm:$0xff]  ;;  %v4244_v10 = vmul.f32 %v13935_v21, %v17850_v40  ;;  %7651 = vmatpush.bf16.msra.mxu0 %v13494_v3  ;;  %v6622_v40 = vshll.u32 %v17869_v33, 16  ;;  %v13940_v3 = vld [vmem:[%s19385_s1 + $0x18] ss:$0 sm:$0xff] }
 0x736   : > { %v3875_v23 = vadd.f32 %v3851_v7, %v3678_v36  ;;  %v3874_v24 = vadd.f32 %v3850_v9, %v3677_v4  ;;  %v5000_v49 = vpop.permute.xlu1 %4999  ;;  %v13936_v38 = vld [vmem:[%s19385_s1 + $0x14] ss:$0 sm:$0xff]  ;;  %v6619_v9 = vrot.slane %v6617_v44, 1  ;;  %v17982_v44 = vld [vmem:[#allocation2 + $0x20] sm:$0xff] }
 0x737   : > { %v4803_v54 = vpop.permute.xlu2 %4802  ;;  %v4442_v36 = vmul.f32 %v13936_v38, %v4414_v63  ;;  %v4441_v7 = vmul.f32 %v13936_v38, %v17858_v19  ;;  %v17958_v63 = vpop.f32.mrf.mxu2 }
 0x738   : > { %6243 = vmatmul.bf16.gmra.mxu2 %v6149_v57  ;;  %v6089_v42 = vpop.f32.mrf.mxu1  ;;  %v4071_v55 = vadd.f32 %v4047_v50, %v3874_v24  ;;  %v4072_v60 = vadd.f32 %v4048_v52, %v3875_v23  ;;  %v17935_v57 = vld [vmem:[#allocation2 + $0x18] sm:$0xff]  ;;  %v4639_v23 = vmul.f32 %v13937_v34, %v17895_v15  ;;  %v6615_v52 = vshrl.u32 %v13743_v27, 16  ;;  %v13938_v15 = vld [vmem:[%s19385_s1 + $0x16] ss:$0 sm:$0xff] }
 0x739   : > { %v17902_v46 = vpop.f32.mrf.mxu0  ;;  %7475 = vmatpush.bf16.msrb.mxu3 %v13483_v56  ;;  %v6859_v11 = vrot.slane %v17935_v57, 1  ;;  %v13418_v56 = vld [vmem:[#allocation2 + $0x48] sm:$0xff]  ;;  %v6624_v24 = vrot.slane %v6622_v40, 1  ;;  %v13941_v40 = vld [vmem:[%s19386_s2] ss:$0 sm:$0xff] }
 0x73b   : > { %6943 = vmatmul.bf16.vlgmr.msrb.gmra.mxu1 %v6858_v16  ;;  %v4268_v16 = vadd.f32 %v4244_v10, %v4071_v55  ;;  %v6860_v50 = vsel %vm6140_vm2, %v6857_v25, %v6859_v11  ;;  %v13468_v25 = vld [vmem:[%s19387_s3 + $0x1a8] sm:$0xff]  ;;  %v13939_v55 = vld [vmem:[%s19385_s1 + $0x17] ss:$0 sm:$0xff] }
 0x73c   : > { %6487 = vmatmul.bf16.gmra.mxu3 %v13417_v13  ;;  %v4217_v12 = vpop.permute.xlu0 %4216  ;;  %7161 = vmatpush.bf16.msrb.mxu2 %v13468_v25 }
 0x73d   : > { %v4245_v5 = vmul.f32 %v13935_v21, %v4217_v12  ;;  %7476 = vmatpush.bf16.msrb.mxu3 %v13482_v58  ;;  %v6151_v12 = vsel %vm6140_vm2, %v6148_v61, %v6150_v26  ;;  %v4465_v47 = vadd.f32 %v4441_v7, %v4268_v16  ;;  %v6152_v16 = vrot.slane %v17680_v2, 1 }
 0x73e   : > { %v5202_v58 = vpop.permute.xlu1 %5201  ;;  %v6630_v2 = vshll.u32 %v17935_v57, 16 }
 0x73f   : > { %v4269_v13 = vadd.f32 %v4245_v5, %v4072_v60  ;;  %v5005_v19 = vpop.permute.xlu2 %5004  ;;  %v17984_v38 = vpop.f32.mrf.mxu2 }
 0x740   : > { %5986 = vmatmul.bf16.gmra.mxu0 %v5868_v20  ;;  %v5033_v27 = vmul.f32 %v13939_v55, %v5005_v19  ;;  %v13419_v19 = vld [vmem:[#allocation2 + $0x50] sm:$0xff] }
 0x741   : > { %v5972_v14 = vpop.f32.mrf.mxu0  ;;  %7477 = vmatpush.bf16.msrb.mxu3 %v13481_v39  ;;  %v4466_v4 = vadd.f32 %v4442_v36, %v4269_v13 }
 0x742   : > { %v17932_v6 = vadd.f32 %v6089_v42, %v5972_v14  ;;  %v6620_v42 = vor.u32 %v6619_v9, %v6615_v52  ;;  %v4835_v14 = vmul.f32 %v13938_v15, %v4803_v54  ;;  %v5032_v54 = vmul.f32 %v13939_v55, %v5000_v49 }
 0x743   : > { %v4663_v5 = vadd.f32 %v4639_v23, %v4466_v4  ;;  %v6153_v49 = vsel %vm6140_vm2, %v6150_v26, %v6152_v16  ;;  %v13493_v23 = vld [vmem:[%s19387_s3 + $0x228] sm:$0xff] }
 0x744   : > { %v4606_v43 = vpop.permute.xlu0 %4605  ;;  %v6625_v39 = vsel %vm5800_vm1, %v6620_v42, %v6624_v24  ;;  %7652 = vmatpush.bf16.msra.mxu0 %v13493_v23 }
 0x745   : > { %v4638_v61 = vmul.f32 %v13937_v34, %v4606_v43  ;;  %7478 = vmatpush.bf16.msrb.mxu3 %v13480_v1  ;;  %v5230_v43 = vmul.f32 %v13940_v3, %v5202_v58  ;;  %v6861_v34 = vrot.slane %v17982_v44, 1 }
 0x747   : > { %v4662_v21 = vadd.f32 %v4638_v61, %v4465_v47  ;;  %v6862_v48 = vsel %vm6140_vm2, %v6859_v11, %v6861_v34 }
 0x748   : > { %6248 = vmatmul.bf16.gmra.mxu2 %v6151_v12 }
 0x749   : > { %v4859_v10 = vadd.f32 %v4835_v14, %v4662_v21  ;;  %v13747_v14 = vld [vmem:[#allocation2 + $0x10] sm:$0xff]  }
 0x74b   : > { %6948 = vmatmul.bf16.gmra.mxu1 %v6860_v50  ;;  %v5056_v7 = vadd.f32 %v5032_v54, %v4859_v10 }
 0x74c   : > { %6492 = vmatmul.bf16.gmra.mxu3 %v13418_v56  ;;  %v4808_v20 = vpop.permute.xlu0 %4807 }
 0x74d   : > { %v4836_v59 = vmul.f32 %v13938_v15, %v4808_v20  ;;  %v6632_v15 = vrot.slane %v6630_v2, 1  ;;  %v6638_v2 = vshll.u32 %v17982_v44, 16 }
 0x74f   : > { %v4860_v60 = vadd.f32 %v4836_v59, %v4663_v5  ;;  %v6626_v5 = vshrl.u32 %v17869_v33, 16  ;;  %v13467_v33 = vld [vmem:[%s19387_s3 + $0x1a0] sm:$0xff] }
 0x750   : > { %6764 = vmatmul.bf16.vlgmr.msrb.gmra.mxu0 %v6625_v39  ;;  %7162 = vmatpush.bf16.msrb.mxu2 %v13467_v33 }
 0x751   : > { %v5057_v13 = vadd.f32 %v5033_v27, %v4860_v60  ;;  %v6628_v25 = vor.u32 %v6626_v5, %v6624_v24  ;;  %v18004_v60 = vld [vmem:[#allocation2 + $0x18] sm:$0xff]  ;;  %v18014_v24 = vpop.f32.mrf.mxu0  ;;  %v13492_v5 = vld [vmem:[%s19387_s3 + $0x220] sm:$0xff] }
 0x752   : > { %7653 = vmatpush.bf16.msra.mxu0 %v13492_v5 }
 0x753   : > { %v5254_v36 = vadd.f32 %v5230_v43, %v5057_v13  ;;  %v6633_v11 = vsel %vm5800_vm1, %v6628_v25, %v6632_v15  ;;  %v7332_v13 = vshll.u32 %v13747_v14, 16  ;;  %v18042_v25 = vld [vmem:[#allocation2 + $0x30] sm:$0xff] }
 0x754   : > { %v5197_v12 = vpop.permute.xlu0 %5196 }
 0x755   : > { %v5282_v1 = vadd.f32 %v13941_v40, %v5254_v36  ;;  %v5229_v4 = vmul.f32 %v13940_v3, %v5197_v12  ;;  %v18006_v3 = vpop.f32.mrf.mxu1 }
 0x757   : > { %v5354_v61 = vsub.f32 0.0, %v5282_v1  ;;  %v5253_v56 = vadd.f32 %v5229_v4, %v5056_v7  ;;  %v5306_v9 = vmax.f32 %v5282_v1, 0.0  ;;  %v18019_v1 = vld [vmem:[#allocation2 + $0x28] sm:$0xff]  ;;  %v7337_v7 = vshll.u32 %v18004_v60, 16 }
 0x758   : > { %6253 = vmatmul.bf16.gmra.mxu2 %v6153_v49  ;;  %v7334_v4 = vrot.slane %v7332_v13, 1  ;;  %v7330_v49 = vshrl.u32 %v13747_v14, 16 }
 0x759   : > { %v5281_v47 = vadd.f32 %v13941_v40, %v5253_v56  ;;  %v5378_v50 = vmax.f32 %v5354_v61, 0.0  ;;  %v5330_v26 = vpack.c.bf16 %v5306_v9, %v5306_v9  ;;  %v6154_v40 = vrot.slane %v17833_v62, 1 }
 0x75a   : > { %v6863_v56 = vrot.slane %v18019_v1, 1  ;;  %v7339_v9 = vrot.slane %v7337_v7, 1  ;;  %v7335_v23 = vor.u32 %v7334_v4, %v7330_v49 }
 0x75b   : > { %v5305_v20 = vmax.f32 %v5281_v47, 0.0  ;;  %v5353_v52 = vsub.f32 0.0, %v5281_v47  ;;  %v17998_v21 = vpop.f32.mrf.mxu2  ;;  %6953 = vmatmul.bf16.gmra.mxu1 %v6862_v48  ;;  %v5402_v42 = vpack.c.bf16 %v5378_v50, %v5378_v50  ;;  %v5450_v39 = vunpack.c.l.b16 %v5330_v26 }
 0x75c   : > { %6497 = vmatmul.bf16.gmra.mxu3 %v13419_v19  ;;  %v6155_v61 = vsel %vm6140_vm2, %v6152_v16, %v6154_v40  ;;  %v6864_v19 = vsel %vm6140_vm2, %v6861_v34, %v6863_v56  ;;  %v6634_v16 = vshrl.u32 %v17935_v57, 16  ;;  %v6640_v26 = vrot.slane %v6638_v2, 1  ;;  %v18039_v34 = vpop.f32.mrf.mxu3 }
 0x75d   : > { %v5329_v59 = vpack.c.bf16 %v5305_v20, %v5305_v20  ;;  %v5377_v58 = vmax.f32 %v5353_v52, 0.0  ;;  %v5510_v10 = vunpack.c.l.b16 %v5402_v42  ;;  %v6094_v47 = vpop.f32.mrf.mxu1  ;;  %v7340_v20 = vsel %vm5800_vm1, %v7335_v23, %v7339_v9 }
 0x75f   : > { %v5401_v55 = vpack.c.bf16 %v5377_v58, %v5377_v58  ;;  %v5449_v27 = vunpack.c.l.b16 %v5329_v59  ;;  %v6636_v59 = vor.u32 %v6634_v16, %v6632_v15  ;;  %v18037_v58 = vld [vmem:[#allocation2 + $0x20] sm:$0xff]  ;;  %v13466_v15 = vld [vmem:[%s19387_s3 + $0x198] sm:$0xff] }
 0x760   : > { %6769 = vmatmul.bf16.gmra.mxu0 %v6633_v11  ;;  %v7345_v14 = vshll.u32 %v18037_v58, 16  ;;  %7163 = vmatpush.bf16.msrb.mxu2 %v13466_v15  ;;  %v7341_v11 = vshrl.u32 %v18004_v60, 16  ;;  %v7349_v5 = vshrl.u32 %v18037_v58, 16 }
 0x761   : > { %v5509_v43 = vunpack.c.l.b16 %v5401_v55  ;;  %v18012_v54 = vpack.c.b16 %v5450_v39, %v5449_v27  ;;  %v6641_v42 = vsel %vm5800_vm1, %v6636_v59, %v6640_v26  ;;  %v6156_v55 = vrot.slane %v17601_v41, 1 }
 0x762   : > { %v6865_v39 = vrot.slane %v18042_v25, 1  ;;  %v7343_v13 = vor.u32 %v7341_v11, %v7339_v9  ;;  %v18067_v9 = vld [vmem:[#allocation2 + $0x28] sm:$0xff] }
 0x763   : > { %v18016_v36 = vpop.f32.mrf.mxu2  ;;  %v5522_v12 = vpack.c.b16 %v5510_v10, %v5509_v43  ;;  %v6157_v27 = vsel %vm6140_vm2, %v6154_v40, %v6156_v55  ;;  %v7347_v43 = vrot.slane %v7345_v14, 1  ;;  %v6646_v10 = vshll.u32 %v18019_v1, 16 }
 0x764   : > { %v6642_v40 = vshrl.u32 %v17982_v44, 16  ;;  %v13464_v44 = vld [vmem:[%s19387_s3 + $0x188] sm:$0xff] }
 0x765   : > { %5545 = vrot.lane.b32.xlu2 %v5522_v12, %s14007_s14  ;;  %v6866_v12 = vsel %vm6140_vm2, %v6863_v56, %v6865_v39  ;;  %v7348_v7 = vsel %vm5800_vm1, %v7343_v13, %v7347_v43  ;;  %v6648_v4 = vrot.slane %v6646_v10, 1  ;;  %v18100_v13 = vld [vmem:[#allocation2 + $0x30] sm:$0xff] }
 0x766   : > { %v6644_v49 = vor.u32 %v6642_v40, %v6640_v26  ;;  %20197 = vst [vmem:[#allocation287_spill] sm:$0xff] %v18100_v13 }
 0x768   : > { %6258 = vmatmul.bf16.gmra.mxu2 %v6155_v61  ;;  %v13465_v61 = vld [vmem:[%s19387_s3 + $0x190] sm:$0xff]  ;;  %v6649_v56 = vsel %vm5800_vm1, %v6644_v49, %v6648_v4 }
 0x769   : > { %7164 = vmatpush.bf16.msrb.mxu2 %v13465_v61 }
 0x76a   : > { %v5977_v62 = vpop.f32.mrf.mxu0 }
 0x76b   : > { %v6109_v50 = vpop.f32.mrf.mxu2  ;;  %v18028_v52 = vadd.f32 %v6094_v47, %v5977_v62  ;;  %6958 = vmatmul.bf16.gmra.mxu1 %v6864_v19  ;;  %v18078_v47 = vld [vmem:[#allocation2 + $0x38] sm:$0xff]  ;;  %v7353_v62 = vshll.u32 %v18067_v9, 16  ;;  %v13463_v19 = vld [vmem:[%s19387_s3 + $0x180] sm:$0xff] }
 0x76c   : > { %v18031_v48 = vadd.f32 %v6109_v50, %v17958_v63  ;;  %7479 = vmatmul.bf16.vlgmr.msrb.gmra.mxu3 %v7340_v20  ;;  %v6158_v20 = vrot.slane %v17598_v0, 1  ;;  %v6867_v26 = vrot.slane %v18078_v47, 1  ;;  %v6662_v49 = vshll.u32 %v18078_v47, 16 }
 0x76d   : > { %7165 = vmatpush.bf16.msrb.mxu2 %v13464_v44  ;;  %v7355_v59 = vrot.slane %v7353_v62, 1 }
 0x76e   : > { %v6159_v16 = vsel %vm6140_vm2, %v6156_v55, %v6158_v20  ;;  %v6868_v14 = vsel %vm6140_vm2, %v6865_v39, %v6867_v26  ;;  %v6650_v55 = vshrl.u32 %v18019_v1, 16  ;;  %v6160_v39 = vrot.slane %v17653_v17, 1  ;;  %v18112_v1 = vld [vmem:[#allocation2 + $0x40] sm:$0xff] }
 0x76f   : > { %v6869_v17 = vrot.slane %v18112_v1, 1 }
 0x770   : > { %6774 = vmatmul.bf16.gmra.mxu0 %v6641_v42  ;;  %v6654_v42 = vshll.u32 %v18042_v25, 16  ;;  %v6652_v10 = vor.u32 %v6650_v55, %v6648_v4  ;;  %v6161_v40 = vsel %vm6140_vm2, %v6158_v20, %v6160_v39  ;;  %v7357_v4 = vshrl.u32 %v18067_v9, 16  ;;  %v13489_v39 = vld [vmem:[%s19387_s3 + $0x208] sm:$0xff] }
 0x771   : > { %7166 = vmatpush.bf16.msrb.mxu2 %v13463_v19  ;;  %v6658_v20 = vshrl.u32 %v18042_v25, 16  ;;  %v7365_v55 = vshrl.u32 %v18100_v13, 16 }
 0x772   : > { %v6656_v11 = vrot.slane %v6654_v42, 1  ;;  %v18139_v25 = vpop.f32.mrf.mxu0 }
 0x773   : > { %v6111_v63 = vpop.f32.mrf.mxu2 }
 0x774   : > { %v18046_v57 = vadd.f32 %v6111_v63, %v17984_v38  ;;  %v18056_v38 = vpop.f32.mrf.mxu3  ;;  %v7351_v63 = vor.u32 %v7349_v5, %v7347_v43  ;;  %v6657_v43 = vsel %vm5800_vm1, %v6652_v10, %v6656_v11  ;;  %v6660_v42 = vor.u32 %v6658_v20, %v6656_v11 }
 0x776   : > { %20195 = vst [vmem:[#allocation342_spill] sm:$0xff] %v18046_v57  ;;  %v7356_v15 = vsel %vm5800_vm1, %v7351_v63, %v7355_v59  ;;  %v18127_v63 = vld [vmem:[#allocation2 + $0x38] sm:$0xff] }
 0x777   : > { %20198 = vst [vmem:[#allocation6_spill] sm:$0xff] %v18127_v63 }
 0x778   : > { %6263 = vmatmul.bf16.gmra.mxu2 %v6157_v27 }
 0x77b   : > { %v6114_v33 = vpop.f32.mrf.mxu2  ;;  %6963 = vmatmul.bf16.gmra.mxu1 %v6866_v12  ;;  %v7361_v12 = vshll.u32 %v18100_v13, 16 }
 0x77c   : > { %v18061_v41 = vadd.f32 %v6114_v33, %v17998_v21  ;;  %7484 = vmatmul.bf16.gmra.mxu3 %v7348_v7  ;;  %v13491_v21 = vld [vmem:[%s19387_s3 + $0x218] sm:$0xff]  ;;  %v18076_v2 = vpop.f32.mrf.mxu3 }
 0x77d   : > { %7654 = vmatpush.bf16.msra.mxu0 %v13491_v21  ;;  %v7363_v61 = vrot.slane %v7361_v12, 1  ;;  %v6075_v21 = vadd.f32 %v17702_v28, %v17704_v32  ;;  %v7369_v32 = vshll.u32 %v18127_v63, 16  ;;  %v6666_v12 = vshrl.u32 %v18078_v47, 16 }
 0x77f   : > { %v7371_v11 = vrot.slane %v7369_v32, 1 }
 0x780   : > { %6779 = vmatmul.bf16.gmra.mxu0 %v6649_v56  ;;  %v7359_v56 = vor.u32 %v7357_v4, %v7355_v59 }
 0x782   : > { %v7364_v62 = vsel %vm5800_vm1, %v7359_v56, %v7363_v61 }
 0x783   : > { %v6116_v23 = vpop.f32.mrf.mxu2 }
 0x784   : > { %v18082_v50 = vadd.f32 %v6116_v23, %v18016_v36  ;;  %v18094_v27 = vpop.f32.mrf.mxu3  ;;  %v6870_v23 = vsel %vm6140_vm2, %v6867_v26, %v6869_v17  ;;  %v18133_v26 = vpop.f32.mrf.mxu1 }
 0x786   : > { %20196 = vst [vmem:[#allocation286_spill] sm:$0xff] %v18082_v50 }
 0x788   : > { %6268 = vmatmul.bf16.gmra.mxu2 %v6159_v16  ;;  %v6664_v16 = vrot.slane %v6662_v49, 1 }
 0x78a   : > { %v6665_v59 = vsel %vm5800_vm1, %v6660_v42, %v6664_v16  ;;  %v18164_v42 = vld [vmem:[#allocation2 + $0x50] sm:$0xff] }
 0x78b   : > { %v6229_v36 = vpop.f32.mrf.mxu2  ;;  %6968 = vmatmul.bf16.gmra.mxu1 %v6868_v14 }
 0x78c   : > { %v18097_v0 = vadd.f32 %v6229_v36, %v17516_v29  ;;  %7489 = vmatmul.bf16.gmra.mxu3 %v7356_v15  ;;  %v18107_v7 = vpop.f32.mrf.mxu3  ;;  %v13490_v29 = vld [vmem:[%s19387_s3 + $0x210] sm:$0xff]  ;;  %v18135_v36 = vld [vmem:[#allocation2 + $0x48] sm:$0xff]  ;;  %v18150_v56 = vpop.f32.mrf.mxu1 }
 0x78d   : > { %7655 = vmatpush.bf16.msra.mxu0 %v13490_v29  ;;  %v13453_v15 = vld [vmem:[#allocation2 + $0x10] sm:$0xff]  ;;  %v6871_v10 = vrot.slane %v18135_v36, 1  ;;  %v6670_v29 = vshll.u32 %v18112_v1, 16 }
 0x78f   : > { %v6872_v4 = vsel %vm6140_vm2, %v6869_v17, %v6871_v10  ;;  %v18160_v17 = vld [vmem:[#allocation2 + $0x40] sm:$0xff] }
 0x790   : > { %6784 = vmatmul.bf16.gmra.mxu0 %v6657_v43  ;;  %v7367_v43 = vor.u32 %v7365_v55, %v7363_v61  ;;  %v6668_v61 = vor.u32 %v6666_v12, %v6664_v16  ;;  %20199 = vst [vmem:[#allocation22_spill] sm:$0xff] %v18160_v17  ;;  %v19423_v55 = vrot.slane %v18164_v42, 1 }
 0x791   : > { %7656 = vmatpush.bf16.msra.mxu0 %v13489_v39 }
 0x792   : > { %v7372_v49 = vsel %vm5800_vm1, %v7367_v43, %v7371_v11 }
 0x793   : > { %v18103_v33 = vpop.f32.mrf.mxu2 }
 0x794   : > { %v18125_v5 = vpop.f32.mrf.mxu3  ;;  %v18168_v32 = vpop.f32.mrf.mxu1 }
 0x798   : > { %6273 = vmatmul.bf16.gmra.mxu2 %v6161_v40 }
 0x79b   : > { %v6234_v44 = vpop.f32.mrf.mxu2  ;;  %6973 = vmatmul.bf16.gmra.mxu1 %v6870_v23  ;;  %v6672_v23 = vrot.slane %v6670_v29, 1  ;;  %v6674_v29 = vshrl.u32 %v18112_v1, 16 }
 0x79c   : > { %v18122_v19 = vadd.f32 %v6234_v44, %v6075_v21  ;;  %7494 = vmatmul.bf16.gmra.mxu3 %v7364_v62  ;;  %v18137_v14 = vpop.f32.mrf.mxu3 }
 0x79d   : > { %v6673_v62 = vsel %vm5800_vm1, %v6668_v61, %v6672_v23 }
 0x7a0   : > { %6789 = vmatmul.bf16.gmra.mxu0 %v6665_v59  ;;  %v7377_v59 = vshll.u32 %v18160_v17, 16 }
 0x7a2   : > { %v7379_v39 = vrot.slane %v7377_v59, 1 }
 0x7a3   : > { %v18130_v28 = vpop.f32.mrf.mxu2 }
 0x7a4   : > { %v18157_v47 = vpop.f32.mrf.mxu3 }
 0x7a8   : > { %7167 = vmatmul.bf16.vlgmr.msrb.gmra.mxu2 %v13453_v15  ;;  %v13454_v15 = vld [vmem:[#allocation2 + $0x18] sm:$0xff]  ;;  %v6104_v1 = vpop.f32.mrf.mxu1 }
 0x7ab   : > { %v6239_v40 = vpop.f32.mrf.mxu2  ;;  %6978 = vmatmul.bf16.gmra.mxu1 %v6872_v4 }
 0x7ac   : > { %v18153_v21 = vadd.f32 %v6239_v40, %v17735_v45  ;;  %7499 = vmatmul.bf16.gmra.mxu3 %v7372_v49  ;;  %v7373_v45 = vshrl.u32 %v18127_v63, 16  ;;  %v18173_v12 = vpop.f32.mrf.mxu3  ;;  %v6678_v40 = vshll.u32 %v18135_v36, 16  ;;  %v6874_v49 = vsel %vm6140_vm2, %v6871_v10, %v19423_v55  ;;  %v7258_v55 = vld [vmem:[#allocation2 + $0x60] sm:$0x1] }
 0x7ad   : > { %v18155_v44 = vpop.f32.mrf.mxu0 }
 0x7ae   : > { %v7375_v43 = vor.u32 %v7373_v45, %v7371_v11  ;;  %v6676_v11 = vor.u32 %v6674_v29, %v6672_v23  ;;  %v13488_v45 = vld [vmem:[%s19387_s3 + $0x200] sm:$0xff]  ;;  %v18192_v23 = vld [vmem:[#allocation2 + $0x48] sm:$0xff] }
 0x7af   : > { %7657 = vmatpush.bf16.msra.mxu0 %v13488_v45  ;;  %v7381_v45 = vshrl.u32 %v18160_v17, 16 }
 0x7b0   : > { %6794 = vmatmul.bf16.gmra.mxu0 %v6673_v62  ;;  %v7380_v61 = vsel %vm5800_vm1, %v7375_v43, %v7379_v39 }
 0x7b3   : > { %v18162_v20 = vpop.f32.mrf.mxu2 }
 0x7b5   : > { %v18170_v16 = vpop.f32.mrf.mxu0 }
 0x7b8   : > { %7172 = vmatmul.bf16.gmra.mxu2 %v13454_v15  ;;  %v6680_v15 = vrot.slane %v6678_v40, 1  ;;  %v18196_v40 = vpop.f32.mrf.mxu3 }
 0x7bb   : > { %v6244_v4 = vpop.f32.mrf.mxu2  ;;  %6983 = vmatmul.bf16.gmra.mxu1 %v6874_v49 }
 0x7bc   : > { %v18182_v62 = vadd.f32 %v6244_v4, %v17872_v35  ;;  %7504 = vmatmul.bf16.gmra.mxu3 %v7380_v61  ;;  %v6681_v35 = vsel %vm5800_vm1, %v6676_v11, %v6680_v15  ;;  %v7317_v11 = vunpack.c.l.b16 %v7258_v55 }
 0x7bd   : > { %v5987_v59 = vpop.f32.mrf.mxu0 }
 0x7be   : > { %v18187_v51 = vadd.f32 %v6104_v1, %v5987_v59  ;;  %v7385_v1 = vshll.u32 %v18192_v23, 16  ;;  %v7383_v59 = vor.u32 %v7381_v45, %v7379_v39  ;;  %v18212_v39 = vld [vmem:[#allocation2 + $0x50] sm:$0xff]  ;;  %v6503_v45 = vadd.f32 %v18039_v34, %v18097_v0 }
 0x7bf   : > { %v5546_v50 = vpop.permute.xlu2 %5545 }
 0x7c0   : > { %v5583_v10 = vsel %vm5547_vm0, %v18012_v54, %v5546_v50  ;;  %6799 = vmatmul.bf16.gmra.mxu0 %v6681_v35  ;;  %v13455_v50 = vld [vmem:[#allocation2 + $0x20] sm:$0xff]  ;;  %v7387_v35 = vrot.slane %v7385_v1, 1 }
 0x7c1   : > { %v5618_v43 = vunpack.c.l.b16 %v5583_v10  ;;  %v5619_v4 = vunpack.c.h.b16 %v5583_v10  ;;  %v6686_v10 = vshll.u32 %v18164_v42, 16 }
 0x7c2   : > { %v7388_v57 = vsel %vm5800_vm1, %v7383_v59, %v7387_v35 }
 0x7c3   : > { %v5642_v29 = vpack.c.b16 %v5618_v43, %v5618_v43  ;;  %v5643_v49 = vpack.c.b16 %v5619_v4, %v5619_v4  ;;  %v18194_v61 = vpop.f32.mrf.mxu2  ;;  %v18203_v43 = vpack.c.b16 %v7317_v11, %v7317_v11  ;;  %v6688_v63 = vrot.slane %v6686_v10, 1 }
 0x7c5   : > { %5690 = vst [vmem:[#allocation2 + $0x58] sm:$0xf] %v5642_v29  ;;  %v18200_v54 = vpop.f32.mrf.mxu0  ;;  %v18206_v29 = vpop.f32.mrf.mxu3 }
 0x7c6   : > { %5691 = vst [vmem:[#allocation2 + $0x5c] sm:$0xf] %v5643_v49  ;;  %v6682_v49 = vshrl.u32 %v18135_v36, 16 }
 0x7c7   : > { %20200 = vst [vmem:[#allocation7_spill] sm:$0xff] %v18206_v29  ;;  %v7590_v29 = vrot.slane %v18203_v43, 1 }
 0x7c8   : > { %7177 = vmatmul.bf16.gmra.mxu2 %v13455_v50  ;;  %v6684_v59 = vor.u32 %v6682_v49, %v6680_v15  ;;  %v20203_v49 = vrot.slane %v18164_v42, 1 }
 0x7ca   : > { %v6689_v10 = vsel %vm5800_vm1, %v6684_v59, %v6688_v63  ;;  %v13456_v59 = vld [vmem:[#allocation2 + $0x28] sm:$0xff] }
 0x7cb   : > { %v6249_v4 = vpop.f32.mrf.mxu2 }
 0x7cc   : > { %v18209_v17 = vadd.f32 %v6249_v4, %v17932_v6  ;;  %7509 = vmatmul.bf16.gmra.mxu3 %v7388_v57  ;;  %v6543_v55 = vld [vmem:[#allocation2 + $0x58] sm:$0x1]  ;;  %v6072_v6 = vadd.f32 %v17694_v8, %v17696_v30  ;;  %v19427_v4 = vrot.slane %v18212_v39, 1 }
 0x7cd   : > { %v6602_v1 = vunpack.c.l.b16 %v6543_v55  ;;  %v18216_v50 = vld [vmem:[#allocation2 + $0x58] sm:$0xff]  ;;  %v6765_v11 = vpop.f32.mrf.mxu0 }
 0x7ce   : > { %v18221_v57 = vadd.f32 %v6765_v11, %v6503_v45  ;;  %v7588_v13 = vrot.slane %v18216_v50, 1  ;;  %v6280_v34 = vadd.f32 %v18103_v33, %v6072_v6  ;;  %v7393_v45 = vshll.u32 %v18212_v39, 16 }
 0x7cf   : > { %v6613_v36 = vpack.c.b16 %v6602_v1, %v6602_v1  ;;  %v6480_v1 = vpop.f32.mrf.mxu3 }
 0x7d0   : > { %6804 = vmatmul.bf16.gmra.mxu0 %v6689_v10  ;;  %v18230_v15 = vsel %vm6140_vm2, %v19427_v4, %v7588_v13  ;;  %v18233_v8 = vsel %vm6140_vm2, %v7588_v13, %v7590_v29  ;;  %v6504_v33 = vadd.f32 %v18056_v38, %v6280_v34  ;;  %v7389_v10 = vshrl.u32 %v18192_v23, 16 }
 0x7d1   : > { %v6875_v0 = vrot.slane %v6613_v36, 1  ;;  %20201 = vst [vmem:[#allocation30_spill] sm:$0xff] %v18230_v15  ;;  %v7395_v13 = vrot.slane %v7393_v45, 1  ;;  %v6694_v29 = vshll.u32 %v6613_v36, 16  ;;  %v6690_v38 = vshrl.u32 %v18164_v42, 16  ;;  %v13457_v45 = vld [vmem:[#allocation2 + $0x30] sm:$0xff] }
 0x7d2   : > { %20202 = vst [vmem:[#allocation42_spill] sm:$0xff] %v18233_v8  ;;  %v7391_v4 = vor.u32 %v7389_v10, %v7387_v35  ;;  %v6077_v36 = vadd.f32 %v17718_v31, %v17720_v53  ;;  %v6097_v42 = vadd.f32 %v18133_v26, %v18139_v25  ;;  %v7397_v53 = vshrl.u32 %v18212_v39, 16 }
 0x7d3   : > { %v18235_v30 = vpop.f32.mrf.mxu2  ;;  %v6876_v55 = vsel %vm6140_vm2, %v20203_v49, %v6875_v0  ;;  %v6696_v34 = vrot.slane %v6694_v29, 1  ;;  %v6505_v49 = vadd.f32 %v18076_v2, %v18122_v19  ;;  %v13749_v29 = vld [vmem:[#allocation2 + $0x10] sm:$0xe]  ;;  %v6100_v25 = vadd.f32 %v18150_v56, %v18155_v44 }
 0x7d4   : > { %6988 = vmatmul.bf16.gmra.mxu1 %v6876_v55  ;;  %v7396_v15 = vsel %vm5800_vm1, %v7391_v4, %v7395_v13  ;;  %v7399_v26 = vor.u32 %v7397_v53, %v7395_v13  ;;  %v6082_v13 = vadd.f32 %v17821_v18, %v17831_v22  ;;  %v13458_v22 = vld [vmem:[#allocation2 + $0x38] sm:$0xff] }
 0x7d5   : > { %v6767_v11 = vpop.f32.mrf.mxu0 }
 0x7d6   : > { %v18242_v6 = vadd.f32 %v6767_v11, %v6504_v33  ;;  %v6692_v11 = vor.u32 %v6690_v38, %v6688_v63  ;;  %v6284_v44 = vadd.f32 %v18162_v20, %v6082_v13 }
 0x7d7   : > { %v6483_v55 = vpop.f32.mrf.mxu3 }
 0x7d8   : > { %7182 = vmatmul.bf16.gmra.mxu2 %v13456_v59  ;;  %v6697_v4 = vsel %vm5800_vm1, %v6692_v11, %v6696_v34  ;;  %v6507_v11 = vadd.f32 %v18107_v7, %v18153_v21  ;;  %v7409_v7 = vshll.u32 %v18203_v43, 16 }
 0x7db   : > { %v6254_v8 = vpop.f32.mrf.mxu2 }
 0x7dc   : > { %v18247_v0 = vadd.f32 %v6254_v8, %v18028_v52  ;;  %7514 = vmatmul.bf16.gmra.mxu3 %v7396_v15  ;;  %v6282_v52 = vadd.f32 %v18130_v28, %v6077_v36  ;;  %v7401_v8 = vshll.u32 %v18216_v50, 16  ;;  %v13748_v28 = vld [vmem:[#allocation2 + $0x10] sm:$0xf0] }
 0x7dd   : > { %v6770_v33 = vpop.f32.mrf.mxu0  ;;  %v13750_v34 = vor.u32 %v13749_v29, %v13748_v28 }
 0x7de   : > { %v18254_v35 = vadd.f32 %v6770_v33, %v6505_v49  ;;  %v6506_v19 = vadd.f32 %v18094_v27, %v6282_v52  ;;  %v7403_v10 = vrot.slane %v7401_v8, 1 }
 0x7df   : > { %v6485_v38 = vpop.f32.mrf.mxu3 }
 0x7e0   : > { %6809 = vmatmul.bf16.gmra.mxu0 %v6697_v4  ;;  %v7404_v27 = vsel %vm5800_vm1, %v7399_v26, %v7403_v10  ;;  %v7571_v4 = vrot.slane %v13750_v34, 1 }
 0x7e3   : > { %v6256_v15 = vpop.f32.mrf.mxu2 }
 0x7e4   : > { %v6290_v2 = vadd.f32 %v6256_v15, %v6097_v42 }
 0x7e5   : > { %v6772_v63 = vpop.f32.mrf.mxu0 }
 0x7e6   : > { %v18262_v59 = vadd.f32 %v6480_v1, %v6290_v2  ;;  %v18264_v31 = vadd.f32 %v6772_v63, %v6506_v19  ;;  %v7572_v1 = vrot.slane %v18004_v60, 1  ;;  %v6102_v60 = vadd.f32 %v18168_v32, %v18170_v16 }
 0x7e7   : > { %v6488_v15 = vpop.f32.mrf.mxu3  ;;  %v7405_v2 = vshrl.u32 %v18216_v50, 16  ;;  %v6509_v50 = vadd.f32 %v18137_v14, %v18182_v62 }
 0x7e8   : > { %7187 = vmatmul.bf16.gmra.mxu2 %v13457_v45  ;;  %v7573_v56 = vsel %vm6140_vm2, %v7571_v4, %v7572_v1  ;;  %v7411_v45 = vrot.slane %v7409_v7, 1 }
 0x7e9   : > { %v7407_v20 = vor.u32 %v7405_v2, %v7403_v10  ;;  %v6087_v10 = vadd.f32 %v17900_v37, %v17902_v46 }
 0x7eb   : > { %v6259_v49 = vpop.f32.mrf.mxu2  ;;  %v7412_v32 = vsel %vm5800_vm1, %v7407_v20, %v7411_v45  ;;  %v6286_v34 = vadd.f32 %v18194_v61, %v6087_v10  ;;  %v6511_v61 = vadd.f32 %v18173_v12, %v18209_v17  ;;  %v13460_v17 = vld [vmem:[#allocation2 + $0x48] sm:$0xff]  ;;  %v13461_v45 = vld [vmem:[#allocation2 + $0x50] sm:$0xff] }
 0x7ec   : > { %v6291_v33 = vadd.f32 %v6259_v49, %v6100_v25  ;;  %7519 = vmatmul.bf16.gmra.mxu3 %v7404_v27  ;;  %v6106_v25 = vpop.f32.mrf.mxu1  ;;  %v13459_v27 = vld [vmem:[#allocation2 + $0x40] sm:$0xff] }
 0x7ed   : > { %v6775_v36 = vpop.f32.mrf.mxu0  ;;  %v6510_v14 = vadd.f32 %v18157_v47, %v6286_v34  ;;  %v6092_v47 = vadd.f32 %v18006_v3, %v18014_v24  ;;  %v20204_v24 = vld [vmem:[#allocation287_spill] sm:$0xff] }
 0x7ee   : > { %v18273_v52 = vadd.f32 %v6483_v55, %v6291_v33  ;;  %v18277_v42 = vadd.f32 %v6775_v36, %v6507_v11  ;;  %v6508_v55 = vadd.f32 %v18125_v5, %v6284_v44  ;;  %v7574_v5 = vrot.slane %v18037_v58, 1 }
 0x7ef   : > { %v6490_v16 = vpop.f32.mrf.mxu3  ;;  %v7576_v36 = vrot.slane %v18067_v9, 1  ;;  %v6288_v44 = vadd.f32 %v18235_v30, %v6092_v47  ;;  %v7578_v7 = vrot.slane %v20204_v24, 1  ;;  %v20205_v30 = vld [vmem:[#allocation7_spill] sm:$0xff] }
 0x7f0   : > { %7658 = vmatmul.bf16.vlgmr.msra.gmra.mxu0 %v7573_v56  ;;  %v7575_v26 = vsel %vm6140_vm2, %v7572_v1, %v7574_v5 }
 0x7f1   : > { %v7577_v56 = vsel %vm6140_vm2, %v7574_v5, %v7576_v36  ;;  %v6512_v9 = vadd.f32 %v18196_v40, %v6288_v44  ;;  %v7579_v40 = vsel %vm6140_vm2, %v7576_v36, %v7578_v7 }
 0x7f3   : > { %v6261_v8 = vpop.f32.mrf.mxu2 }
 0x7f4   : > { %v6292_v21 = vadd.f32 %v6261_v8, %v6102_v60 }
 0x7f5   : > { %v6777_v18 = vpop.f32.mrf.mxu0 }
 0x7f6   : > { %v18286_v19 = vadd.f32 %v6485_v38, %v6292_v21  ;;  %v18288_v63 = vadd.f32 %v6777_v18, %v6508_v55  ;;  %v6513_v55 = vadd.f32 %v20205_v30, %v18247_v0 }
 0x7f7   : > { %v6493_v37 = vpop.f32.mrf.mxu3 }
 0x7f8   : > { %7192 = vmatmul.bf16.gmra.mxu2 %v13458_v22 }
 0x7fb   : > { %v6264_v53 = vpop.f32.mrf.mxu2 }
 0x7fc   : > { %v6293_v43 = vadd.f32 %v6264_v53, %v18187_v51  ;;  %7524 = vmatmul.bf16.gmra.mxu3 %v7412_v32  ;;  %v6107_v51 = vadd.f32 %v6106_v25, %v18200_v54  ;;  %v20207_v25 = vld [vmem:[#allocation22_spill] sm:$0xff] }
 0x7fd   : > { %v6780_v28 = vpop.f32.mrf.mxu0  ;;  %v7582_v34 = vrot.slane %v20207_v25, 1 }
 0x7fe   : > { %v18295_v29 = vadd.f32 %v6488_v15, %v6293_v43  ;;  %v18299_v38 = vadd.f32 %v6780_v28, %v6509_v50  ;;  %v13462_v28 = vld [vmem:[#allocation2 + $0x58] sm:$0xff] }
 0x7ff   : > { %v18317_v60 = vpop.f32.mrf.mxu3 }
 0x800   : > { %7663 = vmatmul.bf16.gmra.mxu0 %v7575_v26 }
 0x803   : > { %v6266_v58 = vpop.f32.mrf.mxu2 }
 0x804   : > { %v6294_v49 = vadd.f32 %v6266_v58, %v6107_v51 }
 0x805   : > { %v6782_v62 = vpop.f32.mrf.mxu0 }
 0x806   : > { %v6518_v33 = vadd.f32 %v6490_v16, %v6294_v49  ;;  %v18305_v11 = vadd.f32 %v6782_v62, %v6510_v14  ;;  %v6944_v49 = vpop.f32.mrf.mxu1 }
 0x807   : > { %v6498_v21 = vpop.f32.mrf.mxu3 }
 0x808   : > { %7197 = vmatmul.bf16.gmra.mxu2 %v13459_v27 }
 0x80b   : > { %v6269_v46 = vpop.f32.mrf.mxu2 }
 0x80c   : > { %v6295_v1 = vadd.f32 %v6269_v46, %v18031_v48 }
 0x80d   : > { %v6785_v54 = vpop.f32.mrf.mxu0 }
 0x80e   : > { %v6519_v4 = vadd.f32 %v6493_v37, %v6295_v1  ;;  %v18313_v13 = vadd.f32 %v6785_v54, %v6511_v61  ;;  %v6946_v37 = vpop.f32.mrf.mxu1  ;;  %v7584_v1 = vrot.slane %v18192_v23, 1 }
 0x810   : > { %7668 = vmatmul.bf16.gmra.mxu0 %v7577_v56  ;;  %v7585_v54 = vsel %vm6140_vm2, %v7582_v34, %v7584_v1 }
 0x813   : > { %v18319_v48 = vpop.f32.mrf.mxu2 }
 0x815   : > { %v6787_v15 = vpop.f32.mrf.mxu0 }
 0x816   : > { %v18322_v12 = vadd.f32 %v6787_v15, %v6512_v9  ;;  %v6949_v47 = vpop.f32.mrf.mxu1 }
 0x818   : > { %7202 = vmatmul.bf16.gmra.mxu2 %v13460_v17 }
 0x81b   : > { %v6274_v8 = vpop.f32.mrf.mxu2 }
 0x81c   : > { %v6297_v3 = vadd.f32 %v6274_v8, %v18061_v41  ;;  %v20206_v41 = vld [vmem:[#allocation6_spill] sm:$0xff]  ;;  %v20208_v8 = vrot.slane %v18212_v39, 1 }
 0x81d   : > { %v6790_v2 = vpop.f32.mrf.mxu0  ;;  %v7580_v32 = vrot.slane %v20206_v41, 1 }
 0x81e   : > { %v6521_v18 = vadd.f32 %v6498_v21, %v6297_v3  ;;  %v18328_v22 = vadd.f32 %v6790_v2, %v6513_v55  ;;  %v7587_v23 = vsel %vm6140_vm2, %v7584_v1, %v20208_v8  ;;  %v13518_v3 = vld [vmem:[%s19389_s5 + $0x78] sm:$0xff]  ;;  %v6994_v21 = vadd.f32 %v6944_v49, %v18221_v57 }
 0x81f   : > { %v7581_v0 = vsel %vm6140_vm2, %v7578_v7, %v7580_v32  ;;  %v7583_v58 = vsel %vm6140_vm2, %v7580_v32, %v7582_v34  ;;  %8311 = vmatpush.bf16.msra.mxu1 %v13518_v3 }
 0x820   : > { %7673 = vmatmul.bf16.gmra.mxu0 %v7579_v40 }
 0x823   : > { %v18339_v5 = vpop.f32.mrf.mxu2 }
 0x825   : > { %v6792_v20 = vpop.f32.mrf.mxu0 }
 0x826   : > { %v18332_v53 = vadd.f32 %v6792_v20, %v18262_v59  ;;  %v18344_v59 = vpop.f32.mrf.mxu3 }
 0x828   : > { %7207 = vmatmul.bf16.gmra.mxu2 %v13461_v45  ;;  %v6995_v45 = vadd.f32 %v6946_v37, %v18242_v6  ;;  %v13517_v37 = vld [vmem:[%s19389_s5 + $0x70] sm:$0xff] }
 0x829   : > { %8312 = vmatpush.bf16.msra.mxu1 %v13517_v37  ;;  %v13516_v37 = vld [vmem:[%s19389_s5 + $0x68] sm:$0xff] }
 0x82b   : > { %v7168_v51 = vpop.f32.mrf.mxu2 }
 0x82c   : > { %v7218_v55 = vadd.f32 %v7168_v51, %v6994_v21  ;;  %v6996_v51 = vadd.f32 %v6949_v47, %v18254_v35 }
 0x82d   : > { %v6795_v16 = vpop.f32.mrf.mxu0  ;;  %8313 = vmatpush.bf16.msra.mxu1 %v13516_v37 }
 0x82e   : > { %v18336_v43 = vadd.f32 %v6795_v16, %v18273_v52  ;;  %v7480_v14 = vpop.f32.mrf.mxu3 }
 0x82f   : > { %v7530_v2 = vadd.f32 %v7480_v14, %v7218_v55 }
 0x830   : > { %7678 = vmatmul.bf16.gmra.mxu0 %v7581_v0  ;;  %v20209_v0 = vld [vmem:[#allocation30_spill] sm:$0xff] }
 0x835   : > { %v6797_v50 = vpop.f32.mrf.mxu0 }
 0x836   : > { %v18342_v10 = vadd.f32 %v6797_v50, %v18286_v19  ;;  %v7170_v19 = vpop.f32.mrf.mxu2  ;;  %v7482_v61 = vpop.f32.mrf.mxu3  ;;  %v13509_v50 = vld [vmem:[%s19389_s5 + $0x30] sm:$0xff] }
 0x837   : > { %v7219_v32 = vadd.f32 %v7170_v19, %v6995_v45 }
 0x838   : > { %7212 = vmatmul.bf16.gmra.mxu2 %v13462_v28 }
 0x839   : > { %v7531_v25 = vadd.f32 %v7482_v61, %v7219_v32 }
 0x83d   : > { %v6800_v26 = vpop.f32.mrf.mxu0 }
 0x83e   : > { %v18348_v52 = vadd.f32 %v6800_v26, %v18295_v29  ;;  %v7173_v29 = vpop.f32.mrf.mxu2  ;;  %v7485_v44 = vpop.f32.mrf.mxu3 }
 0x83f   : > { %v7220_v14 = vadd.f32 %v7173_v29, %v6996_v51 }
 0x840   : > { %7683 = vmatmul.bf16.gmra.mxu0 %v7583_v58 }
 0x845   : > { %v6802_v62 = vpop.f32.mrf.mxu0 }
 0x846   : > { %v18351_v27 = vadd.f32 %v6802_v62, %v6518_v33  ;;  %v7175_v9 = vpop.f32.mrf.mxu2  ;;  %v6951_v33 = vpop.f32.mrf.mxu1 }
 0x847   : > { %v7487_v24 = vpop.f32.mrf.mxu3  ;;  %v6997_v29 = vadd.f32 %v6951_v33, %v18264_v31 }
 0x84d   : > { %v6805_v46 = vpop.f32.mrf.mxu0 }
 0x84e   : > { %v18354_v36 = vadd.f32 %v6805_v46, %v6519_v4  ;;  %v13510_v4 = vld [vmem:[%s19389_s5 + $0x38] sm:$0xff]  ;;  %v7178_v30 = vpop.f32.mrf.mxu2  ;;  %v6954_v39 = vpop.f32.mrf.mxu1 }
 0x84f   : > { %8416 = vmatpush.bf16.msra.mxu2 %v13510_v4  ;;  %v18378_v40 = vpop.f32.mrf.mxu3 }
 0x850   : > { %7688 = vmatmul.bf16.gmra.mxu0 %v7585_v54 }
 0x853   : > { %8417 = vmatpush.bf16.msra.mxu2 %v13509_v50 }
 0x855   : > { %v18357_v56 = vpop.f32.mrf.mxu0 }
 0x856   : > { %v18381_v16 = vpop.f32.mrf.mxu2  ;;  %v6956_v28 = vpop.f32.mrf.mxu1 }
 0x857   : > { %v18389_v49 = vpop.f32.mrf.mxu3 }
 0x85d   : > { %v6810_v15 = vpop.f32.mrf.mxu0 }
 0x85e   : > { %v18359_v17 = vadd.f32 %v6810_v15, %v6521_v18  ;;  %v18376_v18 = vld [vmem:[%s19388_s4] ss:$0 sm:$0xff]  ;;  %v18395_v46 = vpop.f32.mrf.mxu2  ;;  %v6959_v15 = vpop.f32.mrf.mxu1 }
 0x85f   : > { %v7495_v50 = vpop.f32.mrf.mxu3 }
 0x860   : > { %7693 = vmatmul.bf16.gmra.mxu0 %v7587_v23  ;;  %v7532_v23 = vadd.f32 %v7485_v44, %v7220_v14 }
 0x865   : > { %v18370_v7 = vpop.f32.mrf.mxu0 }
 0x86d   : > { %v7659_v20 = vpop.f32.mrf.mxu0 }
 0x86e   : > { %v7709_v41 = vadd.f32 %v7659_v20, %v7530_v2  ;;  %v7221_v20 = vadd.f32 %v7175_v9, %v6997_v29  ;;  %v6998_v9 = vadd.f32 %v6954_v39, %v18277_v42  ;;  %v7497_v42 = vpop.f32.mrf.mxu3 }
 0x870   : > { %v7733_v57 = vadd.f32 %v18376_v18, %v7709_v41  ;;  %7698 = vmatmul.bf16.gmra.mxu0 %v20209_v0  ;;  %v7533_v31 = vadd.f32 %v7487_v24, %v7221_v20 }
 0x872   : > { %v7793_v26 = vsub.f32 0.0, %v7733_v57  ;;  %v7753_v6 = vmax.f32 %v7733_v57, 0.0  ;;  %v20210_v57 = vld [vmem:[#allocation42_spill] sm:$0xff] }
 0x874   : > { %v7813_v62 = vmax.f32 %v7793_v26, 0.0  ;;  %v7773_v1 = vpack.c.bf16 %v7753_v6, %v7753_v6 }
 0x875   : > { %v7661_v34 = vpop.f32.mrf.mxu0 }
 0x876   : > { %v7710_v58 = vadd.f32 %v7661_v34, %v7531_v25  ;;  %v7833_v35 = vpack.c.bf16 %v7813_v62, %v7813_v62  ;;  %v7873_v3 = vunpack.c.l.b16 %v7773_v1  ;;  %v18402_v25 = vpop.f32.mrf.mxu2  ;;  %v6961_v34 = vpop.f32.mrf.mxu1 }
 0x878   : > { %v7734_v19 = vadd.f32 %v18376_v18, %v7710_v58  ;;  %v7923_v45 = vunpack.c.l.b16 %v7833_v35  ;;  %v7222_v58 = vadd.f32 %v7178_v30, %v6998_v9 }
 0x87a   : > { %v7754_v54 = vmax.f32 %v7734_v19, 0.0  ;;  %v7794_v61 = vsub.f32 0.0, %v7734_v19  ;;  %v13508_v19 = vld [vmem:[%s19389_s5 + $0x28] sm:$0xff]  ;;  %v7534_v35 = vadd.f32 %v18378_v40, %v7222_v58  ;;  %v7500_v40 = vpop.f32.mrf.mxu3  ;;  %v13507_v58 = vld [vmem:[%s19389_s5 + $0x20] sm:$0xff] }
 0x87b   : > { %8418 = vmatpush.bf16.msra.mxu2 %v13508_v19 }
 0x87c   : > { %v7774_v47 = vpack.c.bf16 %v7754_v54, %v7754_v54  ;;  %v7814_v8 = vmax.f32 %v7794_v61, 0.0 }
 0x87d   : > { %v7664_v4 = vpop.f32.mrf.mxu0 }
 0x87e   : > { %v7834_v21 = vpack.c.bf16 %v7814_v8, %v7814_v8  ;;  %v7874_v55 = vunpack.c.l.b16 %v7774_v47  ;;  %v7711_v2 = vadd.f32 %v7664_v4, %v7532_v23  ;;  %v6999_v47 = vadd.f32 %v6956_v28, %v18288_v63  ;;  %v7188_v23 = vpop.f32.mrf.mxu2 }
 0x87f   : > { %8419 = vmatpush.bf16.msra.mxu2 %v13507_v58 }
 0x880   : > { %v7924_v41 = vunpack.c.l.b16 %v7834_v21  ;;  %v7735_v32 = vadd.f32 %v18376_v18, %v7711_v2  ;;  %7703 = vmatmul.bf16.gmra.mxu0 %v20210_v57  ;;  %v18400_v0 = vpack.c.b16 %v7874_v55, %v7873_v3  ;;  %v7223_v55 = vadd.f32 %v18381_v16, %v6999_v47  ;;  %v6964_v2 = vpop.f32.mrf.mxu1 }
 0x882   : > { %v7943_v26 = vpack.c.b16 %v7924_v41, %v7923_v45  ;;  %v7795_v44 = vsub.f32 0.0, %v7735_v32  ;;  %v7755_v51 = vmax.f32 %v7735_v32, 0.0  ;;  %v7535_v63 = vadd.f32 %v18389_v49, %v7223_v55 }
 0x884   : > { %7953 = vrot.lane.b32.xlu0 %v7943_v26, %s14007_s14  ;;  %v7815_v14 = vmax.f32 %v7795_v44, 0.0  ;;  %v7775_v1 = vpack.c.bf16 %v7755_v51, %v7755_v51  ;;  %v7000_v44 = vadd.f32 %v6959_v15, %v18299_v38 }
 0x885   : > { %v7666_v33 = vpop.f32.mrf.mxu0 }
 0x886   : > { %v7712_v6 = vadd.f32 %v7666_v33, %v7533_v31  ;;  %v7835_v39 = vpack.c.bf16 %v7815_v14, %v7815_v14  ;;  %v7875_v29 = vunpack.c.l.b16 %v7775_v1  ;;  %v7224_v16 = vadd.f32 %v18395_v46, %v7000_v44  ;;  %v7190_v9 = vpop.f32.mrf.mxu2 }
 0x888   : > { %v7736_v62 = vadd.f32 %v18376_v18, %v7712_v6  ;;  %v7925_v20 = vunpack.c.l.b16 %v7835_v39  ;;  %v6966_v14 = vpop.f32.mrf.mxu1  ;;  %v7536_v15 = vadd.f32 %v7495_v50, %v7224_v16 }
 0x88a   : > { %v7756_v24 = vmax.f32 %v7736_v62, 0.0  ;;  %v7796_v54 = vsub.f32 0.0, %v7736_v62 }
 0x88c   : > { %v7776_v61 = vpack.c.bf16 %v7756_v24, %v7756_v24  ;;  %v7816_v30 = vmax.f32 %v7796_v54, 0.0  ;;  %v7001_v24 = vadd.f32 %v6961_v34, %v18305_v11 }
 0x88d   : > { %v7669_v8 = vpop.f32.mrf.mxu0 }
 0x88e   : > { %v7836_v4 = vpack.c.bf16 %v7816_v30, %v7816_v30  ;;  %v7876_v3 = vunpack.c.l.b16 %v7776_v61  ;;  %v7713_v21 = vadd.f32 %v7669_v8, %v7534_v35  ;;  %v7502_v35 = vpop.f32.mrf.mxu3  ;;  %v7225_v47 = vadd.f32 %v18402_v25, %v7001_v24  ;;  %v7193_v50 = vpop.f32.mrf.mxu2 }
 0x88f   : > { %v7002_v25 = vadd.f32 %v6964_v2, %v18313_v13 }
 0x890   : > { %v7926_v45 = vunpack.c.l.b16 %v7836_v4  ;;  %v7737_v41 = vadd.f32 %v18376_v18, %v7713_v21  ;;  %v18417_v32 = vpack.c.b16 %v7876_v3, %v7875_v29  ;;  %v13515_v3 = vld [vmem:[%s19389_s5 + $0x60] sm:$0xff]  ;;  %v6969_v34 = vpop.f32.mrf.mxu1 }
 0x891   : > { %8314 = vmatpush.bf16.msra.mxu1 %v13515_v3 }
 0x892   : > { %v7944_v57 = vpack.c.b16 %v7926_v45, %v7925_v20  ;;  %v7797_v26 = vsub.f32 0.0, %v7737_v41  ;;  %v7757_v31 = vmax.f32 %v7737_v41, 0.0  ;;  %v7537_v20 = vadd.f32 %v7497_v42, %v7225_v47 }
 0x893   : > { %v7003_v42 = vadd.f32 %v6966_v14, %v18322_v12  ;;  %v7004_v47 = vadd.f32 %v6969_v34, %v18328_v22 }
 0x894   : > { %7955 = vrot.lane.b32.xlu1 %v7944_v57, %s14007_s14  ;;  %v7817_v51 = vmax.f32 %v7797_v26, 0.0  ;;  %v7777_v62 = vpack.c.bf16 %v7757_v31, %v7757_v31  ;;  %v7226_v26 = vadd.f32 %v7188_v23, %v7002_v25 }
 0x895   : > { %v7671_v28 = vpop.f32.mrf.mxu0 }
 0x896   : > { %v7714_v33 = vadd.f32 %v7671_v28, %v7535_v63  ;;  %v7837_v37 = vpack.c.bf16 %v7817_v51, %v7817_v51  ;;  %v7877_v54 = vunpack.c.l.b16 %v7777_v62  ;;  %v7505_v44 = vpop.f32.mrf.mxu3  ;;  %v7195_v51 = vpop.f32.mrf.mxu2 }
 0x898   : > { %v7738_v6 = vadd.f32 %v18376_v18, %v7714_v33  ;;  %v7927_v8 = vunpack.c.l.b16 %v7837_v37  ;;  %v6971_v37 = vpop.f32.mrf.mxu1 }
 0x89a   : > { %v7758_v19 = vmax.f32 %v7738_v6, 0.0  ;;  %v7798_v49 = vsub.f32 0.0, %v7738_v6 }
 0x89c   : > { %v7778_v1 = vpack.c.bf16 %v7758_v19, %v7758_v19  ;;  %v7818_v38 = vmax.f32 %v7798_v49, 0.0  ;;  %v7538_v19 = vadd.f32 %v7500_v40, %v7226_v26  ;;  %v13514_v40 = vld [vmem:[%s19389_s5 + $0x58] sm:$0xff] }
 0x89d   : > { %v7674_v46 = vpop.f32.mrf.mxu0  ;;  %8315 = vmatpush.bf16.msra.mxu1 %v13514_v40  ;;  %v13513_v40 = vld [vmem:[%s19389_s5 + $0x50] sm:$0xff] }
 0x89e   : > { %v7838_v39 = vpack.c.bf16 %v7818_v38, %v7818_v38  ;;  %v7878_v61 = vunpack.c.l.b16 %v7778_v1  ;;  %v7715_v30 = vadd.f32 %v7674_v46, %v7536_v15  ;;  %v7227_v38 = vadd.f32 %v7190_v9, %v7003_v42 }
 0x8a0   : > { %v7928_v29 = vunpack.c.l.b16 %v7838_v39  ;;  %v7739_v4 = vadd.f32 %v18376_v18, %v7715_v30  ;;  %v18433_v21 = vpack.c.b16 %v7878_v61, %v7877_v54  ;;  %v13506_v54 = vld [vmem:[%s19389_s5 + $0x18] sm:$0xff]  ;;  %v7507_v39 = vpop.f32.mrf.mxu3  ;;  %v7539_v9 = vadd.f32 %v7502_v35, %v7227_v38  ;;  %v6974_v3 = vpop.f32.mrf.mxu1 }
 0x8a1   : > { %8420 = vmatpush.bf16.msra.mxu2 %v13506_v54  ;;  %v7005_v35 = vadd.f32 %v6971_v37, %v18332_v53  ;;  %8316 = vmatpush.bf16.msra.mxu1 %v13513_v40 }
 0x8a2   : > { %v7945_v11 = vpack.c.b16 %v7928_v29, %v7927_v8  ;;  %v7799_v55 = vsub.f32 0.0, %v7739_v4  ;;  %v7759_v41 = vmax.f32 %v7739_v4, 0.0  ;;  %v7198_v8 = vpop.f32.mrf.mxu2 }
 0x8a4   : > { %7957 = vrot.lane.b32.xlu2 %v7945_v11, %s14007_s14  ;;  %v7819_v63 = vmax.f32 %v7799_v55, 0.0  ;;  %v7779_v31 = vpack.c.bf16 %v7759_v41, %v7759_v41  ;;  %v7228_v11 = vadd.f32 %v7193_v50, %v7004_v47 }
 0x8a5   : > { %v7676_v45 = vpop.f32.mrf.mxu0 }
 0x8a6   : > { %v7716_v57 = vadd.f32 %v7676_v45, %v7537_v20  ;;  %v7839_v6 = vpack.c.bf16 %v7819_v63, %v7819_v63  ;;  %v7879_v13 = vunpack.c.l.b16 %v7779_v31 }
 0x8a8   : > { %v7740_v28 = vadd.f32 %v18376_v18, %v7716_v57  ;;  %v7929_v15 = vunpack.c.l.b16 %v7839_v6  ;;  %v7510_v31 = vpop.f32.mrf.mxu3 }
 0x8aa   : > { %v7760_v33 = vmax.f32 %v7740_v28, 0.0  ;;  %v7800_v16 = vsub.f32 0.0, %v7740_v28  ;;  %v7540_v28 = vadd.f32 %v7505_v44, %v7228_v11  ;;  %v7200_v50 = vpop.f32.mrf.mxu2  ;;  %v6976_v44 = vpop.f32.mrf.mxu1 }
 0x8ac   : > { %v7780_v58 = vpack.c.bf16 %v7760_v33, %v7760_v33  ;;  %v7820_v62 = vmax.f32 %v7800_v16, 0.0 }
 0x8ad   : > { %v7679_v49 = vpop.f32.mrf.mxu0 }
 0x8ae   : > { %v7840_v2 = vpack.c.bf16 %v7820_v62, %v7820_v62  ;;  %v7880_v1 = vunpack.c.l.b16 %v7780_v58  ;;  %v7717_v23 = vadd.f32 %v7679_v49, %v7538_v19  ;;  %v7229_v58 = vadd.f32 %v7195_v51, %v7005_v35  ;;  %v13505_v49 = vld [vmem:[%s19389_s5 + $0x10] sm:$0xff] }
 0x8af   : > { %8421 = vmatpush.bf16.msra.mxu2 %v13505_v49  ;;  %v7006_v51 = vadd.f32 %v6974_v3, %v18336_v43  ;;  %v7007_v3 = vadd.f32 %v6976_v44, %v18342_v10  ;;  %v13581_v49 = vld [vmem:[%s19389_s5 + $0x1b8] sm:$0xff] }
 0x8b0   : > { %v7930_v24 = vunpack.c.l.b16 %v7840_v2  ;;  %v7741_v46 = vadd.f32 %v18376_v18, %v7717_v23  ;;  %v18446_v12 = vpack.c.b16 %v7880_v1, %v7879_v13  ;;  %v7541_v37 = vadd.f32 %v7507_v39, %v7229_v58  ;;  %v13526_v44 = vld [vmem:[%s19389_s5 + $0xb8] sm:$0xff]  ;;  %9372 = vmatpush.bf16.msrb.mxu0 %v13581_v49 }
 0x8b1   : > { %8559 = vmatpush.bf16.msra.mxu3 %v13526_v44 }
 0x8b2   : > { %v7946_v14 = vpack.c.b16 %v7930_v24, %v7929_v15  ;;  %v7801_v61 = vsub.f32 0.0, %v7741_v46  ;;  %v7761_v29 = vmax.f32 %v7741_v46, 0.0  ;;  %v7512_v15 = vpop.f32.mrf.mxu3  ;;  %v7230_v24 = vadd.f32 %v7198_v8, %v7006_v51  ;;  %v6979_v39 = vpop.f32.mrf.mxu1 }
 0x8b4   : > { %7959 = vrot.lane.b32.xlu0 %v7946_v14, %s14007_s14  ;;  %v7821_v55 = vmax.f32 %v7801_v61, 0.0  ;;  %v7781_v45 = vpack.c.bf16 %v7761_v29, %v7761_v29  ;;  %v7203_v14 = vpop.f32.mrf.mxu2 }
 0x8b5   : > { %v7681_v30 = vpop.f32.mrf.mxu0 }
 0x8b6   : > { %v7718_v4 = vadd.f32 %v7681_v30, %v7539_v9  ;;  %v7841_v57 = vpack.c.bf16 %v7821_v55, %v7821_v55  ;;  %v7881_v22 = vunpack.c.l.b16 %v7781_v45 }
 0x8b8   : > { %v7742_v20 = vadd.f32 %v18376_v18, %v7718_v4  ;;  %v7931_v62 = vunpack.c.l.b16 %v7841_v57  ;;  %v7542_v4 = vadd.f32 %v7510_v31, %v7230_v24 }
 0x8ba   : > { %v7762_v25 = vmax.f32 %v7742_v20, 0.0  ;;  %v7802_v41 = vsub.f32 0.0, %v7742_v20 }
 0x8bc   : > { %v7782_v26 = vpack.c.bf16 %v7762_v25, %v7762_v25  ;;  %v7822_v63 = vmax.f32 %v7802_v41, 0.0  ;;  %v7231_v25 = vadd.f32 %v7200_v50, %v7007_v3  ;;  %v13579_v3 = vld [vmem:[%s19389_s5 + $0x1a8] sm:$0xff] }
 0x8bd   : > { %v7684_v33 = vpop.f32.mrf.mxu0 }
 0x8be   : > { %v7842_v34 = vpack.c.bf16 %v7822_v63, %v7822_v63  ;;  %v7882_v16 = vunpack.c.l.b16 %v7782_v26  ;;  %v7719_v6 = vadd.f32 %v7684_v33, %v7540_v28  ;;  %v7515_v28 = vpop.f32.mrf.mxu3  ;;  %v7205_v33 = vpop.f32.mrf.mxu2  ;;  %v7543_v31 = vadd.f32 %v7512_v15, %v7231_v25 }
 0x8c0   : > { %v7932_v19 = vunpack.c.l.b16 %v7842_v34  ;;  %v7743_v42 = vadd.f32 %v18376_v18, %v7719_v6  ;;  %v18456_v13 = vpack.c.b16 %v7882_v16, %v7881_v22  ;;  %v6981_v34 = vpop.f32.mrf.mxu1  ;;  %v7008_v16 = vadd.f32 %v6979_v39, %v18348_v52  ;;  %v13512_v52 = vld [vmem:[%s19389_s5 + $0x48] sm:$0xff] }
 0x8c1   : > { %8317 = vmatpush.bf16.msra.mxu1 %v13512_v52 }
 0x8c2   : > { %v7947_v2 = vpack.c.b16 %v7932_v19, %v7931_v62  ;;  %v7803_v53 = vsub.f32 0.0, %v7743_v42  ;;  %v7763_v23 = vmax.f32 %v7743_v42, 0.0  ;;  %v7232_v50 = vadd.f32 %v7203_v14, %v7008_v16  ;;  %v13504_v42 = vld [vmem:[%s19389_s5 + $0x8] sm:$0xff]  ;;  %v13577_v16 = vld [vmem:[%s19389_s5 + $0x198] sm:$0xff] }
 0x8c3   : > { %8422 = vmatpush.bf16.msra.mxu2 %v13504_v42  ;;  %v13576_v42 = vld [vmem:[%s19389_s5 + $0x190] sm:$0xff] }
 0x8c4   : > { %7961 = vrot.lane.b32.xlu1 %v7947_v2, %s14007_s14  ;;  %v7823_v46 = vmax.f32 %v7803_v53, 0.0  ;;  %v7783_v61 = vpack.c.bf16 %v7763_v23, %v7763_v23  ;;  %v7544_v24 = vadd.f32 %v7515_v28, %v7232_v50 }
 0x8c5   : > { %v7686_v1 = vpop.f32.mrf.mxu0 }
 0x8c6   : > { %v7720_v38 = vadd.f32 %v7686_v1, %v7541_v37  ;;  %v7843_v47 = vpack.c.bf16 %v7823_v46, %v7823_v46  ;;  %v7883_v11 = vunpack.c.l.b16 %v7783_v61  ;;  %v13580_v1 = vld [vmem:[%s19389_s5 + $0x1b0] sm:$0xff]  ;;  %v7517_v51 = vpop.f32.mrf.mxu3  ;;  %v7009_v46 = vadd.f32 %v6981_v34, %v18351_v27  ;;  %v7208_v40 = vpop.f32.mrf.mxu2 }
 0x8c7   : > { %9373 = vmatpush.bf16.msrb.mxu0 %v13580_v1 }
 0x8c8   : > { %v7744_v54 = vadd.f32 %v18376_v18, %v7720_v38  ;;  %v7933_v41 = vunpack.c.l.b16 %v7843_v47  ;;  %v7233_v39 = vadd.f32 %v7205_v33, %v7009_v46  ;;  %v6984_v47 = vpop.f32.mrf.mxu1 }
 0x8ca   : > { %v7764_v9 = vmax.f32 %v7744_v54, 0.0  ;;  %v7804_v30 = vsub.f32 0.0, %v7744_v54  ;;  %v7545_v25 = vadd.f32 %v7517_v51, %v7233_v39 }
 0x8cb   : > { %9374 = vmatpush.bf16.msrb.mxu0 %v13579_v3  ;;  %v13574_v3 = vld [vmem:[%s19389_s5 + $0x180] sm:$0xff] }
 0x8cc   : > { %v7784_v29 = vpack.c.bf16 %v7764_v9, %v7764_v9  ;;  %v7824_v43 = vmax.f32 %v7804_v30, 0.0 }
 0x8cd   : > { %v7689_v8 = vpop.f32.mrf.mxu0 }
 0x8ce   : > { %v7844_v55 = vpack.c.bf16 %v7824_v43, %v7824_v43  ;;  %v7884_v20 = vunpack.c.l.b16 %v7784_v29  ;;  %v7721_v45 = vadd.f32 %v7689_v8, %v7542_v4 }
 0x8d0   : > { %v7934_v57 = vunpack.c.l.b16 %v7844_v55  ;;  %v7745_v26 = vadd.f32 %v18376_v18, %v7721_v45  ;;  %v18466_v63 = vpack.c.b16 %v7884_v20, %v7883_v11  ;;  %v13578_v11 = vld [vmem:[%s19389_s5 + $0x1a0] sm:$0xff] }
 0x8d1   : > { %v20211_v55 = vld [vmem:[#allocation342_spill] sm:$0xff]  ;;  %9375 = vmatpush.bf16.msrb.mxu0 %v13578_v11 }
 0x8d2   : > { %v7948_v35 = vpack.c.b16 %v7934_v57, %v7933_v41  ;;  %v7805_v22 = vsub.f32 0.0, %v7745_v26  ;;  %v7765_v6 = vmax.f32 %v7745_v26, 0.0  ;;  %v6296_v20 = vadd.f32 %v18319_v48, %v20211_v55  ;;  %v7520_v41 = vpop.f32.mrf.mxu3  ;;  %v13525_v48 = vld [vmem:[%s19389_s5 + $0xb0] sm:$0xff] }
 0x8d3   : > { %v7010_v26 = vadd.f32 %v6984_v47, %v18354_v36  ;;  %v13503_v36 = vld [vmem:[%s19389_s5] sm:$0xff]  ;;  %8560 = vmatpush.bf16.msra.mxu3 %v13525_v48 }
 0x8d4   : > { %7963 = vrot.lane.b32.xlu2 %v7948_v35, %s14007_s14  ;;  %v7825_v62 = vmax.f32 %v7805_v22, 0.0  ;;  %v7785_v2 = vpack.c.bf16 %v7765_v6, %v7765_v6  ;;  %v6520_v33 = vadd.f32 %v18317_v60, %v6296_v20  ;;  %v6986_v60 = vpop.f32.mrf.mxu1  ;;  %8423 = vmatpush.bf16.msra.mxu2 %v13503_v36 }
 0x8d5   : > { %v7691_v10 = vpop.f32.mrf.mxu0  ;;  %v7234_v22 = vadd.f32 %v7208_v40, %v7010_v26  ;;  %9376 = vmatpush.bf16.msrb.mxu0 %v13577_v16  ;;  %v13511_v40 = vld [vmem:[%s19389_s5 + $0x40] sm:$0xff] }
 0x8d6   : > { %v7722_v58 = vadd.f32 %v7691_v10, %v7543_v31  ;;  %v7845_v23 = vpack.c.bf16 %v7825_v62, %v7825_v62  ;;  %v7885_v14 = vunpack.c.l.b16 %v7785_v2  ;;  %v7210_v31 = vpop.f32.mrf.mxu2  ;;  %v6832_v6 = vadd.f32 %v18357_v56, %v6520_v33  ;;  %8318 = vmatpush.bf16.msra.mxu1 %v13511_v40 }
 0x8d7   : > { %v7546_v2 = vadd.f32 %v7520_v41, %v7234_v22  ;;  %v13521_v41 = vld [vmem:[%s19389_s5 + $0x90] sm:$0xff] }
 0x8d8   : > { %v7746_v19 = vadd.f32 %v18376_v18, %v7722_v58  ;;  %v7935_v29 = vunpack.c.l.b16 %v7845_v23  ;;  %v7011_v56 = vadd.f32 %v6986_v60, %v6832_v6  ;;  %v13542_v60 = vld [vmem:[%s19389_s5 + $0xf8] sm:$0xff] }
 0x8d9   : > { %9377 = vmatpush.bf16.msrb.mxu0 %v13576_v42 }
 0x8da   : > { %v7766_v53 = vmax.f32 %v7746_v19, 0.0  ;;  %v7806_v37 = vsub.f32 0.0, %v7746_v19  ;;  %v13524_v19 = vld [vmem:[%s19389_s5 + $0xa8] sm:$0xff]  ;;  %8753 = vmatpush.bf16.msrb.mxu1 %v13542_v60 }
 0x8db   : > { %8561 = vmatpush.bf16.msra.mxu3 %v13524_v19 }
 0x8dc   : > { %v7786_v38 = vpack.c.bf16 %v7766_v53, %v7766_v53  ;;  %v7826_v15 = vmax.f32 %v7806_v37, 0.0 }
 0x8dd   : > { %v7694_v54 = vpop.f32.mrf.mxu0 }
 0x8de   : > { %v7846_v61 = vpack.c.bf16 %v7826_v15, %v7826_v15  ;;  %v7886_v9 = vunpack.c.l.b16 %v7786_v38  ;;  %v7723_v30 = vadd.f32 %v7694_v54, %v7544_v24  ;;  %v7522_v38 = vpop.f32.mrf.mxu3  ;;  %v7235_v15 = vadd.f32 %v7210_v31, %v7011_v56  ;;  %v13523_v54 = vld [vmem:[%s19389_s5 + $0xa0] sm:$0xff]  ;;  %v7213_v39 = vpop.f32.mrf.mxu2 }
 0x8df   : > { %8562 = vmatpush.bf16.msra.mxu3 %v13523_v54 }
 0x8e0   : > { %v7936_v43 = vunpack.c.l.b16 %v7846_v61  ;;  %v7747_v4 = vadd.f32 %v18376_v18, %v7723_v30  ;;  %v18491_v8 = vpack.c.b16 %v7886_v9, %v7885_v14  ;;  %v13575_v14 = vld [vmem:[%s19389_s5 + $0x188] sm:$0xff]  ;;  %v6989_v30 = vpop.f32.mrf.mxu1 }
 0x8e1   : > { %9378 = vmatpush.bf16.msrb.mxu0 %v13575_v14  ;;  %v7012_v20 = vadd.f32 %v6989_v30, %v18359_v17 }
 0x8e2   : > { %v7949_v27 = vpack.c.b16 %v7936_v43, %v7935_v29  ;;  %v7807_v45 = vsub.f32 0.0, %v7747_v4  ;;  %v7767_v28 = vmax.f32 %v7747_v4, 0.0  ;;  %v13522_v29 = vld [vmem:[%s19389_s5 + $0x98] sm:$0xff]  ;;  %v20212_v43 = vld [vmem:[#allocation286_spill] sm:$0xff] }
 0x8e3   : > { %v6298_v4 = vadd.f32 %v18339_v5, %v20212_v43  ;;  %8563 = vmatpush.bf16.msra.mxu3 %v13522_v29  ;;  %v13557_v5 = vld [vmem:[%s19389_s5 + $0x138] sm:$0xff] }
 0x8e4   : > { %7965 = vrot.lane.b32.xlu0 %v7949_v27, %s14007_s14  ;;  %v7827_v10 = vmax.f32 %v7807_v45, 0.0  ;;  %v7787_v58 = vpack.c.bf16 %v7767_v28, %v7767_v28  ;;  %v7547_v27 = vadd.f32 %v7522_v38, %v7235_v15  ;;  %9019 = vmatpush.bf16.msrb.mxu2 %v13557_v5 }
 0x8e5   : > { %v7696_v57 = vpop.f32.mrf.mxu0  ;;  %9379 = vmatpush.bf16.msrb.mxu0 %v13574_v3 }
 0x8e6   : > { %v7724_v35 = vadd.f32 %v7696_v57, %v7545_v25  ;;  %v7847_v49 = vpack.c.bf16 %v7827_v10, %v7827_v10  ;;  %v7887_v37 = vunpack.c.l.b16 %v7787_v58  ;;  %v6522_v57 = vadd.f32 %v18344_v59, %v6298_v4  ;;  %v7525_v10 = vpop.f32.mrf.mxu3  ;;  %v13520_v59 = vld [vmem:[%s19389_s5 + $0x88] sm:$0xff] }
 0x8e7   : > { %8564 = vmatpush.bf16.msra.mxu3 %v13521_v41 }
 0x8e8   : > { %v7748_v34 = vadd.f32 %v18376_v18, %v7724_v35  ;;  %v7937_v24 = vunpack.c.l.b16 %v7847_v49  ;;  %v7236_v35 = vadd.f32 %v7213_v39, %v7012_v20  ;;  %v6834_v31 = vadd.f32 %v18370_v7, %v6522_v57  ;;  %v6991_v58 = vpop.f32.mrf.mxu1 }
 0x8ea   : > { %v7768_v50 = vmax.f32 %v7748_v34, 0.0  ;;  %v7808_v62 = vsub.f32 0.0, %v7748_v34  ;;  %v7548_v19 = vadd.f32 %v7525_v10, %v7236_v35  ;;  %v7013_v42 = vadd.f32 %v6991_v58, %v6834_v31 }
 0x8eb   : > { %8565 = vmatpush.bf16.msra.mxu3 %v13520_v59 }
 0x8ec   : > { %v7788_v44 = vpack.c.bf16 %v7768_v50, %v7768_v50  ;;  %v7828_v52 = vmax.f32 %v7808_v62, 0.0  ;;  %v7215_v50 = vpop.f32.mrf.mxu2 }
 0x8ed   : > { %v7699_v53 = vpop.f32.mrf.mxu0 }
 0x8ee   : > { %v7848_v1 = vpack.c.bf16 %v7828_v52, %v7828_v52  ;;  %v7888_v51 = vunpack.c.l.b16 %v7788_v44  ;;  %v7725_v23 = vadd.f32 %v7699_v53, %v7546_v2  ;;  %v7527_v30 = vpop.f32.mrf.mxu3 }
 0x8f0   : > { %v7938_v46 = vunpack.c.l.b16 %v7848_v1  ;;  %v18527_v61 = vpack.c.b16 %v7888_v51, %v7887_v37  ;;  %v7749_v9 = vadd.f32 %v18376_v18, %v7725_v23  ;;  %v13519_v37 = vld [vmem:[%s19389_s5 + $0x80] sm:$0xff]  ;;  %v7237_v1 = vadd.f32 %v7215_v50, %v7013_v42 }
 0x8f1   : > { %8566 = vmatpush.bf16.msra.mxu3 %v13519_v37  ;;  %v13540_v37 = vld [vmem:[%s19389_s5 + $0xe8] sm:$0xff] }
 0x8f2   : > { %v7950_v47 = vpack.c.b16 %v7938_v46, %v7937_v24  ;;  %v7809_v11 = vsub.f32 0.0, %v7749_v9  ;;  %v7769_v26 = vmax.f32 %v7749_v9, 0.0  ;;  %v7549_v43 = vadd.f32 %v7527_v30, %v7237_v1 }
 0x8f4   : > { %7967 = vrot.lane.b32.xlu1 %v7950_v47, %s14007_s14  ;;  %v7829_v34 = vmax.f32 %v7809_v11, 0.0 }
 0x8f5   : > { %v7701_v55 = vpop.f32.mrf.mxu0 }
 0x8f6   : > { %v7726_v45 = vadd.f32 %v7701_v55, %v7547_v27  ;;  %v7954_v25 = vpop.permute.xlu0 %7953  ;;  %v7849_v49 = vpack.c.bf16 %v7829_v34, %v7829_v34 }
 0x8f7   : > { %v7975_v28 = vsel %vm5547_vm0, %v18400_v0, %v7954_v25  ;;  %v7789_v0 = vpack.c.bf16 %v7769_v26, %v7769_v26 }
 0x8f8   : > { %v7750_v17 = vadd.f32 %v18376_v18, %v7726_v45  ;;  %v8013_v33 = vunpack.c.l.b16 %v7975_v28  ;;  %v8014_v22 = vunpack.c.h.b16 %v7975_v28  ;;  %v7939_v54 = vunpack.c.l.b16 %v7849_v49 }
 0x8f9   : > { %v7889_v51 = vunpack.c.l.b16 %v7789_v0 }
 0x8fa   : > { %v7770_v48 = vmax.f32 %v7750_v17, 0.0  ;;  %v7810_v16 = vsub.f32 0.0, %v7750_v17  ;;  %v8033_v36 = vpack.c.b16 %v8013_v33, %v8013_v33  ;;  %v8034_v6 = vpack.c.b16 %v8014_v22, %v8014_v22 }
 0x8fc   : > { %v7790_v62 = vpack.c.bf16 %v7770_v48, %v7770_v48  ;;  %v7830_v7 = vmax.f32 %v7810_v16, 0.0  ;;  %8073 = vst [vmem:[#allocation2] sm:$0xf] %v8033_v36 }
 0x8fd   : > { %8074 = vst [vmem:[#allocation2 + $0x4] sm:$0xf] %v8034_v6  ;;  %v7704_v44 = vpop.f32.mrf.mxu0 }
 0x8fe   : > { %v7850_v52 = vpack.c.bf16 %v7830_v7, %v7830_v7  ;;  %v7890_v2 = vunpack.c.l.b16 %v7790_v62  ;;  %v7727_v56 = vadd.f32 %v7704_v44, %v7548_v19  ;;  %v7958_v53 = vpop.permute.xlu2 %7957 }
 0x8ff   : > { %v7981_v23 = vsel %vm5547_vm0, %v18433_v21, %v7958_v53  ;;  %v13555_v53 = vld [vmem:[%s19389_s5 + $0x128] sm:$0xff] }
 0x900   : > { %v7940_v38 = vunpack.c.l.b16 %v7850_v52  ;;  %v7751_v15 = vadd.f32 %v18376_v18, %v7727_v56  ;;  %v8017_v24 = vunpack.c.l.b16 %v7981_v23  ;;  %v8018_v46 = vunpack.c.h.b16 %v7981_v23 }
 0x901   : > { %v18563_v40 = vpack.c.b16 %v7890_v2, %v7889_v51 }
 0x902   : > { %v8037_v14 = vpack.c.b16 %v8017_v24, %v8017_v24  ;;  %v8038_v9 = vpack.c.b16 %v8018_v46, %v8018_v46  ;;  %v7951_v39 = vpack.c.b16 %v7940_v38, %v7939_v54  ;;  %v7811_v47 = vsub.f32 0.0, %v7751_v15  ;;  %v13554_v46 = vld [vmem:[%s19389_s5 + $0x120] sm:$0xff] }
 0x903   : > { %v7771_v4 = vmax.f32 %v7751_v15, 0.0  ;;  %v13752_v16 = vld [vmem:[#allocation2] sm:$0xe] }
 0x904   : > { %8077 = vst [vmem:[#allocation2 + $0x10] sm:$0xf] %v8037_v14  ;;  %v13717_v29 = vld [vmem:[#allocation2] sm:$0xff]   ;;  %7969 = vrot.lane.b32.xlu2 %v7951_v39, %s14007_s14  ;;  %v7831_v55 = vmax.f32 %v7811_v47, 0.0 }
 0x905   : > { %8078 = vst [vmem:[#allocation2 + $0x14] sm:$0xf] %v8038_v9  ;;  %8424 = vmatmul.bf16.vlgmr.msra.gmra.mxu2 %v13717_v29  ;;  %v7706_v21 = vpop.f32.mrf.mxu0  ;;  %v7791_v41 = vpack.c.bf16 %v7771_v4, %v7771_v4  ;;  %v13751_v48 = vld [vmem:[#allocation2] sm:$0xf0]  ;;  %v8190_v6 = vshll.u32 %v13717_v29, 16  ;;  %v8188_v7 = vshrl.u32 %v13717_v29, 16 }
 0x906   : > { %v7728_v3 = vadd.f32 %v7706_v21, %v7549_v43  ;;  %v7956_v27 = vpop.permute.xlu1 %7955  ;;  %v7851_v35 = vpack.c.bf16 %v7831_v55, %v7831_v55  ;;  %v13753_v58 = vor.u32 %v13752_v16, %v13751_v48  ;;  %v13539_v4 = vld [vmem:[%s19389_s5 + $0xe0] sm:$0xff] }
 0x907   : > { %v7978_v11 = vsel %vm5547_vm0, %v18417_v32, %v7956_v27  ;;  %v13556_v32 = vld [vmem:[%s19389_s5 + $0x130] sm:$0xff]  ;;  %v7891_v31 = vunpack.c.l.b16 %v7791_v41  ;;  %v8192_v62 = vrot.slane %v8190_v6, 1 }
 0x908   : > { %v7752_v20 = vadd.f32 %v18376_v18, %v7728_v3  ;;  %v8015_v45 = vunpack.c.l.b16 %v7978_v11  ;;  %v8016_v25 = vunpack.c.h.b16 %v7978_v11  ;;  %v13541_v18 = vld [vmem:[%s19389_s5 + $0xf0] sm:$0xff]  ;;  %9020 = vmatpush.bf16.msrb.mxu2 %v13556_v32  ;;  %v7941_v36 = vunpack.c.l.b16 %v7851_v35 }
 0x909   : > { %8754 = vmatpush.bf16.msrb.mxu1 %v13541_v18  ;;  %v8486_v19 = vrot.slane %v13753_v58, 1  ;;  %v8193_v52 = vor.u32 %v8192_v62, %v8188_v7  ;;  %v13537_v62 = vld [vmem:[%s19389_s5 + $0xd0] sm:$0xff] }
 0x90a   : > { %v7772_v5 = vmax.f32 %v7752_v20, 0.0  ;;  %v7812_v57 = vsub.f32 0.0, %v7752_v20  ;;  %v8035_v26 = vpack.c.b16 %v8015_v45, %v8015_v45  ;;  %v8036_v28 = vpack.c.b16 %v8016_v25, %v8016_v25 }
 0x90c   : > { %v7792_v17 = vpack.c.bf16 %v7772_v5, %v7772_v5  ;;  %v7832_v33 = vmax.f32 %v7812_v57, 0.0  ;;  %8075 = vst [vmem:[#allocation2 + $0x8] sm:$0xf] %v8035_v26  ;;  %v13566_v22 = vld [vmem:[#allocation2 + $0x10] sm:$0xff]  ;;  %9021 = vmatpush.bf16.msrb.mxu2 %v13555_v53 }
 0x90d   : > { %8076 = vst [vmem:[#allocation2 + $0xc] sm:$0xf] %v8036_v28  ;;  %9380 = vmatmul.bf16.vlgmr.msrb.gmra.mxu0 %v13566_v22  ;;  %8755 = vmatpush.bf16.msrb.mxu1 %v13540_v37  ;;  %v13497_v1 = vld [vmem:[#allocation2 + $0x10] sm:$0xff] }
 0x90e   : > { %v7852_v10 = vpack.c.bf16 %v7832_v33, %v7832_v33  ;;  %v7892_v34 = vunpack.c.l.b16 %v7792_v17  ;;  %v8203_v23 = vshll.u32 %v13497_v1, 16  ;;  %v8489_v15 = vrot.slane %v13497_v1, 1 }
 0x90f   : > { %v8207_v25 = vshrl.u32 %v13497_v1, 16 }
 0x910   : > { %v7942_v59 = vunpack.c.l.b16 %v7852_v10  ;;  %v18575_v0 = vpack.c.b16 %v7892_v34, %v7891_v31  ;;  %v8205_v39 = vrot.slane %v8203_v23, 1  ;;  %9022 = vmatpush.bf16.msrb.mxu2 %v13554_v46  ;;  %v13553_v31 = vld [vmem:[%s19389_s5 + $0x118] sm:$0xff] }
 0x911   : > { %8756 = vmatpush.bf16.msrb.mxu1 %v13539_v4 }
 0x912   : > { %v7952_v60 = vpack.c.b16 %v7942_v59, %v7941_v36  ;;  %v8209_v28 = vor.u32 %v8207_v25, %v8205_v39 }
 0x914   : > { %7971 = vrot.lane.b32.xlu0 %v7952_v60, %s14007_s14  ;;  %v13496_v50 = vld [vmem:[#allocation2 + $0x8] sm:$0xff]  ;;  %9023 = vmatpush.bf16.msrb.mxu2 %v13553_v31 }
 0x915   : > { %8429 = vmatmul.bf16.gmra.mxu2 %v13496_v50  ;;  %v8487_v42 = vrot.slane %v13496_v50, 1  ;;  %v8195_v49 = vshll.u32 %v13496_v50, 16  ;;  %v8199_v51 = vshrl.u32 %v13496_v50, 16  ;;  %v13552_v50 = vld [vmem:[%s19389_s5 + $0x110] sm:$0xff] }
 0x917   : > { %v8488_v44 = vsel %vm6140_vm2, %v8486_v19, %v8487_v42  ;;  %v8197_v2 = vrot.slane %v8195_v49, 1  ;;  %v8490_v30 = vsel %vm6140_vm2, %v8487_v42, %v8489_v15 }
 0x918   : > { %8567 = vmatmul.bf16.vlgmr.msra.gmra.mxu3 %v8488_v44  ;;  %9024 = vmatpush.bf16.msrb.mxu2 %v13552_v50 }
 0x919   : > { %v8198_v56 = vsel %vm5800_vm1, %v8193_v52, %v8197_v2  ;;  %v8201_v24 = vor.u32 %v8199_v51, %v8197_v2 }
 0x91a   : > { %8319 = vmatmul.bf16.vlgmr.msra.gmra.mxu1 %v8198_v56  ;;  %v13551_v56 = vld [vmem:[%s19389_s5 + $0x108] sm:$0xff] }
 0x91b   : > { %v8206_v43 = vsel %vm5800_vm1, %v8201_v24, %v8205_v39 }
 0x91c   : > { %9025 = vmatpush.bf16.msrb.mxu2 %v13551_v56 }
 0x925   : > { %8434 = vmatmul.bf16.gmra.mxu2 %v13497_v1 }
 0x926   : > { %v7960_v38 = vpop.permute.xlu0 %7959 }
 0x927   : > { %v7984_v54 = vsel %vm5547_vm0, %v18446_v12, %v7960_v38  ;;  %v13565_v38 = vld [vmem:[%s19389_s5 + $0x178] sm:$0xff] }
 0x928   : > { %v8019_v14 = vunpack.c.l.b16 %v7984_v54  ;;  %v8020_v9 = vunpack.c.h.b16 %v7984_v54  ;;  %8572 = vmatmul.bf16.gmra.mxu3 %v8490_v30  ;;  %v13564_v54 = vld [vmem:[%s19389_s5 + $0x170] sm:$0xff]  ;;  %v13563_v30 = vld [vmem:[%s19389_s5 + $0x168] sm:$0xff] }
 0x929   : > { %9178 = vmatpush.bf16.msrb.mxu3 %v13565_v38 }
 0x92a   : > { %v8039_v47 = vpack.c.b16 %v8019_v14, %v8019_v14  ;;  %v8040_v29 = vpack.c.b16 %v8020_v9, %v8020_v9  ;;  %8324 = vmatmul.bf16.gmra.mxu1 %v8206_v43  ;;  %v13550_v14 = vld [vmem:[%s19389_s5 + $0x100] sm:$0xff] }
 0x92b   : > { %9026 = vmatpush.bf16.msrb.mxu2 %v13550_v14 }
 0x92c   : > { %8079 = vst [vmem:[#allocation2 + $0x18] sm:$0xf] %v8039_v47 }
 0x92d   : > { %8080 = vst [vmem:[#allocation2 + $0x1c] sm:$0xf] %v8040_v29  ;;  %9179 = vmatpush.bf16.msrb.mxu3 %v13564_v54 }
 0x92e   : > { %v7964_v12 = vpop.permute.xlu2 %7963 }
 0x92f   : > { %v7990_v21 = vsel %vm5547_vm0, %v18466_v63, %v7964_v12 }
 0x930   : > { %v8023_v3 = vunpack.c.l.b16 %v7990_v21  ;;  %v8024_v27 = vunpack.c.h.b16 %v7990_v21 }
 0x931   : > { %9180 = vmatpush.bf16.msrb.mxu3 %v13563_v30 }
 0x932   : > { %v8043_v11 = vpack.c.b16 %v8023_v3, %v8023_v3  ;;  %v8044_v55 = vpack.c.b16 %v8024_v27, %v8024_v27 }
 0x934   : > { %8083 = vst [vmem:[#allocation2 + $0x28] sm:$0xf] %v8043_v11  ;;  %v13498_v20 = vld [vmem:[#allocation2 + $0x18] sm:$0xff] }
 0x935   : > { %v13567_v45 = vld [vmem:[#allocation2 + $0x18] sm:$0xff]  ;;  %8084 = vst [vmem:[#allocation2 + $0x2c] sm:$0xf] %v8044_v55  ;;  %8439 = vmatmul.bf16.gmra.mxu2 %v13498_v20  ;;  %v8491_v5 = vrot.slane %v13498_v20, 1  ;;  %v8211_v57 = vshll.u32 %v13498_v20, 16  ;;  %v8215_v16 = vshrl.u32 %v13498_v20, 16 }
 0x936   : > { %9385 = vmatmul.bf16.gmra.mxu0 %v13567_v45  ;;  %v7962_v41 = vpop.permute.xlu1 %7961  ;;  %v13562_v20 = vld [vmem:[%s19389_s5 + $0x160] sm:$0xff] }
 0x937   : > { %v7987_v26 = vsel %vm5547_vm0, %v18456_v13, %v7962_v41  ;;  %v8492_v17 = vsel %vm6140_vm2, %v8489_v15, %v8491_v5  ;;  %v8213_v33 = vrot.slane %v8211_v57, 1  ;;  %v13538_v13 = vld [vmem:[%s19389_s5 + $0xd8] sm:$0xff]  ;;  %9181 = vmatpush.bf16.msrb.mxu3 %v13562_v20 }
 0x938   : > { %v8021_v35 = vunpack.c.l.b16 %v7987_v26  ;;  %v8022_v63 = vunpack.c.h.b16 %v7987_v26  ;;  %8577 = vmatmul.bf16.gmra.mxu3 %v8492_v17  ;;  %8757 = vmatpush.bf16.msrb.mxu1 %v13538_v13  ;;  %v13535_v17 = vld [vmem:[%s19389_s5 + $0xc0] sm:$0xff] }
 0x939   : > { %v8214_v18 = vsel %vm5800_vm1, %v8209_v28, %v8213_v33  ;;  %v8217_v59 = vor.u32 %v8215_v16, %v8213_v33  ;;  %v20213_v33 = vmov 0   ;;  %v13604_v16 = vld [vmem:[%s19389_s5 + $0x238] sm:$0xff] }
 0x93a   : > { %v8041_v22 = vpack.c.b16 %v8021_v35, %v8021_v35  ;;  %v8042_v32 = vpack.c.b16 %v8022_v63, %v8022_v63  ;;  %8329 = vmatmul.bf16.gmra.mxu1 %v8214_v18  ;;  %9797 = vmatpush.bf16.msra.mxu2 %v13604_v16 }
 0x93c   : > { %8081 = vst [vmem:[#allocation2 + $0x20] sm:$0xf] %v8041_v22  ;;  %8758 = vmatpush.bf16.msrb.mxu1 %v13537_v62  ;;  %v13500_v7 = vld [vmem:[#allocation2 + $0x28] sm:$0xff]  ;;  %v13560_v22 = vld [vmem:[%s19389_s5 + $0x150] sm:$0xff] }
 0x93d   : > { %8082 = vst [vmem:[#allocation2 + $0x24] sm:$0xf] %v8042_v32  ;;  %v13569_v19 = vld [vmem:[#allocation2 + $0x28] sm:$0xff]  ;;  %v8227_v49 = vshll.u32 %v13500_v7, 16  ;;  %v8495_v52 = vrot.slane %v13500_v7, 1  ;;  %v8231_v3 = vshrl.u32 %v13500_v7, 16 }
 0x93e   : > { %v13559_v32 = vld [vmem:[%s19389_s5 + $0x148] sm:$0xff]  ;;  %v18668_v62 = vld [vmem:[#allocation2 + $0x10] sm:$0xff] }
 0x93f   : > { %v8229_v23 = vrot.slane %v8227_v49, 1 }
 0x941   : > { %v8233_v45 = vor.u32 %v8231_v3, %v8229_v23 }
 0x944   : > { %v13499_v10 = vld [vmem:[#allocation2 + $0x20] sm:$0xff] }
 0x945   : > { %v13568_v34 = vld [vmem:[#allocation2 + $0x20] sm:$0xff]  ;;  %8444 = vmatmul.bf16.gmra.mxu2 %v13499_v10  ;;  %v8493_v48 = vrot.slane %v13499_v10, 1  ;;  %v8219_v36 = vshll.u32 %v13499_v10, 16  ;;  %v8223_v42 = vshrl.u32 %v13499_v10, 16 }
 0x946   : > { %9390 = vmatmul.bf16.gmra.mxu0 %v13568_v34 }
 0x947   : > { %v8494_v6 = vsel %vm6140_vm2, %v8491_v5, %v8493_v48  ;;  %v8221_v60 = vrot.slane %v8219_v36, 1  ;;  %v8496_v51 = vsel %vm6140_vm2, %v8493_v48, %v8495_v52  ;;  %v13754_v48 = vld [vmem:[#allocation2 + $0x8] sm:$0xff]   ;;  %v13558_v36 = vld [vmem:[%s19389_s5 + $0x140] sm:$0xff] }
 0x948   : > { %8582 = vmatmul.bf16.gmra.mxu3 %v8494_v6  ;;  %v8896_v49 = vshrl.u32 %v13754_v48, 16 }
 0x949   : > { %v8222_v58 = vsel %vm5800_vm1, %v8217_v59, %v8221_v60  ;;  %v8225_v2 = vor.u32 %v8223_v42, %v8221_v60 }
 0x94a   : > { %8334 = vmatmul.bf16.gmra.mxu1 %v8222_v58  ;;  %v8898_v58 = vshll.u32 %v13754_v48, 16 }
 0x94b   : > { %v8230_v46 = vsel %vm5800_vm1, %v8225_v2, %v8229_v23 }
 0x94c   : > { %v8900_v42 = vrot.slane %v8898_v58, 1 }
 0x94e   : > { %v8901_v2 = vor.u32 %v8900_v42, %v8896_v49  ;;  %v18712_v42 = vld [vmem:[#allocation2 + $0x28] sm:$0xff]  ;;  %v13593_v49 = vld [vmem:[%s19389_s5 + $0x1e0] sm:$0xff] }
 0x955   : > { %8449 = vmatmul.bf16.gmra.mxu2 %v13500_v7  ;;  %v13596_v7 = vld [vmem:[%s19389_s5 + $0x1f8] sm:$0xff] }
 0x956   : > { %9395 = vmatmul.bf16.gmra.mxu0 %v13569_v19  ;;  %v7966_v44 = vpop.permute.xlu0 %7965 }
 0x957   : > { %v7993_v53 = vsel %vm5547_vm0, %v18491_v8, %v7966_v44  ;;  %v13536_v8 = vld [vmem:[%s19389_s5 + $0xc8] sm:$0xff]  ;;  %v8903_v44 = vshll.u32 %v18668_v62, 16 }
 0x958   : > { %v8025_v37 = vunpack.c.l.b16 %v7993_v53  ;;  %v8026_v1 = vunpack.c.h.b16 %v7993_v53  ;;  %8587 = vmatmul.bf16.gmra.mxu3 %v8496_v51  ;;  %8759 = vmatpush.bf16.msrb.mxu1 %v13536_v8 }
 0x959   : > { %v8905_v56 = vrot.slane %v8903_v44, 1 }
 0x95a   : > { %v8045_v15 = vpack.c.b16 %v8025_v37, %v8025_v37  ;;  %v8046_v24 = vpack.c.b16 %v8026_v1, %v8026_v1  ;;  %8339 = vmatmul.bf16.gmra.mxu1 %v8230_v46 }
 0x95b   : > { %v8906_v51 = vsel %vm5800_vm1, %v8901_v2, %v8905_v56 }
 0x95c   : > { %8085 = vst [vmem:[#allocation2 + $0x30] sm:$0xf] %v8045_v15  ;;  %8760 = vmatpush.bf16.msrb.mxu1 %v13535_v17  ;;  %v13594_v17 = vld [vmem:[%s19389_s5 + $0x1e8] sm:$0xff] }
 0x95d   : > { %8086 = vst [vmem:[#allocation2 + $0x34] sm:$0xf] %v8046_v24  ;;  %v13603_v24 = vld [vmem:[%s19389_s5 + $0x230] sm:$0xff] }
 0x95e   : > { %v7970_v9 = vpop.permute.xlu2 %7969  ;;  %9798 = vmatpush.bf16.msra.mxu2 %v13603_v24 }
 0x95f   : > { %v7999_v39 = vsel %vm5547_vm0, %v18563_v40, %v7970_v9 }
 0x960   : > { %v8029_v47 = vunpack.c.l.b16 %v7999_v39  ;;  %v8030_v29 = vunpack.c.h.b16 %v7999_v39  ;;  %9638 = vmatpush.bf16.msra.mxu1 %v13596_v7  ;;  %v18681_v39 = vld [vmem:[#allocation2 + $0x18] sm:$0xff] }
 0x962   : > { %v8049_v43 = vpack.c.b16 %v8029_v47, %v8029_v47  ;;  %v8050_v4 = vpack.c.b16 %v8030_v29, %v8030_v29 }
 0x964   : > { %v13501_v12 = vld [vmem:[#allocation2 + $0x30] sm:$0xff]  ;;  %8089 = vst [vmem:[#allocation2 + $0x40] sm:$0xf] %v8049_v43 }
 0x965   : > { %v13570_v21 = vld [vmem:[#allocation2 + $0x30] sm:$0xff]  ;;  %8090 = vst [vmem:[#allocation2 + $0x44] sm:$0xf] %v8050_v4  ;;  %8454 = vmatmul.bf16.gmra.mxu2 %v13501_v12  ;;  %v8497_v11 = vrot.slane %v13501_v12, 1  ;;  %v8235_v55 = vshll.u32 %v13501_v12, 16  ;;  %v8239_v10 = vshrl.u32 %v13501_v12, 16 }
 0x966   : > { %9400 = vmatmul.bf16.gmra.mxu0 %v13570_v21  ;;  %v7968_v27 = vpop.permute.xlu1 %7967  ;;  %v13595_v4 = vld [vmem:[%s19389_s5 + $0x1f0] sm:$0xff]  ;;  %v8911_v12 = vshll.u32 %v18681_v39, 16  ;;  %v13755_v21 = vld [vmem:[#allocation2 + $0x8] sm:$0xf0] }
 0x967   : > { %v7996_v40 = vsel %vm5547_vm0, %v18527_v61, %v7968_v27  ;;  %v8498_v5 = vsel %vm6140_vm2, %v8495_v52, %v8497_v11  ;;  %v8237_v57 = vrot.slane %v8235_v55, 1  ;;  %v13561_v61 = vld [vmem:[%s19389_s5 + $0x158] sm:$0xff]  ;;  %9639 = vmatpush.bf16.msra.mxu1 %v13595_v4 }
 0x968   : > { %v8027_v25 = vunpack.c.l.b16 %v7996_v40  ;;  %v8028_v41 = vunpack.c.h.b16 %v7996_v40  ;;  %8592 = vmatmul.bf16.gmra.mxu3 %v8498_v5  ;;  %v8913_v55 = vrot.slane %v8911_v12, 1  ;;  %v13602_v5 = vld [vmem:[%s19389_s5 + $0x228] sm:$0xff] }
 0x969   : > { %v8238_v35 = vsel %vm5800_vm1, %v8233_v45, %v8237_v57  ;;  %9182 = vmatpush.bf16.msrb.mxu3 %v13561_v61  ;;  %v8241_v59 = vor.u32 %v8239_v10, %v8237_v57  ;;  %9799 = vmatpush.bf16.msra.mxu2 %v13602_v5  ;;  %v18695_v61 = vld [vmem:[#allocation2 + $0x20] sm:$0xff]  ;;  %v8915_v10 = vshrl.u32 %v18681_v39, 16 }
 0x96a   : > { %v8047_v26 = vpack.c.b16 %v8027_v25, %v8027_v25  ;;  %v8048_v28 = vpack.c.b16 %v8028_v41, %v8028_v41  ;;  %8344 = vmatmul.bf16.gmra.mxu1 %v8238_v35  ;;  %v9106_v41 = vrot.slane %v18668_v62, 1  ;;  %v8923_v2 = vshrl.u32 %v18695_v61, 16 }
 0x96b   : > { %v8126_v63 = vld [vmem:[#allocation2 + $0x40] sm:$0x1]  ;;  %9640 = vmatpush.bf16.msra.mxu1 %v13594_v17  ;;  %v8917_v48 = vor.u32 %v8915_v10, %v8913_v55 }
 0x96c   : > { %8087 = vst [vmem:[#allocation2 + $0x38] sm:$0xf] %v8047_v26  ;;  %v8177_v19 = vunpack.c.l.b16 %v8126_v63  ;;  %v13527_v63 = vld [vmem:[#allocation2 + $0x8] sm:$0xff] }
 0x96d   : > { %8088 = vst [vmem:[#allocation2 + $0x3c] sm:$0xf] %v8048_v28  ;;  %9183 = vmatpush.bf16.msrb.mxu3 %v13560_v22 }
 0x96e   : > { %10154 = vst [vmem:[#allocation2 + $0x40] sm:$0x1] %v20213_v33  ;;  %v8186_v52 = vpack.c.b16 %v8177_v19, %v8177_v19  ;;  %v13528_v19 = vld [vmem:[#allocation2 + $0x10] sm:$0xff] }
 0x96f   : > { %9641 = vmatpush.bf16.msra.mxu1 %v13593_v49 }
 0x970   : > { %v8251_v1 = vshll.u32 %v8186_v52, 16  ;;  %v8501_v38 = vrot.slane %v8186_v52, 1 }
 0x971   : > { %9184 = vmatpush.bf16.msrb.mxu3 %v13559_v32  ;;  %v8919_v32 = vshll.u32 %v18695_v61, 16 }
 0x972   : > { %v8253_v30 = vrot.slane %v8251_v1, 1 }
 0x974   : > { %v13502_v18 = vld [vmem:[#allocation2 + $0x38] sm:$0xff] }
 0x975   : > { %v13571_v31 = vld [vmem:[#allocation2 + $0x38] sm:$0xff]  ;;  %8459 = vmatmul.bf16.gmra.mxu2 %v13502_v18  ;;  %v8499_v13 = vrot.slane %v13502_v18, 1  ;;  %v8243_v34 = vshll.u32 %v13502_v18, 16  ;;  %9185 = vmatpush.bf16.msrb.mxu3 %v13558_v36  ;;  %v13572_v53 = vld [vmem:[#allocation2 + $0x40] sm:$0xff]  ;;  %v8247_v37 = vshrl.u32 %v13502_v18, 16  ;;  %v9108_v36 = vrot.slane %v18681_v39, 1 }
 0x976   : > { %9405 = vmatmul.bf16.gmra.mxu0 %v13571_v31  ;;  %v13529_v39 = vld [vmem:[#allocation2 + $0x18] sm:$0xff]  ;;  %v18763_v49 = vld [vmem:[#allocation2 + $0x40] sm:$0xff] }
 0x977   : > { %v8500_v6 = vsel %vm6140_vm2, %v8497_v11, %v8499_v13  ;;  %v8245_v60 = vrot.slane %v8243_v34, 1  ;;  %v8502_v9 = vsel %vm6140_vm2, %v8499_v13, %v8501_v38  ;;  %v8907_v11 = vshrl.u32 %v18668_v62, 16 }
 0x978   : > { %8597 = vmatmul.bf16.gmra.mxu3 %v8500_v6  ;;  %v8921_v34 = vrot.slane %v8919_v32, 1 }
 0x979   : > { %v8246_v50 = vsel %vm5800_vm1, %v8241_v59, %v8245_v60  ;;  %v8249_v15 = vor.u32 %v8247_v37, %v8245_v60  ;;  %v8909_v20 = vor.u32 %v8907_v11, %v8905_v56  ;;  %v13601_v60 = vld [vmem:[%s19389_s5 + $0x220] sm:$0xff]  ;;  %v8927_v56 = vshll.u32 %v18712_v42, 16 }
 0x97a   : > { %8349 = vmatmul.bf16.gmra.mxu1 %v8246_v50  ;;  %v8922_v59 = vsel %vm5800_vm1, %v8917_v48, %v8921_v34  ;;  %v9109_v50 = vsel %vm6140_vm2, %v9106_v41, %v9108_v36  ;;  %9800 = vmatpush.bf16.msra.mxu2 %v13601_v60 }
 0x97b   : > { %v8254_v43 = vsel %vm5800_vm1, %v8249_v15, %v8253_v30  ;;  %v8914_v25 = vsel %vm5800_vm1, %v8909_v20, %v8913_v55  ;;  %v9110_v15 = vrot.slane %v18695_v61, 1  ;;  %v13591_v61 = vld [vmem:[%s19389_s5 + $0x1d0] sm:$0xff] }
 0x985   : > { %9027 = vmatmul.bf16.vlgmr.msrb.gmra.mxu2 %v8906_v51  ;;  %v8925_v51 = vor.u32 %v8923_v2, %v8921_v34 }
 0x986   : > { %9410 = vmatmul.bf16.gmra.mxu0 %v13572_v53  ;;  %v7972_v23 = vpop.permute.xlu0 %7971 }
 0x987   : > { %v8002_v46 = vsel %vm5547_vm0, %v18575_v0, %v7972_v23  ;;  %v13756_v0 = vld [vmem:[#allocation2 + $0x8] sm:$0xe]  ;;  %v8929_v23 = vrot.slane %v8927_v56, 1 }
 0x988   : > { %v8031_v8 = vunpack.c.l.b16 %v8002_v46  ;;  %v8032_v54 = vunpack.c.h.b16 %v8002_v46  ;;  %v8425_v14 = vpop.f32.mrf.mxu2  ;;  %8602 = vmatmul.bf16.gmra.mxu3 %v8502_v9  ;;  %v13757_v27 = vor.u32 %v13756_v0, %v13755_v21 }
 0x989   : > { %v8930_v46 = vsel %vm5800_vm1, %v8925_v51, %v8929_v23 }
 0x98a   : > { %v8051_v47 = vpack.c.b16 %v8031_v8, %v8031_v8  ;;  %v8052_v29 = vpack.c.b16 %v8032_v54, %v8032_v54  ;;  %8354 = vmatmul.bf16.gmra.mxu1 %v8254_v43  ;;  %v9105_v45 = vrot.slane %v13757_v27, 1  ;;  %v13600_v8 = vld [vmem:[%s19389_s5 + $0x218] sm:$0xff]  ;;  %v8931_v27 = vshrl.u32 %v18712_v42, 16 }
 0x98b   : > { %9801 = vmatpush.bf16.msra.mxu2 %v13600_v8  ;;  %v13597_v8 = vld [vmem:[%s19389_s5 + $0x200] sm:$0xff] }
 0x98c   : > { %8091 = vst [vmem:[#allocation2 + $0x48] sm:$0xf] %v8051_v47  ;;  %v9107_v26 = vsel %vm6140_vm2, %v9105_v45, %v9106_v41  ;;  %v18729_v47 = vld [vmem:[#allocation2 + $0x30] sm:$0xff]  ;;  %v8933_v55 = vor.u32 %v8931_v27, %v8929_v23 }
 0x98d   : > { %8092 = vst [vmem:[#allocation2 + $0x4c] sm:$0xf] %v8052_v29  ;;  %v13592_v29 = vld [vmem:[%s19389_s5 + $0x1d8] sm:$0xff]  ;;  %v8935_v0 = vshll.u32 %v18729_v47, 16  ;;  %v13599_v41 = vld [vmem:[%s19389_s5 + $0x210] sm:$0xff]  ;;  %v8939_v10 = vshrl.u32 %v18729_v47, 16 }
 0x98e   : > { %9642 = vmatpush.bf16.msra.mxu1 %v13592_v29 }
 0x98f   : > { %v8937_v11 = vrot.slane %v8935_v0, 1  ;;  %9802 = vmatpush.bf16.msra.mxu2 %v13599_v41  ;;  %v13532_v0 = vld [vmem:[#allocation2 + $0x30] sm:$0xff] }
 0x990   : > { %v8427_v3 = vpop.f32.mrf.mxu2 }
 0x991   : > { %v8938_v45 = vsel %vm5800_vm1, %v8933_v55, %v8937_v11  ;;  %v8941_v48 = vor.u32 %v8939_v10, %v8937_v11 }
 0x992   : > { %9643 = vmatpush.bf16.msra.mxu1 %v13591_v61 }
 0x994   : > { %v13573_v40 = vld [vmem:[#allocation2 + $0x48] sm:$0xff] }
 0x995   : > { %9032 = vmatmul.bf16.gmra.mxu2 %v8914_v25  ;;  %v9112_v25 = vrot.slane %v18712_v42, 1  ;;  %v13531_v42 = vld [vmem:[#allocation2 + $0x28] sm:$0xff] }
 0x996   : > { %9415 = vmatmul.bf16.gmra.mxu0 %v13573_v40 }
 0x997   : > { %v8320_v57 = vpop.f32.mrf.mxu1 }
 0x998   : > { %v8426_v28 = vadd.f32 %v8425_v14, %v8320_v57  ;;  %v8430_v35 = vpop.f32.mrf.mxu2  ;;  %9186 = vmatmul.bf16.vlgmr.msrb.gmra.mxu3 %v9107_v26  ;;  %v9111_v14 = vsel %vm6140_vm2, %v9108_v36, %v9110_v15  ;;  %v9113_v57 = vsel %vm6140_vm2, %v9110_v15, %v9112_v25  ;;  %v9114_v36 = vrot.slane %v18729_v47, 1  ;;  %v8834_v15 = vld [vmem:[#allocation2 + $0x48] sm:$0x1] }
 0x99a   : > { %8761 = vmatmul.bf16.vlgmr.msrb.gmra.mxu1 %v13527_v63  ;;  %v18746_v63 = vld [vmem:[#allocation2 + $0x38] sm:$0xff] }
 0x99b   : > { %v8568_v33 = vpop.f32.mrf.mxu3  ;;  %v8943_v32 = vshll.u32 %v18746_v63, 16 }
 0x99c   : > { %v18700_v22 = vadd.f32 %v8568_v33, %v8426_v28 }
 0x99d   : > { %v8945_v34 = vrot.slane %v8943_v32, 1  ;;  %v13533_v32 = vld [vmem:[#allocation2 + $0x38] sm:$0xff] }
 0x99f   : > { %v8322_v18 = vpop.f32.mrf.mxu1  ;;  %v8946_v60 = vsel %vm5800_vm1, %v8941_v48, %v8945_v34 }
 0x9a0   : > { %v8428_v31 = vadd.f32 %v8427_v3, %v8322_v18  ;;  %v8432_v13 = vpop.f32.mrf.mxu2 }
 0x9a3   : > { %v8570_v16 = vpop.f32.mrf.mxu3 }
 0x9a4   : > { %v18705_v6 = vadd.f32 %v8570_v16, %v8428_v31 }
 0x9a5   : > { %9037 = vmatmul.bf16.gmra.mxu2 %v8922_v59 }
 0x9a7   : > { %v8325_v58 = vpop.f32.mrf.mxu1 }
 0x9a8   : > { %v8431_v62 = vadd.f32 %v8430_v35, %v8325_v58  ;;  %v8435_v7 = vpop.f32.mrf.mxu2  ;;  %9191 = vmatmul.bf16.gmra.mxu3 %v9109_v50  ;;  %v13530_v35 = vld [vmem:[#allocation2 + $0x20] sm:$0xff]  ;;  %v13598_v58 = vld [vmem:[%s19389_s5 + $0x208] sm:$0xff] }
 0x9a9   : > { %9803 = vmatpush.bf16.msra.mxu2 %v13598_v58 }
 0x9aa   : > { %8766 = vmatmul.bf16.gmra.mxu1 %v13528_v19 }
 0x9ab   : > { %v8573_v44 = vpop.f32.mrf.mxu3 }
 0x9ac   : > { %v18717_v52 = vadd.f32 %v8573_v44, %v8431_v62  ;;  %v9115_v62 = vsel %vm6140_vm2, %v9112_v25, %v9114_v36  ;;  %v13590_v44 = vld [vmem:[%s19389_s5 + $0x1c8] sm:$0xff]  ;;  %v8955_v25 = vshrl.u32 %v18763_v49, 16 }
 0x9ad   : > { %9644 = vmatpush.bf16.msra.mxu1 %v13590_v44  ;;  %9804 = vmatpush.bf16.msra.mxu2 %v13597_v8 }
 0x9af   : > { %v8327_v53 = vpop.f32.mrf.mxu1 }
 0x9b0   : > { %v8433_v37 = vadd.f32 %v8432_v13, %v8327_v53  ;;  %v8437_v1 = vpop.f32.mrf.mxu2  ;;  %v8947_v53 = vshrl.u32 %v18746_v63, 16 }
 0x9b3   : > { %v8575_v38 = vpop.f32.mrf.mxu3 }
 0x9b4   : > { %v18722_v24 = vadd.f32 %v8575_v38, %v8433_v37  ;;  %v8951_v37 = vshll.u32 %v18763_v49, 16  ;;  %v8949_v38 = vor.u32 %v8947_v53, %v8945_v34  ;;  %v13582_v34 = vld [vmem:[#allocation2 + $0x18] sm:$0xff]  ;;  %v13534_v53 = vld [vmem:[#allocation2 + $0x40] sm:$0xff] }
 0x9b5   : > { %9042 = vmatmul.bf16.gmra.mxu2 %v8930_v46  ;;  %v9725_v58 = vrot.slane %v13582_v34, 1 }
 0x9b6   : > { %v8953_v46 = vrot.slane %v8951_v37, 1 }
 0x9b7   : > { %v8330_v54 = vpop.f32.mrf.mxu1 }
 0x9b8   : > { %v8436_v9 = vadd.f32 %v8435_v7, %v8330_v54  ;;  %v8440_v30 = vpop.f32.mrf.mxu2  ;;  %9196 = vmatmul.bf16.gmra.mxu3 %v9111_v14  ;;  %v9116_v14 = vrot.slane %v18746_v63, 1 }
 0x9ba   : > { %8771 = vmatmul.bf16.gmra.mxu1 %v13529_v39  ;;  %v9117_v47 = vsel %vm6140_vm2, %v9114_v36, %v9116_v14 }
 0x9bb   : > { %v8578_v43 = vpop.f32.mrf.mxu3 }
 0x9bc   : > { %v18734_v4 = vadd.f32 %v8578_v43, %v8436_v9  ;;  %v8954_v9 = vsel %vm5800_vm1, %v8949_v38, %v8953_v46  ;;  %v13758_v38 = vld [vmem:[#allocation2 + $0x10] sm:$0xff]  }
 0x9bf   : > { %v8332_v12 = vpop.f32.mrf.mxu1 }
 0x9c0   : > { %v8438_v21 = vadd.f32 %v8437_v1, %v8332_v12  ;;  %v8442_v3 = vpop.f32.mrf.mxu2 }
 0x9c3   : > { %v8580_v20 = vpop.f32.mrf.mxu3 }
 0x9c4   : > { %v18738_v40 = vadd.f32 %v8580_v20, %v8438_v21  ;;  %v13589_v21 = vld [vmem:[%s19389_s5 + $0x1c0] sm:$0xff] }
 0x9c5   : > { %9047 = vmatmul.bf16.gmra.mxu2 %v8938_v45  ;;  %9645 = vmatpush.bf16.msra.mxu1 %v13589_v21 }
 0x9c7   : > { %v8335_v5 = vpop.f32.mrf.mxu1 }
 0x9c8   : > { %v8441_v26 = vadd.f32 %v8440_v30, %v8335_v5  ;;  %v8445_v28 = vpop.f32.mrf.mxu2  ;;  %9201 = vmatmul.bf16.gmra.mxu3 %v9113_v57  ;;  %v8885_v30 = vunpack.c.l.b16 %v8834_v15  ;;  %v8957_v5 = vor.u32 %v8955_v25, %v8953_v46  ;;  %v9517_v46 = vshll.u32 %v13758_v38, 16 }
 0x9ca   : > { %8776 = vmatmul.bf16.gmra.mxu1 %v13530_v35  ;;  %v8894_v12 = vpack.c.b16 %v8885_v30, %v8885_v30  ;;  %v9522_v30 = vshll.u32 %v13582_v34, 16 }
 0x9cb   : > { %v8583_v17 = vpop.f32.mrf.mxu3 }
 0x9cc   : > { %v18751_v33 = vadd.f32 %v8583_v17, %v8441_v26  ;;  %v8959_v11 = vshll.u32 %v8894_v12, 16 }
 0x9ce   : > { %v8961_v41 = vrot.slane %v8959_v11, 1 }
 0x9cf   : > { %v8337_v18 = vpop.f32.mrf.mxu1 }
 0x9d0   : > { %v8443_v31 = vadd.f32 %v8442_v3, %v8337_v18  ;;  %v8447_v13 = vpop.f32.mrf.mxu2  ;;  %v8962_v26 = vsel %vm5800_vm1, %v8957_v5, %v8961_v41 }
 0x9d3   : > { %v8585_v16 = vpop.f32.mrf.mxu3 }
 0x9d4   : > { %v18756_v59 = vadd.f32 %v8585_v16, %v8443_v31  ;;  %v13759_v31 = vld [vmem:[#allocation2 + $0x10] sm:$0xf0] }
 0x9d5   : > { %9052 = vmatmul.bf16.gmra.mxu2 %v8946_v60 }
 0x9d7   : > { %v8340_v50 = vpop.f32.mrf.mxu1 }
 0x9d8   : > { %v8446_v7 = vadd.f32 %v8445_v28, %v8340_v50  ;;  %v8450_v19 = vpop.f32.mrf.mxu2  ;;  %9206 = vmatmul.bf16.gmra.mxu3 %v9115_v62  ;;  %v9118_v28 = vrot.slane %v18763_v49, 1 }
 0x9da   : > { %8781 = vmatmul.bf16.gmra.mxu1 %v13531_v42  ;;  %v9119_v63 = vsel %vm6140_vm2, %v9116_v14, %v9118_v28 }
 0x9db   : > { %v8588_v2 = vpop.f32.mrf.mxu3 }
 0x9dc   : > { %v18768_v56 = vadd.f32 %v8588_v2, %v8446_v7  ;;  %v9120_v7 = vrot.slane %v8894_v12, 1 }
 0x9de   : > { %v9121_v49 = vsel %vm6140_vm2, %v9118_v28, %v9120_v7 }
 0x9df   : > { %v8342_v1 = vpop.f32.mrf.mxu1 }
 0x9e0   : > { %v18772_v51 = vadd.f32 %v8447_v13, %v8342_v1  ;;  %v8452_v23 = vpop.f32.mrf.mxu2  ;;  %v13760_v13 = vld [vmem:[#allocation2 + $0x10] sm:$0xe] }
 0x9e1   : > { %v13761_v48 = vor.u32 %v13760_v13, %v13759_v31 }
 0x9e3   : > { %v18777_v54 = vpop.f32.mrf.mxu3  ;;  %v9724_v50 = vrot.slane %v13761_v48, 1 }
 0x9e5   : > { %9057 = vmatmul.bf16.gmra.mxu2 %v8954_v9 }
 0x9e7   : > { %v8345_v39 = vpop.f32.mrf.mxu1 }
 0x9e8   : > { %v8451_v29 = vadd.f32 %v8450_v19, %v8345_v39  ;;  %v8455_v43 = vpop.f32.mrf.mxu2  ;;  %9211 = vmatmul.bf16.gmra.mxu3 %v9117_v47  ;;  %v9726_v19 = vsel %vm6140_vm2, %v9724_v50, %v9725_v58  ;;  %v9519_v39 = vrot.slane %v9517_v46, 1 }
 0x9ea   : > { %8786 = vmatmul.bf16.gmra.mxu1 %v13532_v0 }
 0x9eb   : > { %v8593_v3 = vpop.f32.mrf.mxu3 }
 0x9ec   : > { %v18785_v27 = vadd.f32 %v8593_v3, %v8451_v29  ;;  %v9515_v29 = vshrl.u32 %v13758_v38, 16 }
 0x9ee   : > { %v9520_v12 = vor.u32 %v9519_v39, %v9515_v29 }
 0x9ef   : > { %v8347_v55 = vpop.f32.mrf.mxu1 }
 0x9f0   : > { %v18787_v20 = vadd.f32 %v8452_v23, %v8347_v55  ;;  %v8457_v45 = vpop.f32.mrf.mxu2  ;;  %v13583_v23 = vld [vmem:[#allocation2 + $0x20] sm:$0xff] }
 0x9f1   : > { %v9727_v9 = vrot.slane %v13583_v23, 1 }
 0x9f3   : > { %v18790_v57 = vpop.f32.mrf.mxu3  ;;  %v9728_v47 = vsel %vm6140_vm2, %v9725_v58, %v9727_v9 }
 0x9f5   : > { %9062 = vmatmul.bf16.gmra.mxu2 %v8962_v26  ;;  %v9530_v26 = vshll.u32 %v13583_v23, 16 }
 0x9f7   : > { %v8350_v35 = vpop.f32.mrf.mxu1 }
 0x9f8   : > { %v8456_v61 = vadd.f32 %v8455_v43, %v8350_v35  ;;  %v8460_v17 = vpop.f32.mrf.mxu2  ;;  %9216 = vmatmul.bf16.gmra.mxu3 %v9119_v63  ;;  %v9524_v43 = vrot.slane %v9522_v30, 1 }
 0x9fa   : > { %8791 = vmatmul.bf16.gmra.mxu1 %v13533_v32  ;;  %v9525_v11 = vsel %vm5800_vm1, %v9520_v12, %v9524_v43 }
 0x9fb   : > { %v8598_v18 = vpop.f32.mrf.mxu3 }
 0x9fc   : > { %v18795_v10 = vadd.f32 %v8598_v18, %v8456_v61  ;;  %v9526_v61 = vshrl.u32 %v13582_v34, 16  ;;  %v9534_v34 = vshrl.u32 %v13583_v23, 16 }
 0x9fe   : > { %v9528_v32 = vor.u32 %v9526_v61, %v9524_v43 }
 0x9ff   : > { %v8352_v16 = vpop.f32.mrf.mxu1 }
 0xa00   : > { %v18797_v36 = vadd.f32 %v8457_v45, %v8352_v16  ;;  %v8462_v60 = vpop.f32.mrf.mxu2  ;;  %v13584_v45 = vld [vmem:[#allocation2 + $0x28] sm:$0xff] }
 0xa01   : > { %v9729_v35 = vrot.slane %v13584_v45, 1 }
 0xa03   : > { %v18799_v62 = vpop.f32.mrf.mxu3  ;;  %v9730_v63 = vsel %vm6140_vm2, %v9727_v9, %v9729_v35 }
 0xa05   : > { %9805 = vmatmul.bf16.vlgmr.msra.gmra.mxu2 %v9726_v19  ;;  %v9538_v19 = vshll.u32 %v13584_v45, 16 }
 0xa07   : > { %v8355_v42 = vpop.f32.mrf.mxu1 }
 0xa08   : > { %v8461_v44 = vadd.f32 %v8460_v17, %v8355_v42  ;;  %v9028_v2 = vpop.f32.mrf.mxu2  ;;  %9221 = vmatmul.bf16.gmra.mxu3 %v9121_v49 }
 0xa0a   : > { %8796 = vmatmul.bf16.gmra.mxu1 %v13534_v53 }
 0xa0b   : > { %v8603_v37 = vpop.f32.mrf.mxu3 }
 0xa0c   : > { %v18803_v1 = vadd.f32 %v8603_v37, %v8461_v44  ;;  %v9540_v44 = vrot.slane %v9538_v19, 1  ;;  %v9453_v19 = vld [vmem:[#allocation2 + $0x50] sm:$0x1] }
 0xa0f   : > { %v8357_v15 = vpop.f32.mrf.mxu1 }
 0xa10   : > { %v18805_v8 = vadd.f32 %v8462_v60, %v8357_v15  ;;  %v9030_v14 = vpop.f32.mrf.mxu2 }
 0xa15   : > { %9810 = vmatmul.bf16.gmra.mxu2 %v9728_v47  ;;  %v9542_v47 = vshrl.u32 %v13584_v45, 16 }
 0xa17   : > { %v8762_v0 = vpop.f32.mrf.mxu1  ;;  %v9544_v43 = vor.u32 %v9542_v47, %v9540_v44 }
 0xa18   : > { %v8802_v21 = vadd.f32 %v8762_v0, %v18700_v22  ;;  %v9033_v3 = vpop.f32.mrf.mxu2  ;;  %v9532_v22 = vrot.slane %v9530_v26, 1 }
 0xa1a   : > { %9646 = vmatmul.bf16.vlgmr.msra.gmra.mxu1 %v9525_v11  ;;  %v18810_v55 = vadd.f32 %v9028_v2, %v8802_v21  ;;  %v9533_v13 = vsel %vm5800_vm1, %v9528_v32, %v9532_v22 }
 0xa1f   : > { %v8764_v25 = vpop.f32.mrf.mxu1 }
 0xa20   : > { %v8803_v41 = vadd.f32 %v8764_v25, %v18705_v6  ;;  %v9035_v5 = vpop.f32.mrf.mxu2  ;;  %v13585_v6 = vld [vmem:[#allocation2 + $0x30] sm:$0xff] }
 0xa21   : > { %v9731_v50 = vrot.slane %v13585_v6, 1  ;;  %v9546_v9 = vshll.u32 %v13585_v6, 16 }
 0xa22   : > { %v18813_v28 = vadd.f32 %v9030_v14, %v8803_v41 }
 0xa23   : > { %v9732_v42 = vsel %vm6140_vm2, %v9729_v35, %v9731_v50 }
 0xa25   : > { %9815 = vmatmul.bf16.gmra.mxu2 %v9730_v63 }
 0xa27   : > { %v8767_v17 = vpop.f32.mrf.mxu1 }
 0xa28   : > { %v8804_v18 = vadd.f32 %v8767_v17, %v18717_v52  ;;  %v9038_v31 = vpop.f32.mrf.mxu2  ;;  %v9536_v52 = vor.u32 %v9534_v34, %v9532_v22 }
 0xa2a   : > { %9651 = vmatmul.bf16.gmra.mxu1 %v9533_v13  ;;  %v18818_v48 = vadd.f32 %v9033_v3, %v8804_v18  ;;  %v9541_v37 = vsel %vm5800_vm1, %v9536_v52, %v9540_v44 }
 0xa2f   : > { %v8769_v16 = vpop.f32.mrf.mxu1 }
 0xa30   : > { %v8805_v60 = vadd.f32 %v8769_v16, %v18722_v24  ;;  %v9040_v58 = vpop.f32.mrf.mxu2  ;;  %v13586_v24 = vld [vmem:[#allocation2 + $0x38] sm:$0xff] }
 0xa31   : > { %v9733_v14 = vrot.slane %v13586_v24, 1 }
 0xa32   : > { %v18821_v7 = vadd.f32 %v9035_v5, %v8805_v60  ;;  %v9554_v5 = vshll.u32 %v13586_v24, 16 }
 0xa33   : > { %v9734_v39 = vsel %vm6140_vm2, %v9731_v50, %v9733_v14 }
 0xa34   : > { %v9556_v63 = vrot.slane %v9554_v5, 1 }
 0xa35   : > { %9820 = vmatmul.bf16.gmra.mxu2 %v9732_v42 }
 0xa37   : > { %v8772_v49 = vpop.f32.mrf.mxu1 }
 0xa38   : > { %v8806_v2 = vadd.f32 %v8772_v49, %v18734_v4  ;;  %v9043_v53 = vpop.f32.mrf.mxu2  ;;  %v9548_v4 = vrot.slane %v9546_v9, 1 }
 0xa3a   : > { %9656 = vmatmul.bf16.gmra.mxu1 %v9541_v37  ;;  %v18826_v38 = vadd.f32 %v9038_v31, %v8806_v2  ;;  %v9549_v21 = vsel %vm5800_vm1, %v9544_v43, %v9548_v4  ;;  %v13588_v31 = vld [vmem:[#allocation2 + $0x48] sm:$0xff]  ;;  %v9504_v2 = vunpack.c.l.b16 %v9453_v19 }
 0xa3b   : > { %v9737_v60 = vrot.slane %v13588_v31, 1  ;;  %v9570_v9 = vshll.u32 %v13588_v31, 16 }
 0xa3f   : > { %v8774_v15 = vpop.f32.mrf.mxu1 }
 0xa40   : > { %v8807_v46 = vadd.f32 %v8774_v15, %v18738_v40  ;;  %v9045_v23 = vpop.f32.mrf.mxu2  ;;  %v13587_v40 = vld [vmem:[#allocation2 + $0x40] sm:$0xff] }
 0xa41   : > { %v9735_v45 = vrot.slane %v13587_v40, 1  ;;  %v9562_v50 = vshll.u32 %v13587_v40, 16  ;;  %v9566_v47 = vshrl.u32 %v13587_v40, 16  ;;  %v9574_v40 = vshrl.u32 %v13588_v31, 16 }
 0xa42   : > { %v18829_v30 = vadd.f32 %v9040_v58, %v8807_v46  ;;  %v9558_v58 = vshrl.u32 %v13586_v24, 16  ;;  %v9513_v24 = vpack.c.b16 %v9504_v2, %v9504_v2 }
 0xa43   : > { %v9736_v35 = vsel %vm6140_vm2, %v9733_v14, %v9735_v45  ;;  %v9564_v52 = vrot.slane %v9562_v50, 1 }
 0xa44   : > { %v9560_v34 = vor.u32 %v9558_v58, %v9556_v63  ;;  %v9739_v14 = vrot.slane %v9513_v24, 1 }
 0xa45   : > { %9825 = vmatmul.bf16.gmra.mxu2 %v9734_v39 }
 0xa46   : > { %v9740_v39 = vsel %vm6140_vm2, %v9737_v60, %v9739_v14 }
 0xa47   : > { %v8777_v29 = vpop.f32.mrf.mxu1 }
 0xa48   : > { %v8808_v0 = vadd.f32 %v8777_v29, %v18751_v33  ;;  %v9048_v12 = vpop.f32.mrf.mxu2  ;;  %v9550_v33 = vshrl.u32 %v13585_v6, 16  ;;  %v9738_v6 = vsel %vm6140_vm2, %v9735_v45, %v9737_v60  ;;  %v9568_v29 = vor.u32 %v9566_v47, %v9564_v52 }
 0xa4a   : > { %9661 = vmatmul.bf16.gmra.mxu1 %v9549_v21  ;;  %v18834_v3 = vadd.f32 %v9043_v53, %v8808_v0  ;;  %v9552_v22 = vor.u32 %v9550_v33, %v9548_v4  ;;  %v9565_v53 = vsel %vm5800_vm1, %v9560_v34, %v9564_v52 }
 0xa4c   : > { %v9557_v18 = vsel %vm5800_vm1, %v9552_v22, %v9556_v63 }
 0xa4f   : > { %v8779_v11 = vpop.f32.mrf.mxu1 }
 0xa50   : > { %v8809_v25 = vadd.f32 %v8779_v11, %v18756_v59  ;;  %v18837_v41 = vpop.f32.mrf.mxu2 }
 0xa52   : > { %v18839_v26 = vadd.f32 %v9045_v23, %v8809_v25 }
 0xa55   : > { %9830 = vmatmul.bf16.gmra.mxu2 %v9736_v35  ;;  %v9578_v35 = vshll.u32 %v9513_v24, 16 }
 0xa57   : > { %v8782_v61 = vpop.f32.mrf.mxu1  ;;  %v9580_v22 = vrot.slane %v9578_v35, 1 }
 0xa58   : > { %v8810_v17 = vadd.f32 %v8782_v61, %v18768_v56  ;;  %v9053_v32 = vpop.f32.mrf.mxu2  ;;  %v18851_v56 = vpop.f32.mrf.mxu3 }
 0xa5a   : > { %9666 = vmatmul.bf16.gmra.mxu1 %v9557_v18  ;;  %v18844_v59 = vadd.f32 %v9048_v12, %v8810_v17  ;;  %v9381_v12 = vpop.f32.mrf.mxu0 }
 0xa5f   : > { %v18846_v13 = vpop.f32.mrf.mxu1 }
 0xa60   : > { %v18848_v16 = vpop.f32.mrf.mxu2  ;;  %v9187_v46 = vpop.f32.mrf.mxu3 }
 0xa61   : > { %v9227_v19 = vadd.f32 %v9187_v46, %v18810_v55 }
 0xa62   : > { %v9383_v33 = vpop.f32.mrf.mxu0 }
 0xa65   : > { %9835 = vmatmul.bf16.gmra.mxu2 %v9738_v6 }
 0xa67   : > { %v8787_v42 = vpop.f32.mrf.mxu1 }
 0xa68   : > { %v8812_v49 = vadd.f32 %v8787_v42, %v18785_v27  ;;  %v9058_v44 = vpop.f32.mrf.mxu2  ;;  %v9572_v27 = vrot.slane %v9570_v9, 1  ;;  %v9189_v11 = vpop.f32.mrf.mxu3  ;;  %v9421_v42 = vadd.f32 %v9381_v12, %v9227_v19 }
 0xa6a   : > { %9671 = vmatmul.bf16.gmra.mxu1 %v9565_v53  ;;  %v18855_v37 = vadd.f32 %v9053_v32, %v8812_v49  ;;  %v9573_v21 = vsel %vm5800_vm1, %v9568_v29, %v9572_v27  ;;  %v9576_v61 = vor.u32 %v9574_v40, %v9572_v27  ;;  %v9386_v58 = vpop.f32.mrf.mxu0  ;;  %v9228_v53 = vadd.f32 %v9189_v11, %v18813_v28 }
 0xa6c   : > { %v9581_v18 = vsel %vm5800_vm1, %v9576_v61, %v9580_v22  ;;  %v9422_v9 = vadd.f32 %v9383_v33, %v9228_v53 }
 0xa6f   : > { %v18857_v15 = vpop.f32.mrf.mxu1 }
 0xa70   : > { %v18859_v23 = vpop.f32.mrf.mxu2  ;;  %v9192_v63 = vpop.f32.mrf.mxu3 }
 0xa72   : > { %v9388_v31 = vpop.f32.mrf.mxu0 }
 0xa75   : > { %9840 = vmatmul.bf16.gmra.mxu2 %v9740_v39 }
 0xa77   : > { %v8792_v4 = vpop.f32.mrf.mxu1 }
 0xa78   : > { %v8814_v43 = vadd.f32 %v8792_v4, %v18795_v10  ;;  %v9063_v0 = vpop.f32.mrf.mxu2  ;;  %v9194_v50 = vpop.f32.mrf.mxu3  ;;  %v9229_v4 = vadd.f32 %v9192_v63, %v18818_v48 }
 0xa79   : > { %v9230_v19 = vadd.f32 %v9194_v50, %v18821_v7 }
 0xa7a   : > { %9676 = vmatmul.bf16.gmra.mxu1 %v9573_v21  ;;  %v18864_v25 = vadd.f32 %v9058_v44, %v8814_v43  ;;  %v9391_v39 = vpop.f32.mrf.mxu0  ;;  %v9423_v11 = vadd.f32 %v9386_v58, %v9229_v4 }
 0xa7b   : > { %v9424_v58 = vadd.f32 %v9388_v31, %v9230_v19 }
 0xa7f   : > { %v18866_v5 = vpop.f32.mrf.mxu1 }
 0xa80   : > { %v18868_v45 = vpop.f32.mrf.mxu2  ;;  %v9197_v49 = vpop.f32.mrf.mxu3 }
 0xa81   : > { %v9231_v7 = vadd.f32 %v9197_v49, %v18826_v38 }
 0xa87   : > { %v8797_v17 = vpop.f32.mrf.mxu1 }
 0xa88   : > { %v8816_v10 = vadd.f32 %v8797_v17, %v18803_v1  ;;  %v9806_v32 = vpop.f32.mrf.mxu2  ;;  %v18880_v1 = vld [vmem:[%s19390_s6] ss:$0 sm:$0xff]  ;;  %v9199_v29 = vpop.f32.mrf.mxu3 }
 0xa8a   : > { %9681 = vmatmul.bf16.gmra.mxu1 %v9581_v18  ;;  %v18872_v60 = vadd.f32 %v9063_v0, %v8816_v10  ;;  %v9393_v18 = vpop.f32.mrf.mxu0 }
 0xa8f   : > { %v18874_v6 = vpop.f32.mrf.mxu1 }
 0xa90   : > { %v9808_v34 = vpop.f32.mrf.mxu2 }
 0xa97   : > { %v9647_v52 = vpop.f32.mrf.mxu1 }
 0xa98   : > { %v9687_v44 = vadd.f32 %v9647_v52, %v9421_v42  ;;  %v9811_v2 = vpop.f32.mrf.mxu2  ;;  %v9202_v52 = vpop.f32.mrf.mxu3 }
 0xa9a   : > { %v9846_v24 = vadd.f32 %v9806_v32, %v9687_v44 }
 0xa9c   : > { %v9866_v14 = vadd.f32 %v18880_v1, %v9846_v24 }
 0xa9e   : > { %v9914_v55 = vsub.f32 0.0, %v9866_v14  ;;  %v9882_v43 = vmax.f32 %v9866_v14, 0.0 }
 0xa9f   : > { %v9649_v47 = vpop.f32.mrf.mxu1 }
 0xaa0   : > { %v9688_v46 = vadd.f32 %v9649_v47, %v9422_v9  ;;  %v9813_v27 = vpop.f32.mrf.mxu2  ;;  %v9930_v12 = vmax.f32 %v9914_v55, 0.0  ;;  %v9898_v35 = vpack.c.bf16 %v9882_v43, %v9882_v43  ;;  %v9396_v43 = vpop.f32.mrf.mxu0 }
 0xaa1   : > { %v9204_v31 = vpop.f32.mrf.mxu3 }
 0xaa2   : > { %v9847_v0 = vadd.f32 %v9808_v34, %v9688_v46  ;;  %v9946_v22 = vpack.c.bf16 %v9930_v12, %v9930_v12  ;;  %v9978_v48 = vunpack.c.l.b16 %v9898_v35 }
 0xaa4   : > { %v9867_v21 = vadd.f32 %v18880_v1, %v9847_v0  ;;  %v10018_v44 = vunpack.c.l.b16 %v9946_v22 }
 0xaa6   : > { %v9883_v40 = vmax.f32 %v9867_v21, 0.0  ;;  %v9915_v28 = vsub.f32 0.0, %v9867_v21  ;;  %v13625_v21 = vld [vmem:[%s19391_s7 + $0x78] sm:$0xff] }
 0xaa7   : > { %v9652_v61 = vpop.f32.mrf.mxu1  ;;  %10340 = vmatpush.bf16.msra.mxu3 %v13625_v21 }
 0xaa8   : > { %v9899_v33 = vpack.c.bf16 %v9883_v40, %v9883_v40  ;;  %v9931_v17 = vmax.f32 %v9915_v28, 0.0  ;;  %v9689_v10 = vadd.f32 %v9652_v61, %v9423_v11  ;;  %v9816_v32 = vpop.f32.mrf.mxu2  ;;  %v9425_v11 = vadd.f32 %v9391_v39, %v9231_v7  ;;  %v13617_v39 = vld [vmem:[%s19391_s7 + $0x38] sm:$0xff] }
 0xaa9   : > { %10427 = vmatpush.bf16.msra.mxu0 %v13617_v39 }
 0xaaa   : > { %v9947_v63 = vpack.c.bf16 %v9931_v17, %v9931_v17  ;;  %v9848_v42 = vadd.f32 %v9811_v2, %v9689_v10  ;;  %v9979_v34 = vunpack.c.l.b16 %v9899_v33  ;;  %v9232_v17 = vadd.f32 %v9199_v29, %v18829_v30  ;;  %v9207_v30 = vpop.f32.mrf.mxu3 }
 0xaac   : > { %v10019_v53 = vunpack.c.l.b16 %v9947_v63  ;;  %v9868_v24 = vadd.f32 %v18880_v1, %v9848_v42  ;;  %v18888_v14 = vpack.c.b16 %v9979_v34, %v9978_v48 }
 0xaae   : > { %v10034_v9 = vpack.c.b16 %v10019_v53, %v10018_v44  ;;  %v9916_v55 = vsub.f32 0.0, %v9868_v24  ;;  %v9884_v50 = vmax.f32 %v9868_v24, 0.0  ;;  %v9398_v24 = vpop.f32.mrf.mxu0 }
 0xaaf   : > { %v9654_v47 = vpop.f32.mrf.mxu1 }
 0xab0   : > { %v9690_v46 = vadd.f32 %v9654_v47, %v9424_v58  ;;  %10042 = vrot.lane.b32.xlu1 %v10034_v9, %s14007_s14  ;;  %v9818_v4 = vpop.f32.mrf.mxu2  ;;  %v9932_v0 = vmax.f32 %v9916_v55, 0.0  ;;  %v9900_v35 = vpack.c.bf16 %v9884_v50, %v9884_v50  ;;  %v9426_v58 = vadd.f32 %v9393_v18, %v9232_v17  ;;  %v13624_v18 = vld [vmem:[%s19391_s7 + $0x70] sm:$0xff] }
 0xab1   : > { %10341 = vmatpush.bf16.msra.mxu3 %v13624_v18 }
 0xab2   : > { %v9849_v2 = vadd.f32 %v9813_v27, %v9690_v46  ;;  %v9948_v22 = vpack.c.bf16 %v9932_v0, %v9932_v0  ;;  %v9980_v10 = vunpack.c.l.b16 %v9900_v35  ;;  %v9233_v46 = vadd.f32 %v9202_v52, %v18834_v3 }
 0xab3   : > { %v9234_v52 = vadd.f32 %v9204_v31, %v18839_v26  ;;  %v8617_v26 = vadd.f32 %v18777_v54, %v18772_v51  ;;  %v13623_v51 = vld [vmem:[%s19391_s7 + $0x68] sm:$0xff] }
 0xab4   : > { %v9869_v12 = vadd.f32 %v18880_v1, %v9849_v2  ;;  %v10020_v42 = vunpack.c.l.b16 %v9948_v22 }
 0xab5   : > { %10342 = vmatpush.bf16.msra.mxu3 %v13623_v51 }
 0xab6   : > { %v9885_v40 = vmax.f32 %v9869_v12, 0.0  ;;  %v9917_v28 = vsub.f32 0.0, %v9869_v12 }
 0xab7   : > { %v9657_v61 = vpop.f32.mrf.mxu1 }
 0xab8   : > { %v9901_v33 = vpack.c.bf16 %v9885_v40, %v9885_v40  ;;  %v9933_v38 = vmax.f32 %v9917_v28, 0.0  ;;  %v9691_v49 = vadd.f32 %v9657_v61, %v9425_v11  ;;  %v9821_v27 = vpop.f32.mrf.mxu2  ;;  %v9427_v40 = vadd.f32 %v9396_v43, %v9233_v46  ;;  %v9401_v28 = vpop.f32.mrf.mxu0  ;;  %v13616_v43 = vld [vmem:[%s19391_s7 + $0x30] sm:$0xff] }
 0xab9   : > { %10428 = vmatpush.bf16.msra.mxu0 %v13616_v43 }
 0xaba   : > { %v9949_v19 = vpack.c.bf16 %v9933_v38, %v9933_v38  ;;  %v9850_v48 = vadd.f32 %v9816_v32, %v9691_v49  ;;  %v9981_v63 = vunpack.c.l.b16 %v9901_v33 }
 0xabc   : > { %v10021_v34 = vunpack.c.l.b16 %v9949_v19  ;;  %v9870_v44 = vadd.f32 %v18880_v1, %v9850_v48  ;;  %v18901_v53 = vpack.c.b16 %v9981_v63, %v9980_v10 }
 0xabe   : > { %v10035_v9 = vpack.c.b16 %v10021_v34, %v10020_v42  ;;  %v9918_v29 = vsub.f32 0.0, %v9870_v44  ;;  %v9886_v7 = vmax.f32 %v9870_v44, 0.0  ;;  %v9428_v44 = vadd.f32 %v9398_v24, %v9234_v52 }
 0xabf   : > { %v9659_v47 = vpop.f32.mrf.mxu1 }
 0xac0   : > { %v9692_v55 = vadd.f32 %v9659_v47, %v9426_v58  ;;  %10044 = vrot.lane.b32.xlu2 %v10035_v9, %s14007_s14  ;;  %v9823_v32 = vpop.f32.mrf.mxu2  ;;  %v9934_v2 = vmax.f32 %v9918_v29, 0.0  ;;  %v9902_v12 = vpack.c.bf16 %v9886_v7, %v9886_v7  ;;  %v9403_v9 = vpop.f32.mrf.mxu0  ;;  %v8811_v47 = vadd.f32 %v18846_v13, %v8617_v26 }
 0xac1   : > { %v9235_v29 = vadd.f32 %v9207_v30, %v18844_v59 }
 0xac2   : > { %v9851_v50 = vadd.f32 %v9818_v4, %v9692_v55  ;;  %v9950_v61 = vpack.c.bf16 %v9934_v2, %v9934_v2  ;;  %v9209_v4 = vpop.f32.mrf.mxu3  ;;  %v9982_v38 = vunpack.c.l.b16 %v9902_v12  ;;  %v9077_v54 = vadd.f32 %v18837_v41, %v8811_v47 }
 0xac4   : > { %v9871_v0 = vadd.f32 %v18880_v1, %v9851_v50  ;;  %v10022_v48 = vunpack.c.l.b16 %v9950_v61 }
 0xac6   : > { %v9887_v21 = vmax.f32 %v9871_v0, 0.0  ;;  %v9919_v35 = vsub.f32 0.0, %v9871_v0 }
 0xac7   : > { %v9662_v11 = vpop.f32.mrf.mxu1 }
 0xac8   : > { %v9903_v22 = vpack.c.bf16 %v9887_v21, %v9887_v21  ;;  %v9935_v33 = vmax.f32 %v9919_v35, 0.0  ;;  %v9693_v3 = vadd.f32 %v9662_v11, %v9427_v40  ;;  %v9826_v19 = vpop.f32.mrf.mxu2  ;;  %v9429_v21 = vadd.f32 %v9401_v28, %v9235_v29  ;;  %v13615_v28 = vld [vmem:[%s19391_s7 + $0x28] sm:$0xff] }
 0xac9   : > { %v9236_v40 = vadd.f32 %v9209_v4, %v9077_v54  ;;  %10429 = vmatpush.bf16.msra.mxu0 %v13615_v28  ;;  %v8619_v4 = vadd.f32 %v18790_v57, %v18787_v20 }
 0xaca   : > { %v9951_v49 = vpack.c.bf16 %v9935_v33, %v9935_v33  ;;  %v9852_v17 = vadd.f32 %v9821_v27, %v9693_v3  ;;  %v9983_v10 = vunpack.c.l.b16 %v9903_v22  ;;  %v9212_v7 = vpop.f32.mrf.mxu3  ;;  %v9406_v3 = vpop.f32.mrf.mxu0 }
 0xacc   : > { %v10023_v63 = vunpack.c.l.b16 %v9951_v49  ;;  %v9872_v42 = vadd.f32 %v18880_v1, %v9852_v17  ;;  %v18914_v34 = vpack.c.b16 %v9983_v10, %v9982_v38  ;;  %v9430_v10 = vadd.f32 %v9403_v9, %v9236_v40  ;;  %v13622_v9 = vld [vmem:[%s19391_s7 + $0x60] sm:$0xff] }
 0xacd   : > { %10343 = vmatpush.bf16.msra.mxu3 %v13622_v9 }
 0xace   : > { %v10036_v39 = vpack.c.b16 %v10023_v63, %v10022_v48  ;;  %v9920_v27 = vsub.f32 0.0, %v9872_v42  ;;  %v9888_v55 = vmax.f32 %v9872_v42, 0.0 }
 0xacf   : > { %v9664_v31 = vpop.f32.mrf.mxu1 }
 0xad0   : > { %v9694_v58 = vadd.f32 %v9664_v31, %v9428_v44  ;;  %10046 = vrot.lane.b32.xlu0 %v10036_v39, %s14007_s14  ;;  %v9936_v50 = vmax.f32 %v9920_v27, 0.0  ;;  %v9828_v2 = vpop.f32.mrf.mxu2  ;;  %v9904_v0 = vpack.c.bf16 %v9888_v55, %v9888_v55  ;;  %v8813_v44 = vadd.f32 %v18857_v15, %v8619_v4 }
 0xad1   : > { %v9237_v39 = vadd.f32 %v9212_v7, %v18855_v37 }
 0xad2   : > { %v9853_v46 = vadd.f32 %v9823_v32, %v9694_v58  ;;  %v9952_v59 = vpack.c.bf16 %v9936_v50, %v9936_v50  ;;  %v9984_v11 = vunpack.c.l.b16 %v9904_v0  ;;  %v9214_v17 = vpop.f32.mrf.mxu3  ;;  %v9408_v20 = vpop.f32.mrf.mxu0  ;;  %v9079_v57 = vadd.f32 %v18848_v16, %v8813_v44 }
 0xad4   : > { %v9873_v24 = vadd.f32 %v18880_v1, %v9853_v46  ;;  %v10024_v52 = vunpack.c.l.b16 %v9952_v59  ;;  %v9431_v46 = vadd.f32 %v9406_v3, %v9237_v39  ;;  %v9238_v54 = vadd.f32 %v9214_v17, %v9079_v57 }
 0xad6   : > { %v9889_v18 = vmax.f32 %v9873_v24, 0.0  ;;  %v9921_v12 = vsub.f32 0.0, %v9873_v24 }
 0xad7   : > { %v9667_v13 = vpop.f32.mrf.mxu1 }
 0xad8   : > { %v9905_v30 = vpack.c.bf16 %v9889_v18, %v9889_v18  ;;  %v9937_v32 = vmax.f32 %v9921_v12, 0.0  ;;  %v9695_v35 = vadd.f32 %v9667_v13, %v9429_v21 }
 0xada   : > { %v9953_v61 = vpack.c.bf16 %v9937_v32, %v9937_v32  ;;  %v9854_v22 = vadd.f32 %v9826_v19, %v9695_v35  ;;  %v9985_v33 = vunpack.c.l.b16 %v9905_v30  ;;  %v9831_v19 = vpop.f32.mrf.mxu2  ;;  %v9217_v50 = vpop.f32.mrf.mxu3  ;;  %v13614_v30 = vld [vmem:[%s19391_s7 + $0x20] sm:$0xff]  ;;  %v9432_v35 = vadd.f32 %v9408_v20, %v9238_v54 }
 0xadb   : > { %10430 = vmatpush.bf16.msra.mxu0 %v13614_v30 }
 0xadc   : > { %v10025_v38 = vunpack.c.l.b16 %v9953_v61  ;;  %v9874_v41 = vadd.f32 %v18880_v1, %v9854_v22  ;;  %v18930_v49 = vpack.c.b16 %v9985_v33, %v9984_v11  ;;  %v9411_v11 = vpop.f32.mrf.mxu0  ;;  %v8621_v61 = vadd.f32 %v18799_v62, %v18797_v36  ;;  %v13621_v36 = vld [vmem:[%s19391_s7 + $0x58] sm:$0xff] }
 0xadd   : > { %10344 = vmatpush.bf16.msra.mxu3 %v13621_v36  ;;  %v13610_v36 = vld [vmem:[%s19391_s7] sm:$0xff] }
 0xade   : > { %v10037_v48 = vpack.c.b16 %v10025_v38, %v10024_v52  ;;  %v9922_v42 = vsub.f32 0.0, %v9874_v41  ;;  %v9890_v26 = vmax.f32 %v9874_v41, 0.0  ;;  %v8815_v52 = vadd.f32 %v18866_v5, %v8621_v61 }
 0xadf   : > { %v9669_v63 = vpop.f32.mrf.mxu1  ;;  %v9239_v38 = vadd.f32 %v9217_v50, %v18864_v25 }
 0xae0   : > { %v9696_v43 = vadd.f32 %v9669_v63, %v9430_v10  ;;  %10048 = vrot.lane.b32.xlu1 %v10037_v48, %s14007_s14  ;;  %v9938_v27 = vmax.f32 %v9922_v42, 0.0  ;;  %v9906_v47 = vpack.c.bf16 %v9890_v26, %v9890_v26  ;;  %v9081_v62 = vadd.f32 %v18859_v23, %v8815_v52 }
 0xae2   : > { %v9855_v31 = vadd.f32 %v9828_v2, %v9696_v43  ;;  %v9954_v37 = vpack.c.bf16 %v9938_v27, %v9938_v27  ;;  %v9833_v2 = vpop.f32.mrf.mxu2  ;;  %v9986_v0 = vunpack.c.l.b16 %v9906_v47  ;;  %v9219_v41 = vpop.f32.mrf.mxu3  ;;  %v9433_v43 = vadd.f32 %v9411_v11, %v9239_v38 }
 0xae3   : > { %v9240_v27 = vadd.f32 %v9219_v41, %v9081_v62 }
 0xae4   : > { %v9875_v58 = vadd.f32 %v18880_v1, %v9855_v31  ;;  %v10026_v13 = vunpack.c.l.b16 %v9954_v37  ;;  %v9413_v31 = vpop.f32.mrf.mxu0 }
 0xae6   : > { %v9891_v29 = vmax.f32 %v9875_v58, 0.0  ;;  %v9923_v55 = vsub.f32 0.0, %v9875_v58 }
 0xae7   : > { %v9672_v15 = vpop.f32.mrf.mxu1 }
 0xae8   : > { %v9907_v7 = vpack.c.bf16 %v9891_v29, %v9891_v29  ;;  %v9939_v24 = vmax.f32 %v9923_v55, 0.0  ;;  %v9697_v51 = vadd.f32 %v9672_v15, %v9431_v46  ;;  %v13613_v46 = vld [vmem:[%s19391_s7 + $0x18] sm:$0xff]  ;;  %v13620_v15 = vld [vmem:[%s19391_s7 + $0x50] sm:$0xff] }
 0xae9   : > { %10431 = vmatpush.bf16.msra.mxu0 %v13613_v46  ;;  %10345 = vmatpush.bf16.msra.mxu3 %v13620_v15 }
 0xaea   : > { %v9955_v18 = vpack.c.bf16 %v9939_v24, %v9939_v24  ;;  %v9856_v12 = vadd.f32 %v9831_v19, %v9697_v51  ;;  %v9987_v21 = vunpack.c.l.b16 %v9907_v7  ;;  %v9836_v10 = vpop.f32.mrf.mxu2  ;;  %v9222_v47 = vpop.f32.mrf.mxu3  ;;  %v9434_v7 = vadd.f32 %v9413_v31, %v9240_v27 }
 0xaeb   : > { %v8623_v51 = vadd.f32 %v18851_v56, %v18805_v8 }
 0xaec   : > { %v10027_v59 = vunpack.c.l.b16 %v9955_v18  ;;  %v9876_v16 = vadd.f32 %v18880_v1, %v9856_v12  ;;  %v18946_v32 = vpack.c.b16 %v9987_v21, %v9986_v0  ;;  %v13612_v12 = vld [vmem:[%s19391_s7 + $0x10] sm:$0xff]  ;;  %v9241_v21 = vadd.f32 %v9222_v47, %v18872_v60  ;;  %v13618_v47 = vld [vmem:[%s19391_s7 + $0x40] sm:$0xff] }
 0xaed   : > { %v8817_v18 = vadd.f32 %v18874_v6, %v8623_v51  ;;  %10432 = vmatpush.bf16.msra.mxu0 %v13612_v12 }
 0xaee   : > { %v10038_v40 = vpack.c.b16 %v10027_v59, %v10026_v13  ;;  %v9924_v33 = vsub.f32 0.0, %v9876_v16  ;;  %v9892_v28 = vmax.f32 %v9876_v16, 0.0  ;;  %v9416_v16 = vpop.f32.mrf.mxu0 }
 0xaef   : > { %v9674_v22 = vpop.f32.mrf.mxu1  ;;  %v9083_v56 = vadd.f32 %v18868_v45, %v8817_v18  ;;  %v9435_v6 = vadd.f32 %v9416_v16, %v9241_v21  ;;  %v13611_v45 = vld [vmem:[%s19391_s7 + $0x8] sm:$0xff] }
 0xaf0   : > { %v9698_v3 = vadd.f32 %v9674_v22, %v9432_v35  ;;  %10050 = vrot.lane.b32.xlu2 %v10038_v40, %s14007_s14  ;;  %v9940_v48 = vmax.f32 %v9924_v33, 0.0  ;;  %v9908_v19 = vpack.c.bf16 %v9892_v28, %v9892_v28  ;;  %v13619_v28 = vld [vmem:[%s19391_s7 + $0x48] sm:$0xff] }
 0xaf1   : > { %10346 = vmatpush.bf16.msra.mxu3 %v13619_v28  ;;  %10433 = vmatpush.bf16.msra.mxu0 %v13611_v45  ;;  %v13666_v16 = vld [vmem:[%s19391_s7 + $0x168] sm:$0xff] }
 0xaf2   : > { %v9857_v17 = vadd.f32 %v9833_v2, %v9698_v3  ;;  %v9956_v25 = vpack.c.bf16 %v9940_v48, %v9940_v48  ;;  %v9988_v58 = vunpack.c.l.b16 %v9908_v19  ;;  %v9838_v37 = vpop.f32.mrf.mxu2  ;;  %v9224_v35 = vpop.f32.mrf.mxu3 }
 0xaf3   : > { %v9242_v41 = vadd.f32 %v9224_v35, %v9083_v56 }
 0xaf4   : > { %v9877_v4 = vadd.f32 %v18880_v1, %v9857_v17  ;;  %v10028_v29 = vunpack.c.l.b16 %v9956_v25 }
 0xaf5   : > { %10434 = vmatpush.bf16.msra.mxu0 %v13610_v36  ;;  %10347 = vmatpush.bf16.msra.mxu3 %v13618_v47  ;;  %v13647_v36 = vld [vmem:[%s19391_s7 + $0xf8] sm:$0xff] }
 0xaf6   : > { %v9893_v63 = vmax.f32 %v9877_v4, 0.0  ;;  %v9925_v42 = vsub.f32 0.0, %v9877_v4 }
 0xaf7   : > { %v9677_v5 = vpop.f32.mrf.mxu1 }
 0xaf8   : > { %v9909_v44 = vpack.c.bf16 %v9893_v63, %v9893_v63  ;;  %v9941_v39 = vmax.f32 %v9925_v42, 0.0  ;;  %v9699_v26 = vadd.f32 %v9677_v5, %v9433_v43  ;;  %v9418_v43 = vpop.f32.mrf.mxu0 }
 0xaf9   : > { %v9436_v5 = vadd.f32 %v9418_v43, %v9242_v41  ;;  %v13663_v41 = vld [vmem:[%s19391_s7 + $0x150] sm:$0xff]  ;;  %v13661_v43 = vld [vmem:[%s19391_s7 + $0x140] sm:$0xff]  ;;  %10700 = vmatpush.bf16.msrb.mxu0 %v13647_v36 }
 0xafa   : > { %v9957_v9 = vpack.c.bf16 %v9941_v39, %v9941_v39  ;;  %v9858_v20 = vadd.f32 %v9836_v10, %v9699_v26  ;;  %v9989_v57 = vunpack.c.l.b16 %v9909_v44  ;;  %v9841_v22 = vpop.f32.mrf.mxu2 }
 0xafc   : > { %v10029_v55 = vunpack.c.l.b16 %v9957_v9  ;;  %v9878_v23 = vadd.f32 %v18880_v1, %v9858_v20  ;;  %v18965_v50 = vpack.c.b16 %v9989_v57, %v9988_v58  ;;  %v13660_v57 = vld [vmem:[%s19391_s7 + $0x138] sm:$0xff] }
 0xafd   : > { %10908 = vmatpush.bf16.msrb.mxu1 %v13660_v57 }
 0xafe   : > { %v10039_v24 = vpack.c.b16 %v10029_v55, %v10028_v29  ;;  %v9926_v2 = vsub.f32 0.0, %v9878_v23  ;;  %v9894_v13 = vmax.f32 %v9878_v23, 0.0  ;;  %v13668_v29 = vld [vmem:[%s19391_s7 + $0x178] sm:$0xff] }
 0xaff   : > { %v9679_v54 = vpop.f32.mrf.mxu1  ;;  %11035 = vmatpush.bf16.msrb.mxu2 %v13668_v29 }
 0xb00   : > { %v9700_v0 = vadd.f32 %v9679_v54, %v9434_v7  ;;  %10052 = vrot.lane.b32.xlu0 %v10039_v24, %s14007_s14  ;;  %v9942_v30 = vmax.f32 %v9926_v2, 0.0  ;;  %v9910_v40 = vpack.c.bf16 %v9894_v13, %v9894_v13  ;;  %v13667_v7 = vld [vmem:[%s19391_s7 + $0x170] sm:$0xff] }
 0xb01   : > { %v13659_v24 = vld [vmem:[%s19391_s7 + $0x130] sm:$0xff] }
 0xb02   : > { %v9859_v59 = vadd.f32 %v9838_v37, %v9700_v0  ;;  %v9958_v3 = vpack.c.bf16 %v9942_v30, %v9942_v30  ;;  %v9990_v17 = vunpack.c.l.b16 %v9910_v40  ;;  %v9843_v31 = vpop.f32.mrf.mxu2  ;;  %10909 = vmatpush.bf16.msrb.mxu1 %v13659_v24  ;;  %v13665_v40 = vld [vmem:[%s19391_s7 + $0x160] sm:$0xff] }
 0xb03   : > { %11036 = vmatpush.bf16.msrb.mxu2 %v13667_v7 }
 0xb04   : > { %v9879_v8 = vadd.f32 %v18880_v1, %v9859_v59  ;;  %v10030_v62 = vunpack.c.l.b16 %v9958_v3 }
 0xb06   : > { %v9895_v11 = vmax.f32 %v9879_v8, 0.0  ;;  %v9927_v61 = vsub.f32 0.0, %v9879_v8 }
 0xb07   : > { %v9682_v33 = vpop.f32.mrf.mxu1  ;;  %11037 = vmatpush.bf16.msrb.mxu2 %v13666_v16 }
 0xb08   : > { %v9911_v52 = vpack.c.bf16 %v9895_v11, %v9895_v11  ;;  %v9943_v38 = vmax.f32 %v9927_v61, 0.0  ;;  %v9701_v60 = vadd.f32 %v9682_v33, %v9435_v6 }
 0xb0a   : > { %v9959_v10 = vpack.c.bf16 %v9943_v38, %v9943_v38  ;;  %v9860_v48 = vadd.f32 %v9841_v22, %v9701_v60  ;;  %v9991_v4 = vunpack.c.l.b16 %v9911_v52  ;;  %v13657_v52 = vld [vmem:[%s19391_s7 + $0x120] sm:$0xff]  ;;  %v13664_v38 = vld [vmem:[%s19391_s7 + $0x158] sm:$0xff] }
 0xb0b   : > { %11038 = vmatpush.bf16.msrb.mxu2 %v13665_v40  ;;  %v13656_v60 = vld [vmem:[%s19391_s7 + $0x118] sm:$0xff] }
 0xb0c   : > { %v10031_v19 = vunpack.c.l.b16 %v9959_v10  ;;  %v9880_v63 = vadd.f32 %v18880_v1, %v9860_v48  ;;  %v18987_v42 = vpack.c.b16 %v9991_v4, %v9990_v17  ;;  %v13655_v48 = vld [vmem:[%s19391_s7 + $0x110] sm:$0xff]  ;;  %v13662_v4 = vld [vmem:[%s19391_s7 + $0x148] sm:$0xff] }
 0xb0e   : > { %v10040_v25 = vpack.c.b16 %v10031_v19, %v10030_v62  ;;  %v9928_v44 = vsub.f32 0.0, %v9880_v63  ;;  %v9896_v27 = vmax.f32 %v9880_v63, 0.0  ;;  %v13654_v63 = vld [vmem:[%s19391_s7 + $0x108] sm:$0xff] }
 0xb0f   : > { %v9684_v39 = vpop.f32.mrf.mxu1  ;;  %11039 = vmatpush.bf16.msrb.mxu2 %v13664_v38 }
 0xb10   : > { %v9702_v26 = vadd.f32 %v9684_v39, %v9436_v5  ;;  %10054 = vrot.lane.b32.xlu1 %v10040_v25, %s14007_s14  ;;  %v9944_v9 = vmax.f32 %v9928_v44, 0.0  ;;  %v9912_v55 = vpack.c.bf16 %v9896_v27, %v9896_v27  ;;  %v13653_v39 = vld [vmem:[%s19391_s7 + $0x100] sm:$0xff]  ;;  %v13631_v27 = vld [vmem:[%s19391_s7 + $0xa8] sm:$0xff] }
 0xb12   : > { %v9861_v58 = vadd.f32 %v9843_v31, %v9702_v26  ;;  %v9960_v15 = vpack.c.bf16 %v9944_v9, %v9944_v9  ;;  %v9992_v51 = vunpack.c.l.b16 %v9912_v55  ;;  %v13632_v26 = vld [vmem:[%s19391_s7 + $0xb0] sm:$0xff]  ;;  %v13645_v55 = vld [vmem:[%s19391_s7 + $0xe8] sm:$0xff] }
 0xb13   : > { %11040 = vmatpush.bf16.msrb.mxu2 %v13663_v41  ;;  %v13646_v31 = vld [vmem:[%s19391_s7 + $0xf0] sm:$0xff] }
 0xb14   : > { %v9881_v20 = vadd.f32 %v18880_v1, %v9861_v58  ;;  %v10032_v18 = vunpack.c.l.b16 %v9960_v15  ;;  %10701 = vmatpush.bf16.msrb.mxu0 %v13646_v31 }
 0xb16   : > { %v9897_v23 = vmax.f32 %v9881_v20, 0.0  ;;  %v9929_v46 = vsub.f32 0.0, %v9881_v20 }
 0xb17   : > { %11041 = vmatpush.bf16.msrb.mxu2 %v13662_v4 }
 0xb18   : > { %v9913_v37 = vpack.c.bf16 %v9897_v23, %v9897_v23  ;;  %v9945_v1 = vmax.f32 %v9929_v46, 0.0  ;;  %v13630_v23 = vld [vmem:[%s19391_s7 + $0xa0] sm:$0xff]  ;;  %10702 = vmatpush.bf16.msrb.mxu0 %v13645_v55  ;;  %v13628_v55 = vld [vmem:[%s19391_s7 + $0x90] sm:$0xff] }
 0xb1a   : > { %v9961_v54 = vpack.c.bf16 %v9945_v1, %v9945_v1  ;;  %v10045_v2 = vpop.permute.xlu2 %10044  ;;  %v9993_v0 = vunpack.c.l.b16 %v9913_v37 }
 0xb1b   : > { %v10063_v12 = vsel %vm5547_vm0, %v18901_v53, %v10045_v2  ;;  %v13658_v53 = vld [vmem:[%s19391_s7 + $0x128] sm:$0xff]  ;;  %11042 = vmatpush.bf16.msrb.mxu2 %v13661_v43 }
 0xb1c   : > { %v10033_v21 = vunpack.c.l.b16 %v9961_v54  ;;  %v10092_v13 = vunpack.c.l.b16 %v10063_v12  ;;  %v10093_v59 = vunpack.c.h.b16 %v10063_v12  ;;  %v19011_v30 = vpack.c.b16 %v9993_v0, %v9992_v51  ;;  %10910 = vmatpush.bf16.msrb.mxu1 %v13658_v53 }
 0xb1e   : > { %v10108_v8 = vpack.c.b16 %v10092_v13, %v10092_v13  ;;  %v10109_v56 = vpack.c.b16 %v10093_v59, %v10093_v59  ;;  %v10041_v35 = vpack.c.b16 %v10033_v21, %v10032_v18 }
 0xb20   : > { %10140 = vst [vmem:[#allocation2 + $0x8] sm:$0xf] %v10108_v8  ;;  %10056 = vrot.lane.b32.xlu2 %v10041_v35, %s14007_s14  ;;  %10911 = vmatpush.bf16.msrb.mxu1 %v13657_v52  ;;  %s13956_s14 = sshra.s32 %s11600_s24, 4  ;;  %s13957_s14 = int_to_ptr.hbm [resolvable:$true] %s13956_s14 }
 0xb21   : > { %10141 = vst [vmem:[#allocation2 + $0xc] sm:$0xf] %v10109_v56  ;;  %s13958_s27 = scalar_lea.hbm %s13957_s14, 1  ;;  %p13963_p0 = scmp.lt.s32.totalorder %s13957_s14, %s19393_s9 }
 0xb22   : > { %v10043_v11 = vpop.permute.xlu1 %10042  ;;  %p13959_p11 = scmp.ne.s32.totalorder %s13957_s14, %s13958_s27  ;;  %p13964_p1 = scmp.lt.s32.totalorder %s13962_s28, %s13958_s27 }
 0xb23   : > { %v10060_v61 = vsel %vm5547_vm0, %v18888_v14, %v10043_v11  ;;  %v13633_v14 = vld [vmem:[%s19391_s7 + $0xb8] sm:$0xff] }
 0xb24   : > { %v10090_v6 = vunpack.c.l.b16 %v10060_v61  ;;  %v10091_v22 = vunpack.c.h.b16 %v10060_v61  ;;  %10548 = vmatpush.bf16.msrb.mxu3 %v13633_v14  ;;  %10912 = vmatpush.bf16.msrb.mxu1 %v13656_v60  ;;  %p13960_p12 = pnand %p13959_p11, %p14096_p5  ;;  %p13965_p2 = por %p13964_p1, %p13963_p0 }
 0xb26   : > { %v10106_v33 = vpack.c.b16 %v10090_v6, %v10090_v6  ;;  %v10107_v3 = vpack.c.b16 %v10091_v22, %v10091_v22  ;;  %p13961_p13 = pneg %p13960_p12 }
 0xb27   : > { %v13767_v1 = vld [vmem:[#allocation2 + $0x8] sm:$0xe] }
 0xb28   : > { %10138 = vst [vmem:[#allocation2] sm:$0xf] %v10106_v33  ;;  %v19037_v28 = vld [vmem:[#allocation2 + $0x8] sm:$0xff]  ;;  %10913 = vmatpush.bf16.msrb.mxu1 %v13655_v48  ;;  %10549 = vmatpush.bf16.msrb.mxu3 %v13632_v26  ;;  %p13966_p3 = pnand %p13965_p2, %p13961_p13 }
 0xb29   : > { %10139 = vst [vmem:[#allocation2 + $0x4] sm:$0xf] %v10107_v3  ;;  %v10242_v10 = vshll.u32 %v19037_v28, 16  ;;  %v13765_v15 = vld [vmem:[#allocation2 + $0x8] sm:$0xff]   ;;  %v10246_v21 = vshrl.u32 %v19037_v28, 16  ;;  %v10482_v11 = vrot.slane %v19037_v28, 1 }
 0xb2a   : > { %v13766_v37 = vld [vmem:[#allocation2 + $0x8] sm:$0xf0]  ;;  %v10805_v51 = vshll.u32 %v13765_v15, 16  ;;  %v10803_v13 = vshrl.u32 %v13765_v15, 16 }
 0xb2b   : > { %v10244_v25 = vrot.slane %v10242_v10, 1  ;;  %v13768_v0 = vor.u32 %v13767_v1, %v13766_v37  ;;  %v13629_v10 = vld [vmem:[%s19391_s7 + $0x98] sm:$0xff]  ;;  %v13627_v15 = vld [vmem:[%s19391_s7 + $0x88] sm:$0xff]  ;;  %v13640_v37 = vld [vmem:[%s19391_s7 + $0xc0] sm:$0xff] }
 0xb2c   : > { %10914 = vmatpush.bf16.msrb.mxu1 %v13654_v63  ;;  %10550 = vmatpush.bf16.msrb.mxu3 %v13631_v27  ;;  %v10807_v59 = vrot.slane %v10805_v51, 1 }
 0xb2d   : > { %v10968_v8 = vrot.slane %v13768_v0, 1  ;;  %v10248_v40 = vor.u32 %v10246_v21, %v10244_v25 }
 0xb2e   : > { %v10808_v52 = vor.u32 %v10807_v59, %v10803_v13 }
 0xb30   : > { %v13729_v45 = vld [vmem:[#allocation2] sm:$0xff]   ;;  %10915 = vmatpush.bf16.msrb.mxu1 %v13653_v39  ;;  %10551 = vmatpush.bf16.msrb.mxu3 %v13630_v23  ;;  %v13642_v23 = vld [vmem:[%s19391_s7 + $0xd0] sm:$0xff] }
 0xb31   : > { %v10237_v17 = vshll.u32 %v13729_v45, 16  ;;  %10435 = vmatmul.bf16.vlgmr.msra.gmra.mxu0 %v13729_v45  ;;  %v10235_v62 = vshrl.u32 %v13729_v45, 16 }
 0xb33   : > { %v10239_v19 = vrot.slane %v10237_v17, 1  ;;  %v13644_v17 = vld [vmem:[%s19391_s7 + $0xe0] sm:$0xff] }
 0xb34   : > { %10703 = vmatpush.bf16.msrb.mxu0 %v13644_v17  ;;  %10552 = vmatpush.bf16.msrb.mxu3 %v13629_v10 }
 0xb35   : > { %v10240_v5 = vor.u32 %v10239_v19, %v10235_v62  ;;  %v13643_v19 = vld [vmem:[%s19391_s7 + $0xd8] sm:$0xff] }
 0xb37   : > { %v10245_v44 = vsel %vm5800_vm1, %v10240_v5, %v10244_v25 }
 0xb38   : > { %10348 = vmatmul.bf16.vlgmr.msra.gmra.mxu3 %v10245_v44  ;;  %10704 = vmatpush.bf16.msrb.mxu0 %v13643_v19 }
 0xb39   : > { %10553 = vmatpush.bf16.msrb.mxu3 %v13628_v55  ;;  %v13699_v55 = vld [vmem:[%s19391_s7 + $0x218] sm:$0xff] }
 0xb3c   : > { %10705 = vmatpush.bf16.msrb.mxu0 %v13642_v23  ;;  %v13697_v23 = vld [vmem:[%s19391_s7 + $0x208] sm:$0xff] }
 0xb3d   : > { %10554 = vmatpush.bf16.msrb.mxu3 %v13627_v15 }
 0xb41   : > { %10439 = vmatmul.bf16.gmra.mxu0 %v19037_v28 }
 0xb42   : > { %v10047_v58 = vpop.permute.xlu0 %10046 }
 0xb43   : > { %v10066_v9 = vsel %vm5547_vm0, %v18914_v34, %v10047_v58 }
 0xb44   : > { %v10094_v20 = vunpack.c.l.b16 %v10066_v9  ;;  %v10095_v57 = vunpack.c.h.b16 %v10066_v9 }
 0xb46   : > { %v10110_v47 = vpack.c.b16 %v10094_v20, %v10094_v20  ;;  %v10111_v29 = vpack.c.b16 %v10095_v57, %v10095_v57 }
 0xb48   : > { %10142 = vst [vmem:[#allocation2 + $0x10] sm:$0xf] %v10110_v47 }
 0xb49   : > { %10143 = vst [vmem:[#allocation2 + $0x14] sm:$0xf] %v10111_v29 }
 0xb4a   : > { %v10051_v46 = vpop.permute.xlu2 %10050 }
 0xb4b   : > { %v10072_v34 = vsel %vm5547_vm0, %v18946_v32, %v10051_v46  ;;  %v13641_v46 = vld [vmem:[%s19391_s7 + $0xc8] sm:$0xff] }
 0xb4c   : > { %v10098_v7 = vunpack.c.l.b16 %v10072_v34  ;;  %v10099_v24 = vunpack.c.h.b16 %v10072_v34  ;;  %10706 = vmatpush.bf16.msrb.mxu0 %v13641_v46  ;;  %v13695_v46 = vld [vmem:[%s19391_s7 + $0x1f8] sm:$0xff] }
 0xb4e   : > { %v10114_v54 = vpack.c.b16 %v10098_v7, %v10098_v7  ;;  %v10115_v2 = vpack.c.b16 %v10099_v24, %v10099_v24 }
 0xb50   : > { %10146 = vst [vmem:[#allocation2 + $0x20] sm:$0xf] %v10114_v54  ;;  %v13606_v18 = vld [vmem:[#allocation2 + $0x10] sm:$0xff]  ;;  %10707 = vmatpush.bf16.msrb.mxu0 %v13640_v37 }
 0xb51   : > { %v13648_v12 = vld [vmem:[#allocation2 + $0x10] sm:$0xff]  ;;  %10147 = vst [vmem:[#allocation2 + $0x24] sm:$0xf] %v10115_v2  ;;  %10443 = vmatmul.bf16.gmra.mxu0 %v13606_v18  ;;  %v10250_v56 = vshll.u32 %v13606_v18, 16  ;;  %v10484_v61 = vrot.slane %v13606_v18, 1  ;;  %v10254_v62 = vshrl.u32 %v13606_v18, 16 }
 0xb52   : > { %v10049_v16 = vpop.permute.xlu1 %10048  ;;  %v10969_v32 = vrot.slane %v13648_v12, 1  ;;  %v10810_v35 = vshll.u32 %v13648_v12, 16  ;;  %v10814_v5 = vshrl.u32 %v13648_v12, 16 }
 0xb53   : > { %v10069_v53 = vsel %vm5547_vm0, %v18930_v49, %v10049_v16  ;;  %v10252_v3 = vrot.slane %v10250_v56, 1  ;;  %v19087_v14 = vsel %vm6140_vm2, %v10482_v11, %v10484_v61 }
 0xb54   : > { %v10096_v6 = vunpack.c.l.b16 %v10069_v53  ;;  %v10097_v22 = vunpack.c.h.b16 %v10069_v53  ;;  %v10970_v33 = vsel %vm6140_vm2, %v10968_v8, %v10969_v32  ;;  %v10812_v38 = vrot.slane %v10810_v35, 1  ;;  %11395 = vmatpush.bf16.msra.mxu0 %v13695_v46 }
 0xb55   : > { %11043 = vmatmul.bf16.vlgmr.msrb.gmra.mxu2 %v10970_v33  ;;  %v10253_v49 = vsel %vm5800_vm1, %v10248_v40, %v10252_v3  ;;  %v10256_v44 = vor.u32 %v10254_v62, %v10252_v3  ;;  %v13626_v40 = vld [vmem:[%s19391_s7 + $0x80] sm:$0xff] }
 0xb56   : > { %v10112_v60 = vpack.c.b16 %v10096_v6, %v10096_v6  ;;  %v10113_v41 = vpack.c.b16 %v10097_v22, %v10097_v22  ;;  %10352 = vmatmul.bf16.gmra.mxu3 %v10253_v49  ;;  %v10813_v45 = vsel %vm5800_vm1, %v10808_v52, %v10812_v38  ;;  %v10816_v58 = vor.u32 %v10814_v5, %v10812_v38  ;;  %v13702_v6 = vld [vmem:[%s19391_s7 + $0x230] sm:$0xff] }
 0xb57   : > { %10916 = vmatmul.bf16.vlgmr.msrb.gmra.mxu1 %v10813_v45  ;;  %10555 = vmatpush.bf16.msrb.mxu3 %v13626_v40 }
 0xb58   : > { %10144 = vst [vmem:[#allocation2 + $0x18] sm:$0xf] %v10112_v60  ;;  %v19097_v48 = vld [vmem:[#allocation2 + $0x20] sm:$0xff]  ;;  %v13701_v60 = vld [vmem:[%s19391_s7 + $0x228] sm:$0xff] }
 0xb59   : > { %10145 = vst [vmem:[#allocation2 + $0x1c] sm:$0xf] %v10113_v41  ;;  %v10488_v26 = vrot.slane %v19097_v48, 1  ;;  %v19126_v34 = vld [vmem:[#allocation2 + $0x20] sm:$0xff]  ;;  %v10266_v7 = vshll.u32 %v19097_v48, 16  ;;  %v10270_v45 = vshrl.u32 %v19097_v48, 16 }
 0xb5a   : > { %v10826_v51 = vshll.u32 %v19126_v34, 16  ;;  %v10973_v2 = vrot.slane %v19126_v34, 1 }
 0xb5b   : > { %v10268_v16 = vrot.slane %v10266_v7, 1 }
 0xb5c   : > { %v10828_v8 = vrot.slane %v10826_v51, 1 }
 0xb5d   : > { %v10272_v19 = vor.u32 %v10270_v45, %v10268_v16 }
 0xb60   : > { %v13607_v4 = vld [vmem:[#allocation2 + $0x18] sm:$0xff] }
 0xb61   : > { %v13649_v36 = vld [vmem:[#allocation2 + $0x18] sm:$0xff]  ;;  %10447 = vmatmul.bf16.gmra.mxu0 %v13607_v4  ;;  %v10258_v43 = vshll.u32 %v13607_v4, 16  ;;  %v10486_v39 = vrot.slane %v13607_v4, 1  ;;  %v10262_v1 = vshrl.u32 %v13607_v4, 16 }
 0xb62   : > { %v10971_v63 = vrot.slane %v13649_v36, 1  ;;  %v10818_v25 = vshll.u32 %v13649_v36, 16  ;;  %v10822_v24 = vshrl.u32 %v13649_v36, 16  ;;  %v13700_v36 = vld [vmem:[%s19391_s7 + $0x220] sm:$0xff] }
 0xb63   : > { %v10260_v27 = vrot.slane %v10258_v43, 1  ;;  %v19105_v20 = vsel %vm6140_vm2, %v10484_v61, %v10486_v39  ;;  %v19110_v57 = vsel %vm6140_vm2, %v10486_v39, %v10488_v26 }
 0xb64   : > { %v10972_v31 = vsel %vm6140_vm2, %v10969_v32, %v10971_v63  ;;  %v10820_v9 = vrot.slane %v10818_v25, 1  ;;  %v10974_v59 = vsel %vm6140_vm2, %v10971_v63, %v10973_v2  ;;  %v10830_v63 = vshrl.u32 %v19126_v34, 16  ;;  %v13634_v34 = vld [vmem:[#allocation2 + $0x8] sm:$0xff] }
 0xb65   : > { %11047 = vmatmul.bf16.gmra.mxu2 %v10972_v31  ;;  %v10261_v47 = vsel %vm5800_vm1, %v10256_v44, %v10260_v27  ;;  %v10264_v0 = vor.u32 %v10262_v1, %v10260_v27 }
 0xb66   : > { %v10821_v29 = vsel %vm5800_vm1, %v10816_v58, %v10820_v9  ;;  %10356 = vmatmul.bf16.gmra.mxu3 %v10261_v47  ;;  %v10824_v12 = vor.u32 %v10822_v24, %v10820_v9  ;;  %v10832_v31 = vor.u32 %v10830_v63, %v10828_v8 }
 0xb67   : > { %10920 = vmatmul.bf16.gmra.mxu1 %v10821_v29  ;;  %v10269_v35 = vsel %vm5800_vm1, %v10264_v0, %v10268_v16 }
 0xb68   : > { %v10829_v53 = vsel %vm5800_vm1, %v10824_v12, %v10828_v8 }
 0xb71   : > { %10451 = vmatmul.bf16.gmra.mxu0 %v19097_v48  ;;  %v13682_v48 = vld [vmem:[%s19391_s7 + $0x1b8] sm:$0xff] }
 0xb72   : > { %v10053_v54 = vpop.permute.xlu0 %10052  ;;  %11187 = vmatpush.bf16.msra.mxu3 %v13682_v48  ;;  %v13637_v48 = vld [vmem:[#allocation2 + $0x20] sm:$0xff] }
 0xb73   : > { %v10075_v18 = vsel %vm5547_vm0, %v18965_v50, %v10053_v54  ;;  %v13703_v50 = vld [vmem:[%s19391_s7 + $0x238] sm:$0xff] }
 0xb74   : > { %v10100_v21 = vunpack.c.l.b16 %v10075_v18  ;;  %v10101_v13 = vunpack.c.h.b16 %v10075_v18  ;;  %11522 = vmatpush.bf16.msra.mxu1 %v13703_v50 }
 0xb75   : > { %11051 = vmatmul.bf16.gmra.mxu2 %v10974_v59 }
 0xb76   : > { %v10116_v32 = vpack.c.b16 %v10100_v21, %v10100_v21  ;;  %v10117_v56 = vpack.c.b16 %v10101_v13, %v10101_v13  ;;  %10360 = vmatmul.bf16.gmra.mxu3 %v10269_v35  ;;  %v13681_v35 = vld [vmem:[%s19391_s7 + $0x1b0] sm:$0xff] }
 0xb77   : > { %10924 = vmatmul.bf16.gmra.mxu1 %v10829_v53  ;;  %11188 = vmatpush.bf16.msra.mxu3 %v13681_v35 }
 0xb78   : > { %10148 = vst [vmem:[#allocation2 + $0x28] sm:$0xf] %v10116_v32  ;;  %11523 = vmatpush.bf16.msra.mxu1 %v13702_v6  ;;  %v13762_v6 = vld [vmem:[#allocation2] sm:$0xf0] }
 0xb79   : > { %10149 = vst [vmem:[#allocation2 + $0x2c] sm:$0xf] %v10117_v56 }
 0xb7a   : > { %v10057_v61 = vpop.permute.xlu2 %10056 }
 0xb7b   : > { %v10081_v22 = vsel %vm5547_vm0, %v19011_v30, %v10057_v61 }
 0xb7c   : > { %v10104_v33 = vunpack.c.l.b16 %v10081_v22  ;;  %v10105_v3 = vunpack.c.h.b16 %v10081_v22  ;;  %11524 = vmatpush.bf16.msra.mxu1 %v13701_v60  ;;  %v13763_v22 = vld [vmem:[#allocation2] sm:$0xe] }
 0xb7e   : > { %v10120_v52 = vpack.c.b16 %v10104_v33, %v10104_v33  ;;  %v10121_v38 = vpack.c.b16 %v10105_v3, %v10105_v3  ;;  %v13694_v33 = vld [vmem:[%s19391_s7 + $0x1f0] sm:$0xff]  ;;  %v13680_v3 = vld [vmem:[%s19391_s7 + $0x1a8] sm:$0xff] }
 0xb7f   : > { %11396 = vmatpush.bf16.msra.mxu0 %v13694_v33  ;;  %11189 = vmatpush.bf16.msra.mxu3 %v13680_v3 }
 0xb80   : > { %10152 = vst [vmem:[#allocation2 + $0x38] sm:$0xf] %v10120_v52  ;;  %v19154_v41 = vld [vmem:[#allocation2 + $0x28] sm:$0xff]  ;;  %11525 = vmatpush.bf16.msra.mxu1 %v13700_v36  ;;  %v13635_v52 = vld [vmem:[#allocation2 + $0x10] sm:$0xff] }
 0xb81   : > { %v13651_v49 = vld [vmem:[#allocation2 + $0x28] sm:$0xff]  ;;  %10153 = vst [vmem:[#allocation2 + $0x3c] sm:$0xf] %v10121_v38  ;;  %10455 = vmatmul.bf16.gmra.mxu0 %v19154_v41  ;;  %v10274_v10 = vshll.u32 %v19154_v41, 16  ;;  %v10490_v43 = vrot.slane %v19154_v41, 1  ;;  %v10278_v0 = vshrl.u32 %v19154_v41, 16  ;;  %v13764_v38 = vor.u32 %v13763_v22, %v13762_v6 }
 0xb82   : > { %v10055_v30 = vpop.permute.xlu1 %10054  ;;  %v10975_v17 = vrot.slane %v13651_v49, 1  ;;  %v10834_v4 = vshll.u32 %v13651_v49, 16  ;;  %v10838_v24 = vshrl.u32 %v13651_v49, 16  ;;  %v13769_v22 = vld [vmem:[#allocation2 + $0x10] sm:$0xff]  }
 0xb83   : > { %v10078_v62 = vsel %vm5547_vm0, %v18987_v42, %v10055_v30  ;;  %v10276_v39 = vrot.slane %v10274_v10, 1  ;;  %v19170_v58 = vsel %vm6140_vm2, %v10488_v26, %v10490_v43  ;;  %v13698_v26 = vld [vmem:[%s19391_s7 + $0x210] sm:$0xff] }
 0xb84   : > { %v10102_v5 = vunpack.c.l.b16 %v10078_v62  ;;  %v10103_v25 = vunpack.c.h.b16 %v10078_v62  ;;  %v10976_v44 = vsel %vm6140_vm2, %v10973_v2, %v10975_v17  ;;  %v10836_v27 = vrot.slane %v10834_v4, 1  ;;  %11526 = vmatpush.bf16.msra.mxu1 %v13699_v55  ;;  %v13696_v2 = vld [vmem:[%s19391_s7 + $0x200] sm:$0xff]  ;;  %v13693_v62 = vld [vmem:[%s19391_s7 + $0x1e8] sm:$0xff] }
 0xb85   : > { %11055 = vmatmul.bf16.gmra.mxu2 %v10976_v44  ;;  %v10277_v47 = vsel %vm5800_vm1, %v10272_v19, %v10276_v39  ;;  %v10280_v8 = vor.u32 %v10278_v0, %v10276_v39  ;;  %v13679_v19 = vld [vmem:[%s19391_s7 + $0x1a0] sm:$0xff]  ;;  %11397 = vmatpush.bf16.msra.mxu0 %v13693_v62  ;;  %v13636_v44 = vld [vmem:[#allocation2 + $0x18] sm:$0xff]  ;;  %v13676_v0 = vld [vmem:[%s19391_s7 + $0x188] sm:$0xff] }
 0xb86   : > { %v10118_v9 = vpack.c.b16 %v10102_v5, %v10102_v5  ;;  %v10119_v42 = vpack.c.b16 %v10103_v25, %v10103_v25  ;;  %10364 = vmatmul.bf16.gmra.mxu3 %v10277_v47  ;;  %v10837_v29 = vsel %vm5800_vm1, %v10832_v31, %v10836_v27  ;;  %v10840_v12 = vor.u32 %v10838_v24, %v10836_v27  ;;  %v13771_v5 = vld [vmem:[#allocation2 + $0x10] sm:$0xe]  ;;  %v19219_v25 = vld [vmem:[#allocation2 + $0x18] sm:$0xff]  ;;  %v13692_v31 = vld [vmem:[%s19391_s7 + $0x1e0] sm:$0xff] }
 0xb87   : > { %10928 = vmatmul.bf16.gmra.mxu1 %v10837_v29  ;;  %v10751_v56 = vld [vmem:[#allocation2 + $0x38] sm:$0x1]  ;;  %11190 = vmatpush.bf16.msra.mxu3 %v13679_v19 }
 0xb88   : > { %10150 = vst [vmem:[#allocation2 + $0x30] sm:$0xf] %v10118_v9  ;;  %11527 = vmatpush.bf16.msra.mxu1 %v13698_v26  ;;  %v10794_v40 = vunpack.c.l.b16 %v10751_v56  ;;  %v13691_v26 = vld [vmem:[%s19391_s7 + $0x1d8] sm:$0xff] }
 0xb89   : > { %10151 = vst [vmem:[#allocation2 + $0x34] sm:$0xf] %v10119_v42  ;;  %11398 = vmatpush.bf16.msra.mxu0 %v13692_v31  ;;  %v13678_v42 = vld [vmem:[%s19391_s7 + $0x198] sm:$0xff] }
 0xb8a   : > { %v10801_v61 = vpack.c.b16 %v10794_v40, %v10794_v40 }
 0xb8b   : > { %11191 = vmatpush.bf16.msra.mxu3 %v13678_v42 }
 0xb8c   : > { %11528 = vmatpush.bf16.msra.mxu1 %v13697_v23  ;;  %v10850_v41 = vshll.u32 %v10801_v61, 16  ;;  %v10979_v49 = vrot.slane %v10801_v61, 1  ;;  %v19235_v23 = vld [vmem:[#allocation2 + $0x20] sm:$0xff] }
 0xb8d   : > { %11399 = vmatpush.bf16.msra.mxu0 %v13691_v26  ;;  %v11305_v42 = vshll.u32 %v19235_v23, 16 }
 0xb8e   : > { %v10852_v10 = vrot.slane %v10850_v41, 1 }
 0xb8f   : > { %v10183_v15 = vld [vmem:[#allocation2 + $0x30] sm:$0x1] }
 0xb90   : > { %v13652_v37 = vld [vmem:[#allocation2 + $0x30] sm:$0xff]  ;;  %v10226_v1 = vunpack.c.l.b16 %v10183_v15  ;;  %11529 = vmatpush.bf16.msra.mxu1 %v13696_v2  ;;  %v13638_v2 = vld [vmem:[#allocation2 + $0x28] sm:$0xff] }
 0xb91   : > { %10708 = vmatmul.bf16.vlgmr.msrb.gmra.mxu0 %v13634_v34  ;;  %v10977_v7 = vrot.slane %v13652_v37, 1  ;;  %v10842_v51 = vshll.u32 %v13652_v37, 16  ;;  %v10846_v60 = vshrl.u32 %v13652_v37, 16  ;;  %v13677_v15 = vld [vmem:[%s19391_s7 + $0x190] sm:$0xff] }
 0xb92   : > { %v10233_v54 = vpack.c.b16 %v10226_v1, %v10226_v1  ;;  %11192 = vmatpush.bf16.msra.mxu3 %v13677_v15  ;;  %v13690_v1 = vld [vmem:[%s19391_s7 + $0x1d0] sm:$0xff] }
 0xb93   : > { %v10978_v18 = vsel %vm6140_vm2, %v10975_v17, %v10977_v7  ;;  %v10844_v21 = vrot.slane %v10842_v51, 1  ;;  %v10980_v30 = vsel %vm6140_vm2, %v10977_v7, %v10979_v49  ;;  %v10481_v17 = vrot.slane %v13764_v38, 1  ;;  %11400 = vmatpush.bf16.msra.mxu0 %v13690_v1  ;;  %v13689_v7 = vld [vmem:[%s19391_s7 + $0x1c8] sm:$0xff]  ;;  %v19269_v35 = vld [vmem:[#allocation2 + $0x30] sm:$0xff] }
 0xb94   : > { %v10282_v13 = vshll.u32 %v10233_v54, 16  ;;  %v10492_v59 = vrot.slane %v10233_v54, 1  ;;  %v19249_v51 = vld [vmem:[#allocation2 + $0x28] sm:$0xff]  ;;  %v13688_v54 = vld [vmem:[%s19391_s7 + $0x1c0] sm:$0xff]  ;;  %v13639_v40 = vld [vmem:[#allocation2 + $0x30] sm:$0xff]  ;;  %v11462_v6 = vrot.slane %v19269_v35, 1 }
 0xb95   : > { %11059 = vmatmul.bf16.gmra.mxu2 %v10978_v18  ;;  %v10845_v16 = vsel %vm5800_vm1, %v10840_v12, %v10844_v21  ;;  %v10848_v45 = vor.u32 %v10846_v60, %v10844_v21  ;;  %v10483_v36 = vsel %vm6140_vm2, %v10481_v17, %v10482_v11  ;;  %v11456_v11 = vrot.slane %v19219_v25, 1 }
 0xb96   : > { %v10284_v32 = vrot.slane %v10282_v13, 1  ;;  %v19199_v53 = vsel %vm6140_vm2, %v10490_v43, %v10492_v59  ;;  %v13770_v43 = vld [vmem:[#allocation2 + $0x10] sm:$0xf0]  ;;  %11193 = vmatpush.bf16.msra.mxu3 %v13676_v0  ;;  %v11297_v60 = vshll.u32 %v19219_v25, 16  ;;  %v11290_v17 = vshrl.u32 %v13769_v22, 16 }
 0xb97   : > { %10932 = vmatmul.bf16.gmra.mxu1 %v10845_v16  ;;  %v10853_v4 = vsel %vm5800_vm1, %v10848_v45, %v10852_v10  ;;  %v13772_v28 = vor.u32 %v13771_v5, %v13770_v43  ;;  %11401 = vmatpush.bf16.msra.mxu0 %v13689_v7 }
 0xb98   : > { %v10285_v50 = vsel %vm5800_vm1, %v10280_v8, %v10284_v32  ;;  %v13675_v32 = vld [vmem:[%s19391_s7 + $0x180] sm:$0xff]  ;;  %v11299_v10 = vrot.slane %v11297_v60, 1 }
 0xb99   : > { %10368 = vmatmul.bf16.gmra.mxu3 %v10285_v50  ;;  %v11455_v39 = vrot.slane %v13772_v28, 1 }
 0xb9a   : > { %11194 = vmatpush.bf16.msra.mxu3 %v13675_v32 }
 0xb9b   : > { %v11457_v9 = vsel %vm6140_vm2, %v11455_v39, %v11456_v11  ;;  %11402 = vmatpush.bf16.msra.mxu0 %v13688_v54  ;;  %v11238_v39 = vld [vmem:[#allocation2 + $0x40] sm:$0x1] }
 0xba1   : > { %10712 = vmatmul.bf16.gmra.mxu0 %v13635_v52  ;;  %v11292_v52 = vshll.u32 %v13769_v22, 16  ;;  %v13670_v22 = vld [vmem:[#allocation2 + $0x18] sm:$0xff] }
 0xba3   : > { %v11294_v45 = vrot.slane %v11292_v52, 1 }
 0xba5   : > { %11063 = vmatmul.bf16.gmra.mxu2 %v10980_v30 }
 0xba7   : > { %10936 = vmatmul.bf16.gmra.mxu1 %v10853_v4 }
 0xba9   : > { %10556 = vmatmul.bf16.vlgmr.msrb.gmra.mxu3 %v10483_v36  ;;  %v11295_v36 = vor.u32 %v11294_v45, %v11290_v17 }
 0xbab   : > { %v11300_v19 = vsel %vm5800_vm1, %v11295_v36, %v11299_v10 }
 0xbae   : > { %v10436_v63 = vpop.f32.mrf.mxu0 }
 0xbb1   : > { %10716 = vmatmul.bf16.gmra.mxu0 %v13636_v44 }
 0xbb6   : > { %v10438_v27 = vpop.f32.mrf.mxu0 }
 0xbb7   : > { %11530 = vmatmul.bf16.vlgmr.msra.gmra.mxu1 %v11457_v9  ;;  %v11301_v9 = vshrl.u32 %v19219_v25, 16 }
 0xbb9   : > { %10560 = vmatmul.bf16.gmra.mxu3 %v19087_v14  ;;  %v11458_v14 = vrot.slane %v19235_v23, 1 }
 0xbbb   : > { %v10349_v47 = vpop.f32.mrf.mxu3  ;;  %v11459_v37 = vsel %vm6140_vm2, %v11456_v11, %v11458_v14 }
 0xbbc   : > { %v19230_v29 = vadd.f32 %v10436_v63, %v10349_v47  ;;  %v19282_v63 = vld [vmem:[#allocation2 + $0x38] sm:$0xff]  ;;  %v11281_v47 = vunpack.c.l.b16 %v11238_v39 }
 0xbbe   : > { %v10440_v55 = vpop.f32.mrf.mxu0 }
 0xbc1   : > { %10720 = vmatmul.bf16.gmra.mxu0 %v13637_v48  ;;  %v11303_v48 = vor.u32 %v11301_v9, %v11299_v10 }
 0xbc3   : > { %v10351_v46 = vpop.f32.mrf.mxu3 }
 0xbc4   : > { %v11307_v46 = vrot.slane %v11305_v42, 1 }
 0xbc6   : > { %v10442_v34 = vpop.f32.mrf.mxu0 }
 0xbc7   : > { %11534 = vmatmul.bf16.gmra.mxu1 %v11459_v37  ;;  %v11308_v34 = vsel %vm5800_vm1, %v11303_v48, %v11307_v46 }
 0xbc9   : > { %10564 = vmatmul.bf16.gmra.mxu3 %v19105_v20  ;;  %v11460_v20 = vrot.slane %v19249_v51, 1 }
 0xbcb   : > { %v11461_v21 = vsel %vm6140_vm2, %v11458_v14, %v11460_v20  ;;  %v11463_v3 = vsel %vm6140_vm2, %v11460_v20, %v11462_v6  ;;  %v19295_v14 = vpack.c.b16 %v11281_v47, %v11281_v47 }
 0xbce   : > { %v10444_v24 = vpop.f32.mrf.mxu0 }
 0xbd1   : > { %10724 = vmatmul.bf16.gmra.mxu0 %v13638_v2  ;;  %v11313_v2 = vshll.u32 %v19249_v51, 16 }
 0xbd4   : > { %v19258_v18 = vpop.f32.mrf.mxu1 }
 0xbd6   : > { %v10446_v12 = vpop.f32.mrf.mxu0 }
 0xbd7   : > { %11538 = vmatmul.bf16.gmra.mxu1 %v11461_v21  ;;  %v11309_v21 = vshrl.u32 %v19235_v23, 16 }
 0xbd8   : > { %v19261_v13 = vpop.f32.mrf.mxu2 }
 0xbd9   : > { %10568 = vmatmul.bf16.gmra.mxu3 %v19110_v57  ;;  %v10353_v59 = vpop.f32.mrf.mxu3  ;;  %v11311_v32 = vor.u32 %v11309_v21, %v11307_v46 }
 0xbda   : > { %v19264_v16 = vadd.f32 %v10440_v55, %v10353_v59  ;;  %v11315_v59 = vrot.slane %v11313_v2, 1 }
 0xbdc   : > { %v10919_v8 = vpop.f32.mrf.mxu1 }
 0xbde   : > { %v10448_v56 = vpop.f32.mrf.mxu0 }
 0xbe0   : > { %v11046_v50 = vpop.f32.mrf.mxu2 }
 0xbe1   : > { %v10355_v61 = vpop.f32.mrf.mxu3  ;;  %10728 = vmatmul.bf16.gmra.mxu0 %v13639_v40  ;;  %v11316_v50 = vsel %vm5800_vm1, %v11311_v32, %v11315_v59 }
 0xbe4   : > { %v19272_v57 = vpop.f32.mrf.mxu1 }
 0xbe6   : > { %v10450_v33 = vpop.f32.mrf.mxu0 }
 0xbe7   : > { %11542 = vmatmul.bf16.gmra.mxu1 %v11463_v3  ;;  %v11321_v3 = vshll.u32 %v19269_v35, 16 }
 0xbe8   : > { %v19275_v38 = vpop.f32.mrf.mxu2 }
 0xbe9   : > { %10572 = vmatmul.bf16.gmra.mxu3 %v19170_v58  ;;  %v10357_v41 = vpop.f32.mrf.mxu3  ;;  %v11464_v58 = vrot.slane %v19282_v63, 1  ;;  %v11323_v45 = vrot.slane %v11321_v3, 1 }
 0xbea   : > { %v19279_v49 = vadd.f32 %v10444_v24, %v10357_v41  ;;  %v13669_v24 = vld [vmem:[#allocation2 + $0x10] sm:$0xff]  ;;  %v11317_v41 = vshrl.u32 %v19249_v51, 16 }
 0xbeb   : > { %v11465_v28 = vsel %vm6140_vm2, %v11462_v6, %v11464_v58 }
 0xbec   : > { %v10923_v30 = vpop.f32.mrf.mxu1  ;;  %v11319_v17 = vor.u32 %v11317_v41, %v11315_v59 }
 0xbee   : > { %v10452_v4 = vpop.f32.mrf.mxu0 }
 0xbf0   : > { %v11050_v62 = vpop.f32.mrf.mxu2 }
 0xbf1   : > { %v10359_v43 = vpop.f32.mrf.mxu3  ;;  %11403 = vmatmul.bf16.vlgmr.msra.gmra.mxu0 %v11300_v19 }
 0xbf2   : > { %v13671_v43 = vld [vmem:[#allocation2 + $0x20] sm:$0xff] }
 0xbf4   : > { %v19284_v5 = vpop.f32.mrf.mxu1 }
 0xbf6   : > { %v10454_v44 = vpop.f32.mrf.mxu0 }
 0xbf7   : > { %11546 = vmatmul.bf16.gmra.mxu1 %v11465_v28  ;;  %v11325_v44 = vshrl.u32 %v19269_v35, 16  ;;  %v11329_v28 = vshll.u32 %v19282_v63, 16  ;;  %v11337_v35 = vshll.u32 %v19295_v14, 16 }
 0xbf8   : > { %v19288_v11 = vpop.f32.mrf.mxu2 }
 0xbf9   : > { %10576 = vmatmul.bf16.gmra.mxu3 %v19199_v53  ;;  %v10361_v31 = vpop.f32.mrf.mxu3  ;;  %v11466_v53 = vrot.slane %v19295_v14, 1  ;;  %v11327_v9 = vor.u32 %v11325_v44, %v11323_v45  ;;  %v11339_v2 = vrot.slane %v11337_v35, 1 }
 0xbfa   : > { %v19291_v27 = vadd.f32 %v10448_v56, %v10361_v31 }
 0xbfb   : > { %v11467_v25 = vsel %vm6140_vm2, %v11464_v58, %v11466_v53  ;;  %v11333_v53 = vshrl.u32 %v19282_v63, 16 }
 0xbfc   : > { %v10927_v55 = vpop.f32.mrf.mxu1 }
 0xbfd   : > { %v11331_v55 = vrot.slane %v11329_v28, 1 }
 0xbfe   : > { %v10456_v26 = vpop.f32.mrf.mxu0 }
 0xc00   : > { %v11054_v15 = vpop.f32.mrf.mxu2 }
 0xc01   : > { %v10363_v37 = vpop.f32.mrf.mxu3  ;;  %11407 = vmatmul.bf16.gmra.mxu0 %v11308_v34 }
 0xc02   : > { %v13672_v37 = vld [vmem:[#allocation2 + $0x28] sm:$0xff] }
 0xc04   : > { %v19299_v1 = vpop.f32.mrf.mxu1 }
 0xc06   : > { %v10458_v7 = vpop.f32.mrf.mxu0 }
 0xc07   : > { %11550 = vmatmul.bf16.gmra.mxu1 %v11467_v25 }
 0xc08   : > { %v19302_v54 = vpop.f32.mrf.mxu2 }
 0xc09   : > { %11195 = vmatmul.bf16.vlgmr.msra.gmra.mxu3 %v13669_v24  ;;  %v10365_v0 = vpop.f32.mrf.mxu3  ;;  %v11335_v24 = vor.u32 %v11333_v53, %v11331_v55 }
 0xc0a   : > { %v19305_v20 = vadd.f32 %v10452_v4, %v10365_v0  ;;  %v11324_v4 = vsel %vm5800_vm1, %v11319_v17, %v11323_v45 }
 0xc0b   : > { %v11340_v21 = vsel %vm5800_vm1, %v11335_v24, %v11339_v2 }
 0xc0c   : > { %v10931_v12 = vpop.f32.mrf.mxu1 }
 0xc0e   : > { %v10709_v8 = vpop.f32.mrf.mxu0 }
 0xc10   : > { %v11058_v56 = vpop.f32.mrf.mxu2 }
 0xc11   : > { %v10367_v40 = vpop.f32.mrf.mxu3  ;;  %11411 = vmatmul.bf16.gmra.mxu0 %v11316_v50  ;;  %v13673_v56 = vld [vmem:[#allocation2 + $0x30] sm:$0xff] }
 0xc14   : > { %v19309_v61 = vpop.f32.mrf.mxu1 }
 0xc16   : > { %v10711_v6 = vpop.f32.mrf.mxu0 }
 0xc18   : > { %v19311_v33 = vpop.f32.mrf.mxu2 }
 0xc19   : > { %11199 = vmatmul.bf16.gmra.mxu3 %v13670_v22 }
 0xc1c   : > { %v10369_v52 = vpop.f32.mrf.mxu3  ;;  %v10935_v23 = vpop.f32.mrf.mxu1 }
 0xc1d   : > { %v19314_v60 = vadd.f32 %v10456_v26, %v10369_v52  ;;  %v11332_v26 = vsel %vm5800_vm1, %v11327_v9, %v11331_v55  ;;  %v13674_v52 = vld [vmem:[#allocation2 + $0x38] sm:$0xff] }
 0xc1e   : > { %v10713_v30 = vpop.f32.mrf.mxu0 }
 0xc20   : > { %v11062_v10 = vpop.f32.mrf.mxu2 }
 0xc21   : > { %11415 = vmatmul.bf16.gmra.mxu0 %v11324_v4 }
 0xc24   : > { %v10371_v36 = vpop.f32.mrf.mxu3  ;;  %v19318_v62 = vpop.f32.mrf.mxu1 }
 0xc26   : > { %v10715_v19 = vpop.f32.mrf.mxu0 }
 0xc28   : > { %v19320_v58 = vpop.f32.mrf.mxu2 }
 0xc29   : > { %11203 = vmatmul.bf16.gmra.mxu3 %v13671_v43 }
 0xc2c   : > { %v10557_v51 = vpop.f32.mrf.mxu3  ;;  %v10939_v31 = vpop.f32.mrf.mxu1 }
 0xc2d   : > { %v10581_v39 = vadd.f32 %v10557_v51, %v19230_v29 }
 0xc2e   : > { %v10717_v47 = vpop.f32.mrf.mxu0 }
 0xc2f   : > { %v10733_v42 = vadd.f32 %v10709_v8, %v10581_v39 }
 0xc30   : > { %v11066_v48 = vpop.f32.mrf.mxu2 }
 0xc31   : > { %11419 = vmatmul.bf16.gmra.mxu0 %v11332_v26 }
 0xc34   : > { %v10559_v46 = vpop.f32.mrf.mxu3  ;;  %v19326_v15 = vpop.f32.mrf.mxu1 }
 0xc36   : > { %v10719_v34 = vpop.f32.mrf.mxu0 }
 0xc39   : > { %11207 = vmatmul.bf16.gmra.mxu3 %v13672_v37  ;;  %v10941_v37 = vadd.f32 %v19258_v18, %v10733_v42  ;;  %v13862_v18 = vld [vmem:[%s19392_s8] ss:$0 sm:$0xff] }
 0xc3b   : > { %v11068_v35 = vadd.f32 %v19261_v13, %v10941_v37 }
 0xc3c   : > { %v10561_v29 = vpop.f32.mrf.mxu3  ;;  %v11533_v25 = vpop.f32.mrf.mxu1 }
 0xc3d   : > { %v10582_v7 = vadd.f32 %v10561_v29, %v19264_v16 }
 0xc3e   : > { %v10721_v12 = vpop.f32.mrf.mxu0 }
 0xc3f   : > { %v10734_v0 = vadd.f32 %v10713_v30, %v10582_v7 }
 0xc41   : > { %11423 = vmatmul.bf16.gmra.mxu0 %v11340_v21 }
 0xc44   : > { %v10563_v59 = vpop.f32.mrf.mxu3  ;;  %v11535_v8 = vpop.f32.mrf.mxu1 }
 0xc46   : > { %v10723_v32 = vpop.f32.mrf.mxu0 }
 0xc49   : > { %11211 = vmatmul.bf16.gmra.mxu3 %v13673_v56 }
 0xc4c   : > { %v10565_v50 = vpop.f32.mrf.mxu3  ;;  %v11537_v63 = vpop.f32.mrf.mxu1 }
 0xc4d   : > { %v10583_v14 = vadd.f32 %v10565_v50, %v19279_v49 }
 0xc4e   : > { %v10725_v6 = vpop.f32.mrf.mxu0 }
 0xc4f   : > { %v10735_v40 = vadd.f32 %v10717_v47, %v10583_v14 }
 0xc54   : > { %v10567_v16 = vpop.f32.mrf.mxu3  ;;  %v11539_v22 = vpop.f32.mrf.mxu1 }
 0xc56   : > { %v10727_v3 = vpop.f32.mrf.mxu0 }
 0xc59   : > { %11215 = vmatmul.bf16.gmra.mxu3 %v13674_v52 }
 0xc5c   : > { %v10569_v23 = vpop.f32.mrf.mxu3  ;;  %v11541_v45 = vpop.f32.mrf.mxu1 }
 0xc5d   : > { %v10584_v41 = vadd.f32 %v10569_v23, %v19291_v27 }
 0xc5e   : > { %v10729_v17 = vpop.f32.mrf.mxu0 }
 0xc5f   : > { %v10736_v30 = vadd.f32 %v10721_v12, %v10584_v41  ;;  %v10942_v12 = vadd.f32 %v19272_v57, %v10734_v0  ;;  %v10943_v57 = vadd.f32 %v19284_v5, %v10735_v40 }
 0xc64   : > { %v10571_v10 = vpop.f32.mrf.mxu3  ;;  %v11543_v4 = vpop.f32.mrf.mxu1 }
 0xc66   : > { %v10731_v36 = vpop.f32.mrf.mxu0 }
 0xc6c   : > { %v10573_v19 = vpop.f32.mrf.mxu3  ;;  %v11545_v43 = vpop.f32.mrf.mxu1 }
 0xc6d   : > { %v10585_v49 = vadd.f32 %v10573_v19, %v19305_v20 }
 0xc6e   : > { %v11404_v28 = vpop.f32.mrf.mxu0 }
 0xc6f   : > { %v10737_v44 = vadd.f32 %v10725_v6, %v10585_v49 }
 0xc74   : > { %v10575_v51 = vpop.f32.mrf.mxu3  ;;  %v11547_v39 = vpop.f32.mrf.mxu1 }
 0xc76   : > { %v11406_v31 = vpop.f32.mrf.mxu0 }
 0xc7c   : > { %v10577_v9 = vpop.f32.mrf.mxu3  ;;  %v11549_v55 = vpop.f32.mrf.mxu1 }
 0xc7d   : > { %v10586_v47 = vadd.f32 %v10577_v9, %v19314_v60  ;;  %v11069_v60 = vadd.f32 %v19275_v38, %v10942_v12  ;;  %v11070_v38 = vadd.f32 %v19288_v11, %v10943_v57  ;;  %v10945_v9 = vadd.f32 %v19309_v61, %v10737_v44 }
 0xc7e   : > { %v11408_v48 = vpop.f32.mrf.mxu0 }
 0xc7f   : > { %v10738_v27 = vadd.f32 %v10729_v17, %v10586_v47 }
 0xc84   : > { %v10579_v26 = vpop.f32.mrf.mxu3  ;;  %v11551_v46 = vpop.f32.mrf.mxu1 }
 0xc86   : > { %v11410_v34 = vpop.f32.mrf.mxu0 }
 0xc87   : > { %v10946_v34 = vadd.f32 %v19318_v62, %v10738_v27 }
 0xc8c   : > { %v11196_v20 = vpop.f32.mrf.mxu3  ;;  %v11553_v29 = vpop.f32.mrf.mxu1 }
 0xc8d   : > { %v11220_v53 = vadd.f32 %v11196_v20, %v11068_v35 }
 0xc8e   : > { %v11412_v25 = vpop.f32.mrf.mxu0 }
 0xc8f   : > { %v11428_v7 = vadd.f32 %v11404_v28, %v11220_v53 }
 0xc91   : > { %v11555_v32 = vadd.f32 %v19326_v15, %v11428_v7 }
 0xc93   : > { %v11565_v50 = vadd.f32 %v13862_v18, %v11555_v32 }
 0xc94   : > { %v11198_v24 = vpop.f32.mrf.mxu3 }
 0xc96   : > { %v11414_v2 = vpop.f32.mrf.mxu0 }
 0xc9c   : > { %v11200_v21 = vpop.f32.mrf.mxu3 }
 0xc9d   : > { %v11221_v59 = vadd.f32 %v11200_v21, %v11069_v60 }
 0xc9e   : > { %v11416_v42 = vpop.f32.mrf.mxu0 }
 0xc9f   : > { %v11429_v13 = vadd.f32 %v11408_v48, %v11221_v59 }
 0xca1   : > { %v11556_v56 = vadd.f32 %v11535_v8, %v11429_v13  ;;  %v10944_v8 = vadd.f32 %v19299_v1, %v10736_v30 }
 0xca3   : > { %v11566_v14 = vadd.f32 %v13862_v18, %v11556_v56  ;;  %v11071_v36 = vadd.f32 %v19302_v54, %v10944_v8 }
 0xca4   : > { %v11202_v63 = vpop.f32.mrf.mxu3 }
 0xca5   : > { %v11571_v6 = vmax.f32 %v11565_v50, %v11566_v14 }
 0xca6   : > { %v11418_v16 = vpop.f32.mrf.mxu0 }
 0xcac   : > { %v11204_v0 = vpop.f32.mrf.mxu3 }
 0xcad   : > { %v11222_v3 = vadd.f32 %v11204_v0, %v11070_v38 }
 0xcae   : > { %v11420_v15 = vpop.f32.mrf.mxu0 }
 0xcaf   : > { %v11430_v52 = vadd.f32 %v11412_v25, %v11222_v3 }
 0xcb1   : > { %v11557_v23 = vadd.f32 %v11539_v22, %v11430_v52  ;;  %v11072_v22 = vadd.f32 %v19311_v33, %v10945_v9 }
 0xcb3   : > { %v11567_v41 = vadd.f32 %v13862_v18, %v11557_v23 }
 0xcb4   : > { %v11206_v45 = vpop.f32.mrf.mxu3 }
 0xcb5   : > { %v11572_v17 = vmax.f32 %v11571_v6, %v11567_v41 }
 0xcb6   : > { %v11422_v10 = vpop.f32.mrf.mxu0 }
 0xcbc   : > { %v11208_v19 = vpop.f32.mrf.mxu3 }
 0xcbd   : > { %v11223_v49 = vadd.f32 %v11208_v19, %v11071_v36 }
 0xcbe   : > { %v11424_v28 = vpop.f32.mrf.mxu0 }
 0xcbf   : > { %v11431_v43 = vadd.f32 %v11416_v42, %v11223_v49 }
 0xcc1   : > { %v11558_v5 = vadd.f32 %v11543_v4, %v11431_v43  ;;  %v11073_v4 = vadd.f32 %v19320_v58, %v10946_v34 }
 0xcc3   : > { %v11568_v40 = vadd.f32 %v13862_v18, %v11558_v5 }
 0xcc4   : > { %v11210_v11 = vpop.f32.mrf.mxu3 }
 0xcc5   : > { %v11573_v51 = vmax.f32 %v11572_v17, %v11568_v40 }
 0xcc6   : > { %v11426_v31 = vpop.f32.mrf.mxu0 }
 0xccc   : > { %v11212_v47 = vpop.f32.mrf.mxu3 }
 0xccd   : > { %v11224_v55 = vadd.f32 %v11212_v47, %v11072_v22 }
 0xccf   : > { %v11432_v48 = vadd.f32 %v11420_v15, %v11224_v55 }
 0xcd1   : > { %v11559_v26 = vadd.f32 %v11547_v39, %v11432_v48 }
 0xcd3   : > { %v11569_v1 = vadd.f32 %v13862_v18, %v11559_v26 }
 0xcd4   : > { %v11214_v54 = vpop.f32.mrf.mxu3 }
 0xcd5   : > { %v11574_v30 = vmax.f32 %v11573_v51, %v11569_v1 }
 0xcdc   : > { %v11216_v37 = vpop.f32.mrf.mxu3 }
 0xcdd   : > { %v11225_v35 = vadd.f32 %v11216_v37, %v11073_v4 }
 0xcdf   : > { %v11433_v20 = vadd.f32 %v11424_v28, %v11225_v35 }
 0xce1   : > { %v11560_v53 = vadd.f32 %v11551_v46, %v11433_v20 }
 0xce3   : > { %v11570_v61 = vadd.f32 %v13862_v18, %v11560_v53 }
 0xce4   : > { %v11218_v33 = vpop.f32.mrf.mxu3 }
 0xce5   : > { %v11575_v44 = vmax.f32 %v11574_v30, %v11570_v61 }
 0xce7   : > { %v11577_v29 = vsel %vm11576_vm3, %v11575_v44, -inf }
 0xce8   : > { %v11578_v7 = vrot.slane %v11577_v29, 4 }
 0xcea   : > { %v11579_v39 = vmax.f32 %v11577_v29, %v11578_v7 }
 0xcec   : > { %v11580_v25 = vrot.slane %v11579_v39, 2 }
 0xcee   : > { %v11581_v62 = vmax.f32 %v11579_v39, %v11580_v25 }
 0xcf0   : > { %v11582_v58 = vrot.slane %v11581_v62, 1 }
 0xcf2   : > { %v11583_v27 = vmax.f32 %v11581_v62, %v11582_v58 }
 0xcf4   : > { %11585 = vst.msk [vmem:[%s324_s22] sm:$0x1] %vm11584_vm4, %v11583_v27 }
 0xcf5   : > { %13969 = shalt.err (!%p13966_p3)
}
 0xcf6   : > { %13790 = dma.vmem_to_hbm [thread:$0]  (%p14096_p5), %s11598_s23, 16, %s11600_s24, %s11587_s26  }
 0xcf7 PF: > { %p13796_p4 = scmp.ge.s32.totalorder %s14004_s12, 2  ;;  %s11611_s29 = sand.u32 1, %s13992_s30  }
 0xcf8   : > { %s11612_s21 = scalar_lea.sflag [#allocation4], %s11611_s29 }
 0xcf9   : > { %p13793_p7 = pnand %p13796_p4, %p14100_p6 }
 0xcfb   : > { %p13794_p8 = pneg %p13793_p7 }
 0xcfd   : > { %13987 = dma.done.wait (%p13794_p8), %s11612_s21, 16  }
 0xcfe   : > { %13989 = vsyncadd (%p13794_p8), %s11612_s21, 4294967280  ;;  %p19_p9 = scmp.ge.s32.totalorder %s14083_s15, 4   ;;  %s20214_s30 = smov %s13996_s10 }
 0xcff   : > { %s20215_s10 = smov %s14000_s11  ;;  %s20216_s11 = smov %s14094_s18 }
 0xd00   : > { %s20217_s12 = smov %s14083_s15  ;;  %21 = sbr.rel (!%p19_p9) target bundleno = 3 (0x3), region = 139 }
 0xd05   :  { %11617 = vsyncpa [#allocation4], 1 }
 0xd06   :  { %11619 = vsyncpa [#allocation4 + $0x1], 1 }

</bundles_post_ra>
